<compile_context>
chip_gen: v6e
topology: v6e:2x2x1
jax: 0.10.0
libtpu: 0.0.40
codegen_flags: <defaults>
</compile_context>

<pallas_src>
import functools

import numpy as np
import jax
import jax.numpy as jnp
from jax.experimental import pallas as pl
from jax.experimental.pallas import tpu as pltpu


# ---------------------------------------------------------------------------
# Recurrence kernel: chunked ODE-Euler step + GRU_with_std update.
# ---------------------------------------------------------------------------

_REC_W_ORDER = [
    "ode_w1", "ode_b1", "ode_w2", "ode_b2",
    "gw1_hs", "ns_w1_hs",
    "xproj_w", "xproj_b",
    "ur_w2", "ur_b2",
    "ns_w2", "ns_b2",
]


def ode_gru_chunk_kernel(
    dts_ref,                                  # (T_pad,) f32 in SMEM
    x_ref,                                    # (t_chunk*B, X) VMEM
    ode_w1, ode_b1, ode_w2, ode_b2,           # diffeq_solver.diff_func MLP
    gw1_hs, ns_w1_hs,                         # layer-1 [h|h_std] stacked weights
    xproj_w, xproj_b,                         # fused x projection (gate + new_state)
    ur_w2, ur_b2,                             # block-diag fused gate second layer
    ns_w2, ns_b2,                             # new_state_net second layer
    h_out_ref,                                # (t_chunk, B, H) bf16 output block
    xproj_ref,                                # (t_chunk*B, 3*n_gru) f32 VMEM scratch
    h_ref, hstd_ref,                          # (B, H) f32 VMEM scratch (persist over grid)
    *, t_chunk):
    c = pl.program_id(0)
    B, H = h_ref.shape

    @pl.when(c == 0)
    def _():
        h_ref[...] = jnp.zeros_like(h_ref)
        hstd_ref[...] = jnp.zeros_like(hstd_ref)

    def mm(a_f32, w_bf16):
        # bf16 MXU inputs, f32 accumulation.
        return jnp.dot(a_f32.astype(jnp.bfloat16), w_bf16,
                       preferred_element_type=jnp.float32)

    # Hoist weight loads and bias broadcasts out of the unrolled time loop.
    w_ode1 = ode_w1[...]
    w_ode2 = ode_w2[...]
    w_g1 = gw1_hs[...]              # (2H, 2*n_gru)
    w_n1 = ns_w1_hs[...]            # (2H, n_gru)
    w_ur2 = ur_w2[...]              # (2*n_gru, 2H) block-diagonal
    w_ns2 = ns_w2[...]              # (n_gru, 2H)
    n2 = w_g1.shape[1]              # 2*n_gru

    def bcast(b_ref, rows):
        return jnp.broadcast_to(b_ref[...], (rows, b_ref.shape[-1]))

    b_ode1 = bcast(ode_b1, B)
    b_ode2 = bcast(ode_b2, B)
    b_ur2 = bcast(ur_b2, B)
    b_ns2 = bcast(ns_b2, B)

    # Hoist the state-independent x projections (incl. their layer-1 biases)
    # off the serial critical path: one batched matmul per chunk.
    xproj_ref[...] = mm(x_ref[...], xproj_w[...]) + bcast(xproj_b, x_ref.shape[0])

    def step(i, carry):
        h, h_std = carry
        dt = dts_ref[c * t_chunk + i]

        # Explicit-Euler ODE transition: h_ode = h + diff_func(h) * dt
        f = jnp.tanh(mm(h, w_ode1) + b_ode1)
        f = mm(f, w_ode2) + b_ode2
        h_ode = h + f * dt

        # Precomputed x terms for this step (already include layer-1 biases).
        row = pl.multiple_of(i * B, B)
        xp = xproj_ref[pl.ds(row, B), :]        # (B, 3*n_gru)
        xg = xp[:, :n2]                         # fused update/reset gate x term
        xn = xp[:, n2:]                         # new_state_net x term

        # GRU_with_std(h_ode, h_std, x):
        hs = jnp.concatenate([h_ode, h_std], axis=-1)        # (B, 2H) lane concat
        g1 = jnp.tanh(mm(hs, w_g1) + xg)                     # (B, 2*n_gru)
        ur = jax.nn.sigmoid(mm(g1, w_ur2) + b_ur2)           # (B, 2H): [u | r]
        u = ur[:, :H]
        r = ur[:, H:]

        hs_r = jnp.concatenate([h_ode * r, h_std * r], axis=-1)
        n1 = jnp.tanh(mm(hs_r, w_n1) + xn)                   # (B, n_gru)
        nsm = mm(n1, w_ns2) + b_ns2                          # (B, 2H): [mean | std]
        new_state = nsm[:, :H]
        new_state_std = jnp.abs(nsm[:, H:])

        new_h = (1.0 - u) * new_state + u * h_ode
        new_h_std = jnp.abs((1.0 - u) * new_state_std + u * h_std)

        h_out_ref[i] = new_h.astype(h_out_ref.dtype)
        return (new_h, new_h_std)

    h_fin, s_fin = jax.lax.fori_loop(
        0, t_chunk, step, (h_ref[...], hstd_ref[...]), unroll=True)
    h_ref[...] = h_fin
    hstd_ref[...] = s_fin


def run_ode_rnn(x_tbx, dts, prep, h_dims, t_chunk):
    """x_tbx: (T_pad, B, X) merged observations; dts: (T_pad,) Euler step sizes."""
    T, B, X = x_tbx.shape
    assert T % t_chunk == 0
    H = h_dims
    n_gru = prep["ns_w1_hs"].shape[1]
    weights = [prep[k] for k in _REC_W_ORDER]
    x_flat = x_tbx.reshape(T * B, X)

    def full_spec(a):
        nd = a.ndim
        return pl.BlockSpec(a.shape, lambda c, _nd=nd: (0,) * _nd)

    in_specs = (
        [pl.BlockSpec(memory_space=pltpu.MemorySpace.SMEM)]          # dts, whole array
        + [pl.BlockSpec((t_chunk * B, X), lambda c: (c, 0))]         # observation chunk
        + [full_spec(w) for w in weights]                            # resident weights
    )
    out_spec = pl.BlockSpec((t_chunk, B, H), lambda c: (c, 0, 0))

    grid_spec = pltpu.PrefetchScalarGridSpec(
        num_scalar_prefetch=0,
        grid=(T // t_chunk,),
        in_specs=in_specs,
        out_specs=out_spec,
        scratch_shapes=[pltpu.VMEM((t_chunk * B, 3 * n_gru), jnp.float32),
                        pltpu.VMEM((B, H), jnp.float32),
                        pltpu.VMEM((B, H), jnp.float32)],
    )

    fn = pl.pallas_call(
        functools.partial(ode_gru_chunk_kernel, t_chunk=t_chunk),
        out_shape=jax.ShapeDtypeStruct((T, B, H), jnp.bfloat16),
        grid_spec=grid_spec,
        compiler_params=pltpu.CompilerParams(dimension_semantics=("arbitrary",)),
    )
    return fn(dts, x_flat, *weights)


# ---------------------------------------------------------------------------
# output_net, batched over all requested (time, batch) rows in one call.
# ---------------------------------------------------------------------------

def output_net_kernel(h_ref, w1, b1, w2, b2, y_ref):
    hb = h_ref[...].astype(jnp.bfloat16)
    z = jnp.tanh(jnp.dot(hb, w1[...], preferred_element_type=jnp.float32) + b1[...])
    y = jnp.dot(z.astype(jnp.bfloat16), w2[...],
                preferred_element_type=jnp.float32) + b2[...]
    y_ref[...] = y.astype(y_ref.dtype)


def run_output_net(h2d, prep, y_dims):
    M, _ = h2d.shape
    args = [h2d, prep["out_w1"], prep["out_b1"], prep["out_w2"], prep["out_b2"]]

    def full_spec(a):
        nd = a.ndim
        return pl.BlockSpec(a.shape, lambda i, _nd=nd: (0,) * _nd)

    fn = pl.pallas_call(
        output_net_kernel,
        out_shape=jax.ShapeDtypeStruct((M, y_dims), jnp.float32),
        grid_spec=pltpu.PrefetchScalarGridSpec(
            num_scalar_prefetch=0,
            grid=(1,),
            in_specs=[full_spec(a) for a in args],
            out_specs=pl.BlockSpec((M, y_dims), lambda i: (0, 0)),
        ),
        compiler_params=pltpu.CompilerParams(dimension_semantics=("arbitrary",)),
    )
    return fn(*args)


# ---------------------------------------------------------------------------
# Host-side parameter prep / glue (mirrors Recurrent.forward, ODE_RNN branch).
# ---------------------------------------------------------------------------

def prep_params(params, h_dims):
    """Fuse/split/cast raw (PyTorch-layout) params into kernel-ready form."""
    H = h_dims
    n_gru = params["ug_w2"].shape[0]
    bf = lambda w: w.astype(jnp.bfloat16)

    # Fuse update + reset gate layer 1 along output columns.
    gw1 = jnp.concatenate([params["ug_w1"], params["rg_w1"]], axis=1)   # (2H+X, 2*n_gru)
    gb1 = jnp.concatenate([params["ug_b1"], params["rg_b1"]], axis=1)   # (1, 2*n_gru)
    nsw1 = params["ns_w1"]                                              # (2H+X, n_gru)

    # Fuse the two x projections (gate + new_state) into one weight/bias.
    xproj_w = jnp.concatenate([gw1[2 * H:], nsw1[2 * H:]], axis=1)      # (X, 3*n_gru)
    xproj_b = jnp.concatenate([gb1, params["ns_b1"]], axis=1)           # (1, 3*n_gru)

    # Block-diagonal fused gate second layer: [[ug_w2, 0], [0, rg_w2]].
    zeros = jnp.zeros((n_gru, H), jnp.float32)
    ur_w2 = jnp.concatenate(
        [jnp.concatenate([params["ug_w2"], zeros], axis=1),
         jnp.concatenate([zeros, params["rg_w2"]], axis=1)], axis=0)    # (2*n_gru, 2H)
    ur_b2 = jnp.concatenate([params["ug_b2"], params["rg_b2"]], axis=1) # (1, 2H)

    return dict(
        ode_w1=bf(params["ode_w1"]), ode_b1=params["ode_b1"],
        ode_w2=bf(params["ode_w2"]), ode_b2=params["ode_b2"],
        gw1_hs=bf(gw1[:2 * H]),                 # (2H, 2*n_gru)
        ns_w1_hs=bf(nsw1[:2 * H]),              # (2H, n_gru)
        xproj_w=bf(xproj_w), xproj_b=xproj_b,
        ur_w2=bf(ur_w2), ur_b2=ur_b2,
        ns_w2=bf(params["ns_w2"]), ns_b2=params["ns_b2"],
        out_w1=bf(params["out_w1"]), out_b1=params["out_b1"],
        out_w2=bf(params["out_w2"]), out_b2=params["out_b2"],
    )


def recurrent_forward(y_time, x_data, x_time, x_mask, params, h_dims, y_dims,
                      t_chunk=16):
    """Mirrors Recurrent.forward (using == 'ODE_RNN'). Time merging on host."""
    x_time = np.atleast_1d(np.asarray(x_time, np.float32))
    y_time = np.atleast_1d(np.asarray(y_time, np.float32))
    all_t = np.concatenate([x_time, y_time])
    # NOTE: np.unique on float32 timestamps requires exact equality for reuse.
    uniq, inv = np.unique(all_t, return_inverse=True)
    x_time_index = inv[: len(x_time)]
    y_time_index = inv[len(x_time):]

    x = np.asarray(x_data, np.float32)
    if x_mask is not None:
        x = x * np.asarray(x_mask, np.float32)
    B, _, X = x.shape
    T = len(uniq)
    T_pad = int(np.ceil(T / t_chunk)) * t_chunk

    # Time-major merged observations, padded along time.
    x_merged = np.zeros((T_pad, B, X), np.float32)
    for i, idx in enumerate(x_time_index):
        x_merged[idx, :, :] = x[:, i, :]

    # Per-step Euler dt, reproducing the (prev_ti, ti) bookkeeping in run_ODE_RNN:
    #   iter 0: prev_ti = t[-1] + 0.01, ti = t[-1]      -> dt = -0.01
    #   iter 1: prev_ti = t[0],          ti = t[-1]     -> dt = t[-1] - t[0]
    #   iter i>=2: prev_ti = t[i-1],     ti = t[i-2]    -> dt = t[i-2] - t[i-1]
    dts = np.zeros((T_pad,), np.float32)           # padded steps: dt = 0
    dts[0] = -0.01
    if T >= 2:
        dts[1] = uniq[-1] - uniq[0]
    for i in range(2, T):
        dts[i] = uniq[i - 2] - uniq[i - 1]

    prep = prep_params(params, h_dims)
    x_tbx = jnp.asarray(x_merged)
    dts_j = jnp.asarray(dts)

    # Sequential recurrence -> hidden states per step (output_net hoisted off it).
    h_all = run_ode_rnn(x_tbx, dts_j, prep, h_dims, t_chunk)     # (T_pad, B, H) bf16

    # output_net only at the requested prediction times, as one batched matmul.
    h_sel = h_all[np.asarray(y_time_index)]                      # (T_y, B, H)
    T_y = h_sel.shape[0]
    y_flat = run_output_net(h_sel.reshape(T_y * B, h_dims), prep, y_dims)
    y_pred = jnp.transpose(y_flat.reshape(T_y, B, y_dims), (1, 0, 2))   # (B, T_y, Y)

    return y_pred, x_tbx, dts_j, h_all, np.asarray(y_time_index), prep


# ---------------------------------------------------------------------------
# Pure-JAX UNFUSED reference (mirrors the torch GRU_with_std / run_ODE_RNN
# math directly from the raw params) for validating the fused kernel.
# ---------------------------------------------------------------------------

def reference_recurrence(x_tbx, dts, params, h_dims):
    T, B, _ = x_tbx.shape
    H = h_dims

    def lin(a, w, b):
        return jnp.dot(a.astype(jnp.bfloat16), w.astype(jnp.bfloat16),
                       preferred_element_type=jnp.float32) + b

    h = jnp.zeros((B, H), jnp.float32)
    s = jnp.zeros((B, H), jnp.float32)
    hs = []
    for t in range(T):
        xi = x_tbx[t]
        f = jnp.tanh(lin(h, params["ode_w1"], params["ode_b1"]))
        f = lin(f, params["ode_w2"], params["ode_b2"])
        h_ode = h + f * dts[t]
        yc = jnp.concatenate([h_ode, s, xi], axis=-1)
        u = jax.nn.sigmoid(lin(jnp.tanh(lin(yc, params["ug_w1"], params["ug_b1"])),
                               params["ug_w2"], params["ug_b2"]))
        r = jax.nn.sigmoid(lin(jnp.tanh(lin(yc, params["rg_w1"], params["rg_b1"])),
                               params["rg_w2"], params["rg_b2"]))
        cc = jnp.concatenate([h_ode * r, s * r, xi], axis=-1)
        nsm = lin(jnp.tanh(lin(cc, params["ns_w1"], params["ns_b1"])),
                  params["ns_w2"], params["ns_b2"])
        new_state = nsm[:, :H]
        new_state_std = jnp.abs(nsm[:, H:])
        h = (1.0 - u) * new_state + u * h_ode
        s = jnp.abs((1.0 - u) * new_state_std + u * s)
        hs.append(h)
    return jnp.stack(hs, 0)


def reference_output(h2d, prep):
    def mm(a, w):
        return jnp.dot(a.astype(jnp.bfloat16), w, preferred_element_type=jnp.float32)
    z = jnp.tanh(mm(h2d, prep["out_w1"]) + prep["out_b1"])
    return mm(z, prep["out_w2"]) + prep["out_b2"]


# ---------------------------------------------------------------------------
# Parameter init (utils.init_network_weights: normal(std=0.1), zero biases).
# ---------------------------------------------------------------------------

def init_params(key, x_dims, h_dims, y_dims, n_gru, n_out, n_ode):
    shapes = {
        "ode_w1": (h_dims, n_ode), "ode_b1": (1, n_ode),
        "ode_w2": (n_ode, h_dims), "ode_b2": (1, h_dims),
        "ug_w1": (2 * h_dims + x_dims, n_gru), "ug_b1": (1, n_gru),
        "ug_w2": (n_gru, h_dims), "ug_b2": (1, h_dims),
        "rg_w1": (2 * h_dims + x_dims, n_gru), "rg_b1": (1, n_gru),
        "rg_w2": (n_gru, h_dims), "rg_b2": (1, h_dims),
        "ns_w1": (2 * h_dims + x_dims, n_gru), "ns_b1": (1, n_gru),
        "ns_w2": (n_gru, 2 * h_dims), "ns_b2": (1, 2 * h_dims),
        "out_w1": (h_dims, n_out), "out_b1": (1, n_out),
        "out_w2": (n_out, y_dims), "out_b2": (1, y_dims),
    }
    params = {}
    for name, shape in shapes.items():
        key, sub = jax.random.split(key)
        if "_b" in name:
            params[name] = jnp.zeros(shape, jnp.float32)
        else:
            params[name] = 0.1 * jax.random.normal(sub, shape, jnp.float32)
    return params


if __name__ == "__main__":
    B, X, H, Y = 8, 4, 16, 3
    N_GRU, N_OUT, N_ODE = 128, 64, 64      # n_gru = 128 -> lane-aligned fusions
    T_X, T_Y = 24, 6
    T_CHUNK = 16                           # -> 2 grid chunks for T_pad = 32

    key = jax.random.PRNGKey(0)
    key, kp, kx = jax.random.split(key, 3)
    params = init_params(kp, X, H, Y, N_GRU, N_OUT, N_ODE)

    x_data = jax.random.normal(kx, (B, T_X, X), jnp.float32)
    x_time = np.linspace(0.0, 1.0, T_X).astype(np.float32)
    y_time = np.array([0.05, float(x_time[5]), 0.33, 0.61, 0.77, 0.98],
                      np.float32)[:T_Y]
    x_mask = (np.arange(B * T_X * X).reshape(B, T_X, X) % 5 != 0).astype(np.float32)

    y_pred, x_tbx, dts, h_all, y_idx, prep = recurrent_forward(
        y_time, np.asarray(x_data), x_time, x_mask, params, H, Y, t_chunk=T_CHUNK)
    y_pred = jax.block_until_ready(y_pred)
    h_all = jax.block_until_ready(h_all)

    # Validate fused kernel recurrence + gathered outputs against the unfused
    # pure-JAX mirror of the torch module (bf16 matmul inputs, f32 state).
    ref_h = reference_recurrence(x_tbx, dts, params, H)
    np.testing.assert_allclose(np.asarray(h_all.astype(jnp.float32)),
                               np.asarray(ref_h), rtol=2e-2, atol=2e-2)

    ref_y_flat = reference_output(ref_h[y_idx].reshape(len(y_idx) * B, H), prep)
    ref_y = jnp.transpose(ref_y_flat.reshape(len(y_idx), B, Y), (1, 0, 2))
    np.testing.assert_allclose(np.asarray(y_pred), np.asarray(ref_y),
                               rtol=2e-2, atol=2e-2)

    assert y_pred.shape == (B, len(y_time), Y)
    print("KERNEL_OK")
</pallas_src>

<mosaic_0001>
module attributes {stable_mosaic.version = 11 : i64} {
  func.func @ode_gru_chunk_kernel(%arg0: i32, %arg1: memref<32xf32, #tpu.memory_space<smem>>, %arg2: memref<128x4xf32, #tpu.memory_space<vmem>>, %arg3: memref<16x64xbf16, #tpu.memory_space<vmem>>, %arg4: memref<1x64xf32, #tpu.memory_space<vmem>>, %arg5: memref<64x16xbf16, #tpu.memory_space<vmem>>, %arg6: memref<1x16xf32, #tpu.memory_space<vmem>>, %arg7: memref<32x256xbf16, #tpu.memory_space<vmem>>, %arg8: memref<32x128xbf16, #tpu.memory_space<vmem>>, %arg9: memref<4x384xbf16, #tpu.memory_space<vmem>>, %arg10: memref<1x384xf32, #tpu.memory_space<vmem>>, %arg11: memref<256x32xbf16, #tpu.memory_space<vmem>>, %arg12: memref<1x32xf32, #tpu.memory_space<vmem>>, %arg13: memref<128x32xbf16, #tpu.memory_space<vmem>>, %arg14: memref<1x32xf32, #tpu.memory_space<vmem>>, %arg15: memref<16x8x16xbf16, #tpu.memory_space<vmem>>, %arg16: memref<128x384xf32, #tpu.memory_space<vmem>>, %arg17: memref<8x16xf32, #tpu.memory_space<vmem>>, %arg18: memref<8x16xf32, #tpu.memory_space<vmem>>) attributes {dimension_semantics = [#tpu.dimension_semantics<arbitrary>], iteration_bounds = array<i64: 2>, scalar_prefetch = 0 : i64, scratch_operands = 3 : i64, tpu.core_type = #tpu.core_type<tc>, window_params = [{transform_indices = @transform_0, window_bounds = array<i64: 32>}, {transform_indices = @transform_1, window_bounds = array<i64: 128, 4>}, {pipeline_mode = #tpu.pipeline_mode<synchronous>, transform_indices = @transform_2, window_bounds = array<i64: 16, 64>}, {pipeline_mode = #tpu.pipeline_mode<synchronous>, transform_indices = @transform_3, window_bounds = array<i64: 1, 64>}, {pipeline_mode = #tpu.pipeline_mode<synchronous>, transform_indices = @transform_4, window_bounds = array<i64: 64, 16>}, {pipeline_mode = #tpu.pipeline_mode<synchronous>, transform_indices = @transform_5, window_bounds = array<i64: 1, 16>}, {pipeline_mode = #tpu.pipeline_mode<synchronous>, transform_indices = @transform_6, window_bounds = array<i64: 32, 256>}, {pipeline_mode = #tpu.pipeline_mode<synchronous>, transform_indices = @transform_7, window_bounds = array<i64: 32, 128>}, {pipeline_mode = #tpu.pipeline_mode<synchronous>, transform_indices = @transform_8, window_bounds = array<i64: 4, 384>}, {pipeline_mode = #tpu.pipeline_mode<synchronous>, transform_indices = @transform_9, window_bounds = array<i64: 1, 384>}, {pipeline_mode = #tpu.pipeline_mode<synchronous>, transform_indices = @transform_10, window_bounds = array<i64: 256, 32>}, {pipeline_mode = #tpu.pipeline_mode<synchronous>, transform_indices = @transform_11, window_bounds = array<i64: 1, 32>}, {pipeline_mode = #tpu.pipeline_mode<synchronous>, transform_indices = @transform_12, window_bounds = array<i64: 128, 32>}, {pipeline_mode = #tpu.pipeline_mode<synchronous>, transform_indices = @transform_13, window_bounds = array<i64: 1, 32>}, {transform_indices = @transform_14, window_bounds = array<i64: 16, 8, 16>}]} {
    %c0_i32 = arith.constant 0 : i32
    %0 = arith.cmpi eq, %arg0, %c0_i32 : i32
    %1 = arith.extui %0 : i1 to i32
    %c0_i32_0 = arith.constant 0 : i32
    %2 = arith.cmpi ne, %1, %c0_i32_0 : i32
    scf.if %2 {
      %cst_261 = arith.constant 0.000000e+00 : f32
      %1058 = vector.broadcast %cst_261 : f32 to vector<8x16xf32>
      %c0_262 = arith.constant 0 : index
      %c0_263 = arith.constant 0 : index
      %1059 = vector.load %arg17[%c0_262, %c0_263] : memref<8x16xf32, #tpu.memory_space<vmem>>, vector<8x16xf32>
      tpu.vector_store %arg17[%c0_262, %c0_263], %1058 {strides = array<i32>} : memref<8x16xf32, #tpu.memory_space<vmem>>, vector<8x16xf32>,
      %cst_264 = arith.constant 0.000000e+00 : f32
      %1060 = vector.broadcast %cst_264 : f32 to vector<8x16xf32>
      %c0_265 = arith.constant 0 : index
      %c0_266 = arith.constant 0 : index
      %1061 = vector.load %arg18[%c0_265, %c0_266] : memref<8x16xf32, #tpu.memory_space<vmem>>, vector<8x16xf32>
      tpu.vector_store %arg18[%c0_265, %c0_266], %1060 {strides = array<i32>} : memref<8x16xf32, #tpu.memory_space<vmem>>, vector<8x16xf32>,
    } else {
    }
    %c0 = arith.constant 0 : index
    %c0_1 = arith.constant 0 : index
    %3 = vector.load %arg3[%c0, %c0_1] : memref<16x64xbf16, #tpu.memory_space<vmem>>, vector<16x64xbf16>
    %c0_2 = arith.constant 0 : index
    %c0_3 = arith.constant 0 : index
    %4 = vector.load %arg5[%c0_2, %c0_3] : memref<64x16xbf16, #tpu.memory_space<vmem>>, vector<64x16xbf16>
    %c0_4 = arith.constant 0 : index
    %c0_5 = arith.constant 0 : index
    %5 = vector.load %arg7[%c0_4, %c0_5] : memref<32x256xbf16, #tpu.memory_space<vmem>>, vector<32x256xbf16>
    %c0_6 = arith.constant 0 : index
    %c0_7 = arith.constant 0 : index
    %6 = vector.load %arg8[%c0_6, %c0_7] : memref<32x128xbf16, #tpu.memory_space<vmem>>, vector<32x128xbf16>
    %c0_8 = arith.constant 0 : index
    %c0_9 = arith.constant 0 : index
    %7 = vector.load %arg11[%c0_8, %c0_9] : memref<256x32xbf16, #tpu.memory_space<vmem>>, vector<256x32xbf16>
    %c0_10 = arith.constant 0 : index
    %c0_11 = arith.constant 0 : index
    %8 = vector.load %arg13[%c0_10, %c0_11] : memref<128x32xbf16, #tpu.memory_space<vmem>>, vector<128x32xbf16>
    %c0_12 = arith.constant 0 : index
    %c0_13 = arith.constant 0 : index
    %9 = vector.load %arg4[%c0_12, %c0_13] : memref<1x64xf32, #tpu.memory_space<vmem>>, vector<1x64xf32>
    %10 = vector.shape_cast %9 : vector<1x64xf32> to vector<1x64xf32>
    %11 = vector.broadcast %10 : vector<1x64xf32> to vector<8x64xf32>
    %c0_14 = arith.constant 0 : index
    %c0_15 = arith.constant 0 : index
    %12 = vector.load %arg6[%c0_14, %c0_15] : memref<1x16xf32, #tpu.memory_space<vmem>>, vector<1x16xf32>
    %13 = vector.shape_cast %12 : vector<1x16xf32> to vector<1x16xf32>
    %14 = vector.broadcast %13 : vector<1x16xf32> to vector<8x16xf32>
    %c0_16 = arith.constant 0 : index
    %c0_17 = arith.constant 0 : index
    %15 = vector.load %arg12[%c0_16, %c0_17] : memref<1x32xf32, #tpu.memory_space<vmem>>, vector<1x32xf32>
    %16 = vector.shape_cast %15 : vector<1x32xf32> to vector<1x32xf32>
    %17 = vector.broadcast %16 : vector<1x32xf32> to vector<8x32xf32>
    %c0_18 = arith.constant 0 : index
    %c0_19 = arith.constant 0 : index
    %18 = vector.load %arg14[%c0_18, %c0_19] : memref<1x32xf32, #tpu.memory_space<vmem>>, vector<1x32xf32>
    %19 = vector.shape_cast %18 : vector<1x32xf32> to vector<1x32xf32>
    %20 = vector.broadcast %19 : vector<1x32xf32> to vector<8x32xf32>
    %c0_20 = arith.constant 0 : index
    %c0_21 = arith.constant 0 : index
    %21 = vector.load %arg2[%c0_20, %c0_21] : memref<128x4xf32, #tpu.memory_space<vmem>>, vector<128x4xf32>
    %c0_22 = arith.constant 0 : index
    %c0_23 = arith.constant 0 : index
    %22 = vector.load %arg9[%c0_22, %c0_23] : memref<4x384xbf16, #tpu.memory_space<vmem>>, vector<4x384xbf16>
    %23 = arith.truncf %21 : vector<128x4xf32> to vector<128x4xbf16>
    %cst = arith.constant dense<0.000000e+00> : vector<128x384xf32>
    %24 = tpu.matmul %23, %22, %cst {dimension_numbers = #tpu.dot_dimension_numbers<[1], [0], [0], [1], [0, 0, 1, 1], [], []>} : vector<128x4xbf16>, vector<4x384xbf16>, vector<128x384xf32> -> vector<128x384xf32>
    %c0_24 = arith.constant 0 : index
    %c0_25 = arith.constant 0 : index
    %25 = vector.load %arg10[%c0_24, %c0_25] : memref<1x384xf32, #tpu.memory_space<vmem>>, vector<1x384xf32>
    %26 = vector.shape_cast %25 : vector<1x384xf32> to vector<1x384xf32>
    %27 = vector.broadcast %26 : vector<1x384xf32> to vector<128x384xf32>
    %28 = arith.addf %24, %27 : vector<128x384xf32>
    %c0_26 = arith.constant 0 : index
    %c0_27 = arith.constant 0 : index
    %29 = vector.load %arg16[%c0_26, %c0_27] : memref<128x384xf32, #tpu.memory_space<vmem>>, vector<128x384xf32>
    tpu.vector_store %arg16[%c0_26, %c0_27], %28 {strides = array<i32>} : memref<128x384xf32, #tpu.memory_space<vmem>>, vector<128x384xf32>,
    %c0_28 = arith.constant 0 : index
    %c0_29 = arith.constant 0 : index
    %30 = vector.load %arg17[%c0_28, %c0_29] : memref<8x16xf32, #tpu.memory_space<vmem>>, vector<8x16xf32>
    %c0_30 = arith.constant 0 : index
    %c0_31 = arith.constant 0 : index
    %31 = vector.load %arg18[%c0_30, %c0_31] : memref<8x16xf32, #tpu.memory_space<vmem>>, vector<8x16xf32>
    %c0_i32_32 = arith.constant 0 : i32
    %c16_i32 = arith.constant 16 : i32
    %32 = arith.muli %arg0, %c16_i32 : i32
    %33 = arith.addi %32, %c0_i32_32 : i32
    %34 = arith.index_cast %33 : i32 to index
    %35 = memref.load %arg1[%34] : memref<32xf32, #tpu.memory_space<smem>>
    %36 = arith.truncf %30 : vector<8x16xf32> to vector<8x16xbf16>
    %cst_33 = arith.constant dense<0.000000e+00> : vector<8x64xf32>
    %37 = tpu.matmul %36, %3, %cst_33 {dimension_numbers = #tpu.dot_dimension_numbers<[1], [0], [0], [1], [0, 0, 1, 1], [], []>} : vector<8x16xbf16>, vector<16x64xbf16>, vector<8x64xf32> -> vector<8x64xf32>
    %38 = arith.addf %37, %11 : vector<8x64xf32>
    %39 = math.tanh %38 : vector<8x64xf32>
    %40 = arith.truncf %39 : vector<8x64xf32> to vector<8x64xbf16>
    %cst_34 = arith.constant dense<0.000000e+00> : vector<8x16xf32>
    %41 = tpu.matmul %40, %4, %cst_34 {dimension_numbers = #tpu.dot_dimension_numbers<[1], [0], [0], [1], [0, 0, 1, 1], [], []>} : vector<8x64xbf16>, vector<64x16xbf16>, vector<8x16xf32> -> vector<8x16xf32>
    %42 = arith.addf %41, %14 : vector<8x16xf32>
    %43 = vector.broadcast %35 : f32 to vector<8x16xf32>
    %44 = arith.mulf %42, %43 : vector<8x16xf32>
    %45 = arith.addf %30, %44 : vector<8x16xf32>
    %c8_i32 = arith.constant 8 : i32
    %46 = arith.muli %c0_i32_32, %c8_i32 : i32
    %47 = tpu.assume_multiple %46, 8 : i32
    %48 = arith.index_cast %47 : i32 to index
    %c0_35 = arith.constant 0 : index
    %49 = vector.load %arg16[%48, %c0_35] : memref<128x384xf32, #tpu.memory_space<vmem>>, vector<8x384xf32>
    %50 = vector.extract_strided_slice %49 {offsets = [0, 0], sizes = [8, 256], strides = [1, 1]} : vector<8x384xf32> to vector<8x256xf32>
    %51 = vector.extract_strided_slice %49 {offsets = [0, 256], sizes = [8, 128], strides = [1, 1]} : vector<8x384xf32> to vector<8x128xf32>
    %52 = tpu.concatenate %45, %31 in 1 : vector<8x16xf32>, vector<8x16xf32> -> vector<8x32xf32>
    %53 = arith.truncf %52 : vector<8x32xf32> to vector<8x32xbf16>
    %cst_36 = arith.constant dense<0.000000e+00> : vector<8x256xf32>
    %54 = tpu.matmul %53, %5, %cst_36 {dimension_numbers = #tpu.dot_dimension_numbers<[1], [0], [0], [1], [0, 0, 1, 1], [], []>} : vector<8x32xbf16>, vector<32x256xbf16>, vector<8x256xf32> -> vector<8x256xf32>
    %55 = arith.addf %54, %50 : vector<8x256xf32>
    %56 = math.tanh %55 : vector<8x256xf32>
    %57 = arith.truncf %56 : vector<8x256xf32> to vector<8x256xbf16>
    %cst_37 = arith.constant dense<0.000000e+00> : vector<8x32xf32>
    %58 = tpu.matmul %57, %7, %cst_37 {dimension_numbers = #tpu.dot_dimension_numbers<[1], [0], [0], [1], [0, 0, 1, 1], [], []>} : vector<8x256xbf16>, vector<256x32xbf16>, vector<8x32xf32> -> vector<8x32xf32>
    %59 = arith.addf %58, %17 : vector<8x32xf32>
    %60 = arith.negf %59 : vector<8x32xf32>
    %61 = math.exp %60 : vector<8x32xf32>
    %cst_38 = arith.constant 1.000000e+00 : f32
    %62 = vector.broadcast %cst_38 : f32 to vector<8x32xf32>
    %63 = arith.addf %62, %61 : vector<8x32xf32>
    %64 = arith.divf %62, %63 : vector<8x32xf32>
    %65 = vector.extract_strided_slice %64 {offsets = [0, 0], sizes = [8, 16], strides = [1, 1]} : vector<8x32xf32> to vector<8x16xf32>
    %66 = vector.extract_strided_slice %64 {offsets = [0, 16], sizes = [8, 16], strides = [1, 1]} : vector<8x32xf32> to vector<8x16xf32>
    %67 = arith.mulf %45, %66 : vector<8x16xf32>
    %68 = arith.mulf %31, %66 : vector<8x16xf32>
    %69 = tpu.concatenate %67, %68 in 1 : vector<8x16xf32>, vector<8x16xf32> -> vector<8x32xf32>
    %70 = arith.truncf %69 : vector<8x32xf32> to vector<8x32xbf16>
    %cst_39 = arith.constant dense<0.000000e+00> : vector<8x128xf32>
    %71 = tpu.matmul %70, %6, %cst_39 {dimension_numbers = #tpu.dot_dimension_numbers<[1], [0], [0], [1], [0, 0, 1, 1], [], []>} : vector<8x32xbf16>, vector<32x128xbf16>, vector<8x128xf32> -> vector<8x128xf32>
    %72 = arith.addf %71, %51 : vector<8x128xf32>
    %73 = math.tanh %72 : vector<8x128xf32>
    %74 = arith.truncf %73 : vector<8x128xf32> to vector<8x128xbf16>
    %cst_40 = arith.constant dense<0.000000e+00> : vector<8x32xf32>
    %75 = tpu.matmul %74, %8, %cst_40 {dimension_numbers = #tpu.dot_dimension_numbers<[1], [0], [0], [1], [0, 0, 1, 1], [], []>} : vector<8x128xbf16>, vector<128x32xbf16>, vector<8x32xf32> -> vector<8x32xf32>
    %76 = arith.addf %75, %20 : vector<8x32xf32>
    %77 = vector.extract_strided_slice %76 {offsets = [0, 0], sizes = [8, 16], strides = [1, 1]} : vector<8x32xf32> to vector<8x16xf32>
    %78 = vector.extract_strided_slice %76 {offsets = [0, 16], sizes = [8, 16], strides = [1, 1]} : vector<8x32xf32> to vector<8x16xf32>
    %79 = math.absf %78 : vector<8x16xf32>
    %cst_41 = arith.constant 1.000000e+00 : f32
    %80 = vector.broadcast %cst_41 : f32 to vector<8x16xf32>
    %81 = arith.subf %80, %65 : vector<8x16xf32>
    %82 = arith.mulf %81, %77 : vector<8x16xf32>
    %83 = arith.mulf %65, %45 : vector<8x16xf32>
    %84 = arith.addf %82, %83 : vector<8x16xf32>
    %cst_42 = arith.constant 1.000000e+00 : f32
    %85 = vector.broadcast %cst_42 : f32 to vector<8x16xf32>
    %86 = arith.subf %85, %65 : vector<8x16xf32>
    %87 = arith.mulf %86, %79 : vector<8x16xf32>
    %88 = arith.mulf %65, %31 : vector<8x16xf32>
    %89 = arith.addf %87, %88 : vector<8x16xf32>
    %90 = math.absf %89 : vector<8x16xf32>
    %91 = arith.truncf %84 : vector<8x16xf32> to vector<8x16xbf16>
    %92 = arith.index_cast %c0_i32_32 : i32 to index
    %c0_43 = arith.constant 0 : index
    %c0_44 = arith.constant 0 : index
    %93 = vector.load %arg15[%92, %c0_43, %c0_44] : memref<16x8x16xbf16, #tpu.memory_space<vmem>>, vector<1x8x16xbf16>
    %94 = vector.shape_cast %93 : vector<1x8x16xbf16> to vector<8x16xbf16>
    %95 = vector.shape_cast %91 : vector<8x16xbf16> to vector<1x8x16xbf16>
    tpu.vector_store %arg15[%92, %c0_43, %c0_44], %95 {strides = array<i32>} : memref<16x8x16xbf16, #tpu.memory_space<vmem>>, vector<1x8x16xbf16>,
    %c1_i32 = arith.constant 1 : i32
    %c16_i32_45 = arith.constant 16 : i32
    %96 = arith.muli %arg0, %c16_i32_45 : i32
    %97 = arith.addi %96, %c1_i32 : i32
    %98 = arith.index_cast %97 : i32 to index
    %99 = memref.load %arg1[%98] : memref<32xf32, #tpu.memory_space<smem>>
    %100 = arith.truncf %84 : vector<8x16xf32> to vector<8x16xbf16>
    %cst_46 = arith.constant dense<0.000000e+00> : vector<8x64xf32>
    %101 = tpu.matmul %100, %3, %cst_46 {dimension_numbers = #tpu.dot_dimension_numbers<[1], [0], [0], [1], [0, 0, 1, 1], [], []>} : vector<8x16xbf16>, vector<16x64xbf16>, vector<8x64xf32> -> vector<8x64xf32>
    %102 = arith.addf %101, %11 : vector<8x64xf32>
    %103 = math.tanh %102 : vector<8x64xf32>
    %104 = arith.truncf %103 : vector<8x64xf32> to vector<8x64xbf16>
    %cst_47 = arith.constant dense<0.000000e+00> : vector<8x16xf32>
    %105 = tpu.matmul %104, %4, %cst_47 {dimension_numbers = #tpu.dot_dimension_numbers<[1], [0], [0], [1], [0, 0, 1, 1], [], []>} : vector<8x64xbf16>, vector<64x16xbf16>, vector<8x16xf32> -> vector<8x16xf32>
    %106 = arith.addf %105, %14 : vector<8x16xf32>
    %107 = vector.broadcast %99 : f32 to vector<8x16xf32>
    %108 = arith.mulf %106, %107 : vector<8x16xf32>
    %109 = arith.addf %84, %108 : vector<8x16xf32>
    %c8_i32_48 = arith.constant 8 : i32
    %110 = arith.muli %c1_i32, %c8_i32_48 : i32
    %111 = tpu.assume_multiple %110, 8 : i32
    %112 = arith.index_cast %111 : i32 to index
    %c0_49 = arith.constant 0 : index
    %113 = vector.load %arg16[%112, %c0_49] : memref<128x384xf32, #tpu.memory_space<vmem>>, vector<8x384xf32>
    %114 = vector.extract_strided_slice %113 {offsets = [0, 0], sizes = [8, 256], strides = [1, 1]} : vector<8x384xf32> to vector<8x256xf32>
    %115 = vector.extract_strided_slice %113 {offsets = [0, 256], sizes = [8, 128], strides = [1, 1]} : vector<8x384xf32> to vector<8x128xf32>
    %116 = tpu.concatenate %109, %90 in 1 : vector<8x16xf32>, vector<8x16xf32> -> vector<8x32xf32>
    %117 = arith.truncf %116 : vector<8x32xf32> to vector<8x32xbf16>
    %cst_50 = arith.constant dense<0.000000e+00> : vector<8x256xf32>
    %118 = tpu.matmul %117, %5, %cst_50 {dimension_numbers = #tpu.dot_dimension_numbers<[1], [0], [0], [1], [0, 0, 1, 1], [], []>} : vector<8x32xbf16>, vector<32x256xbf16>, vector<8x256xf32> -> vector<8x256xf32>
    %119 = arith.addf %118, %114 : vector<8x256xf32>
    %120 = math.tanh %119 : vector<8x256xf32>
    %121 = arith.truncf %120 : vector<8x256xf32> to vector<8x256xbf16>
    %cst_51 = arith.constant dense<0.000000e+00> : vector<8x32xf32>
    %122 = tpu.matmul %121, %7, %cst_51 {dimension_numbers = #tpu.dot_dimension_numbers<[1], [0], [0], [1], [0, 0, 1, 1], [], []>} : vector<8x256xbf16>, vector<256x32xbf16>, vector<8x32xf32> -> vector<8x32xf32>
    %123 = arith.addf %122, %17 : vector<8x32xf32>
    %124 = arith.negf %123 : vector<8x32xf32>
    %125 = math.exp %124 : vector<8x32xf32>
    %cst_52 = arith.constant 1.000000e+00 : f32
    %126 = vector.broadcast %cst_52 : f32 to vector<8x32xf32>
    %127 = arith.addf %126, %125 : vector<8x32xf32>
    %128 = arith.divf %126, %127 : vector<8x32xf32>
    %129 = vector.extract_strided_slice %128 {offsets = [0, 0], sizes = [8, 16], strides = [1, 1]} : vector<8x32xf32> to vector<8x16xf32>
    %130 = vector.extract_strided_slice %128 {offsets = [0, 16], sizes = [8, 16], strides = [1, 1]} : vector<8x32xf32> to vector<8x16xf32>
    %131 = arith.mulf %109, %130 : vector<8x16xf32>
    %132 = arith.mulf %90, %130 : vector<8x16xf32>
    %133 = tpu.concatenate %131, %132 in 1 : vector<8x16xf32>, vector<8x16xf32> -> vector<8x32xf32>
    %134 = arith.truncf %133 : vector<8x32xf32> to vector<8x32xbf16>
    %cst_53 = arith.constant dense<0.000000e+00> : vector<8x128xf32>
    %135 = tpu.matmul %134, %6, %cst_53 {dimension_numbers = #tpu.dot_dimension_numbers<[1], [0], [0], [1], [0, 0, 1, 1], [], []>} : vector<8x32xbf16>, vector<32x128xbf16>, vector<8x128xf32> -> vector<8x128xf32>
    %136 = arith.addf %135, %115 : vector<8x128xf32>
    %137 = math.tanh %136 : vector<8x128xf32>
    %138 = arith.truncf %137 : vector<8x128xf32> to vector<8x128xbf16>
    %cst_54 = arith.constant dense<0.000000e+00> : vector<8x32xf32>
    %139 = tpu.matmul %138, %8, %cst_54 {dimension_numbers = #tpu.dot_dimension_numbers<[1], [0], [0], [1], [0, 0, 1, 1], [], []>} : vector<8x128xbf16>, vector<128x32xbf16>, vector<8x32xf32> -> vector<8x32xf32>
    %140 = arith.addf %139, %20 : vector<8x32xf32>
    %141 = vector.extract_strided_slice %140 {offsets = [0, 0], sizes = [8, 16], strides = [1, 1]} : vector<8x32xf32> to vector<8x16xf32>
    %142 = vector.extract_strided_slice %140 {offsets = [0, 16], sizes = [8, 16], strides = [1, 1]} : vector<8x32xf32> to vector<8x16xf32>
    %143 = math.absf %142 : vector<8x16xf32>
    %cst_55 = arith.constant 1.000000e+00 : f32
    %144 = vector.broadcast %cst_55 : f32 to vector<8x16xf32>
    %145 = arith.subf %144, %129 : vector<8x16xf32>
    %146 = arith.mulf %145, %141 : vector<8x16xf32>
    %147 = arith.mulf %129, %109 : vector<8x16xf32>
    %148 = arith.addf %146, %147 : vector<8x16xf32>
    %cst_56 = arith.constant 1.000000e+00 : f32
    %149 = vector.broadcast %cst_56 : f32 to vector<8x16xf32>
    %150 = arith.subf %149, %129 : vector<8x16xf32>
    %151 = arith.mulf %150, %143 : vector<8x16xf32>
    %152 = arith.mulf %129, %90 : vector<8x16xf32>
    %153 = arith.addf %151, %152 : vector<8x16xf32>
    %154 = math.absf %153 : vector<8x16xf32>
    %155 = arith.truncf %148 : vector<8x16xf32> to vector<8x16xbf16>
    %156 = arith.index_cast %c1_i32 : i32 to index
    %c0_57 = arith.constant 0 : index
    %c0_58 = arith.constant 0 : index
    %157 = vector.load %arg15[%156, %c0_57, %c0_58] : memref<16x8x16xbf16, #tpu.memory_space<vmem>>, vector<1x8x16xbf16>
    %158 = vector.shape_cast %157 : vector<1x8x16xbf16> to vector<8x16xbf16>
    %159 = vector.shape_cast %155 : vector<8x16xbf16> to vector<1x8x16xbf16>
    tpu.vector_store %arg15[%156, %c0_57, %c0_58], %159 {strides = array<i32>} : memref<16x8x16xbf16, #tpu.memory_space<vmem>>, vector<1x8x16xbf16>,
    %c2_i32 = arith.constant 2 : i32
    %c16_i32_59 = arith.constant 16 : i32
    %160 = arith.muli %arg0, %c16_i32_59 : i32
    %161 = arith.addi %160, %c2_i32 : i32
    %162 = arith.index_cast %161 : i32 to index
    %163 = memref.load %arg1[%162] : memref<32xf32, #tpu.memory_space<smem>>
    %164 = arith.truncf %148 : vector<8x16xf32> to vector<8x16xbf16>
    %cst_60 = arith.constant dense<0.000000e+00> : vector<8x64xf32>
    %165 = tpu.matmul %164, %3, %cst_60 {dimension_numbers = #tpu.dot_dimension_numbers<[1], [0], [0], [1], [0, 0, 1, 1], [], []>} : vector<8x16xbf16>, vector<16x64xbf16>, vector<8x64xf32> -> vector<8x64xf32>
    %166 = arith.addf %165, %11 : vector<8x64xf32>
    %167 = math.tanh %166 : vector<8x64xf32>
    %168 = arith.truncf %167 : vector<8x64xf32> to vector<8x64xbf16>
    %cst_61 = arith.constant dense<0.000000e+00> : vector<8x16xf32>
    %169 = tpu.matmul %168, %4, %cst_61 {dimension_numbers = #tpu.dot_dimension_numbers<[1], [0], [0], [1], [0, 0, 1, 1], [], []>} : vector<8x64xbf16>, vector<64x16xbf16>, vector<8x16xf32> -> vector<8x16xf32>
    %170 = arith.addf %169, %14 : vector<8x16xf32>
    %171 = vector.broadcast %163 : f32 to vector<8x16xf32>
    %172 = arith.mulf %170, %171 : vector<8x16xf32>
    %173 = arith.addf %148, %172 : vector<8x16xf32>
    %c8_i32_62 = arith.constant 8 : i32
    %174 = arith.muli %c2_i32, %c8_i32_62 : i32
    %175 = tpu.assume_multiple %174, 8 : i32
    %176 = arith.index_cast %175 : i32 to index
    %c0_63 = arith.constant 0 : index
    %177 = vector.load %arg16[%176, %c0_63] : memref<128x384xf32, #tpu.memory_space<vmem>>, vector<8x384xf32>
    %178 = vector.extract_strided_slice %177 {offsets = [0, 0], sizes = [8, 256], strides = [1, 1]} : vector<8x384xf32> to vector<8x256xf32>
    %179 = vector.extract_strided_slice %177 {offsets = [0, 256], sizes = [8, 128], strides = [1, 1]} : vector<8x384xf32> to vector<8x128xf32>
    %180 = tpu.concatenate %173, %154 in 1 : vector<8x16xf32>, vector<8x16xf32> -> vector<8x32xf32>
    %181 = arith.truncf %180 : vector<8x32xf32> to vector<8x32xbf16>
    %cst_64 = arith.constant dense<0.000000e+00> : vector<8x256xf32>
    %182 = tpu.matmul %181, %5, %cst_64 {dimension_numbers = #tpu.dot_dimension_numbers<[1], [0], [0], [1], [0, 0, 1, 1], [], []>} : vector<8x32xbf16>, vector<32x256xbf16>, vector<8x256xf32> -> vector<8x256xf32>
    %183 = arith.addf %182, %178 : vector<8x256xf32>
    %184 = math.tanh %183 : vector<8x256xf32>
    %185 = arith.truncf %184 : vector<8x256xf32> to vector<8x256xbf16>
    %cst_65 = arith.constant dense<0.000000e+00> : vector<8x32xf32>
    %186 = tpu.matmul %185, %7, %cst_65 {dimension_numbers = #tpu.dot_dimension_numbers<[1], [0], [0], [1], [0, 0, 1, 1], [], []>} : vector<8x256xbf16>, vector<256x32xbf16>, vector<8x32xf32> -> vector<8x32xf32>
    %187 = arith.addf %186, %17 : vector<8x32xf32>
    %188 = arith.negf %187 : vector<8x32xf32>
    %189 = math.exp %188 : vector<8x32xf32>
    %cst_66 = arith.constant 1.000000e+00 : f32
    %190 = vector.broadcast %cst_66 : f32 to vector<8x32xf32>
    %191 = arith.addf %190, %189 : vector<8x32xf32>
    %192 = arith.divf %190, %191 : vector<8x32xf32>
    %193 = vector.extract_strided_slice %192 {offsets = [0, 0], sizes = [8, 16], strides = [1, 1]} : vector<8x32xf32> to vector<8x16xf32>
    %194 = vector.extract_strided_slice %192 {offsets = [0, 16], sizes = [8, 16], strides = [1, 1]} : vector<8x32xf32> to vector<8x16xf32>
    %195 = arith.mulf %173, %194 : vector<8x16xf32>
    %196 = arith.mulf %154, %194 : vector<8x16xf32>
    %197 = tpu.concatenate %195, %196 in 1 : vector<8x16xf32>, vector<8x16xf32> -> vector<8x32xf32>
    %198 = arith.truncf %197 : vector<8x32xf32> to vector<8x32xbf16>
    %cst_67 = arith.constant dense<0.000000e+00> : vector<8x128xf32>
    %199 = tpu.matmul %198, %6, %cst_67 {dimension_numbers = #tpu.dot_dimension_numbers<[1], [0], [0], [1], [0, 0, 1, 1], [], []>} : vector<8x32xbf16>, vector<32x128xbf16>, vector<8x128xf32> -> vector<8x128xf32>
    %200 = arith.addf %199, %179 : vector<8x128xf32>
    %201 = math.tanh %200 : vector<8x128xf32>
    %202 = arith.truncf %201 : vector<8x128xf32> to vector<8x128xbf16>
    %cst_68 = arith.constant dense<0.000000e+00> : vector<8x32xf32>
    %203 = tpu.matmul %202, %8, %cst_68 {dimension_numbers = #tpu.dot_dimension_numbers<[1], [0], [0], [1], [0, 0, 1, 1], [], []>} : vector<8x128xbf16>, vector<128x32xbf16>, vector<8x32xf32> -> vector<8x32xf32>
    %204 = arith.addf %203, %20 : vector<8x32xf32>
    %205 = vector.extract_strided_slice %204 {offsets = [0, 0], sizes = [8, 16], strides = [1, 1]} : vector<8x32xf32> to vector<8x16xf32>
    %206 = vector.extract_strided_slice %204 {offsets = [0, 16], sizes = [8, 16], strides = [1, 1]} : vector<8x32xf32> to vector<8x16xf32>
    %207 = math.absf %206 : vector<8x16xf32>
    %cst_69 = arith.constant 1.000000e+00 : f32
    %208 = vector.broadcast %cst_69 : f32 to vector<8x16xf32>
    %209 = arith.subf %208, %193 : vector<8x16xf32>
    %210 = arith.mulf %209, %205 : vector<8x16xf32>
    %211 = arith.mulf %193, %173 : vector<8x16xf32>
    %212 = arith.addf %210, %211 : vector<8x16xf32>
    %cst_70 = arith.constant 1.000000e+00 : f32
    %213 = vector.broadcast %cst_70 : f32 to vector<8x16xf32>
    %214 = arith.subf %213, %193 : vector<8x16xf32>
    %215 = arith.mulf %214, %207 : vector<8x16xf32>
    %216 = arith.mulf %193, %154 : vector<8x16xf32>
    %217 = arith.addf %215, %216 : vector<8x16xf32>
    %218 = math.absf %217 : vector<8x16xf32>
    %219 = arith.truncf %212 : vector<8x16xf32> to vector<8x16xbf16>
    %220 = arith.index_cast %c2_i32 : i32 to index
    %c0_71 = arith.constant 0 : index
    %c0_72 = arith.constant 0 : index
    %221 = vector.load %arg15[%220, %c0_71, %c0_72] : memref<16x8x16xbf16, #tpu.memory_space<vmem>>, vector<1x8x16xbf16>
    %222 = vector.shape_cast %221 : vector<1x8x16xbf16> to vector<8x16xbf16>
    %223 = vector.shape_cast %219 : vector<8x16xbf16> to vector<1x8x16xbf16>
    tpu.vector_store %arg15[%220, %c0_71, %c0_72], %223 {strides = array<i32>} : memref<16x8x16xbf16, #tpu.memory_space<vmem>>, vector<1x8x16xbf16>,
    %c3_i32 = arith.constant 3 : i32
    %c16_i32_73 = arith.constant 16 : i32
    %224 = arith.muli %arg0, %c16_i32_73 : i32
    %225 = arith.addi %224, %c3_i32 : i32
    %226 = arith.index_cast %225 : i32 to index
    %227 = memref.load %arg1[%226] : memref<32xf32, #tpu.memory_space<smem>>
    %228 = arith.truncf %212 : vector<8x16xf32> to vector<8x16xbf16>
    %cst_74 = arith.constant dense<0.000000e+00> : vector<8x64xf32>
    %229 = tpu.matmul %228, %3, %cst_74 {dimension_numbers = #tpu.dot_dimension_numbers<[1], [0], [0], [1], [0, 0, 1, 1], [], []>} : vector<8x16xbf16>, vector<16x64xbf16>, vector<8x64xf32> -> vector<8x64xf32>
    %230 = arith.addf %229, %11 : vector<8x64xf32>
    %231 = math.tanh %230 : vector<8x64xf32>
    %232 = arith.truncf %231 : vector<8x64xf32> to vector<8x64xbf16>
    %cst_75 = arith.constant dense<0.000000e+00> : vector<8x16xf32>
    %233 = tpu.matmul %232, %4, %cst_75 {dimension_numbers = #tpu.dot_dimension_numbers<[1], [0], [0], [1], [0, 0, 1, 1], [], []>} : vector<8x64xbf16>, vector<64x16xbf16>, vector<8x16xf32> -> vector<8x16xf32>
    %234 = arith.addf %233, %14 : vector<8x16xf32>
    %235 = vector.broadcast %227 : f32 to vector<8x16xf32>
    %236 = arith.mulf %234, %235 : vector<8x16xf32>
    %237 = arith.addf %212, %236 : vector<8x16xf32>
    %c8_i32_76 = arith.constant 8 : i32
    %238 = arith.muli %c3_i32, %c8_i32_76 : i32
    %239 = tpu.assume_multiple %238, 8 : i32
    %240 = arith.index_cast %239 : i32 to index
    %c0_77 = arith.constant 0 : index
    %241 = vector.load %arg16[%240, %c0_77] : memref<128x384xf32, #tpu.memory_space<vmem>>, vector<8x384xf32>
    %242 = vector.extract_strided_slice %241 {offsets = [0, 0], sizes = [8, 256], strides = [1, 1]} : vector<8x384xf32> to vector<8x256xf32>
    %243 = vector.extract_strided_slice %241 {offsets = [0, 256], sizes = [8, 128], strides = [1, 1]} : vector<8x384xf32> to vector<8x128xf32>
    %244 = tpu.concatenate %237, %218 in 1 : vector<8x16xf32>, vector<8x16xf32> -> vector<8x32xf32>
    %245 = arith.truncf %244 : vector<8x32xf32> to vector<8x32xbf16>
    %cst_78 = arith.constant dense<0.000000e+00> : vector<8x256xf32>
    %246 = tpu.matmul %245, %5, %cst_78 {dimension_numbers = #tpu.dot_dimension_numbers<[1], [0], [0], [1], [0, 0, 1, 1], [], []>} : vector<8x32xbf16>, vector<32x256xbf16>, vector<8x256xf32> -> vector<8x256xf32>
    %247 = arith.addf %246, %242 : vector<8x256xf32>
    %248 = math.tanh %247 : vector<8x256xf32>
    %249 = arith.truncf %248 : vector<8x256xf32> to vector<8x256xbf16>
    %cst_79 = arith.constant dense<0.000000e+00> : vector<8x32xf32>
    %250 = tpu.matmul %249, %7, %cst_79 {dimension_numbers = #tpu.dot_dimension_numbers<[1], [0], [0], [1], [0, 0, 1, 1], [], []>} : vector<8x256xbf16>, vector<256x32xbf16>, vector<8x32xf32> -> vector<8x32xf32>
    %251 = arith.addf %250, %17 : vector<8x32xf32>
    %252 = arith.negf %251 : vector<8x32xf32>
    %253 = math.exp %252 : vector<8x32xf32>
    %cst_80 = arith.constant 1.000000e+00 : f32
    %254 = vector.broadcast %cst_80 : f32 to vector<8x32xf32>
    %255 = arith.addf %254, %253 : vector<8x32xf32>
    %256 = arith.divf %254, %255 : vector<8x32xf32>
    %257 = vector.extract_strided_slice %256 {offsets = [0, 0], sizes = [8, 16], strides = [1, 1]} : vector<8x32xf32> to vector<8x16xf32>
    %258 = vector.extract_strided_slice %256 {offsets = [0, 16], sizes = [8, 16], strides = [1, 1]} : vector<8x32xf32> to vector<8x16xf32>
    %259 = arith.mulf %237, %258 : vector<8x16xf32>
    %260 = arith.mulf %218, %258 : vector<8x16xf32>
    %261 = tpu.concatenate %259, %260 in 1 : vector<8x16xf32>, vector<8x16xf32> -> vector<8x32xf32>
    %262 = arith.truncf %261 : vector<8x32xf32> to vector<8x32xbf16>
    %cst_81 = arith.constant dense<0.000000e+00> : vector<8x128xf32>
    %263 = tpu.matmul %262, %6, %cst_81 {dimension_numbers = #tpu.dot_dimension_numbers<[1], [0], [0], [1], [0, 0, 1, 1], [], []>} : vector<8x32xbf16>, vector<32x128xbf16>, vector<8x128xf32> -> vector<8x128xf32>
    %264 = arith.addf %263, %243 : vector<8x128xf32>
    %265 = math.tanh %264 : vector<8x128xf32>
    %266 = arith.truncf %265 : vector<8x128xf32> to vector<8x128xbf16>
    %cst_82 = arith.constant dense<0.000000e+00> : vector<8x32xf32>
    %267 = tpu.matmul %266, %8, %cst_82 {dimension_numbers = #tpu.dot_dimension_numbers<[1], [0], [0], [1], [0, 0, 1, 1], [], []>} : vector<8x128xbf16>, vector<128x32xbf16>, vector<8x32xf32> -> vector<8x32xf32>
    %268 = arith.addf %267, %20 : vector<8x32xf32>
    %269 = vector.extract_strided_slice %268 {offsets = [0, 0], sizes = [8, 16], strides = [1, 1]} : vector<8x32xf32> to vector<8x16xf32>
    %270 = vector.extract_strided_slice %268 {offsets = [0, 16], sizes = [8, 16], strides = [1, 1]} : vector<8x32xf32> to vector<8x16xf32>
    %271 = math.absf %270 : vector<8x16xf32>
    %cst_83 = arith.constant 1.000000e+00 : f32
    %272 = vector.broadcast %cst_83 : f32 to vector<8x16xf32>
    %273 = arith.subf %272, %257 : vector<8x16xf32>
    %274 = arith.mulf %273, %269 : vector<8x16xf32>
    %275 = arith.mulf %257, %237 : vector<8x16xf32>
    %276 = arith.addf %274, %275 : vector<8x16xf32>
    %cst_84 = arith.constant 1.000000e+00 : f32
    %277 = vector.broadcast %cst_84 : f32 to vector<8x16xf32>
    %278 = arith.subf %277, %257 : vector<8x16xf32>
    %279 = arith.mulf %278, %271 : vector<8x16xf32>
    %280 = arith.mulf %257, %218 : vector<8x16xf32>
    %281 = arith.addf %279, %280 : vector<8x16xf32>
    %282 = math.absf %281 : vector<8x16xf32>
    %283 = arith.truncf %276 : vector<8x16xf32> to vector<8x16xbf16>
    %284 = arith.index_cast %c3_i32 : i32 to index
    %c0_85 = arith.constant 0 : index
    %c0_86 = arith.constant 0 : index
    %285 = vector.load %arg15[%284, %c0_85, %c0_86] : memref<16x8x16xbf16, #tpu.memory_space<vmem>>, vector<1x8x16xbf16>
    %286 = vector.shape_cast %285 : vector<1x8x16xbf16> to vector<8x16xbf16>
    %287 = vector.shape_cast %283 : vector<8x16xbf16> to vector<1x8x16xbf16>
    tpu.vector_store %arg15[%284, %c0_85, %c0_86], %287 {strides = array<i32>} : memref<16x8x16xbf16, #tpu.memory_space<vmem>>, vector<1x8x16xbf16>,
    %c4_i32 = arith.constant 4 : i32
    %c16_i32_87 = arith.constant 16 : i32
    %288 = arith.muli %arg0, %c16_i32_87 : i32
    %289 = arith.addi %288, %c4_i32 : i32
    %290 = arith.index_cast %289 : i32 to index
    %291 = memref.load %arg1[%290] : memref<32xf32, #tpu.memory_space<smem>>
    %292 = arith.truncf %276 : vector<8x16xf32> to vector<8x16xbf16>
    %cst_88 = arith.constant dense<0.000000e+00> : vector<8x64xf32>
    %293 = tpu.matmul %292, %3, %cst_88 {dimension_numbers = #tpu.dot_dimension_numbers<[1], [0], [0], [1], [0, 0, 1, 1], [], []>} : vector<8x16xbf16>, vector<16x64xbf16>, vector<8x64xf32> -> vector<8x64xf32>
    %294 = arith.addf %293, %11 : vector<8x64xf32>
    %295 = math.tanh %294 : vector<8x64xf32>
    %296 = arith.truncf %295 : vector<8x64xf32> to vector<8x64xbf16>
    %cst_89 = arith.constant dense<0.000000e+00> : vector<8x16xf32>
    %297 = tpu.matmul %296, %4, %cst_89 {dimension_numbers = #tpu.dot_dimension_numbers<[1], [0], [0], [1], [0, 0, 1, 1], [], []>} : vector<8x64xbf16>, vector<64x16xbf16>, vector<8x16xf32> -> vector<8x16xf32>
    %298 = arith.addf %297, %14 : vector<8x16xf32>
    %299 = vector.broadcast %291 : f32 to vector<8x16xf32>
    %300 = arith.mulf %298, %299 : vector<8x16xf32>
    %301 = arith.addf %276, %300 : vector<8x16xf32>
    %c8_i32_90 = arith.constant 8 : i32
    %302 = arith.muli %c4_i32, %c8_i32_90 : i32
    %303 = tpu.assume_multiple %302, 8 : i32
    %304 = arith.index_cast %303 : i32 to index
    %c0_91 = arith.constant 0 : index
    %305 = vector.load %arg16[%304, %c0_91] : memref<128x384xf32, #tpu.memory_space<vmem>>, vector<8x384xf32>
    %306 = vector.extract_strided_slice %305 {offsets = [0, 0], sizes = [8, 256], strides = [1, 1]} : vector<8x384xf32> to vector<8x256xf32>
    %307 = vector.extract_strided_slice %305 {offsets = [0, 256], sizes = [8, 128], strides = [1, 1]} : vector<8x384xf32> to vector<8x128xf32>
    %308 = tpu.concatenate %301, %282 in 1 : vector<8x16xf32>, vector<8x16xf32> -> vector<8x32xf32>
    %309 = arith.truncf %308 : vector<8x32xf32> to vector<8x32xbf16>
    %cst_92 = arith.constant dense<0.000000e+00> : vector<8x256xf32>
    %310 = tpu.matmul %309, %5, %cst_92 {dimension_numbers = #tpu.dot_dimension_numbers<[1], [0], [0], [1], [0, 0, 1, 1], [], []>} : vector<8x32xbf16>, vector<32x256xbf16>, vector<8x256xf32> -> vector<8x256xf32>
    %311 = arith.addf %310, %306 : vector<8x256xf32>
    %312 = math.tanh %311 : vector<8x256xf32>
    %313 = arith.truncf %312 : vector<8x256xf32> to vector<8x256xbf16>
    %cst_93 = arith.constant dense<0.000000e+00> : vector<8x32xf32>
    %314 = tpu.matmul %313, %7, %cst_93 {dimension_numbers = #tpu.dot_dimension_numbers<[1], [0], [0], [1], [0, 0, 1, 1], [], []>} : vector<8x256xbf16>, vector<256x32xbf16>, vector<8x32xf32> -> vector<8x32xf32>
    %315 = arith.addf %314, %17 : vector<8x32xf32>
    %316 = arith.negf %315 : vector<8x32xf32>
    %317 = math.exp %316 : vector<8x32xf32>
    %cst_94 = arith.constant 1.000000e+00 : f32
    %318 = vector.broadcast %cst_94 : f32 to vector<8x32xf32>
    %319 = arith.addf %318, %317 : vector<8x32xf32>
    %320 = arith.divf %318, %319 : vector<8x32xf32>
    %321 = vector.extract_strided_slice %320 {offsets = [0, 0], sizes = [8, 16], strides = [1, 1]} : vector<8x32xf32> to vector<8x16xf32>
    %322 = vector.extract_strided_slice %320 {offsets = [0, 16], sizes = [8, 16], strides = [1, 1]} : vector<8x32xf32> to vector<8x16xf32>
    %323 = arith.mulf %301, %322 : vector<8x16xf32>
    %324 = arith.mulf %282, %322 : vector<8x16xf32>
    %325 = tpu.concatenate %323, %324 in 1 : vector<8x16xf32>, vector<8x16xf32> -> vector<8x32xf32>
    %326 = arith.truncf %325 : vector<8x32xf32> to vector<8x32xbf16>
    %cst_95 = arith.constant dense<0.000000e+00> : vector<8x128xf32>
    %327 = tpu.matmul %326, %6, %cst_95 {dimension_numbers = #tpu.dot_dimension_numbers<[1], [0], [0], [1], [0, 0, 1, 1], [], []>} : vector<8x32xbf16>, vector<32x128xbf16>, vector<8x128xf32> -> vector<8x128xf32>
    %328 = arith.addf %327, %307 : vector<8x128xf32>
    %329 = math.tanh %328 : vector<8x128xf32>
    %330 = arith.truncf %329 : vector<8x128xf32> to vector<8x128xbf16>
    %cst_96 = arith.constant dense<0.000000e+00> : vector<8x32xf32>
    %331 = tpu.matmul %330, %8, %cst_96 {dimension_numbers = #tpu.dot_dimension_numbers<[1], [0], [0], [1], [0, 0, 1, 1], [], []>} : vector<8x128xbf16>, vector<128x32xbf16>, vector<8x32xf32> -> vector<8x32xf32>
    %332 = arith.addf %331, %20 : vector<8x32xf32>
    %333 = vector.extract_strided_slice %332 {offsets = [0, 0], sizes = [8, 16], strides = [1, 1]} : vector<8x32xf32> to vector<8x16xf32>
    %334 = vector.extract_strided_slice %332 {offsets = [0, 16], sizes = [8, 16], strides = [1, 1]} : vector<8x32xf32> to vector<8x16xf32>
    %335 = math.absf %334 : vector<8x16xf32>
    %cst_97 = arith.constant 1.000000e+00 : f32
    %336 = vector.broadcast %cst_97 : f32 to vector<8x16xf32>
    %337 = arith.subf %336, %321 : vector<8x16xf32>
    %338 = arith.mulf %337, %333 : vector<8x16xf32>
    %339 = arith.mulf %321, %301 : vector<8x16xf32>
    %340 = arith.addf %338, %339 : vector<8x16xf32>
    %cst_98 = arith.constant 1.000000e+00 : f32
    %341 = vector.broadcast %cst_98 : f32 to vector<8x16xf32>
    %342 = arith.subf %341, %321 : vector<8x16xf32>
    %343 = arith.mulf %342, %335 : vector<8x16xf32>
    %344 = arith.mulf %321, %282 : vector<8x16xf32>
    %345 = arith.addf %343, %344 : vector<8x16xf32>
    %346 = math.absf %345 : vector<8x16xf32>
    %347 = arith.truncf %340 : vector<8x16xf32> to vector<8x16xbf16>
    %348 = arith.index_cast %c4_i32 : i32 to index
    %c0_99 = arith.constant 0 : index
    %c0_100 = arith.constant 0 : index
    %349 = vector.load %arg15[%348, %c0_99, %c0_100] : memref<16x8x16xbf16, #tpu.memory_space<vmem>>, vector<1x8x16xbf16>
    %350 = vector.shape_cast %349 : vector<1x8x16xbf16> to vector<8x16xbf16>
    %351 = vector.shape_cast %347 : vector<8x16xbf16> to vector<1x8x16xbf16>
    tpu.vector_store %arg15[%348, %c0_99, %c0_100], %351 {strides = array<i32>} : memref<16x8x16xbf16, #tpu.memory_space<vmem>>, vector<1x8x16xbf16>,
    %c5_i32 = arith.constant 5 : i32
    %c16_i32_101 = arith.constant 16 : i32
    %352 = arith.muli %arg0, %c16_i32_101 : i32
    %353 = arith.addi %352, %c5_i32 : i32
    %354 = arith.index_cast %353 : i32 to index
    %355 = memref.load %arg1[%354] : memref<32xf32, #tpu.memory_space<smem>>
    %356 = arith.truncf %340 : vector<8x16xf32> to vector<8x16xbf16>
    %cst_102 = arith.constant dense<0.000000e+00> : vector<8x64xf32>
    %357 = tpu.matmul %356, %3, %cst_102 {dimension_numbers = #tpu.dot_dimension_numbers<[1], [0], [0], [1], [0, 0, 1, 1], [], []>} : vector<8x16xbf16>, vector<16x64xbf16>, vector<8x64xf32> -> vector<8x64xf32>
    %358 = arith.addf %357, %11 : vector<8x64xf32>
    %359 = math.tanh %358 : vector<8x64xf32>
    %360 = arith.truncf %359 : vector<8x64xf32> to vector<8x64xbf16>
    %cst_103 = arith.constant dense<0.000000e+00> : vector<8x16xf32>
    %361 = tpu.matmul %360, %4, %cst_103 {dimension_numbers = #tpu.dot_dimension_numbers<[1], [0], [0], [1], [0, 0, 1, 1], [], []>} : vector<8x64xbf16>, vector<64x16xbf16>, vector<8x16xf32> -> vector<8x16xf32>
    %362 = arith.addf %361, %14 : vector<8x16xf32>
    %363 = vector.broadcast %355 : f32 to vector<8x16xf32>
    %364 = arith.mulf %362, %363 : vector<8x16xf32>
    %365 = arith.addf %340, %364 : vector<8x16xf32>
    %c8_i32_104 = arith.constant 8 : i32
    %366 = arith.muli %c5_i32, %c8_i32_104 : i32
    %367 = tpu.assume_multiple %366, 8 : i32
    %368 = arith.index_cast %367 : i32 to index
    %c0_105 = arith.constant 0 : index
    %369 = vector.load %arg16[%368, %c0_105] : memref<128x384xf32, #tpu.memory_space<vmem>>, vector<8x384xf32>
    %370 = vector.extract_strided_slice %369 {offsets = [0, 0], sizes = [8, 256], strides = [1, 1]} : vector<8x384xf32> to vector<8x256xf32>
    %371 = vector.extract_strided_slice %369 {offsets = [0, 256], sizes = [8, 128], strides = [1, 1]} : vector<8x384xf32> to vector<8x128xf32>
    %372 = tpu.concatenate %365, %346 in 1 : vector<8x16xf32>, vector<8x16xf32> -> vector<8x32xf32>
    %373 = arith.truncf %372 : vector<8x32xf32> to vector<8x32xbf16>
    %cst_106 = arith.constant dense<0.000000e+00> : vector<8x256xf32>
    %374 = tpu.matmul %373, %5, %cst_106 {dimension_numbers = #tpu.dot_dimension_numbers<[1], [0], [0], [1], [0, 0, 1, 1], [], []>} : vector<8x32xbf16>, vector<32x256xbf16>, vector<8x256xf32> -> vector<8x256xf32>
    %375 = arith.addf %374, %370 : vector<8x256xf32>
    %376 = math.tanh %375 : vector<8x256xf32>
    %377 = arith.truncf %376 : vector<8x256xf32> to vector<8x256xbf16>
    %cst_107 = arith.constant dense<0.000000e+00> : vector<8x32xf32>
    %378 = tpu.matmul %377, %7, %cst_107 {dimension_numbers = #tpu.dot_dimension_numbers<[1], [0], [0], [1], [0, 0, 1, 1], [], []>} : vector<8x256xbf16>, vector<256x32xbf16>, vector<8x32xf32> -> vector<8x32xf32>
    %379 = arith.addf %378, %17 : vector<8x32xf32>
    %380 = arith.negf %379 : vector<8x32xf32>
    %381 = math.exp %380 : vector<8x32xf32>
    %cst_108 = arith.constant 1.000000e+00 : f32
    %382 = vector.broadcast %cst_108 : f32 to vector<8x32xf32>
    %383 = arith.addf %382, %381 : vector<8x32xf32>
    %384 = arith.divf %382, %383 : vector<8x32xf32>
    %385 = vector.extract_strided_slice %384 {offsets = [0, 0], sizes = [8, 16], strides = [1, 1]} : vector<8x32xf32> to vector<8x16xf32>
    %386 = vector.extract_strided_slice %384 {offsets = [0, 16], sizes = [8, 16], strides = [1, 1]} : vector<8x32xf32> to vector<8x16xf32>
    %387 = arith.mulf %365, %386 : vector<8x16xf32>
    %388 = arith.mulf %346, %386 : vector<8x16xf32>
    %389 = tpu.concatenate %387, %388 in 1 : vector<8x16xf32>, vector<8x16xf32> -> vector<8x32xf32>
    %390 = arith.truncf %389 : vector<8x32xf32> to vector<8x32xbf16>
    %cst_109 = arith.constant dense<0.000000e+00> : vector<8x128xf32>
    %391 = tpu.matmul %390, %6, %cst_109 {dimension_numbers = #tpu.dot_dimension_numbers<[1], [0], [0], [1], [0, 0, 1, 1], [], []>} : vector<8x32xbf16>, vector<32x128xbf16>, vector<8x128xf32> -> vector<8x128xf32>
    %392 = arith.addf %391, %371 : vector<8x128xf32>
    %393 = math.tanh %392 : vector<8x128xf32>
    %394 = arith.truncf %393 : vector<8x128xf32> to vector<8x128xbf16>
    %cst_110 = arith.constant dense<0.000000e+00> : vector<8x32xf32>
    %395 = tpu.matmul %394, %8, %cst_110 {dimension_numbers = #tpu.dot_dimension_numbers<[1], [0], [0], [1], [0, 0, 1, 1], [], []>} : vector<8x128xbf16>, vector<128x32xbf16>, vector<8x32xf32> -> vector<8x32xf32>
    %396 = arith.addf %395, %20 : vector<8x32xf32>
    %397 = vector.extract_strided_slice %396 {offsets = [0, 0], sizes = [8, 16], strides = [1, 1]} : vector<8x32xf32> to vector<8x16xf32>
    %398 = vector.extract_strided_slice %396 {offsets = [0, 16], sizes = [8, 16], strides = [1, 1]} : vector<8x32xf32> to vector<8x16xf32>
    %399 = math.absf %398 : vector<8x16xf32>
    %cst_111 = arith.constant 1.000000e+00 : f32
    %400 = vector.broadcast %cst_111 : f32 to vector<8x16xf32>
    %401 = arith.subf %400, %385 : vector<8x16xf32>
    %402 = arith.mulf %401, %397 : vector<8x16xf32>
    %403 = arith.mulf %385, %365 : vector<8x16xf32>
    %404 = arith.addf %402, %403 : vector<8x16xf32>
    %cst_112 = arith.constant 1.000000e+00 : f32
    %405 = vector.broadcast %cst_112 : f32 to vector<8x16xf32>
    %406 = arith.subf %405, %385 : vector<8x16xf32>
    %407 = arith.mulf %406, %399 : vector<8x16xf32>
    %408 = arith.mulf %385, %346 : vector<8x16xf32>
    %409 = arith.addf %407, %408 : vector<8x16xf32>
    %410 = math.absf %409 : vector<8x16xf32>
    %411 = arith.truncf %404 : vector<8x16xf32> to vector<8x16xbf16>
    %412 = arith.index_cast %c5_i32 : i32 to index
    %c0_113 = arith.constant 0 : index
    %c0_114 = arith.constant 0 : index
    %413 = vector.load %arg15[%412, %c0_113, %c0_114] : memref<16x8x16xbf16, #tpu.memory_space<vmem>>, vector<1x8x16xbf16>
    %414 = vector.shape_cast %413 : vector<1x8x16xbf16> to vector<8x16xbf16>
    %415 = vector.shape_cast %411 : vector<8x16xbf16> to vector<1x8x16xbf16>
    tpu.vector_store %arg15[%412, %c0_113, %c0_114], %415 {strides = array<i32>} : memref<16x8x16xbf16, #tpu.memory_space<vmem>>, vector<1x8x16xbf16>,
    %c6_i32 = arith.constant 6 : i32
    %c16_i32_115 = arith.constant 16 : i32
    %416 = arith.muli %arg0, %c16_i32_115 : i32
    %417 = arith.addi %416, %c6_i32 : i32
    %418 = arith.index_cast %417 : i32 to index
    %419 = memref.load %arg1[%418] : memref<32xf32, #tpu.memory_space<smem>>
    %420 = arith.truncf %404 : vector<8x16xf32> to vector<8x16xbf16>
    %cst_116 = arith.constant dense<0.000000e+00> : vector<8x64xf32>
    %421 = tpu.matmul %420, %3, %cst_116 {dimension_numbers = #tpu.dot_dimension_numbers<[1], [0], [0], [1], [0, 0, 1, 1], [], []>} : vector<8x16xbf16>, vector<16x64xbf16>, vector<8x64xf32> -> vector<8x64xf32>
    %422 = arith.addf %421, %11 : vector<8x64xf32>
    %423 = math.tanh %422 : vector<8x64xf32>
    %424 = arith.truncf %423 : vector<8x64xf32> to vector<8x64xbf16>
    %cst_117 = arith.constant dense<0.000000e+00> : vector<8x16xf32>
    %425 = tpu.matmul %424, %4, %cst_117 {dimension_numbers = #tpu.dot_dimension_numbers<[1], [0], [0], [1], [0, 0, 1, 1], [], []>} : vector<8x64xbf16>, vector<64x16xbf16>, vector<8x16xf32> -> vector<8x16xf32>
    %426 = arith.addf %425, %14 : vector<8x16xf32>
    %427 = vector.broadcast %419 : f32 to vector<8x16xf32>
    %428 = arith.mulf %426, %427 : vector<8x16xf32>
    %429 = arith.addf %404, %428 : vector<8x16xf32>
    %c8_i32_118 = arith.constant 8 : i32
    %430 = arith.muli %c6_i32, %c8_i32_118 : i32
    %431 = tpu.assume_multiple %430, 8 : i32
    %432 = arith.index_cast %431 : i32 to index
    %c0_119 = arith.constant 0 : index
    %433 = vector.load %arg16[%432, %c0_119] : memref<128x384xf32, #tpu.memory_space<vmem>>, vector<8x384xf32>
    %434 = vector.extract_strided_slice %433 {offsets = [0, 0], sizes = [8, 256], strides = [1, 1]} : vector<8x384xf32> to vector<8x256xf32>
    %435 = vector.extract_strided_slice %433 {offsets = [0, 256], sizes = [8, 128], strides = [1, 1]} : vector<8x384xf32> to vector<8x128xf32>
    %436 = tpu.concatenate %429, %410 in 1 : vector<8x16xf32>, vector<8x16xf32> -> vector<8x32xf32>
    %437 = arith.truncf %436 : vector<8x32xf32> to vector<8x32xbf16>
    %cst_120 = arith.constant dense<0.000000e+00> : vector<8x256xf32>
    %438 = tpu.matmul %437, %5, %cst_120 {dimension_numbers = #tpu.dot_dimension_numbers<[1], [0], [0], [1], [0, 0, 1, 1], [], []>} : vector<8x32xbf16>, vector<32x256xbf16>, vector<8x256xf32> -> vector<8x256xf32>
    %439 = arith.addf %438, %434 : vector<8x256xf32>
    %440 = math.tanh %439 : vector<8x256xf32>
    %441 = arith.truncf %440 : vector<8x256xf32> to vector<8x256xbf16>
    %cst_121 = arith.constant dense<0.000000e+00> : vector<8x32xf32>
    %442 = tpu.matmul %441, %7, %cst_121 {dimension_numbers = #tpu.dot_dimension_numbers<[1], [0], [0], [1], [0, 0, 1, 1], [], []>} : vector<8x256xbf16>, vector<256x32xbf16>, vector<8x32xf32> -> vector<8x32xf32>
    %443 = arith.addf %442, %17 : vector<8x32xf32>
    %444 = arith.negf %443 : vector<8x32xf32>
    %445 = math.exp %444 : vector<8x32xf32>
    %cst_122 = arith.constant 1.000000e+00 : f32
    %446 = vector.broadcast %cst_122 : f32 to vector<8x32xf32>
    %447 = arith.addf %446, %445 : vector<8x32xf32>
    %448 = arith.divf %446, %447 : vector<8x32xf32>
    %449 = vector.extract_strided_slice %448 {offsets = [0, 0], sizes = [8, 16], strides = [1, 1]} : vector<8x32xf32> to vector<8x16xf32>
    %450 = vector.extract_strided_slice %448 {offsets = [0, 16], sizes = [8, 16], strides = [1, 1]} : vector<8x32xf32> to vector<8x16xf32>
    %451 = arith.mulf %429, %450 : vector<8x16xf32>
    %452 = arith.mulf %410, %450 : vector<8x16xf32>
    %453 = tpu.concatenate %451, %452 in 1 : vector<8x16xf32>, vector<8x16xf32> -> vector<8x32xf32>
    %454 = arith.truncf %453 : vector<8x32xf32> to vector<8x32xbf16>
    %cst_123 = arith.constant dense<0.000000e+00> : vector<8x128xf32>
    %455 = tpu.matmul %454, %6, %cst_123 {dimension_numbers = #tpu.dot_dimension_numbers<[1], [0], [0], [1], [0, 0, 1, 1], [], []>} : vector<8x32xbf16>, vector<32x128xbf16>, vector<8x128xf32> -> vector<8x128xf32>
    %456 = arith.addf %455, %435 : vector<8x128xf32>
    %457 = math.tanh %456 : vector<8x128xf32>
    %458 = arith.truncf %457 : vector<8x128xf32> to vector<8x128xbf16>
    %cst_124 = arith.constant dense<0.000000e+00> : vector<8x32xf32>
    %459 = tpu.matmul %458, %8, %cst_124 {dimension_numbers = #tpu.dot_dimension_numbers<[1], [0], [0], [1], [0, 0, 1, 1], [], []>} : vector<8x128xbf16>, vector<128x32xbf16>, vector<8x32xf32> -> vector<8x32xf32>
    %460 = arith.addf %459, %20 : vector<8x32xf32>
    %461 = vector.extract_strided_slice %460 {offsets = [0, 0], sizes = [8, 16], strides = [1, 1]} : vector<8x32xf32> to vector<8x16xf32>
    %462 = vector.extract_strided_slice %460 {offsets = [0, 16], sizes = [8, 16], strides = [1, 1]} : vector<8x32xf32> to vector<8x16xf32>
    %463 = math.absf %462 : vector<8x16xf32>
    %cst_125 = arith.constant 1.000000e+00 : f32
    %464 = vector.broadcast %cst_125 : f32 to vector<8x16xf32>
    %465 = arith.subf %464, %449 : vector<8x16xf32>
    %466 = arith.mulf %465, %461 : vector<8x16xf32>
    %467 = arith.mulf %449, %429 : vector<8x16xf32>
    %468 = arith.addf %466, %467 : vector<8x16xf32>
    %cst_126 = arith.constant 1.000000e+00 : f32
    %469 = vector.broadcast %cst_126 : f32 to vector<8x16xf32>
    %470 = arith.subf %469, %449 : vector<8x16xf32>
    %471 = arith.mulf %470, %463 : vector<8x16xf32>
    %472 = arith.mulf %449, %410 : vector<8x16xf32>
    %473 = arith.addf %471, %472 : vector<8x16xf32>
    %474 = math.absf %473 : vector<8x16xf32>
    %475 = arith.truncf %468 : vector<8x16xf32> to vector<8x16xbf16>
    %476 = arith.index_cast %c6_i32 : i32 to index
    %c0_127 = arith.constant 0 : index
    %c0_128 = arith.constant 0 : index
    %477 = vector.load %arg15[%476, %c0_127, %c0_128] : memref<16x8x16xbf16, #tpu.memory_space<vmem>>, vector<1x8x16xbf16>
    %478 = vector.shape_cast %477 : vector<1x8x16xbf16> to vector<8x16xbf16>
    %479 = vector.shape_cast %475 : vector<8x16xbf16> to vector<1x8x16xbf16>
    tpu.vector_store %arg15[%476, %c0_127, %c0_128], %479 {strides = array<i32>} : memref<16x8x16xbf16, #tpu.memory_space<vmem>>, vector<1x8x16xbf16>,
    %c7_i32 = arith.constant 7 : i32
    %c16_i32_129 = arith.constant 16 : i32
    %480 = arith.muli %arg0, %c16_i32_129 : i32
    %481 = arith.addi %480, %c7_i32 : i32
    %482 = arith.index_cast %481 : i32 to index
    %483 = memref.load %arg1[%482] : memref<32xf32, #tpu.memory_space<smem>>
    %484 = arith.truncf %468 : vector<8x16xf32> to vector<8x16xbf16>
    %cst_130 = arith.constant dense<0.000000e+00> : vector<8x64xf32>
    %485 = tpu.matmul %484, %3, %cst_130 {dimension_numbers = #tpu.dot_dimension_numbers<[1], [0], [0], [1], [0, 0, 1, 1], [], []>} : vector<8x16xbf16>, vector<16x64xbf16>, vector<8x64xf32> -> vector<8x64xf32>
    %486 = arith.addf %485, %11 : vector<8x64xf32>
    %487 = math.tanh %486 : vector<8x64xf32>
    %488 = arith.truncf %487 : vector<8x64xf32> to vector<8x64xbf16>
    %cst_131 = arith.constant dense<0.000000e+00> : vector<8x16xf32>
    %489 = tpu.matmul %488, %4, %cst_131 {dimension_numbers = #tpu.dot_dimension_numbers<[1], [0], [0], [1], [0, 0, 1, 1], [], []>} : vector<8x64xbf16>, vector<64x16xbf16>, vector<8x16xf32> -> vector<8x16xf32>
    %490 = arith.addf %489, %14 : vector<8x16xf32>
    %491 = vector.broadcast %483 : f32 to vector<8x16xf32>
    %492 = arith.mulf %490, %491 : vector<8x16xf32>
    %493 = arith.addf %468, %492 : vector<8x16xf32>
    %c8_i32_132 = arith.constant 8 : i32
    %494 = arith.muli %c7_i32, %c8_i32_132 : i32
    %495 = tpu.assume_multiple %494, 8 : i32
    %496 = arith.index_cast %495 : i32 to index
    %c0_133 = arith.constant 0 : index
    %497 = vector.load %arg16[%496, %c0_133] : memref<128x384xf32, #tpu.memory_space<vmem>>, vector<8x384xf32>
    %498 = vector.extract_strided_slice %497 {offsets = [0, 0], sizes = [8, 256], strides = [1, 1]} : vector<8x384xf32> to vector<8x256xf32>
    %499 = vector.extract_strided_slice %497 {offsets = [0, 256], sizes = [8, 128], strides = [1, 1]} : vector<8x384xf32> to vector<8x128xf32>
    %500 = tpu.concatenate %493, %474 in 1 : vector<8x16xf32>, vector<8x16xf32> -> vector<8x32xf32>
    %501 = arith.truncf %500 : vector<8x32xf32> to vector<8x32xbf16>
    %cst_134 = arith.constant dense<0.000000e+00> : vector<8x256xf32>
    %502 = tpu.matmul %501, %5, %cst_134 {dimension_numbers = #tpu.dot_dimension_numbers<[1], [0], [0], [1], [0, 0, 1, 1], [], []>} : vector<8x32xbf16>, vector<32x256xbf16>, vector<8x256xf32> -> vector<8x256xf32>
    %503 = arith.addf %502, %498 : vector<8x256xf32>
    %504 = math.tanh %503 : vector<8x256xf32>
    %505 = arith.truncf %504 : vector<8x256xf32> to vector<8x256xbf16>
    %cst_135 = arith.constant dense<0.000000e+00> : vector<8x32xf32>
    %506 = tpu.matmul %505, %7, %cst_135 {dimension_numbers = #tpu.dot_dimension_numbers<[1], [0], [0], [1], [0, 0, 1, 1], [], []>} : vector<8x256xbf16>, vector<256x32xbf16>, vector<8x32xf32> -> vector<8x32xf32>
    %507 = arith.addf %506, %17 : vector<8x32xf32>
    %508 = arith.negf %507 : vector<8x32xf32>
    %509 = math.exp %508 : vector<8x32xf32>
    %cst_136 = arith.constant 1.000000e+00 : f32
    %510 = vector.broadcast %cst_136 : f32 to vector<8x32xf32>
    %511 = arith.addf %510, %509 : vector<8x32xf32>
    %512 = arith.divf %510, %511 : vector<8x32xf32>
    %513 = vector.extract_strided_slice %512 {offsets = [0, 0], sizes = [8, 16], strides = [1, 1]} : vector<8x32xf32> to vector<8x16xf32>
    %514 = vector.extract_strided_slice %512 {offsets = [0, 16], sizes = [8, 16], strides = [1, 1]} : vector<8x32xf32> to vector<8x16xf32>
    %515 = arith.mulf %493, %514 : vector<8x16xf32>
    %516 = arith.mulf %474, %514 : vector<8x16xf32>
    %517 = tpu.concatenate %515, %516 in 1 : vector<8x16xf32>, vector<8x16xf32> -> vector<8x32xf32>
    %518 = arith.truncf %517 : vector<8x32xf32> to vector<8x32xbf16>
    %cst_137 = arith.constant dense<0.000000e+00> : vector<8x128xf32>
    %519 = tpu.matmul %518, %6, %cst_137 {dimension_numbers = #tpu.dot_dimension_numbers<[1], [0], [0], [1], [0, 0, 1, 1], [], []>} : vector<8x32xbf16>, vector<32x128xbf16>, vector<8x128xf32> -> vector<8x128xf32>
    %520 = arith.addf %519, %499 : vector<8x128xf32>
    %521 = math.tanh %520 : vector<8x128xf32>
    %522 = arith.truncf %521 : vector<8x128xf32> to vector<8x128xbf16>
    %cst_138 = arith.constant dense<0.000000e+00> : vector<8x32xf32>
    %523 = tpu.matmul %522, %8, %cst_138 {dimension_numbers = #tpu.dot_dimension_numbers<[1], [0], [0], [1], [0, 0, 1, 1], [], []>} : vector<8x128xbf16>, vector<128x32xbf16>, vector<8x32xf32> -> vector<8x32xf32>
    %524 = arith.addf %523, %20 : vector<8x32xf32>
    %525 = vector.extract_strided_slice %524 {offsets = [0, 0], sizes = [8, 16], strides = [1, 1]} : vector<8x32xf32> to vector<8x16xf32>
    %526 = vector.extract_strided_slice %524 {offsets = [0, 16], sizes = [8, 16], strides = [1, 1]} : vector<8x32xf32> to vector<8x16xf32>
    %527 = math.absf %526 : vector<8x16xf32>
    %cst_139 = arith.constant 1.000000e+00 : f32
    %528 = vector.broadcast %cst_139 : f32 to vector<8x16xf32>
    %529 = arith.subf %528, %513 : vector<8x16xf32>
    %530 = arith.mulf %529, %525 : vector<8x16xf32>
    %531 = arith.mulf %513, %493 : vector<8x16xf32>
    %532 = arith.addf %530, %531 : vector<8x16xf32>
    %cst_140 = arith.constant 1.000000e+00 : f32
    %533 = vector.broadcast %cst_140 : f32 to vector<8x16xf32>
    %534 = arith.subf %533, %513 : vector<8x16xf32>
    %535 = arith.mulf %534, %527 : vector<8x16xf32>
    %536 = arith.mulf %513, %474 : vector<8x16xf32>
    %537 = arith.addf %535, %536 : vector<8x16xf32>
    %538 = math.absf %537 : vector<8x16xf32>
    %539 = arith.truncf %532 : vector<8x16xf32> to vector<8x16xbf16>
    %540 = arith.index_cast %c7_i32 : i32 to index
    %c0_141 = arith.constant 0 : index
    %c0_142 = arith.constant 0 : index
    %541 = vector.load %arg15[%540, %c0_141, %c0_142] : memref<16x8x16xbf16, #tpu.memory_space<vmem>>, vector<1x8x16xbf16>
    %542 = vector.shape_cast %541 : vector<1x8x16xbf16> to vector<8x16xbf16>
    %543 = vector.shape_cast %539 : vector<8x16xbf16> to vector<1x8x16xbf16>
    tpu.vector_store %arg15[%540, %c0_141, %c0_142], %543 {strides = array<i32>} : memref<16x8x16xbf16, #tpu.memory_space<vmem>>, vector<1x8x16xbf16>,
    %c8_i32_143 = arith.constant 8 : i32
    %c16_i32_144 = arith.constant 16 : i32
    %544 = arith.muli %arg0, %c16_i32_144 : i32
    %545 = arith.addi %544, %c8_i32_143 : i32
    %546 = arith.index_cast %545 : i32 to index
    %547 = memref.load %arg1[%546] : memref<32xf32, #tpu.memory_space<smem>>
    %548 = arith.truncf %532 : vector<8x16xf32> to vector<8x16xbf16>
    %cst_145 = arith.constant dense<0.000000e+00> : vector<8x64xf32>
    %549 = tpu.matmul %548, %3, %cst_145 {dimension_numbers = #tpu.dot_dimension_numbers<[1], [0], [0], [1], [0, 0, 1, 1], [], []>} : vector<8x16xbf16>, vector<16x64xbf16>, vector<8x64xf32> -> vector<8x64xf32>
    %550 = arith.addf %549, %11 : vector<8x64xf32>
    %551 = math.tanh %550 : vector<8x64xf32>
    %552 = arith.truncf %551 : vector<8x64xf32> to vector<8x64xbf16>
    %cst_146 = arith.constant dense<0.000000e+00> : vector<8x16xf32>
    %553 = tpu.matmul %552, %4, %cst_146 {dimension_numbers = #tpu.dot_dimension_numbers<[1], [0], [0], [1], [0, 0, 1, 1], [], []>} : vector<8x64xbf16>, vector<64x16xbf16>, vector<8x16xf32> -> vector<8x16xf32>
    %554 = arith.addf %553, %14 : vector<8x16xf32>
    %555 = vector.broadcast %547 : f32 to vector<8x16xf32>
    %556 = arith.mulf %554, %555 : vector<8x16xf32>
    %557 = arith.addf %532, %556 : vector<8x16xf32>
    %c8_i32_147 = arith.constant 8 : i32
    %558 = arith.muli %c8_i32_143, %c8_i32_147 : i32
    %559 = tpu.assume_multiple %558, 8 : i32
    %560 = arith.index_cast %559 : i32 to index
    %c0_148 = arith.constant 0 : index
    %561 = vector.load %arg16[%560, %c0_148] : memref<128x384xf32, #tpu.memory_space<vmem>>, vector<8x384xf32>
    %562 = vector.extract_strided_slice %561 {offsets = [0, 0], sizes = [8, 256], strides = [1, 1]} : vector<8x384xf32> to vector<8x256xf32>
    %563 = vector.extract_strided_slice %561 {offsets = [0, 256], sizes = [8, 128], strides = [1, 1]} : vector<8x384xf32> to vector<8x128xf32>
    %564 = tpu.concatenate %557, %538 in 1 : vector<8x16xf32>, vector<8x16xf32> -> vector<8x32xf32>
    %565 = arith.truncf %564 : vector<8x32xf32> to vector<8x32xbf16>
    %cst_149 = arith.constant dense<0.000000e+00> : vector<8x256xf32>
    %566 = tpu.matmul %565, %5, %cst_149 {dimension_numbers = #tpu.dot_dimension_numbers<[1], [0], [0], [1], [0, 0, 1, 1], [], []>} : vector<8x32xbf16>, vector<32x256xbf16>, vector<8x256xf32> -> vector<8x256xf32>
    %567 = arith.addf %566, %562 : vector<8x256xf32>
    %568 = math.tanh %567 : vector<8x256xf32>
    %569 = arith.truncf %568 : vector<8x256xf32> to vector<8x256xbf16>
    %cst_150 = arith.constant dense<0.000000e+00> : vector<8x32xf32>
    %570 = tpu.matmul %569, %7, %cst_150 {dimension_numbers = #tpu.dot_dimension_numbers<[1], [0], [0], [1], [0, 0, 1, 1], [], []>} : vector<8x256xbf16>, vector<256x32xbf16>, vector<8x32xf32> -> vector<8x32xf32>
    %571 = arith.addf %570, %17 : vector<8x32xf32>
    %572 = arith.negf %571 : vector<8x32xf32>
    %573 = math.exp %572 : vector<8x32xf32>
    %cst_151 = arith.constant 1.000000e+00 : f32
    %574 = vector.broadcast %cst_151 : f32 to vector<8x32xf32>
    %575 = arith.addf %574, %573 : vector<8x32xf32>
    %576 = arith.divf %574, %575 : vector<8x32xf32>
    %577 = vector.extract_strided_slice %576 {offsets = [0, 0], sizes = [8, 16], strides = [1, 1]} : vector<8x32xf32> to vector<8x16xf32>
    %578 = vector.extract_strided_slice %576 {offsets = [0, 16], sizes = [8, 16], strides = [1, 1]} : vector<8x32xf32> to vector<8x16xf32>
    %579 = arith.mulf %557, %578 : vector<8x16xf32>
    %580 = arith.mulf %538, %578 : vector<8x16xf32>
    %581 = tpu.concatenate %579, %580 in 1 : vector<8x16xf32>, vector<8x16xf32> -> vector<8x32xf32>
    %582 = arith.truncf %581 : vector<8x32xf32> to vector<8x32xbf16>
    %cst_152 = arith.constant dense<0.000000e+00> : vector<8x128xf32>
    %583 = tpu.matmul %582, %6, %cst_152 {dimension_numbers = #tpu.dot_dimension_numbers<[1], [0], [0], [1], [0, 0, 1, 1], [], []>} : vector<8x32xbf16>, vector<32x128xbf16>, vector<8x128xf32> -> vector<8x128xf32>
    %584 = arith.addf %583, %563 : vector<8x128xf32>
    %585 = math.tanh %584 : vector<8x128xf32>
    %586 = arith.truncf %585 : vector<8x128xf32> to vector<8x128xbf16>
    %cst_153 = arith.constant dense<0.000000e+00> : vector<8x32xf32>
    %587 = tpu.matmul %586, %8, %cst_153 {dimension_numbers = #tpu.dot_dimension_numbers<[1], [0], [0], [1], [0, 0, 1, 1], [], []>} : vector<8x128xbf16>, vector<128x32xbf16>, vector<8x32xf32> -> vector<8x32xf32>
    %588 = arith.addf %587, %20 : vector<8x32xf32>
    %589 = vector.extract_strided_slice %588 {offsets = [0, 0], sizes = [8, 16], strides = [1, 1]} : vector<8x32xf32> to vector<8x16xf32>
    %590 = vector.extract_strided_slice %588 {offsets = [0, 16], sizes = [8, 16], strides = [1, 1]} : vector<8x32xf32> to vector<8x16xf32>
    %591 = math.absf %590 : vector<8x16xf32>
    %cst_154 = arith.constant 1.000000e+00 : f32
    %592 = vector.broadcast %cst_154 : f32 to vector<8x16xf32>
    %593 = arith.subf %592, %577 : vector<8x16xf32>
    %594 = arith.mulf %593, %589 : vector<8x16xf32>
    %595 = arith.mulf %577, %557 : vector<8x16xf32>
    %596 = arith.addf %594, %595 : vector<8x16xf32>
    %cst_155 = arith.constant 1.000000e+00 : f32
    %597 = vector.broadcast %cst_155 : f32 to vector<8x16xf32>
    %598 = arith.subf %597, %577 : vector<8x16xf32>
    %599 = arith.mulf %598, %591 : vector<8x16xf32>
    %600 = arith.mulf %577, %538 : vector<8x16xf32>
    %601 = arith.addf %599, %600 : vector<8x16xf32>
    %602 = math.absf %601 : vector<8x16xf32>
    %603 = arith.truncf %596 : vector<8x16xf32> to vector<8x16xbf16>
    %604 = arith.index_cast %c8_i32_143 : i32 to index
    %c0_156 = arith.constant 0 : index
    %c0_157 = arith.constant 0 : index
    %605 = vector.load %arg15[%604, %c0_156, %c0_157] : memref<16x8x16xbf16, #tpu.memory_space<vmem>>, vector<1x8x16xbf16>
    %606 = vector.shape_cast %605 : vector<1x8x16xbf16> to vector<8x16xbf16>
    %607 = vector.shape_cast %603 : vector<8x16xbf16> to vector<1x8x16xbf16>
    tpu.vector_store %arg15[%604, %c0_156, %c0_157], %607 {strides = array<i32>} : memref<16x8x16xbf16, #tpu.memory_space<vmem>>, vector<1x8x16xbf16>,
    %c9_i32 = arith.constant 9 : i32
    %c16_i32_158 = arith.constant 16 : i32
    %608 = arith.muli %arg0, %c16_i32_158 : i32
    %609 = arith.addi %608, %c9_i32 : i32
    %610 = arith.index_cast %609 : i32 to index
    %611 = memref.load %arg1[%610] : memref<32xf32, #tpu.memory_space<smem>>
    %612 = arith.truncf %596 : vector<8x16xf32> to vector<8x16xbf16>
    %cst_159 = arith.constant dense<0.000000e+00> : vector<8x64xf32>
    %613 = tpu.matmul %612, %3, %cst_159 {dimension_numbers = #tpu.dot_dimension_numbers<[1], [0], [0], [1], [0, 0, 1, 1], [], []>} : vector<8x16xbf16>, vector<16x64xbf16>, vector<8x64xf32> -> vector<8x64xf32>
    %614 = arith.addf %613, %11 : vector<8x64xf32>
    %615 = math.tanh %614 : vector<8x64xf32>
    %616 = arith.truncf %615 : vector<8x64xf32> to vector<8x64xbf16>
    %cst_160 = arith.constant dense<0.000000e+00> : vector<8x16xf32>
    %617 = tpu.matmul %616, %4, %cst_160 {dimension_numbers = #tpu.dot_dimension_numbers<[1], [0], [0], [1], [0, 0, 1, 1], [], []>} : vector<8x64xbf16>, vector<64x16xbf16>, vector<8x16xf32> -> vector<8x16xf32>
    %618 = arith.addf %617, %14 : vector<8x16xf32>
    %619 = vector.broadcast %611 : f32 to vector<8x16xf32>
    %620 = arith.mulf %618, %619 : vector<8x16xf32>
    %621 = arith.addf %596, %620 : vector<8x16xf32>
    %c8_i32_161 = arith.constant 8 : i32
    %622 = arith.muli %c9_i32, %c8_i32_161 : i32
    %623 = tpu.assume_multiple %622, 8 : i32
    %624 = arith.index_cast %623 : i32 to index
    %c0_162 = arith.constant 0 : index
    %625 = vector.load %arg16[%624, %c0_162] : memref<128x384xf32, #tpu.memory_space<vmem>>, vector<8x384xf32>
    %626 = vector.extract_strided_slice %625 {offsets = [0, 0], sizes = [8, 256], strides = [1, 1]} : vector<8x384xf32> to vector<8x256xf32>
    %627 = vector.extract_strided_slice %625 {offsets = [0, 256], sizes = [8, 128], strides = [1, 1]} : vector<8x384xf32> to vector<8x128xf32>
    %628 = tpu.concatenate %621, %602 in 1 : vector<8x16xf32>, vector<8x16xf32> -> vector<8x32xf32>
    %629 = arith.truncf %628 : vector<8x32xf32> to vector<8x32xbf16>
    %cst_163 = arith.constant dense<0.000000e+00> : vector<8x256xf32>
    %630 = tpu.matmul %629, %5, %cst_163 {dimension_numbers = #tpu.dot_dimension_numbers<[1], [0], [0], [1], [0, 0, 1, 1], [], []>} : vector<8x32xbf16>, vector<32x256xbf16>, vector<8x256xf32> -> vector<8x256xf32>
    %631 = arith.addf %630, %626 : vector<8x256xf32>
    %632 = math.tanh %631 : vector<8x256xf32>
    %633 = arith.truncf %632 : vector<8x256xf32> to vector<8x256xbf16>
    %cst_164 = arith.constant dense<0.000000e+00> : vector<8x32xf32>
    %634 = tpu.matmul %633, %7, %cst_164 {dimension_numbers = #tpu.dot_dimension_numbers<[1], [0], [0], [1], [0, 0, 1, 1], [], []>} : vector<8x256xbf16>, vector<256x32xbf16>, vector<8x32xf32> -> vector<8x32xf32>
    %635 = arith.addf %634, %17 : vector<8x32xf32>
    %636 = arith.negf %635 : vector<8x32xf32>
    %637 = math.exp %636 : vector<8x32xf32>
    %cst_165 = arith.constant 1.000000e+00 : f32
    %638 = vector.broadcast %cst_165 : f32 to vector<8x32xf32>
    %639 = arith.addf %638, %637 : vector<8x32xf32>
    %640 = arith.divf %638, %639 : vector<8x32xf32>
    %641 = vector.extract_strided_slice %640 {offsets = [0, 0], sizes = [8, 16], strides = [1, 1]} : vector<8x32xf32> to vector<8x16xf32>
    %642 = vector.extract_strided_slice %640 {offsets = [0, 16], sizes = [8, 16], strides = [1, 1]} : vector<8x32xf32> to vector<8x16xf32>
    %643 = arith.mulf %621, %642 : vector<8x16xf32>
    %644 = arith.mulf %602, %642 : vector<8x16xf32>
    %645 = tpu.concatenate %643, %644 in 1 : vector<8x16xf32>, vector<8x16xf32> -> vector<8x32xf32>
    %646 = arith.truncf %645 : vector<8x32xf32> to vector<8x32xbf16>
    %cst_166 = arith.constant dense<0.000000e+00> : vector<8x128xf32>
    %647 = tpu.matmul %646, %6, %cst_166 {dimension_numbers = #tpu.dot_dimension_numbers<[1], [0], [0], [1], [0, 0, 1, 1], [], []>} : vector<8x32xbf16>, vector<32x128xbf16>, vector<8x128xf32> -> vector<8x128xf32>
    %648 = arith.addf %647, %627 : vector<8x128xf32>
    %649 = math.tanh %648 : vector<8x128xf32>
    %650 = arith.truncf %649 : vector<8x128xf32> to vector<8x128xbf16>
    %cst_167 = arith.constant dense<0.000000e+00> : vector<8x32xf32>
    %651 = tpu.matmul %650, %8, %cst_167 {dimension_numbers = #tpu.dot_dimension_numbers<[1], [0], [0], [1], [0, 0, 1, 1], [], []>} : vector<8x128xbf16>, vector<128x32xbf16>, vector<8x32xf32> -> vector<8x32xf32>
    %652 = arith.addf %651, %20 : vector<8x32xf32>
    %653 = vector.extract_strided_slice %652 {offsets = [0, 0], sizes = [8, 16], strides = [1, 1]} : vector<8x32xf32> to vector<8x16xf32>
    %654 = vector.extract_strided_slice %652 {offsets = [0, 16], sizes = [8, 16], strides = [1, 1]} : vector<8x32xf32> to vector<8x16xf32>
    %655 = math.absf %654 : vector<8x16xf32>
    %cst_168 = arith.constant 1.000000e+00 : f32
    %656 = vector.broadcast %cst_168 : f32 to vector<8x16xf32>
    %657 = arith.subf %656, %641 : vector<8x16xf32>
    %658 = arith.mulf %657, %653 : vector<8x16xf32>
    %659 = arith.mulf %641, %621 : vector<8x16xf32>
    %660 = arith.addf %658, %659 : vector<8x16xf32>
    %cst_169 = arith.constant 1.000000e+00 : f32
    %661 = vector.broadcast %cst_169 : f32 to vector<8x16xf32>
    %662 = arith.subf %661, %641 : vector<8x16xf32>
    %663 = arith.mulf %662, %655 : vector<8x16xf32>
    %664 = arith.mulf %641, %602 : vector<8x16xf32>
    %665 = arith.addf %663, %664 : vector<8x16xf32>
    %666 = math.absf %665 : vector<8x16xf32>
    %667 = arith.truncf %660 : vector<8x16xf32> to vector<8x16xbf16>
    %668 = arith.index_cast %c9_i32 : i32 to index
    %c0_170 = arith.constant 0 : index
    %c0_171 = arith.constant 0 : index
    %669 = vector.load %arg15[%668, %c0_170, %c0_171] : memref<16x8x16xbf16, #tpu.memory_space<vmem>>, vector<1x8x16xbf16>
    %670 = vector.shape_cast %669 : vector<1x8x16xbf16> to vector<8x16xbf16>
    %671 = vector.shape_cast %667 : vector<8x16xbf16> to vector<1x8x16xbf16>
    tpu.vector_store %arg15[%668, %c0_170, %c0_171], %671 {strides = array<i32>} : memref<16x8x16xbf16, #tpu.memory_space<vmem>>, vector<1x8x16xbf16>,
    %c10_i32 = arith.constant 10 : i32
    %c16_i32_172 = arith.constant 16 : i32
    %672 = arith.muli %arg0, %c16_i32_172 : i32
    %673 = arith.addi %672, %c10_i32 : i32
    %674 = arith.index_cast %673 : i32 to index
    %675 = memref.load %arg1[%674] : memref<32xf32, #tpu.memory_space<smem>>
    %676 = arith.truncf %660 : vector<8x16xf32> to vector<8x16xbf16>
    %cst_173 = arith.constant dense<0.000000e+00> : vector<8x64xf32>
    %677 = tpu.matmul %676, %3, %cst_173 {dimension_numbers = #tpu.dot_dimension_numbers<[1], [0], [0], [1], [0, 0, 1, 1], [], []>} : vector<8x16xbf16>, vector<16x64xbf16>, vector<8x64xf32> -> vector<8x64xf32>
    %678 = arith.addf %677, %11 : vector<8x64xf32>
    %679 = math.tanh %678 : vector<8x64xf32>
    %680 = arith.truncf %679 : vector<8x64xf32> to vector<8x64xbf16>
    %cst_174 = arith.constant dense<0.000000e+00> : vector<8x16xf32>
    %681 = tpu.matmul %680, %4, %cst_174 {dimension_numbers = #tpu.dot_dimension_numbers<[1], [0], [0], [1], [0, 0, 1, 1], [], []>} : vector<8x64xbf16>, vector<64x16xbf16>, vector<8x16xf32> -> vector<8x16xf32>
    %682 = arith.addf %681, %14 : vector<8x16xf32>
    %683 = vector.broadcast %675 : f32 to vector<8x16xf32>
    %684 = arith.mulf %682, %683 : vector<8x16xf32>
    %685 = arith.addf %660, %684 : vector<8x16xf32>
    %c8_i32_175 = arith.constant 8 : i32
    %686 = arith.muli %c10_i32, %c8_i32_175 : i32
    %687 = tpu.assume_multiple %686, 8 : i32
    %688 = arith.index_cast %687 : i32 to index
    %c0_176 = arith.constant 0 : index
    %689 = vector.load %arg16[%688, %c0_176] : memref<128x384xf32, #tpu.memory_space<vmem>>, vector<8x384xf32>
    %690 = vector.extract_strided_slice %689 {offsets = [0, 0], sizes = [8, 256], strides = [1, 1]} : vector<8x384xf32> to vector<8x256xf32>
    %691 = vector.extract_strided_slice %689 {offsets = [0, 256], sizes = [8, 128], strides = [1, 1]} : vector<8x384xf32> to vector<8x128xf32>
    %692 = tpu.concatenate %685, %666 in 1 : vector<8x16xf32>, vector<8x16xf32> -> vector<8x32xf32>
    %693 = arith.truncf %692 : vector<8x32xf32> to vector<8x32xbf16>
    %cst_177 = arith.constant dense<0.000000e+00> : vector<8x256xf32>
    %694 = tpu.matmul %693, %5, %cst_177 {dimension_numbers = #tpu.dot_dimension_numbers<[1], [0], [0], [1], [0, 0, 1, 1], [], []>} : vector<8x32xbf16>, vector<32x256xbf16>, vector<8x256xf32> -> vector<8x256xf32>
    %695 = arith.addf %694, %690 : vector<8x256xf32>
    %696 = math.tanh %695 : vector<8x256xf32>
    %697 = arith.truncf %696 : vector<8x256xf32> to vector<8x256xbf16>
    %cst_178 = arith.constant dense<0.000000e+00> : vector<8x32xf32>
    %698 = tpu.matmul %697, %7, %cst_178 {dimension_numbers = #tpu.dot_dimension_numbers<[1], [0], [0], [1], [0, 0, 1, 1], [], []>} : vector<8x256xbf16>, vector<256x32xbf16>, vector<8x32xf32> -> vector<8x32xf32>
    %699 = arith.addf %698, %17 : vector<8x32xf32>
    %700 = arith.negf %699 : vector<8x32xf32>
    %701 = math.exp %700 : vector<8x32xf32>
    %cst_179 = arith.constant 1.000000e+00 : f32
    %702 = vector.broadcast %cst_179 : f32 to vector<8x32xf32>
    %703 = arith.addf %702, %701 : vector<8x32xf32>
    %704 = arith.divf %702, %703 : vector<8x32xf32>
    %705 = vector.extract_strided_slice %704 {offsets = [0, 0], sizes = [8, 16], strides = [1, 1]} : vector<8x32xf32> to vector<8x16xf32>
    %706 = vector.extract_strided_slice %704 {offsets = [0, 16], sizes = [8, 16], strides = [1, 1]} : vector<8x32xf32> to vector<8x16xf32>
    %707 = arith.mulf %685, %706 : vector<8x16xf32>
    %708 = arith.mulf %666, %706 : vector<8x16xf32>
    %709 = tpu.concatenate %707, %708 in 1 : vector<8x16xf32>, vector<8x16xf32> -> vector<8x32xf32>
    %710 = arith.truncf %709 : vector<8x32xf32> to vector<8x32xbf16>
    %cst_180 = arith.constant dense<0.000000e+00> : vector<8x128xf32>
    %711 = tpu.matmul %710, %6, %cst_180 {dimension_numbers = #tpu.dot_dimension_numbers<[1], [0], [0], [1], [0, 0, 1, 1], [], []>} : vector<8x32xbf16>, vector<32x128xbf16>, vector<8x128xf32> -> vector<8x128xf32>
    %712 = arith.addf %711, %691 : vector<8x128xf32>
    %713 = math.tanh %712 : vector<8x128xf32>
    %714 = arith.truncf %713 : vector<8x128xf32> to vector<8x128xbf16>
    %cst_181 = arith.constant dense<0.000000e+00> : vector<8x32xf32>
    %715 = tpu.matmul %714, %8, %cst_181 {dimension_numbers = #tpu.dot_dimension_numbers<[1], [0], [0], [1], [0, 0, 1, 1], [], []>} : vector<8x128xbf16>, vector<128x32xbf16>, vector<8x32xf32> -> vector<8x32xf32>
    %716 = arith.addf %715, %20 : vector<8x32xf32>
    %717 = vector.extract_strided_slice %716 {offsets = [0, 0], sizes = [8, 16], strides = [1, 1]} : vector<8x32xf32> to vector<8x16xf32>
    %718 = vector.extract_strided_slice %716 {offsets = [0, 16], sizes = [8, 16], strides = [1, 1]} : vector<8x32xf32> to vector<8x16xf32>
    %719 = math.absf %718 : vector<8x16xf32>
    %cst_182 = arith.constant 1.000000e+00 : f32
    %720 = vector.broadcast %cst_182 : f32 to vector<8x16xf32>
    %721 = arith.subf %720, %705 : vector<8x16xf32>
    %722 = arith.mulf %721, %717 : vector<8x16xf32>
    %723 = arith.mulf %705, %685 : vector<8x16xf32>
    %724 = arith.addf %722, %723 : vector<8x16xf32>
    %cst_183 = arith.constant 1.000000e+00 : f32
    %725 = vector.broadcast %cst_183 : f32 to vector<8x16xf32>
    %726 = arith.subf %725, %705 : vector<8x16xf32>
    %727 = arith.mulf %726, %719 : vector<8x16xf32>
    %728 = arith.mulf %705, %666 : vector<8x16xf32>
    %729 = arith.addf %727, %728 : vector<8x16xf32>
    %730 = math.absf %729 : vector<8x16xf32>
    %731 = arith.truncf %724 : vector<8x16xf32> to vector<8x16xbf16>
    %732 = arith.index_cast %c10_i32 : i32 to index
    %c0_184 = arith.constant 0 : index
    %c0_185 = arith.constant 0 : index
    %733 = vector.load %arg15[%732, %c0_184, %c0_185] : memref<16x8x16xbf16, #tpu.memory_space<vmem>>, vector<1x8x16xbf16>
    %734 = vector.shape_cast %733 : vector<1x8x16xbf16> to vector<8x16xbf16>
    %735 = vector.shape_cast %731 : vector<8x16xbf16> to vector<1x8x16xbf16>
    tpu.vector_store %arg15[%732, %c0_184, %c0_185], %735 {strides = array<i32>} : memref<16x8x16xbf16, #tpu.memory_space<vmem>>, vector<1x8x16xbf16>,
    %c11_i32 = arith.constant 11 : i32
    %c16_i32_186 = arith.constant 16 : i32
    %736 = arith.muli %arg0, %c16_i32_186 : i32
    %737 = arith.addi %736, %c11_i32 : i32
    %738 = arith.index_cast %737 : i32 to index
    %739 = memref.load %arg1[%738] : memref<32xf32, #tpu.memory_space<smem>>
    %740 = arith.truncf %724 : vector<8x16xf32> to vector<8x16xbf16>
    %cst_187 = arith.constant dense<0.000000e+00> : vector<8x64xf32>
    %741 = tpu.matmul %740, %3, %cst_187 {dimension_numbers = #tpu.dot_dimension_numbers<[1], [0], [0], [1], [0, 0, 1, 1], [], []>} : vector<8x16xbf16>, vector<16x64xbf16>, vector<8x64xf32> -> vector<8x64xf32>
    %742 = arith.addf %741, %11 : vector<8x64xf32>
    %743 = math.tanh %742 : vector<8x64xf32>
    %744 = arith.truncf %743 : vector<8x64xf32> to vector<8x64xbf16>
    %cst_188 = arith.constant dense<0.000000e+00> : vector<8x16xf32>
    %745 = tpu.matmul %744, %4, %cst_188 {dimension_numbers = #tpu.dot_dimension_numbers<[1], [0], [0], [1], [0, 0, 1, 1], [], []>} : vector<8x64xbf16>, vector<64x16xbf16>, vector<8x16xf32> -> vector<8x16xf32>
    %746 = arith.addf %745, %14 : vector<8x16xf32>
    %747 = vector.broadcast %739 : f32 to vector<8x16xf32>
    %748 = arith.mulf %746, %747 : vector<8x16xf32>
    %749 = arith.addf %724, %748 : vector<8x16xf32>
    %c8_i32_189 = arith.constant 8 : i32
    %750 = arith.muli %c11_i32, %c8_i32_189 : i32
    %751 = tpu.assume_multiple %750, 8 : i32
    %752 = arith.index_cast %751 : i32 to index
    %c0_190 = arith.constant 0 : index
    %753 = vector.load %arg16[%752, %c0_190] : memref<128x384xf32, #tpu.memory_space<vmem>>, vector<8x384xf32>
    %754 = vector.extract_strided_slice %753 {offsets = [0, 0], sizes = [8, 256], strides = [1, 1]} : vector<8x384xf32> to vector<8x256xf32>
    %755 = vector.extract_strided_slice %753 {offsets = [0, 256], sizes = [8, 128], strides = [1, 1]} : vector<8x384xf32> to vector<8x128xf32>
    %756 = tpu.concatenate %749, %730 in 1 : vector<8x16xf32>, vector<8x16xf32> -> vector<8x32xf32>
    %757 = arith.truncf %756 : vector<8x32xf32> to vector<8x32xbf16>
    %cst_191 = arith.constant dense<0.000000e+00> : vector<8x256xf32>
    %758 = tpu.matmul %757, %5, %cst_191 {dimension_numbers = #tpu.dot_dimension_numbers<[1], [0], [0], [1], [0, 0, 1, 1], [], []>} : vector<8x32xbf16>, vector<32x256xbf16>, vector<8x256xf32> -> vector<8x256xf32>
    %759 = arith.addf %758, %754 : vector<8x256xf32>
    %760 = math.tanh %759 : vector<8x256xf32>
    %761 = arith.truncf %760 : vector<8x256xf32> to vector<8x256xbf16>
    %cst_192 = arith.constant dense<0.000000e+00> : vector<8x32xf32>
    %762 = tpu.matmul %761, %7, %cst_192 {dimension_numbers = #tpu.dot_dimension_numbers<[1], [0], [0], [1], [0, 0, 1, 1], [], []>} : vector<8x256xbf16>, vector<256x32xbf16>, vector<8x32xf32> -> vector<8x32xf32>
    %763 = arith.addf %762, %17 : vector<8x32xf32>
    %764 = arith.negf %763 : vector<8x32xf32>
    %765 = math.exp %764 : vector<8x32xf32>
    %cst_193 = arith.constant 1.000000e+00 : f32
    %766 = vector.broadcast %cst_193 : f32 to vector<8x32xf32>
    %767 = arith.addf %766, %765 : vector<8x32xf32>
    %768 = arith.divf %766, %767 : vector<8x32xf32>
    %769 = vector.extract_strided_slice %768 {offsets = [0, 0], sizes = [8, 16], strides = [1, 1]} : vector<8x32xf32> to vector<8x16xf32>
    %770 = vector.extract_strided_slice %768 {offsets = [0, 16], sizes = [8, 16], strides = [1, 1]} : vector<8x32xf32> to vector<8x16xf32>
    %771 = arith.mulf %749, %770 : vector<8x16xf32>
    %772 = arith.mulf %730, %770 : vector<8x16xf32>
    %773 = tpu.concatenate %771, %772 in 1 : vector<8x16xf32>, vector<8x16xf32> -> vector<8x32xf32>
    %774 = arith.truncf %773 : vector<8x32xf32> to vector<8x32xbf16>
    %cst_194 = arith.constant dense<0.000000e+00> : vector<8x128xf32>
    %775 = tpu.matmul %774, %6, %cst_194 {dimension_numbers = #tpu.dot_dimension_numbers<[1], [0], [0], [1], [0, 0, 1, 1], [], []>} : vector<8x32xbf16>, vector<32x128xbf16>, vector<8x128xf32> -> vector<8x128xf32>
    %776 = arith.addf %775, %755 : vector<8x128xf32>
    %777 = math.tanh %776 : vector<8x128xf32>
    %778 = arith.truncf %777 : vector<8x128xf32> to vector<8x128xbf16>
    %cst_195 = arith.constant dense<0.000000e+00> : vector<8x32xf32>
    %779 = tpu.matmul %778, %8, %cst_195 {dimension_numbers = #tpu.dot_dimension_numbers<[1], [0], [0], [1], [0, 0, 1, 1], [], []>} : vector<8x128xbf16>, vector<128x32xbf16>, vector<8x32xf32> -> vector<8x32xf32>
    %780 = arith.addf %779, %20 : vector<8x32xf32>
    %781 = vector.extract_strided_slice %780 {offsets = [0, 0], sizes = [8, 16], strides = [1, 1]} : vector<8x32xf32> to vector<8x16xf32>
    %782 = vector.extract_strided_slice %780 {offsets = [0, 16], sizes = [8, 16], strides = [1, 1]} : vector<8x32xf32> to vector<8x16xf32>
    %783 = math.absf %782 : vector<8x16xf32>
    %cst_196 = arith.constant 1.000000e+00 : f32
    %784 = vector.broadcast %cst_196 : f32 to vector<8x16xf32>
    %785 = arith.subf %784, %769 : vector<8x16xf32>
    %786 = arith.mulf %785, %781 : vector<8x16xf32>
    %787 = arith.mulf %769, %749 : vector<8x16xf32>
    %788 = arith.addf %786, %787 : vector<8x16xf32>
    %cst_197 = arith.constant 1.000000e+00 : f32
    %789 = vector.broadcast %cst_197 : f32 to vector<8x16xf32>
    %790 = arith.subf %789, %769 : vector<8x16xf32>
    %791 = arith.mulf %790, %783 : vector<8x16xf32>
    %792 = arith.mulf %769, %730 : vector<8x16xf32>
    %793 = arith.addf %791, %792 : vector<8x16xf32>
    %794 = math.absf %793 : vector<8x16xf32>
    %795 = arith.truncf %788 : vector<8x16xf32> to vector<8x16xbf16>
    %796 = arith.index_cast %c11_i32 : i32 to index
    %c0_198 = arith.constant 0 : index
    %c0_199 = arith.constant 0 : index
    %797 = vector.load %arg15[%796, %c0_198, %c0_199] : memref<16x8x16xbf16, #tpu.memory_space<vmem>>, vector<1x8x16xbf16>
    %798 = vector.shape_cast %797 : vector<1x8x16xbf16> to vector<8x16xbf16>
    %799 = vector.shape_cast %795 : vector<8x16xbf16> to vector<1x8x16xbf16>
    tpu.vector_store %arg15[%796, %c0_198, %c0_199], %799 {strides = array<i32>} : memref<16x8x16xbf16, #tpu.memory_space<vmem>>, vector<1x8x16xbf16>,
    %c12_i32 = arith.constant 12 : i32
    %c16_i32_200 = arith.constant 16 : i32
    %800 = arith.muli %arg0, %c16_i32_200 : i32
    %801 = arith.addi %800, %c12_i32 : i32
    %802 = arith.index_cast %801 : i32 to index
    %803 = memref.load %arg1[%802] : memref<32xf32, #tpu.memory_space<smem>>
    %804 = arith.truncf %788 : vector<8x16xf32> to vector<8x16xbf16>
    %cst_201 = arith.constant dense<0.000000e+00> : vector<8x64xf32>
    %805 = tpu.matmul %804, %3, %cst_201 {dimension_numbers = #tpu.dot_dimension_numbers<[1], [0], [0], [1], [0, 0, 1, 1], [], []>} : vector<8x16xbf16>, vector<16x64xbf16>, vector<8x64xf32> -> vector<8x64xf32>
    %806 = arith.addf %805, %11 : vector<8x64xf32>
    %807 = math.tanh %806 : vector<8x64xf32>
    %808 = arith.truncf %807 : vector<8x64xf32> to vector<8x64xbf16>
    %cst_202 = arith.constant dense<0.000000e+00> : vector<8x16xf32>
    %809 = tpu.matmul %808, %4, %cst_202 {dimension_numbers = #tpu.dot_dimension_numbers<[1], [0], [0], [1], [0, 0, 1, 1], [], []>} : vector<8x64xbf16>, vector<64x16xbf16>, vector<8x16xf32> -> vector<8x16xf32>
    %810 = arith.addf %809, %14 : vector<8x16xf32>
    %811 = vector.broadcast %803 : f32 to vector<8x16xf32>
    %812 = arith.mulf %810, %811 : vector<8x16xf32>
    %813 = arith.addf %788, %812 : vector<8x16xf32>
    %c8_i32_203 = arith.constant 8 : i32
    %814 = arith.muli %c12_i32, %c8_i32_203 : i32
    %815 = tpu.assume_multiple %814, 8 : i32
    %816 = arith.index_cast %815 : i32 to index
    %c0_204 = arith.constant 0 : index
    %817 = vector.load %arg16[%816, %c0_204] : memref<128x384xf32, #tpu.memory_space<vmem>>, vector<8x384xf32>
    %818 = vector.extract_strided_slice %817 {offsets = [0, 0], sizes = [8, 256], strides = [1, 1]} : vector<8x384xf32> to vector<8x256xf32>
    %819 = vector.extract_strided_slice %817 {offsets = [0, 256], sizes = [8, 128], strides = [1, 1]} : vector<8x384xf32> to vector<8x128xf32>
    %820 = tpu.concatenate %813, %794 in 1 : vector<8x16xf32>, vector<8x16xf32> -> vector<8x32xf32>
    %821 = arith.truncf %820 : vector<8x32xf32> to vector<8x32xbf16>
    %cst_205 = arith.constant dense<0.000000e+00> : vector<8x256xf32>
    %822 = tpu.matmul %821, %5, %cst_205 {dimension_numbers = #tpu.dot_dimension_numbers<[1], [0], [0], [1], [0, 0, 1, 1], [], []>} : vector<8x32xbf16>, vector<32x256xbf16>, vector<8x256xf32> -> vector<8x256xf32>
    %823 = arith.addf %822, %818 : vector<8x256xf32>
    %824 = math.tanh %823 : vector<8x256xf32>
    %825 = arith.truncf %824 : vector<8x256xf32> to vector<8x256xbf16>
    %cst_206 = arith.constant dense<0.000000e+00> : vector<8x32xf32>
    %826 = tpu.matmul %825, %7, %cst_206 {dimension_numbers = #tpu.dot_dimension_numbers<[1], [0], [0], [1], [0, 0, 1, 1], [], []>} : vector<8x256xbf16>, vector<256x32xbf16>, vector<8x32xf32> -> vector<8x32xf32>
    %827 = arith.addf %826, %17 : vector<8x32xf32>
    %828 = arith.negf %827 : vector<8x32xf32>
    %829 = math.exp %828 : vector<8x32xf32>
    %cst_207 = arith.constant 1.000000e+00 : f32
    %830 = vector.broadcast %cst_207 : f32 to vector<8x32xf32>
    %831 = arith.addf %830, %829 : vector<8x32xf32>
    %832 = arith.divf %830, %831 : vector<8x32xf32>
    %833 = vector.extract_strided_slice %832 {offsets = [0, 0], sizes = [8, 16], strides = [1, 1]} : vector<8x32xf32> to vector<8x16xf32>
    %834 = vector.extract_strided_slice %832 {offsets = [0, 16], sizes = [8, 16], strides = [1, 1]} : vector<8x32xf32> to vector<8x16xf32>
    %835 = arith.mulf %813, %834 : vector<8x16xf32>
    %836 = arith.mulf %794, %834 : vector<8x16xf32>
    %837 = tpu.concatenate %835, %836 in 1 : vector<8x16xf32>, vector<8x16xf32> -> vector<8x32xf32>
    %838 = arith.truncf %837 : vector<8x32xf32> to vector<8x32xbf16>
    %cst_208 = arith.constant dense<0.000000e+00> : vector<8x128xf32>
    %839 = tpu.matmul %838, %6, %cst_208 {dimension_numbers = #tpu.dot_dimension_numbers<[1], [0], [0], [1], [0, 0, 1, 1], [], []>} : vector<8x32xbf16>, vector<32x128xbf16>, vector<8x128xf32> -> vector<8x128xf32>
    %840 = arith.addf %839, %819 : vector<8x128xf32>
    %841 = math.tanh %840 : vector<8x128xf32>
    %842 = arith.truncf %841 : vector<8x128xf32> to vector<8x128xbf16>
    %cst_209 = arith.constant dense<0.000000e+00> : vector<8x32xf32>
    %843 = tpu.matmul %842, %8, %cst_209 {dimension_numbers = #tpu.dot_dimension_numbers<[1], [0], [0], [1], [0, 0, 1, 1], [], []>} : vector<8x128xbf16>, vector<128x32xbf16>, vector<8x32xf32> -> vector<8x32xf32>
    %844 = arith.addf %843, %20 : vector<8x32xf32>
    %845 = vector.extract_strided_slice %844 {offsets = [0, 0], sizes = [8, 16], strides = [1, 1]} : vector<8x32xf32> to vector<8x16xf32>
    %846 = vector.extract_strided_slice %844 {offsets = [0, 16], sizes = [8, 16], strides = [1, 1]} : vector<8x32xf32> to vector<8x16xf32>
    %847 = math.absf %846 : vector<8x16xf32>
    %cst_210 = arith.constant 1.000000e+00 : f32
    %848 = vector.broadcast %cst_210 : f32 to vector<8x16xf32>
    %849 = arith.subf %848, %833 : vector<8x16xf32>
    %850 = arith.mulf %849, %845 : vector<8x16xf32>
    %851 = arith.mulf %833, %813 : vector<8x16xf32>
    %852 = arith.addf %850, %851 : vector<8x16xf32>
    %cst_211 = arith.constant 1.000000e+00 : f32
    %853 = vector.broadcast %cst_211 : f32 to vector<8x16xf32>
    %854 = arith.subf %853, %833 : vector<8x16xf32>
    %855 = arith.mulf %854, %847 : vector<8x16xf32>
    %856 = arith.mulf %833, %794 : vector<8x16xf32>
    %857 = arith.addf %855, %856 : vector<8x16xf32>
    %858 = math.absf %857 : vector<8x16xf32>
    %859 = arith.truncf %852 : vector<8x16xf32> to vector<8x16xbf16>
    %860 = arith.index_cast %c12_i32 : i32 to index
    %c0_212 = arith.constant 0 : index
    %c0_213 = arith.constant 0 : index
    %861 = vector.load %arg15[%860, %c0_212, %c0_213] : memref<16x8x16xbf16, #tpu.memory_space<vmem>>, vector<1x8x16xbf16>
    %862 = vector.shape_cast %861 : vector<1x8x16xbf16> to vector<8x16xbf16>
    %863 = vector.shape_cast %859 : vector<8x16xbf16> to vector<1x8x16xbf16>
    tpu.vector_store %arg15[%860, %c0_212, %c0_213], %863 {strides = array<i32>} : memref<16x8x16xbf16, #tpu.memory_space<vmem>>, vector<1x8x16xbf16>,
    %c13_i32 = arith.constant 13 : i32
    %c16_i32_214 = arith.constant 16 : i32
    %864 = arith.muli %arg0, %c16_i32_214 : i32
    %865 = arith.addi %864, %c13_i32 : i32
    %866 = arith.index_cast %865 : i32 to index
    %867 = memref.load %arg1[%866] : memref<32xf32, #tpu.memory_space<smem>>
    %868 = arith.truncf %852 : vector<8x16xf32> to vector<8x16xbf16>
    %cst_215 = arith.constant dense<0.000000e+00> : vector<8x64xf32>
    %869 = tpu.matmul %868, %3, %cst_215 {dimension_numbers = #tpu.dot_dimension_numbers<[1], [0], [0], [1], [0, 0, 1, 1], [], []>} : vector<8x16xbf16>, vector<16x64xbf16>, vector<8x64xf32> -> vector<8x64xf32>
    %870 = arith.addf %869, %11 : vector<8x64xf32>
    %871 = math.tanh %870 : vector<8x64xf32>
    %872 = arith.truncf %871 : vector<8x64xf32> to vector<8x64xbf16>
    %cst_216 = arith.constant dense<0.000000e+00> : vector<8x16xf32>
    %873 = tpu.matmul %872, %4, %cst_216 {dimension_numbers = #tpu.dot_dimension_numbers<[1], [0], [0], [1], [0, 0, 1, 1], [], []>} : vector<8x64xbf16>, vector<64x16xbf16>, vector<8x16xf32> -> vector<8x16xf32>
    %874 = arith.addf %873, %14 : vector<8x16xf32>
    %875 = vector.broadcast %867 : f32 to vector<8x16xf32>
    %876 = arith.mulf %874, %875 : vector<8x16xf32>
    %877 = arith.addf %852, %876 : vector<8x16xf32>
    %c8_i32_217 = arith.constant 8 : i32
    %878 = arith.muli %c13_i32, %c8_i32_217 : i32
    %879 = tpu.assume_multiple %878, 8 : i32
    %880 = arith.index_cast %879 : i32 to index
    %c0_218 = arith.constant 0 : index
    %881 = vector.load %arg16[%880, %c0_218] : memref<128x384xf32, #tpu.memory_space<vmem>>, vector<8x384xf32>
    %882 = vector.extract_strided_slice %881 {offsets = [0, 0], sizes = [8, 256], strides = [1, 1]} : vector<8x384xf32> to vector<8x256xf32>
    %883 = vector.extract_strided_slice %881 {offsets = [0, 256], sizes = [8, 128], strides = [1, 1]} : vector<8x384xf32> to vector<8x128xf32>
    %884 = tpu.concatenate %877, %858 in 1 : vector<8x16xf32>, vector<8x16xf32> -> vector<8x32xf32>
    %885 = arith.truncf %884 : vector<8x32xf32> to vector<8x32xbf16>
    %cst_219 = arith.constant dense<0.000000e+00> : vector<8x256xf32>
    %886 = tpu.matmul %885, %5, %cst_219 {dimension_numbers = #tpu.dot_dimension_numbers<[1], [0], [0], [1], [0, 0, 1, 1], [], []>} : vector<8x32xbf16>, vector<32x256xbf16>, vector<8x256xf32> -> vector<8x256xf32>
    %887 = arith.addf %886, %882 : vector<8x256xf32>
    %888 = math.tanh %887 : vector<8x256xf32>
    %889 = arith.truncf %888 : vector<8x256xf32> to vector<8x256xbf16>
    %cst_220 = arith.constant dense<0.000000e+00> : vector<8x32xf32>
    %890 = tpu.matmul %889, %7, %cst_220 {dimension_numbers = #tpu.dot_dimension_numbers<[1], [0], [0], [1], [0, 0, 1, 1], [], []>} : vector<8x256xbf16>, vector<256x32xbf16>, vector<8x32xf32> -> vector<8x32xf32>
    %891 = arith.addf %890, %17 : vector<8x32xf32>
    %892 = arith.negf %891 : vector<8x32xf32>
    %893 = math.exp %892 : vector<8x32xf32>
    %cst_221 = arith.constant 1.000000e+00 : f32
    %894 = vector.broadcast %cst_221 : f32 to vector<8x32xf32>
    %895 = arith.addf %894, %893 : vector<8x32xf32>
    %896 = arith.divf %894, %895 : vector<8x32xf32>
    %897 = vector.extract_strided_slice %896 {offsets = [0, 0], sizes = [8, 16], strides = [1, 1]} : vector<8x32xf32> to vector<8x16xf32>
    %898 = vector.extract_strided_slice %896 {offsets = [0, 16], sizes = [8, 16], strides = [1, 1]} : vector<8x32xf32> to vector<8x16xf32>
    %899 = arith.mulf %877, %898 : vector<8x16xf32>
    %900 = arith.mulf %858, %898 : vector<8x16xf32>
    %901 = tpu.concatenate %899, %900 in 1 : vector<8x16xf32>, vector<8x16xf32> -> vector<8x32xf32>
    %902 = arith.truncf %901 : vector<8x32xf32> to vector<8x32xbf16>
    %cst_222 = arith.constant dense<0.000000e+00> : vector<8x128xf32>
    %903 = tpu.matmul %902, %6, %cst_222 {dimension_numbers = #tpu.dot_dimension_numbers<[1], [0], [0], [1], [0, 0, 1, 1], [], []>} : vector<8x32xbf16>, vector<32x128xbf16>, vector<8x128xf32> -> vector<8x128xf32>
    %904 = arith.addf %903, %883 : vector<8x128xf32>
    %905 = math.tanh %904 : vector<8x128xf32>
    %906 = arith.truncf %905 : vector<8x128xf32> to vector<8x128xbf16>
    %cst_223 = arith.constant dense<0.000000e+00> : vector<8x32xf32>
    %907 = tpu.matmul %906, %8, %cst_223 {dimension_numbers = #tpu.dot_dimension_numbers<[1], [0], [0], [1], [0, 0, 1, 1], [], []>} : vector<8x128xbf16>, vector<128x32xbf16>, vector<8x32xf32> -> vector<8x32xf32>
    %908 = arith.addf %907, %20 : vector<8x32xf32>
    %909 = vector.extract_strided_slice %908 {offsets = [0, 0], sizes = [8, 16], strides = [1, 1]} : vector<8x32xf32> to vector<8x16xf32>
    %910 = vector.extract_strided_slice %908 {offsets = [0, 16], sizes = [8, 16], strides = [1, 1]} : vector<8x32xf32> to vector<8x16xf32>
    %911 = math.absf %910 : vector<8x16xf32>
    %cst_224 = arith.constant 1.000000e+00 : f32
    %912 = vector.broadcast %cst_224 : f32 to vector<8x16xf32>
    %913 = arith.subf %912, %897 : vector<8x16xf32>
    %914 = arith.mulf %913, %909 : vector<8x16xf32>
    %915 = arith.mulf %897, %877 : vector<8x16xf32>
    %916 = arith.addf %914, %915 : vector<8x16xf32>
    %cst_225 = arith.constant 1.000000e+00 : f32
    %917 = vector.broadcast %cst_225 : f32 to vector<8x16xf32>
    %918 = arith.subf %917, %897 : vector<8x16xf32>
    %919 = arith.mulf %918, %911 : vector<8x16xf32>
    %920 = arith.mulf %897, %858 : vector<8x16xf32>
    %921 = arith.addf %919, %920 : vector<8x16xf32>
    %922 = math.absf %921 : vector<8x16xf32>
    %923 = arith.truncf %916 : vector<8x16xf32> to vector<8x16xbf16>
    %924 = arith.index_cast %c13_i32 : i32 to index
    %c0_226 = arith.constant 0 : index
    %c0_227 = arith.constant 0 : index
    %925 = vector.load %arg15[%924, %c0_226, %c0_227] : memref<16x8x16xbf16, #tpu.memory_space<vmem>>, vector<1x8x16xbf16>
    %926 = vector.shape_cast %925 : vector<1x8x16xbf16> to vector<8x16xbf16>
    %927 = vector.shape_cast %923 : vector<8x16xbf16> to vector<1x8x16xbf16>
    tpu.vector_store %arg15[%924, %c0_226, %c0_227], %927 {strides = array<i32>} : memref<16x8x16xbf16, #tpu.memory_space<vmem>>, vector<1x8x16xbf16>,
    %c14_i32 = arith.constant 14 : i32
    %c16_i32_228 = arith.constant 16 : i32
    %928 = arith.muli %arg0, %c16_i32_228 : i32
    %929 = arith.addi %928, %c14_i32 : i32
    %930 = arith.index_cast %929 : i32 to index
    %931 = memref.load %arg1[%930] : memref<32xf32, #tpu.memory_space<smem>>
    %932 = arith.truncf %916 : vector<8x16xf32> to vector<8x16xbf16>
    %cst_229 = arith.constant dense<0.000000e+00> : vector<8x64xf32>
    %933 = tpu.matmul %932, %3, %cst_229 {dimension_numbers = #tpu.dot_dimension_numbers<[1], [0], [0], [1], [0, 0, 1, 1], [], []>} : vector<8x16xbf16>, vector<16x64xbf16>, vector<8x64xf32> -> vector<8x64xf32>
    %934 = arith.addf %933, %11 : vector<8x64xf32>
    %935 = math.tanh %934 : vector<8x64xf32>
    %936 = arith.truncf %935 : vector<8x64xf32> to vector<8x64xbf16>
    %cst_230 = arith.constant dense<0.000000e+00> : vector<8x16xf32>
    %937 = tpu.matmul %936, %4, %cst_230 {dimension_numbers = #tpu.dot_dimension_numbers<[1], [0], [0], [1], [0, 0, 1, 1], [], []>} : vector<8x64xbf16>, vector<64x16xbf16>, vector<8x16xf32> -> vector<8x16xf32>
    %938 = arith.addf %937, %14 : vector<8x16xf32>
    %939 = vector.broadcast %931 : f32 to vector<8x16xf32>
    %940 = arith.mulf %938, %939 : vector<8x16xf32>
    %941 = arith.addf %916, %940 : vector<8x16xf32>
    %c8_i32_231 = arith.constant 8 : i32
    %942 = arith.muli %c14_i32, %c8_i32_231 : i32
    %943 = tpu.assume_multiple %942, 8 : i32
    %944 = arith.index_cast %943 : i32 to index
    %c0_232 = arith.constant 0 : index
    %945 = vector.load %arg16[%944, %c0_232] : memref<128x384xf32, #tpu.memory_space<vmem>>, vector<8x384xf32>
    %946 = vector.extract_strided_slice %945 {offsets = [0, 0], sizes = [8, 256], strides = [1, 1]} : vector<8x384xf32> to vector<8x256xf32>
    %947 = vector.extract_strided_slice %945 {offsets = [0, 256], sizes = [8, 128], strides = [1, 1]} : vector<8x384xf32> to vector<8x128xf32>
    %948 = tpu.concatenate %941, %922 in 1 : vector<8x16xf32>, vector<8x16xf32> -> vector<8x32xf32>
    %949 = arith.truncf %948 : vector<8x32xf32> to vector<8x32xbf16>
    %cst_233 = arith.constant dense<0.000000e+00> : vector<8x256xf32>
    %950 = tpu.matmul %949, %5, %cst_233 {dimension_numbers = #tpu.dot_dimension_numbers<[1], [0], [0], [1], [0, 0, 1, 1], [], []>} : vector<8x32xbf16>, vector<32x256xbf16>, vector<8x256xf32> -> vector<8x256xf32>
    %951 = arith.addf %950, %946 : vector<8x256xf32>
    %952 = math.tanh %951 : vector<8x256xf32>
    %953 = arith.truncf %952 : vector<8x256xf32> to vector<8x256xbf16>
    %cst_234 = arith.constant dense<0.000000e+00> : vector<8x32xf32>
    %954 = tpu.matmul %953, %7, %cst_234 {dimension_numbers = #tpu.dot_dimension_numbers<[1], [0], [0], [1], [0, 0, 1, 1], [], []>} : vector<8x256xbf16>, vector<256x32xbf16>, vector<8x32xf32> -> vector<8x32xf32>
    %955 = arith.addf %954, %17 : vector<8x32xf32>
    %956 = arith.negf %955 : vector<8x32xf32>
    %957 = math.exp %956 : vector<8x32xf32>
    %cst_235 = arith.constant 1.000000e+00 : f32
    %958 = vector.broadcast %cst_235 : f32 to vector<8x32xf32>
    %959 = arith.addf %958, %957 : vector<8x32xf32>
    %960 = arith.divf %958, %959 : vector<8x32xf32>
    %961 = vector.extract_strided_slice %960 {offsets = [0, 0], sizes = [8, 16], strides = [1, 1]} : vector<8x32xf32> to vector<8x16xf32>
    %962 = vector.extract_strided_slice %960 {offsets = [0, 16], sizes = [8, 16], strides = [1, 1]} : vector<8x32xf32> to vector<8x16xf32>
    %963 = arith.mulf %941, %962 : vector<8x16xf32>
    %964 = arith.mulf %922, %962 : vector<8x16xf32>
    %965 = tpu.concatenate %963, %964 in 1 : vector<8x16xf32>, vector<8x16xf32> -> vector<8x32xf32>
    %966 = arith.truncf %965 : vector<8x32xf32> to vector<8x32xbf16>
    %cst_236 = arith.constant dense<0.000000e+00> : vector<8x128xf32>
    %967 = tpu.matmul %966, %6, %cst_236 {dimension_numbers = #tpu.dot_dimension_numbers<[1], [0], [0], [1], [0, 0, 1, 1], [], []>} : vector<8x32xbf16>, vector<32x128xbf16>, vector<8x128xf32> -> vector<8x128xf32>
    %968 = arith.addf %967, %947 : vector<8x128xf32>
    %969 = math.tanh %968 : vector<8x128xf32>
    %970 = arith.truncf %969 : vector<8x128xf32> to vector<8x128xbf16>
    %cst_237 = arith.constant dense<0.000000e+00> : vector<8x32xf32>
    %971 = tpu.matmul %970, %8, %cst_237 {dimension_numbers = #tpu.dot_dimension_numbers<[1], [0], [0], [1], [0, 0, 1, 1], [], []>} : vector<8x128xbf16>, vector<128x32xbf16>, vector<8x32xf32> -> vector<8x32xf32>
    %972 = arith.addf %971, %20 : vector<8x32xf32>
    %973 = vector.extract_strided_slice %972 {offsets = [0, 0], sizes = [8, 16], strides = [1, 1]} : vector<8x32xf32> to vector<8x16xf32>
    %974 = vector.extract_strided_slice %972 {offsets = [0, 16], sizes = [8, 16], strides = [1, 1]} : vector<8x32xf32> to vector<8x16xf32>
    %975 = math.absf %974 : vector<8x16xf32>
    %cst_238 = arith.constant 1.000000e+00 : f32
    %976 = vector.broadcast %cst_238 : f32 to vector<8x16xf32>
    %977 = arith.subf %976, %961 : vector<8x16xf32>
    %978 = arith.mulf %977, %973 : vector<8x16xf32>
    %979 = arith.mulf %961, %941 : vector<8x16xf32>
    %980 = arith.addf %978, %979 : vector<8x16xf32>
    %cst_239 = arith.constant 1.000000e+00 : f32
    %981 = vector.broadcast %cst_239 : f32 to vector<8x16xf32>
    %982 = arith.subf %981, %961 : vector<8x16xf32>
    %983 = arith.mulf %982, %975 : vector<8x16xf32>
    %984 = arith.mulf %961, %922 : vector<8x16xf32>
    %985 = arith.addf %983, %984 : vector<8x16xf32>
    %986 = math.absf %985 : vector<8x16xf32>
    %987 = arith.truncf %980 : vector<8x16xf32> to vector<8x16xbf16>
    %988 = arith.index_cast %c14_i32 : i32 to index
    %c0_240 = arith.constant 0 : index
    %c0_241 = arith.constant 0 : index
    %989 = vector.load %arg15[%988, %c0_240, %c0_241] : memref<16x8x16xbf16, #tpu.memory_space<vmem>>, vector<1x8x16xbf16>
    %990 = vector.shape_cast %989 : vector<1x8x16xbf16> to vector<8x16xbf16>
    %991 = vector.shape_cast %987 : vector<8x16xbf16> to vector<1x8x16xbf16>
    tpu.vector_store %arg15[%988, %c0_240, %c0_241], %991 {strides = array<i32>} : memref<16x8x16xbf16, #tpu.memory_space<vmem>>, vector<1x8x16xbf16>,
    %c15_i32 = arith.constant 15 : i32
    %c16_i32_242 = arith.constant 16 : i32
    %992 = arith.muli %arg0, %c16_i32_242 : i32
    %993 = arith.addi %992, %c15_i32 : i32
    %994 = arith.index_cast %993 : i32 to index
    %995 = memref.load %arg1[%994] : memref<32xf32, #tpu.memory_space<smem>>
    %996 = arith.truncf %980 : vector<8x16xf32> to vector<8x16xbf16>
    %cst_243 = arith.constant dense<0.000000e+00> : vector<8x64xf32>
    %997 = tpu.matmul %996, %3, %cst_243 {dimension_numbers = #tpu.dot_dimension_numbers<[1], [0], [0], [1], [0, 0, 1, 1], [], []>} : vector<8x16xbf16>, vector<16x64xbf16>, vector<8x64xf32> -> vector<8x64xf32>
    %998 = arith.addf %997, %11 : vector<8x64xf32>
    %999 = math.tanh %998 : vector<8x64xf32>
    %1000 = arith.truncf %999 : vector<8x64xf32> to vector<8x64xbf16>
    %cst_244 = arith.constant dense<0.000000e+00> : vector<8x16xf32>
    %1001 = tpu.matmul %1000, %4, %cst_244 {dimension_numbers = #tpu.dot_dimension_numbers<[1], [0], [0], [1], [0, 0, 1, 1], [], []>} : vector<8x64xbf16>, vector<64x16xbf16>, vector<8x16xf32> -> vector<8x16xf32>
    %1002 = arith.addf %1001, %14 : vector<8x16xf32>
    %1003 = vector.broadcast %995 : f32 to vector<8x16xf32>
    %1004 = arith.mulf %1002, %1003 : vector<8x16xf32>
    %1005 = arith.addf %980, %1004 : vector<8x16xf32>
    %c8_i32_245 = arith.constant 8 : i32
    %1006 = arith.muli %c15_i32, %c8_i32_245 : i32
    %1007 = tpu.assume_multiple %1006, 8 : i32
    %1008 = arith.index_cast %1007 : i32 to index
    %c0_246 = arith.constant 0 : index
    %1009 = vector.load %arg16[%1008, %c0_246] : memref<128x384xf32, #tpu.memory_space<vmem>>, vector<8x384xf32>
    %1010 = vector.extract_strided_slice %1009 {offsets = [0, 0], sizes = [8, 256], strides = [1, 1]} : vector<8x384xf32> to vector<8x256xf32>
    %1011 = vector.extract_strided_slice %1009 {offsets = [0, 256], sizes = [8, 128], strides = [1, 1]} : vector<8x384xf32> to vector<8x128xf32>
    %1012 = tpu.concatenate %1005, %986 in 1 : vector<8x16xf32>, vector<8x16xf32> -> vector<8x32xf32>
    %1013 = arith.truncf %1012 : vector<8x32xf32> to vector<8x32xbf16>
    %cst_247 = arith.constant dense<0.000000e+00> : vector<8x256xf32>
    %1014 = tpu.matmul %1013, %5, %cst_247 {dimension_numbers = #tpu.dot_dimension_numbers<[1], [0], [0], [1], [0, 0, 1, 1], [], []>} : vector<8x32xbf16>, vector<32x256xbf16>, vector<8x256xf32> -> vector<8x256xf32>
    %1015 = arith.addf %1014, %1010 : vector<8x256xf32>
    %1016 = math.tanh %1015 : vector<8x256xf32>
    %1017 = arith.truncf %1016 : vector<8x256xf32> to vector<8x256xbf16>
    %cst_248 = arith.constant dense<0.000000e+00> : vector<8x32xf32>
    %1018 = tpu.matmul %1017, %7, %cst_248 {dimension_numbers = #tpu.dot_dimension_numbers<[1], [0], [0], [1], [0, 0, 1, 1], [], []>} : vector<8x256xbf16>, vector<256x32xbf16>, vector<8x32xf32> -> vector<8x32xf32>
    %1019 = arith.addf %1018, %17 : vector<8x32xf32>
    %1020 = arith.negf %1019 : vector<8x32xf32>
    %1021 = math.exp %1020 : vector<8x32xf32>
    %cst_249 = arith.constant 1.000000e+00 : f32
    %1022 = vector.broadcast %cst_249 : f32 to vector<8x32xf32>
    %1023 = arith.addf %1022, %1021 : vector<8x32xf32>
    %1024 = arith.divf %1022, %1023 : vector<8x32xf32>
    %1025 = vector.extract_strided_slice %1024 {offsets = [0, 0], sizes = [8, 16], strides = [1, 1]} : vector<8x32xf32> to vector<8x16xf32>
    %1026 = vector.extract_strided_slice %1024 {offsets = [0, 16], sizes = [8, 16], strides = [1, 1]} : vector<8x32xf32> to vector<8x16xf32>
    %1027 = arith.mulf %1005, %1026 : vector<8x16xf32>
    %1028 = arith.mulf %986, %1026 : vector<8x16xf32>
    %1029 = tpu.concatenate %1027, %1028 in 1 : vector<8x16xf32>, vector<8x16xf32> -> vector<8x32xf32>
    %1030 = arith.truncf %1029 : vector<8x32xf32> to vector<8x32xbf16>
    %cst_250 = arith.constant dense<0.000000e+00> : vector<8x128xf32>
    %1031 = tpu.matmul %1030, %6, %cst_250 {dimension_numbers = #tpu.dot_dimension_numbers<[1], [0], [0], [1], [0, 0, 1, 1], [], []>} : vector<8x32xbf16>, vector<32x128xbf16>, vector<8x128xf32> -> vector<8x128xf32>
    %1032 = arith.addf %1031, %1011 : vector<8x128xf32>
    %1033 = math.tanh %1032 : vector<8x128xf32>
    %1034 = arith.truncf %1033 : vector<8x128xf32> to vector<8x128xbf16>
    %cst_251 = arith.constant dense<0.000000e+00> : vector<8x32xf32>
    %1035 = tpu.matmul %1034, %8, %cst_251 {dimension_numbers = #tpu.dot_dimension_numbers<[1], [0], [0], [1], [0, 0, 1, 1], [], []>} : vector<8x128xbf16>, vector<128x32xbf16>, vector<8x32xf32> -> vector<8x32xf32>
    %1036 = arith.addf %1035, %20 : vector<8x32xf32>
    %1037 = vector.extract_strided_slice %1036 {offsets = [0, 0], sizes = [8, 16], strides = [1, 1]} : vector<8x32xf32> to vector<8x16xf32>
    %1038 = vector.extract_strided_slice %1036 {offsets = [0, 16], sizes = [8, 16], strides = [1, 1]} : vector<8x32xf32> to vector<8x16xf32>
    %1039 = math.absf %1038 : vector<8x16xf32>
    %cst_252 = arith.constant 1.000000e+00 : f32
    %1040 = vector.broadcast %cst_252 : f32 to vector<8x16xf32>
    %1041 = arith.subf %1040, %1025 : vector<8x16xf32>
    %1042 = arith.mulf %1041, %1037 : vector<8x16xf32>
    %1043 = arith.mulf %1025, %1005 : vector<8x16xf32>
    %1044 = arith.addf %1042, %1043 : vector<8x16xf32>
    %cst_253 = arith.constant 1.000000e+00 : f32
    %1045 = vector.broadcast %cst_253 : f32 to vector<8x16xf32>
    %1046 = arith.subf %1045, %1025 : vector<8x16xf32>
    %1047 = arith.mulf %1046, %1039 : vector<8x16xf32>
    %1048 = arith.mulf %1025, %986 : vector<8x16xf32>
    %1049 = arith.addf %1047, %1048 : vector<8x16xf32>
    %1050 = math.absf %1049 : vector<8x16xf32>
    %1051 = arith.truncf %1044 : vector<8x16xf32> to vector<8x16xbf16>
    %1052 = arith.index_cast %c15_i32 : i32 to index
    %c0_254 = arith.constant 0 : index
    %c0_255 = arith.constant 0 : index
    %1053 = vector.load %arg15[%1052, %c0_254, %c0_255] : memref<16x8x16xbf16, #tpu.memory_space<vmem>>, vector<1x8x16xbf16>
    %1054 = vector.shape_cast %1053 : vector<1x8x16xbf16> to vector<8x16xbf16>
    %1055 = vector.shape_cast %1051 : vector<8x16xbf16> to vector<1x8x16xbf16>
    tpu.vector_store %arg15[%1052, %c0_254, %c0_255], %1055 {strides = array<i32>} : memref<16x8x16xbf16, #tpu.memory_space<vmem>>, vector<1x8x16xbf16>,
    %c16_i32_256 = arith.constant 16 : i32
    %c0_257 = arith.constant 0 : index
    %c0_258 = arith.constant 0 : index
    %1056 = vector.load %arg17[%c0_257, %c0_258] : memref<8x16xf32, #tpu.memory_space<vmem>>, vector<8x16xf32>
    tpu.vector_store %arg17[%c0_257, %c0_258], %1044 {strides = array<i32>} : memref<8x16xf32, #tpu.memory_space<vmem>>, vector<8x16xf32>,
    %c0_259 = arith.constant 0 : index
    %c0_260 = arith.constant 0 : index
    %1057 = vector.load %arg18[%c0_259, %c0_260] : memref<8x16xf32, #tpu.memory_space<vmem>>, vector<8x16xf32>
    tpu.vector_store %arg18[%c0_259, %c0_260], %1050 {strides = array<i32>} : memref<8x16xf32, #tpu.memory_space<vmem>>, vector<8x16xf32>,
    return
  }
  func.func @transform_0(%arg0: i32) -> i32 {
    %c0_i32 = arith.constant 0 : i32
    %c0_i32_0 = arith.constant 0 : i32
    return %c0_i32 : i32
  }
  func.func @transform_1(%arg0: i32) -> (i32, i32) {
    %c0_i32 = arith.constant 0 : i32
    %c0_i32_0 = arith.constant 0 : i32
    return %arg0, %c0_i32 : i32, i32
  }
  func.func @transform_2(%arg0: i32) -> (i32, i32) {
    %c0_i32 = arith.constant 0 : i32
    %c0_i32_0 = arith.constant 0 : i32
    %c0_i32_1 = arith.constant 0 : i32
    return %c0_i32, %c0_i32_0 : i32, i32
  }
  func.func @transform_3(%arg0: i32) -> (i32, i32) {
    %c0_i32 = arith.constant 0 : i32
    %c0_i32_0 = arith.constant 0 : i32
    %c0_i32_1 = arith.constant 0 : i32
    return %c0_i32, %c0_i32_0 : i32, i32
  }
  func.func @transform_4(%arg0: i32) -> (i32, i32) {
    %c0_i32 = arith.constant 0 : i32
    %c0_i32_0 = arith.constant 0 : i32
    %c0_i32_1 = arith.constant 0 : i32
    return %c0_i32, %c0_i32_0 : i32, i32
  }
  func.func @transform_5(%arg0: i32) -> (i32, i32) {
    %c0_i32 = arith.constant 0 : i32
    %c0_i32_0 = arith.constant 0 : i32
    %c0_i32_1 = arith.constant 0 : i32
    return %c0_i32, %c0_i32_0 : i32, i32
  }
  func.func @transform_6(%arg0: i32) -> (i32, i32) {
    %c0_i32 = arith.constant 0 : i32
    %c0_i32_0 = arith.constant 0 : i32
    %c0_i32_1 = arith.constant 0 : i32
    return %c0_i32, %c0_i32_0 : i32, i32
  }
  func.func @transform_7(%arg0: i32) -> (i32, i32) {
    %c0_i32 = arith.constant 0 : i32
    %c0_i32_0 = arith.constant 0 : i32
    %c0_i32_1 = arith.constant 0 : i32
    return %c0_i32, %c0_i32_0 : i32, i32
  }
  func.func @transform_8(%arg0: i32) -> (i32, i32) {
    %c0_i32 = arith.constant 0 : i32
    %c0_i32_0 = arith.constant 0 : i32
    %c0_i32_1 = arith.constant 0 : i32
    return %c0_i32, %c0_i32_0 : i32, i32
  }
  func.func @transform_9(%arg0: i32) -> (i32, i32) {
    %c0_i32 = arith.constant 0 : i32
    %c0_i32_0 = arith.constant 0 : i32
    %c0_i32_1 = arith.constant 0 : i32
    return %c0_i32, %c0_i32_0 : i32, i32
  }
  func.func @transform_10(%arg0: i32) -> (i32, i32) {
    %c0_i32 = arith.constant 0 : i32
    %c0_i32_0 = arith.constant 0 : i32
    %c0_i32_1 = arith.constant 0 : i32
    return %c0_i32, %c0_i32_0 : i32, i32
  }
  func.func @transform_11(%arg0: i32) -> (i32, i32) {
    %c0_i32 = arith.constant 0 : i32
    %c0_i32_0 = arith.constant 0 : i32
    %c0_i32_1 = arith.constant 0 : i32
    return %c0_i32, %c0_i32_0 : i32, i32
  }
  func.func @transform_12(%arg0: i32) -> (i32, i32) {
    %c0_i32 = arith.constant 0 : i32
    %c0_i32_0 = arith.constant 0 : i32
    %c0_i32_1 = arith.constant 0 : i32
    return %c0_i32, %c0_i32_0 : i32, i32
  }
  func.func @transform_13(%arg0: i32) -> (i32, i32) {
    %c0_i32 = arith.constant 0 : i32
    %c0_i32_0 = arith.constant 0 : i32
    %c0_i32_1 = arith.constant 0 : i32
    return %c0_i32, %c0_i32_0 : i32, i32
  }
  func.func @transform_14(%arg0: i32) -> (i32, i32, i32) {
    %c0_i32 = arith.constant 0 : i32
    %c0_i32_0 = arith.constant 0 : i32
    %c0_i32_1 = arith.constant 0 : i32
    return %arg0, %c0_i32, %c0_i32_0 : i32, i32, i32
  }
}

</mosaic_0001>

<bundles_post_ra>
// kernel: tpu_custom_call.1
= control target key start
LH: loop header
LB: loop body
LE: loop exit
PB: predicated region body
PF: predicated region fallthrough
CT: control target
= control target key end

     0   :  { %19 = vsyncpa [#allocation6], 0  ;;  %s8312_s29 = smov 0   ;;  %s10934_s0 = inlined_call_operand.vmem [shape: f32[32], index: 0, kind: input, shape index: {}]   ;;  %s10935_s1 = inlined_call_operand.vmem [shape: f32[256,4], index: 1, kind: input, shape index: {}]   ;;  %s10936_s2 = inlined_call_operand.vmem [shape: bf16[16,64], index: 2, kind: input, shape index: {}]   ;;  %s10937_s3 = inlined_call_operand.vmem [shape: f32[1,64], index: 3, kind: input, shape index: {}]   ;;  %s10938_s4 = inlined_call_operand.vmem [shape: bf16[64,16], index: 4, kind: input, shape index: {}]   ;;  %s10939_s5 = inlined_call_operand.vmem [shape: f32[1,16], index: 5, kind: input, shape index: {}]   ;;  %s10940_s6 = inlined_call_operand.vmem [shape: bf16[32,256], index: 6, kind: input, shape index: {}]   ;;  %s10941_s7 = inlined_call_operand.vmem [shape: bf16[32,128], index: 7, kind: input, shape index: {}]   ;;  %s10942_s8 = inlined_call_operand.vmem [shape: bf16[4,384], index: 8, kind: input, shape index: {}]   ;;  %s10943_s9 = inlined_call_operand.vmem [shape: f32[1,384], index: 9, kind: input, shape index: {}]   ;;  %s10944_s10 = inlined_call_operand.vmem [shape: bf16[256,32], index: 10, kind: input, shape index: {}]   ;;  %s10945_s11 = inlined_call_operand.vmem [shape: f32[1,32], index: 11, kind: input, shape index: {}]   ;;  %s10946_s12 = inlined_call_operand.vmem [shape: bf16[128,32], index: 12, kind: input, shape index: {}]   ;;  %s10947_s13 = inlined_call_operand.vmem [shape: f32[1,32], index: 13, kind: input, shape index: {}]   ;;  %s10948_s14 = inlined_call_operand.vmem [shape: bf16[32,8,16], index: 14, kind: output, shape index: {}]  }
   0x1 LB: > { %s8318_s30 = sadd.s32 4294967295, %s8227_s29   ;;  %p6230_p0 = scmp.ge.s32.totalorder %s8227_s29, 1  ;;  %s8227_s29 = sphi %s8312_s29, %s25_s29  }
   0x2   : > { %p355_p1 = scmp.lt.s32.totalorder %s8227_s29, 3  ;;  %s368_s17 = sshll.u32 %s10934_s0, 4  ;;  %s369_s17 = int_to_ptr.vmem [resolvable:$true] %s368_s17 }
   0x3   : > { %p7822_p4 = scmp.eq.s32.totalorder %s8318_s30, 0  ;;  %s8202_s19 = scalar_lea.vmem %s369_s17, 16 }
   0x4   : > { %p8326_p3 = pnand %p6230_p0, %p355_p1  ;;  %p8203_p7 = scmp.ne.s32.totalorder %s369_s17, %s8202_s19 }
   0x5   : > { %p8210_p11 = scmp.lt.s32.totalorder %s369_s17, %s369_s17  ;;  %p8211_p12 = scmp.lt.s32.totalorder %s8202_s19, %s8202_s19 }
   0x6   : > { %p7818_p5 = pneg %p8326_p3 }
   0x7   : > { %p8212_p13 = por %p8211_p12, %p8210_p11 }
   0x8   : > { %p7819_p6 = pnand %p7822_p4, %p7818_p5 }
   0xa   : > { %p8204_p8 = pneg %p7819_p6 }
   0xc   : > { %p8205_p9 = pnand %p8204_p8, %p8203_p7 }
   0xe   : > { %p8206_p10 = pneg %p8205_p9 }
  0x10   : > { %p8213_p2 = pnand %p8212_p13, %p8206_p10 }
  0x12   : > { %8216 = shalt.err (!%p8213_p2)
}
  0x13   : > { %s8229_s20 = smov [#allocation5]   ;;  %426 = sbr.rel (%p8326_p3) target bundleno = 24279 (0x5ed7), region = 76 }
  0x14   : > { %7821 = dma.vmem_to_smem (!%p7819_p6), %s369_s17, 16, %s8229_s20, [#allocation6]  }
  0x18   : > { %8222 = dma.done.wait (%p7822_p4), [#allocation6], 16  }
  0x19   : > { %8224 = vsyncadd (%p7822_p4), [#allocation6], 4294967280 }
  0x1a   : > { %432 = sfence }
  0x1b   : > { %s8342_s21 = sshll.u32 %s8318_s30, 4  ;;  %p10954_p1 = scmp.ne.s32.totalorder %s8318_s30, 0 }
  0x1c   : > { %p474_p0 = scmp.lt.s32.totalorder %s8342_s21, 31 }
  0x1d   : > { %489 = sbr.rel (%p10954_p1) target bundleno = 36 (0x24), region = 84 }
  0x1e   : > { %s475_s22 = scalar_select %p474_p0, %s8342_s21, 31 }
  0x20   : > { %s6236_s23 = sshll.u32 %s475_s22, 3  ;;  %s6238_s24 = sshll.u32 %s475_s22, 2 }
  0x21   : > { %s8349_s27 = scalar_lea.vmem %s10935_s1, %s6236_s23  ;;  %s8354_s16 = scalar_lea.vmem %s10948_s14, %s6238_s24 }
  0x22   : > { %vm490_vm0 = vcmask 130048   ;;  %v8230_v0 = vmov 0.0  }
  0x23   : > { %491 = vst.msk [vmem:[#allocation3] sm:$0xff] %vm490_vm0, %v8230_v0  ;;  %492 = vst.msk [vmem:[#allocation4] sm:$0xff] %vm490_vm0, %v8230_v0 }
  0x24 PF: > { %v8361_v1 = vld [vmem:[%s10942_s8] sm:$0x3f]  ;;  %v614_v2 = vlaneseq  ;;  %v8231_v3 = vmov 1983009808   ;;  %v588_v6 = vld [vmem:[%s8349_s27 + $0x8] sm:$0xff]  ;;  %vm646_vm1 = vcmask 31744  }
  0x25   : > { %v632_v4 = vunpack.c.l.s4 %v8231_v3  ;;  %v587_v5 = vld [vmem:[%s8349_s27] sm:$0xff]  ;;  %v630_v10 = vcombine.high %v8361_v1, %v8361_v1  ;;  %vm671_vm2 = vcmask 1041408   ;;  %v589_v15 = vld [vmem:[%s8349_s27 + $0x10] sm:$0xff]  ;;  %v590_v16 = vld [vmem:[%s8349_s27 + $0x18] sm:$0xff]  ;;  %v10951_v24 = vmov 0.0   ;;  %s8234_s18 = smov 16  }
  0x26   : > { %v8365_v7 = vshrl.u32 %v614_v2, 7  ;;  %v8367_v8 = vpack.c.bf16 %v588_v6, %v587_v5  ;;  %v8372_v9 = vld [vmem:[%s10943_s9] sm:$0x7]  ;;  %v592_v19 = vld [vmem:[%s8349_s27 + $0x28] sm:$0xff]  ;;  %v8394_v22 = vpack.c.bf16 %v590_v16, %v589_v15  ;;  %v593_v25 = vld [vmem:[%s8349_s27 + $0x30] sm:$0xff]  ;;  %vm8233_vm3 = vmmov 0  }
  0x27   : > { %v633_v11 = vunpack.c.0.s8 %v632_v4  ;;  %v591_v18 = vld [vmem:[%s8349_s27 + $0x20] sm:$0xff]  ;;  %v594_v26 = vld [vmem:[%s8349_s27 + $0x38] sm:$0xff]  ;;  %v596_v28 = vld [vmem:[%s8349_s27 + $0x48] sm:$0xff]  ;;  %vm950_vm4 = vcmask 130048   ;;  %vm1020_vm5 = vcmask 523264   ;;  %s942_s15 = sld [smem:[#allocation5 + %s8342_s21]] }
  0x28   : > { %v624_v12 = vsub.s32 2, %v8365_v7  ;;  %7061 = vmatprep.mubr.msk.bf16.mxu1 %vm646_vm1, %v8367_v8  ;;  %v8390_v20 = vld [vmem:[%s10936_s2] sm:$0xff]   ;;  %v8396_v23 = vpack.c.bf16 %v592_v19, %v591_v18  ;;  %v8409_v29 = vpack.c.bf16 %v594_v26, %v593_v25  ;;  %v597_v31 = vld [vmem:[%s8349_s27 + $0x50] sm:$0xff]  ;;  %v598_v32 = vld [vmem:[%s8349_s27 + $0x58] sm:$0xff]  ;;  %vm1099_vm6 = vcmask 261120   ;;  %s8236_s19 = smov 112  }
  0x29   : > { %v636_v13 = vsub.s32 %v633_v11, %v8365_v7  ;;  %v595_v27 = vld [vmem:[%s8349_s27 + $0x40] sm:$0xff]  ;;  %v600_v34 = vld [vmem:[%s8349_s27 + $0x68] sm:$0xff]  ;;  %v8421_v35 = vpack.c.bf16 %v598_v32, %v597_v31  ;;  %v601_v37 = vld [vmem:[%s8349_s27 + $0x70] sm:$0xff]  ;;  %vm1461_vm7 = vcmask 125952   ;;  %s1463_s17 = sadd.s32 1, %s8342_s21  ;;  %s1775_s20 = sadd.s32 2, %s8342_s21 }
  0x2a   : > { %v8381_v14 = vrot.slane %v8372_v9, %v624_v12  ;;  %v8411_v30 = vpack.c.bf16 %v596_v28, %v595_v27  ;;  %v599_v33 = vld [vmem:[%s8349_s27 + $0x60] sm:$0xff]  ;;  %v602_v38 = vld [vmem:[%s8349_s27 + $0x78] sm:$0xff]  ;;  %v8454_v43 = vld [vmem:[%s10938_s4 + $0x10] sm:$0xff]   ;;  %s1464_s30 = sld [smem:[#allocation5 + %s1463_s17]]  ;;  %s2087_s24 = sadd.s32 3, %s8342_s21 }
  0x2b   : > { %v644_v17 = vrot.slane %v630_v10, %v636_v13  ;;  %v8423_v36 = vpack.c.bf16 %v600_v34, %v599_v33  ;;  %v8431_v39 = vpack.c.bf16 %v602_v38, %v601_v37  ;;  %v8437_v40 = vld [vmem:[#allocation3] sm:$0xff]  ;;  %v8447_v42 = vld [vmem:[%s10938_s4 + $0x18] sm:$0xff]   ;;  %v8461_v44 = vld [vmem:[%s10938_s4 + $0x8] sm:$0xff]   ;;  %v637_v47 = vrot.slane %v8361_v1, %v636_v13  ;;  %s1776_s22 = sld [smem:[#allocation5 + %s1775_s20]]  ;;  %s2711_s28 = sadd.s32 5, %s8342_s21 }
  0x2c   : > { %v943_v41 = vpack.c.bf16 %v8437_v40, %v8437_v40  ;;  %v8468_v45 = vld [vmem:[%s10938_s4] sm:$0xff]   ;;  %v8471_v46 = vld [vmem:[#allocation4] sm:$0xff]  ;;  %v8532_v32 = vld [vmem:[%s10940_s6 + $0x14] ss:$8 sps:$4 sm:$0xff]   ;;  %v10949_v33 = vmov 0   ;;  %s2088_s25 = sld [smem:[#allocation5 + %s2087_s24]] }
  0x2d   : > { %7813 = vmatprep.subr.msk.bf16.mxu1 %vm671_vm2, %v644_v17  ;;  %v679_v21 = vsel %vm671_vm2, %v644_v17, 0  ;;  %1074 = vrot.lane.b32.xlu0 %v8471_v46, %s8234_s18  ;;  %v645_v48 = vcombine.high %v637_v47, %v637_v47  ;;  %v673_v49 = vsel %vm671_vm2, %v637_v47, 0  ;;  %v8525_v18 = vld [vmem:[%s10937_s3] ss:$0 sm:$0xff]  ;;  %v8538_v34 = vld [vmem:[%s10940_s6 + $0x10] ss:$8 sps:$4 sm:$0xff]  }
  0x2e   : > { %7060 = vmatpush3.bf16.msra.mxu1 %v679_v21  ;;  %713 = vmatprep.mubr.bf16.mxu0 %v10949_v33  ;;  %v8549_v37 = vld [vmem:[%s10940_s6 + $0x4] ss:$8 sps:$4 sm:$0xff]   ;;  %v8554_v38 = vld [vmem:[%s10940_s6] ss:$8 sps:$4 sm:$0xff]   ;;  %v8574_v47 = vld [vmem:[%s10944_s10 + $0x70] sm:$0xff]   ;;  %s3023_s17 = sadd.s32 6, %s8342_s21 }
  0x2f   : > { %7077 = vmatprep.subr.bf16.mxu1 %v10951_v24  ;;  %6244 = vmatprep.subr.msk.bf16.mxu0 %vm671_vm2, %v645_v48  ;;  %v8582_v48 = vld [vmem:[%s10944_s10 + $0x30] sm:$0xff]  }
  0x30   : > { %696 = vmatpush1.bf16.msra.mxu0 %v673_v49  ;;  %v8594_v49 = vld [vmem:[%s10944_s10 + $0x28] sm:$0xff]  }
  0x31   : > { %7062 = vmatmul.mubr.msk.bf16.vlgmr.msra.gmra.mxu1 %vm646_vm1, %v8394_v22 }
  0x32   : > { %7078 = vmatpush3.bf16.msra.mxu1 %v8390_v20  ;;  %7065 = vmatprep.mubr.msk.bf16.mxu1 %vm646_vm1, %v8396_v23 }
  0x33   : > { %7083 = vmatprep.subr.bf16.mxu1 %v10951_v24  ;;  %6245 = vmatmul.mubr.msk.bf16.vlgmr.msra.gmra.mxu0 %vm646_vm1, %v8367_v8  ;;  %v8562_v8 = vld [vmem:[%s10944_s10 + $0x78] sm:$0xff]  }
  0x34   : > { %723 = vmatprep.mubr.bf16.mxu0 %v10949_v33  ;;  %6410 = vmatprep.subr.bf16.mxu0 %v8562_v8 }
  0x39   : > { %7066 = vmatmul.mubr.msk.bf16.gmra.mxu1 %vm646_vm1, %v8409_v29 }
  0x3a   : > { %7069 = vmatprep.mubr.msk.bf16.mxu1 %vm646_vm1, %v8411_v30 }
  0x3b   : > { %6246 = vmatmul.mubr.msk.bf16.gmra.mxu0 %vm646_vm1, %v8394_v22  ;;  %v8588_v22 = vld [vmem:[%s10944_s10 + $0x68] sm:$0xff]  }
  0x3c   : > { %733 = vmatprep.mubr.bf16.mxu0 %v10949_v33 }
  0x41   : > { %7070 = vmatmul.mubr.msk.bf16.gmra.mxu1 %vm646_vm1, %v8421_v35 }
  0x42   : > { %7073 = vmatprep.mubr.msk.bf16.mxu1 %vm646_vm1, %v8423_v36 }
  0x43   : > { %6247 = vmatmul.mubr.msk.bf16.gmra.mxu0 %vm646_vm1, %v8396_v23  ;;  %v8615_v23 = vld [vmem:[%s10944_s10 + $0x58] sm:$0xff]  }
  0x44   : > { %743 = vmatprep.mubr.bf16.mxu0 %v10949_v33 }
  0x49   : > { %7074 = vmatmul.mubr.msk.bf16.gmra.mxu1 %vm646_vm1, %v8431_v39 }
  0x4a   : > { %7079 = vmatprep.mubr.msk.bf16.mxu1 %vm8233_vm3, %v10951_v24 }
  0x4b   : > { %6248 = vmatmul.mubr.msk.bf16.gmra.mxu0 %vm646_vm1, %v8409_v29  ;;  %v8642_v29 = vld [vmem:[%s10944_s10 + $0x50] sm:$0xff]  }
  0x4c   : > { %753 = vmatprep.mubr.bf16.mxu0 %v10949_v33 }
  0x51   : > { %7080 = vmatmul.mubr.msk.bf16.vlgmr.msra.gmra.mxu1 %vm950_vm4, %v943_v41  ;;  %v8567_v41 = vld [vmem:[%s10944_s10 + $0x38] sm:$0xff]  }
  0x52   : > { %7091 = vmatprep.mubr.msk.bf16.mxu1 %vm8233_vm3, %v10951_v24  ;;  %7084 = vmatpush3.bf16.msra.mxu1 %v8447_v42 }
  0x53   : > { %7085 = vmatprep.subr.bf16.mxu1 %v10951_v24  ;;  %6411 = vmatpush3.bf16.msra.mxu0 %v8567_v41 }
  0x54   : > { %6412 = vmatprep.subr.bf16.mxu0 %v8574_v47  ;;  %6249 = vmatmul.mubr.msk.bf16.gmra.mxu0 %vm646_vm1, %v8411_v30  ;;  %v8648_v30 = vld [vmem:[%s10944_s10 + $0x10] sm:$0xff]  }
  0x55   : > { %763 = vmatprep.mubr.bf16.mxu0 %v10949_v33 }
  0x56   : > { %7086 = vmatpush3.bf16.msra.mxu1 %v8454_v43 }
  0x57   : > { %7087 = vmatprep.subr.bf16.mxu1 %v10951_v24  ;;  %6413 = vmatpush3.bf16.msra.mxu0 %v8582_v48 }
  0x58   : > { %6414 = vmatprep.subr.bf16.mxu0 %v8588_v22 }
  0x5a   : > { %7088 = vmatpush3.bf16.msra.mxu1 %v8461_v44 }
  0x5b   : > { %7089 = vmatprep.subr.bf16.mxu1 %v10951_v24  ;;  %6415 = vmatpush3.bf16.msra.mxu0 %v8594_v49 }
  0x5c   : > { %6250 = vmatmul.mubr.msk.bf16.gmra.mxu0 %vm646_vm1, %v8421_v35  ;;  %v8655_v35 = vld [vmem:[%s10939_s5] ss:$0 sm:$0xff] }
  0x5d   : > { %773 = vmatprep.mubr.bf16.mxu0 %v10949_v33 }
  0x5e   : > { %7090 = vmatpush3.bf16.msra.mxu1 %v8468_v45 }
  0x5f   : > { %1115 = vmatprep.subr.bf16.mxu1 %v8532_v32 }
  0x64   : > { %6251 = vmatmul.mubr.msk.bf16.gmra.mxu0 %vm646_vm1, %v8423_v36 }
  0x65   : > { %783 = vmatprep.mubr.bf16.mxu0 %v10949_v33 }
  0x6c   : > { %6252 = vmatmul.mubr.msk.bf16.gmra.mxu0 %vm646_vm1, %v8431_v39  ;;  %v1064_v39 = vstv %s942_s15  ;;  %s2712_s15 = sld [smem:[#allocation5 + %s2711_s28]]  ;;  %s4271_s28 = sadd.s32 10, %s8342_s21 }
  0xf1   : > { %v7063_v50 = vpop.f32.mrf.mxu1 }
  0xf2   : > { %v8479_v51 = vadd.f32 %v7063_v50, %v8381_v14  ;;  %v8602_v50 = vld [vmem:[%s10944_s10 + $0x60] sm:$0xff]  }
  0xf3   : > { %v828_v52 = vpop.f32.mrf.mxu1  ;;  %6416 = vmatprep.subr.bf16.mxu0 %v8602_v50 }
  0xf4   : > { %10955 = vst [vmem:[#allocation8_spill] sm:$0xff] %v8479_v51  ;;  %v8482_v53 = vadd.f32 %v828_v52, %v8381_v14  ;;  %v8609_v52 = vld [vmem:[%s10944_s10 + $0x20] sm:$0xff]  }
  0xf5   : > { %v7064_v54 = vpop.f32.mrf.mxu1  ;;  %6417 = vmatpush3.bf16.msra.mxu0 %v8609_v52 }
  0xf6   : > { %v8485_v55 = vadd.f32 %v7064_v54, %v8381_v14  ;;  %v8621_v54 = vld [vmem:[%s10944_s10 + $0x18] sm:$0xff]   ;;  %6418 = vmatprep.subr.bf16.mxu0 %v8615_v23 }
  0xf7   : > { %v8487_v56 = vpop.f32.mrf.mxu1 }
  0xf8   : > { %10956 = vst [vmem:[#allocation9_spill] sm:$0xff] %v8485_v55 }
  0xf9   : > { %v7067_v57 = vpop.f32.mrf.mxu1  ;;  %6419 = vmatpush3.bf16.msra.mxu0 %v8621_v54 }
  0xfa   : > { %v8490_v58 = vadd.f32 %v7067_v57, %v8381_v14  ;;  %6420 = vmatprep.subr.bf16.mxu0 %v8642_v29 }
  0xfb   : > { %v844_v59 = vpop.f32.mrf.mxu1 }
  0xfc   : > { %10957 = vst [vmem:[#allocation10_spill] sm:$0xff] %v8490_v58  ;;  %v8493_v60 = vadd.f32 %v844_v59, %v8381_v14 }
  0xfd   : > { %v7068_v61 = vpop.f32.mrf.mxu1  ;;  %6421 = vmatpush3.bf16.msra.mxu0 %v8648_v30 }
  0xfe   : > { %10958 = vst [vmem:[#allocation11_spill] sm:$0xff] %v8493_v60  ;;  %v8496_v62 = vadd.f32 %v7068_v61, %v8381_v14 }
  0xff   : > { %v8498_v63 = vpop.f32.mrf.mxu1 }
 0x100   : > { %10959 = vst [vmem:[#allocation12_spill] sm:$0xff] %v8496_v62  ;;  %10960 = vst [vmem:[#allocation13_spill] sm:$0xff] %v8498_v63 }
 0x101   : > { %v7071_v0 = vpop.f32.mrf.mxu1 }
 0x102   : > { %v8501_v1 = vadd.f32 %v7071_v0, %v8381_v14 }
 0x103   : > { %v860_v2 = vpop.f32.mrf.mxu1 }
 0x104   : > { %10961 = vst [vmem:[#allocation14_spill] sm:$0xff] %v8501_v1  ;;  %v8504_v3 = vadd.f32 %v860_v2, %v8381_v14  ;;  %v1075_v2 = vpop.permute.xlu0 %1074 }
 0x105   : > { %v7072_v4 = vpop.f32.mrf.mxu1 }
 0x106   : > { %10962 = vst [vmem:[#allocation15_spill] sm:$0xff] %v8504_v3  ;;  %v8507_v5 = vadd.f32 %v7072_v4, %v8381_v14 }
 0x107   : > { %v8509_v6 = vpop.f32.mrf.mxu1 }
 0x108   : > { %10963 = vst [vmem:[#allocation16_spill] sm:$0xff] %v8507_v5  ;;  %10964 = vst [vmem:[#allocation17_spill] sm:$0xff] %v8509_v6 }
 0x109   : > { %v7075_v10 = vpop.f32.mrf.mxu1 }
 0x10a   : > { %v8512_v11 = vadd.f32 %v7075_v10, %v8381_v14 }
 0x10b   : > { %v876_v12 = vpop.f32.mrf.mxu1 }
 0x10c   : > { %10965 = vst [vmem:[#allocation18_spill] sm:$0xff] %v8512_v11  ;;  %v8515_v13 = vadd.f32 %v876_v12, %v8381_v14 }
 0x10d   : > { %v7076_v15 = vpop.f32.mrf.mxu1 }
 0x10e   : > { %10966 = vst [vmem:[#allocation19_spill] sm:$0xff] %v8515_v13  ;;  %v8518_v16 = vadd.f32 %v7076_v15, %v8381_v14 }
 0x10f   : > { %v8520_v17 = vpop.f32.mrf.mxu1 }
 0x110   : > { %10967 = vst [vmem:[#allocation20_spill] sm:$0xff] %v8518_v16  ;;  %10968 = vst [vmem:[#allocation21_spill] sm:$0xff] %v8520_v17 }
 0x111   : > { %v988_v19 = vpop.f32.mrf.mxu1 }
 0x112   : > { %v989_v21 = vadd.f32 %v8525_v18, %v988_v19  ;;  %v8669_v19 = vld [vmem:[%s10944_s10 + $0x48] sm:$0xff]  }
 0x113   : > { %v7081_v25 = vpop.f32.mrf.mxu1  ;;  %6422 = vmatprep.subr.bf16.mxu0 %v8669_v19 }
 0x114   : > { %7878 = vtanh.f32 %v989_v21  ;;  %v8681_v21 = vld [vmem:[%s10944_s10 + $0x40] sm:$0xff]  }
 0x115   : > { %v991_v26 = vpop.f32.mrf.mxu1  ;;  %v8686_v25 = vld [vmem:[%s10944_s10] sm:$0xff]  }
 0x116   : > { %v616_v26 = vsub.s32 0, %v8365_v7 }
 0x117   : > { %v7082_v27 = vpop.f32.mrf.mxu1 }
 0x118   : > { %v8693_v27 = vrot.slane %v8372_v9, %v616_v26 }
 0x121   : > { %v7879_v28 = vpop.eup %7878 }
 0x122   : > { %v995_v31 = vpack.c.bf16 %v7879_v28, %v7879_v28  ;;  %v620_v28 = vsub.s32 1, %v8365_v7 }
 0x124   : > { %7092 = vmatmul.mubr.msk.bf16.vlgmr.msra.gmra.mxu1 %vm1020_vm5, %v995_v31  ;;  %v715_v31 = vpop.f32.mrf.mxu0 }
 0x125   : > { %1135 = vmatprep.mubr.bf16.mxu1 %v10949_v33  ;;  %1116 = vmatpush1.bf16.msra.mxu1 %v8538_v34 }
 0x126   : > { %1117 = vmatprep.subr.bf16.mxu1 %v8549_v37 }
 0x129   : > { %1118 = vmatpush1.bf16.msra.mxu1 %v8554_v38 }
 0x12a   : > { %7095 = vmatprep.subr.bf16.mxu1 %v10951_v24 }
 0x1e4   : > { %v1058_v36 = vpop.f32.mrf.mxu1 }
 0x1e5   : > { %v1059_v57 = vadd.f32 %v8655_v35, %v1058_v36  ;;  %v8697_v36 = vrot.slane %v8372_v9, %v620_v28  ;;  %v10969_v9 = vmov 0.0  }
 0x1e6   : > { %v7093_v59 = vpop.f32.mrf.mxu1 }
 0x1e7   : > { %v1065_v61 = vmul.f32 %v1064_v39, %v1059_v57  ;;  %v716_v39 = vadd.f32 %v715_v31, %v8693_v27  ;;  %v717_v57 = vpop.f32.mrf.mxu0 }
 0x1e8   : > { %v1061_v0 = vpop.f32.mrf.mxu1 }
 0x1e9   : > { %v8659_v4 = vadd.f32 %v1065_v61, %v8437_v40  ;;  %v8674_v40 = vld [vmem:[%s10944_s10 + $0x8] sm:$0xff]   ;;  %v718_v61 = vadd.f32 %v717_v57, %v8697_v36  ;;  %v8703_v28 = vpop.f32.mrf.mxu0 }
 0x1ea   : > { %v7094_v10 = vpop.f32.mrf.mxu1  ;;  %6423 = vmatpush3.bf16.msra.mxu0 %v8674_v40 }
 0x1eb   : > { %v1077_v12 = vsel %vm950_vm4, %v8659_v4, %v1075_v2  ;;  %6424 = vmatprep.subr.bf16.mxu0 %v8681_v21  ;;  %v8705_v31 = vpop.f32.mrf.mxu0 }
 0x1ec   : > { %v1078_v15 = vpack.c.bf16 %v1077_v12, %v1077_v12 }
 0x1ee   : > { %6273 = vmatmul.mubr.msk.bf16.vlgmr.msra.gmra.mxu1 %vm1099_vm6, %v1078_v15  ;;  %6425 = vmatpush3.bf16.msra.mxu0 %v8686_v25 }
 0x1ef   : > { %7099 = vmatprep.mubr.msk.bf16.mxu1 %vm8233_vm3, %v10951_v24  ;;  %7103 = vmatprep.subr.bf16.mxu0 %v10951_v24 }
 0x2ae   : > { %v1137_v59 = vpop.f32.mrf.mxu1 }
 0x2af   : > { %v1138_v0 = vadd.f32 %v1137_v59, %v716_v39  ;;  %v8707_v39 = vpop.f32.mrf.mxu0 }
 0x2b0   : > { %v1139_v2 = vpop.f32.mrf.mxu1 }
 0x2b1   : > { %v1140_v10 = vadd.f32 %v1139_v2, %v718_v61  ;;  %7880 = vtanh.f32 %v1138_v0  ;;  %v8709_v57 = vpop.f32.mrf.mxu0 }
 0x2b2   : > { %v1141_v12 = vpop.f32.mrf.mxu1 }
 0x2b3   : > { %7882 = vtanh.f32 %v1140_v10  ;;  %v8711_v59 = vpop.f32.mrf.mxu0 }
 0x2b4   : > { %v1142_v15 = vpop.f32.mrf.mxu1  ;;  %10970 = vst [vmem:[#allocation22_spill] sm:$0xff] %v8711_v59 }
 0x2b5   : > { %v8713_v61 = vpop.f32.mrf.mxu0 }
 0x2b6   : > { %10971 = vst [vmem:[#allocation23_spill] sm:$0xff] %v8713_v61 }
 0x2b7   : > { %v8715_v0 = vpop.f32.mrf.mxu0 }
 0x2b8   : > { %10972 = vst [vmem:[#allocation24_spill] sm:$0xff] %v8715_v0 }
 0x2be   : > { %v7881_v26 = vpop.eup %7880 }
 0x2bf   : > { %v1146_v24 = vpack.c.bf16 %v7881_v26, %v7881_v26 }
 0x2c0   : > { %v7883_v33 = vpop.eup %7882 }
 0x2c1   : > { %v1147_v7 = vpack.c.bf16 %v7883_v33, %v7883_v33  ;;  %v8717_v33 = vpop.f32.mrf.mxu0 }
 0x2c2   : > { %10973 = vst [vmem:[#allocation25_spill] sm:$0xff] %v8717_v33 }
 0x2c3   : > { %1276 = vmatprep.mubr.bf16.mxu0 %v1147_v7 }
 0x2c4   : > { %1277 = vmatmul.mubr.bf16.vlgmr.msra.gmra.mxu0 %v1146_v24  ;;  %v8719_v24 = vpop.f32.mrf.mxu0 }
 0x2c5   : > { %7119 = vmatprep.mubr.msk.bf16.mxu0 %vm8233_vm3, %v10969_v9  ;;  %10974 = vst [vmem:[#allocation26_spill] sm:$0xff] %v8719_v24 }
 0x2c6   : > { %v8721_v2 = vpop.f32.mrf.mxu0 }
 0x2c7   : > { %10975 = vst [vmem:[#allocation27_spill] sm:$0xff] %v8721_v2 }
 0x2c8   : > { %v8723_v10 = vpop.f32.mrf.mxu0 }
 0x2c9   : > { %10976 = vst [vmem:[#allocation28_spill] sm:$0xff] %v8723_v10 }
 0x2ca   : > { %v8725_v12 = vpop.f32.mrf.mxu0 }
 0x2cb   : > { %10977 = vst [vmem:[#allocation29_spill] sm:$0xff] %v8725_v12 }
 0x2cc   : > { %v8727_v15 = vpop.f32.mrf.mxu0 }
 0x2cd   : > { %10978 = vst [vmem:[#allocation30_spill] sm:$0xff] %v8727_v15 }
 0x2ce   : > { %v8729_v26 = vpop.f32.mrf.mxu0 }
 0x2cf   : > { %10979 = vst [vmem:[#allocation31_spill] sm:$0xff] %v8729_v26 }
 0x2d0   : > { %v8731_v7 = vpop.f32.mrf.mxu0 }
 0x2d1   : > { %10980 = vst [vmem:[#allocation32_spill] sm:$0xff] %v8731_v7 }
 0x2d2   : > { %v8733_v16 = vpop.f32.mrf.mxu0 }
 0x2d3   : > { %10981 = vst [vmem:[#allocation33_spill] sm:$0xff] %v8733_v16 }
 0x2d4   : > { %v8735_v11 = vpop.f32.mrf.mxu0 }
 0x2d5   : > { %10982 = vst [vmem:[#allocation34_spill] sm:$0xff] %v8735_v11 }
 0x2d6   : > { %v8737_v17 = vpop.f32.mrf.mxu0 }
 0x2d7   : > { %10983 = vst [vmem:[#allocation35_spill] sm:$0xff] %v8737_v17 }
 0x2d8   : > { %v8739_v13 = vpop.f32.mrf.mxu0 }
 0x2d9   : > { %10984 = vst [vmem:[#allocation36_spill] sm:$0xff] %v8739_v13 }
 0x2da   : > { %v8741_v5 = vpop.f32.mrf.mxu0 }
 0x2db   : > { %10985 = vst [vmem:[#allocation37_spill] sm:$0xff] %v8741_v5 }
 0x2dc   : > { %v8743_v1 = vpop.f32.mrf.mxu0 }
 0x2dd   : > { %10986 = vst [vmem:[#allocation38_spill] sm:$0xff] %v8743_v1 }
 0x2de   : > { %v8745_v6 = vpop.f32.mrf.mxu0 }
 0x2df   : > { %10987 = vst [vmem:[#allocation39_spill] sm:$0xff] %v8745_v6  ;;  %v8766_v6 = vld [vmem:[%s10945_s11] ss:$0 sm:$0xff] }
 0x2e0   : > { %v8747_v3 = vpop.f32.mrf.mxu0 }
 0x2e1   : > { %10988 = vst [vmem:[#allocation40_spill] sm:$0xff] %v8747_v3 }
 0x2e2   : > { %v8749_v62 = vpop.f32.mrf.mxu0 }
 0x2e3   : > { %10989 = vst [vmem:[#allocation41_spill] sm:$0xff] %v8749_v62 }
 0x2e4   : > { %v8751_v26 = vpop.f32.mrf.mxu0 }
 0x2e5   : > { %10990 = vst [vmem:[#allocation42_spill] sm:$0xff] %v8751_v26 }
 0x2e6   : > { %v8753_v7 = vpop.f32.mrf.mxu0 }
 0x2e7   : > { %10991 = vst [vmem:[#allocation43_spill] sm:$0xff] %v8753_v7 }
 0x2e8   : > { %v8755_v16 = vpop.f32.mrf.mxu0 }
 0x2e9   : > { %10992 = vst [vmem:[#allocation44_spill] sm:$0xff] %v8755_v16 }
 0x2ea   : > { %v8757_v11 = vpop.f32.mrf.mxu0 }
 0x2eb   : > { %10993 = vst [vmem:[#allocation45_spill] sm:$0xff] %v8757_v11 }
 0x2ec   : > { %v8759_v17 = vpop.f32.mrf.mxu0 }
 0x2ed   : > { %10994 = vst [vmem:[#allocation46_spill] sm:$0xff] %v8759_v17 }
 0x2ee   : > { %v8761_v13 = vpop.f32.mrf.mxu0 }
 0x2ef   : > { %10995 = vst [vmem:[#allocation47_spill] sm:$0xff] %v8761_v13  ;;  %v8772_v13 = vld [vmem:[%s10941_s7 + $0x8] sm:$0xff]  }
 0x2f0   : > { %7096 = vmatpush3.bf16.msra.mxu1 %v8772_v13 }
 0x2f1   : > { %7097 = vmatprep.subr.bf16.mxu1 %v10969_v9 }
 0x384   : > { %v6426_v5 = vpop.f32.mrf.mxu0 }
 0x386   : > { %v6427_v3 = vpop.f32.mrf.mxu0 }
 0x387   : > { %v6428_v62 = vadd.f32 %v6427_v3, %v6426_v5  ;;  %v8796_v3 = vld [vmem:[%s10946_s12 + $0x30] sm:$0xff]   ;;  %v8803_v5 = vld [vmem:[%s10946_s12 + $0x28] sm:$0xff]  }
 0x388   : > { %v6429_v1 = vpop.f32.mrf.mxu0 }
 0x389   : > { %v1279_v26 = vadd.f32 %v6428_v62, %v8766_v6  ;;  %v8783_v62 = vld [vmem:[%s10941_s7] sm:$0xff]   ;;  %v8790_v1 = vld [vmem:[%s10946_s12 + $0x38] sm:$0xff]  }
 0x38a   : > { %v6430_v7 = vpop.f32.mrf.mxu0  ;;  %7098 = vmatpush3.bf16.msra.mxu1 %v8783_v62  ;;  %7104 = vmatpush3.bf16.msra.mxu0 %v8790_v1 }
 0x38b   : > { %v6290_v15 = vmul.f32 -1.442695, %v1279_v26  ;;  %7123 = vmatprep.subr.bf16.mxu1 %v10969_v9  ;;  %7105 = vmatprep.subr.bf16.mxu0 %v10969_v9 }
 0x38d   : > { %7884 = vpow2.f32 %v6290_v15 }
 0x38e   : > { %7106 = vmatpush3.bf16.msra.mxu0 %v8796_v3 }
 0x38f   : > { %7107 = vmatprep.subr.bf16.mxu0 %v10969_v9 }
 0x392   : > { %7108 = vmatpush3.bf16.msra.mxu0 %v8803_v5 }
 0x393   : > { %7109 = vmatprep.subr.bf16.mxu0 %v10969_v9 }
 0x39a   : > { %v7885_v16 = vpop.eup %7884 }
 0x39b   : > { %v1287_v11 = vadd.f32 1.0, %v7885_v16 }
 0x39d   : > { %7886 = vrcp.f32 %v1287_v11 }
 0x3aa   : > { %v8776_v17 = vpop.eup %7886 }
 0x3ab   : > { %1291 = vrot.lane.b32.xlu0 %v8776_v17, %s8236_s19 }
 0x41d   : > { %v1292_v11 = vpop.permute.xlu0 %1291 }
 0x41e   : > { %v1295_v16 = vmul.f32 %v1292_v11, %v8471_v46  ;;  %v1294_v15 = vmul.f32 %v1292_v11, %v8659_v4  ;;  %v8834_v11 = vld [vmem:[%s10946_s12 + $0x10] sm:$0xff]  }
 0x420   : > { %1297 = vrot.lane.b32.xlu1 %v1295_v16, %s8234_s18  ;;  %v8820_v16 = vld [vmem:[%s10946_s12 + $0x20] sm:$0xff]  }
 0x421   : > { %7110 = vmatpush3.bf16.msra.mxu0 %v8820_v16 }
 0x422   : > { %7111 = vmatprep.subr.bf16.mxu0 %v10969_v9 }
 0x492   : > { %v1298_v26 = vpop.permute.xlu1 %1297 }
 0x493   : > { %v1300_v7 = vsel %vm950_vm4, %v1294_v15, %v1298_v26  ;;  %v8841_v15 = vld [vmem:[%s10946_s12 + $0x8] sm:$0xff]   ;;  %v8848_v26 = vld [vmem:[%s10946_s12] sm:$0xff]  }
 0x494   : > { %v1301_v58 = vpack.c.bf16 %v1300_v7, %v1300_v7 }
 0x496   : > { %7100 = vmatmul.mubr.msk.bf16.vlgmr.msra.gmra.mxu1 %vm1099_vm6, %v1301_v58  ;;  %v8827_v58 = vld [vmem:[%s10946_s12 + $0x18] sm:$0xff]  }
 0x497   : > { %7124 = vmatpush3.bf16.msra.mxu1 %v8390_v20  ;;  %7125 = vmatprep.mubr.msk.bf16.mxu1 %vm8233_vm3, %v10969_v9 }
 0x498   : > { %7129 = vmatprep.subr.bf16.mxu1 %v10969_v9  ;;  %7112 = vmatpush3.bf16.msra.mxu0 %v8827_v58 }
 0x499   : > { %7113 = vmatprep.subr.bf16.mxu0 %v10969_v9 }
 0x49c   : > { %7114 = vmatpush3.bf16.msra.mxu0 %v8834_v11 }
 0x49d   : > { %7115 = vmatprep.subr.bf16.mxu0 %v10969_v9 }
 0x4a0   : > { %7116 = vmatpush3.bf16.msra.mxu0 %v8841_v15 }
 0x4a1   : > { %7117 = vmatprep.subr.bf16.mxu0 %v10969_v9 }
 0x4a4   : > { %7118 = vmatpush3.bf16.msra.mxu0 %v8848_v26 }
 0x4a5   : > { %6451 = vmatprep.subr.bf16.mxu0 %v8562_v8 }
 0x556   : > { %v1351_v7 = vpop.f32.mrf.mxu1 }
 0x557   : > { %v1352_v12 = vadd.f32 %v1351_v7, %v8482_v53  ;;  %v8872_v53 = vld [vmem:[%s10947_s13] ss:$0 sm:$0xff]  ;;  %v1450_v7 = vmul.f32 %v8776_v17, %v8659_v4 }
 0x558   : > { %v7101_v10 = vpop.f32.mrf.mxu1 }
 0x559   : > { %7888 = vtanh.f32 %v1352_v12 }
 0x55a   : > { %v1354_v63 = vpop.f32.mrf.mxu1 }
 0x55c   : > { %v7102_v2 = vpop.f32.mrf.mxu1 }
 0x566   : > { %v7889_v24 = vpop.eup %7888 }
 0x567   : > { %v1358_v60 = vpack.c.bf16 %v7889_v24, %v7889_v24  ;;  %v1448_v24 = vsub.f32 1.0, %v8776_v17 }
 0x569   : > { %7120 = vmatmul.mubr.bf16.vlgmr.msra.gmra.mxu0 %v1358_v60 }
 0x56a   : > { %6452 = vmatpush3.bf16.msra.mxu0 %v8567_v41 }
 0x56b   : > { %6453 = vmatprep.subr.bf16.mxu0 %v8574_v47 }
 0x56e   : > { %6454 = vmatpush3.bf16.msra.mxu0 %v8582_v48 }
 0x56f   : > { %6455 = vmatprep.subr.bf16.mxu0 %v8588_v22 }
 0x572   : > { %6456 = vmatpush3.bf16.msra.mxu0 %v8594_v49 }
 0x573   : > { %6457 = vmatprep.subr.bf16.mxu0 %v8602_v50 }
 0x576   : > { %6458 = vmatpush3.bf16.msra.mxu0 %v8609_v52 }
 0x577   : > { %6459 = vmatprep.subr.bf16.mxu0 %v8615_v23 }
 0x57a   : > { %6460 = vmatpush3.bf16.msra.mxu0 %v8621_v54 }
 0x57b   : > { %6461 = vmatprep.subr.bf16.mxu0 %v8642_v29 }
 0x57e   : > { %6462 = vmatpush3.bf16.msra.mxu0 %v8648_v30 }
 0x57f   : > { %6463 = vmatprep.subr.bf16.mxu0 %v8669_v19 }
 0x582   : > { %6464 = vmatpush3.bf16.msra.mxu0 %v8674_v40 }
 0x583   : > { %6465 = vmatprep.subr.bf16.mxu0 %v8681_v21 }
 0x586   : > { %6466 = vmatpush3.bf16.msra.mxu0 %v8686_v25 }
 0x587   : > { %7169 = vmatprep.subr.bf16.mxu0 %v10969_v9 }
 0x629   : > { %v1441_v60 = vpop.f32.mrf.mxu0 }
 0x62a   : > { %v1442_v63 = vadd.f32 %v8872_v53, %v1441_v60 }
 0x62b   : > { %v7121_v2 = vpop.f32.mrf.mxu0 }
 0x62c   : > { %v1447_v10 = vand.u32 2147483647, %v1442_v63  ;;  %v1449_v12 = vmul.f32 %v1448_v24, %v1442_v63 }
 0x62d   : > { %v1444_v33 = vpop.f32.mrf.mxu0 }
 0x62e   : > { %v1451_v0 = vadd.f32 %v1450_v7, %v1449_v12  ;;  %1453 = vrot.lane.b32.xlu1 %v1447_v10, %s8236_s19 }
 0x62f   : > { %v7122_v55 = vpop.f32.mrf.mxu0 }
 0x630   : > { %v1460_v61 = vpack.c.bf16 %v1451_v0, %v1451_v0 }
 0x632   : > { %1462 = vst.msk [vmem:[%s8354_s16] sm:$0xf] %vm1461_vm7, %v1460_v61  ;;  %7126 = vmatmul.mubr.msk.bf16.vlgmr.msra.gmra.mxu1 %vm950_vm4, %v1460_v61  ;;  %v1457_v61 = vmul.f32 %v8776_v17, %v8471_v46  ;;  %v10996_v46 = vmov 0  }
 0x633   : > { %7130 = vmatpush3.bf16.msra.mxu1 %v8447_v42  ;;  %7137 = vmatprep.mubr.msk.bf16.mxu1 %vm8233_vm3, %v10969_v9 }
 0x634   : > { %7131 = vmatprep.subr.bf16.mxu1 %v10969_v9 }
 0x637   : > { %7132 = vmatpush3.bf16.msra.mxu1 %v8454_v43 }
 0x638   : > { %7133 = vmatprep.subr.bf16.mxu1 %v10969_v9 }
 0x63b   : > { %7134 = vmatpush3.bf16.msra.mxu1 %v8461_v44 }
 0x63c   : > { %7135 = vmatprep.subr.bf16.mxu1 %v10969_v9 }
 0x63f   : > { %7136 = vmatpush3.bf16.msra.mxu1 %v8468_v45 }
 0x640   : > { %1583 = vmatprep.subr.bf16.mxu1 %v8532_v32 }
 0x6a0   : > { %v1454_v55 = vpop.permute.xlu1 %1453 }
 0x6a1   : > { %v1456_v4 = vmul.f32 %v1454_v55, %v1448_v24  ;;  %v1553_v24 = vstv %s1464_s30  ;;  %s3024_s30 = sld [smem:[#allocation5 + %s3023_s17]] }
 0x6a3   : > { %v1458_v33 = vadd.f32 %v1457_v61, %v1456_v4 }
 0x6a5   : > { %v8894_v60 = vand.u32 2147483647, %v1458_v33 }
 0x6a7   : > { %1563 = vrot.lane.b32.xlu0 %v8894_v60, %s8234_s18 }
 0x6f2   : > { %v1502_v63 = vpop.f32.mrf.mxu1 }
 0x6f3   : > { %v1503_v2 = vadd.f32 %v8525_v18, %v1502_v63 }
 0x6f4   : > { %v7127_v10 = vpop.f32.mrf.mxu1 }
 0x6f5   : > { %7890 = vtanh.f32 %v1503_v2 }
 0x6f6   : > { %v1505_v12 = vpop.f32.mrf.mxu1 }
 0x6f8   : > { %v7128_v7 = vpop.f32.mrf.mxu1 }
 0x6f9   : > { %v722_v7 = vadd.f32 %v8705_v31, %v8697_v36 }
 0x702   : > { %v7891_v59 = vpop.eup %7890 }
 0x703   : > { %v1509_v51 = vpack.c.bf16 %v7891_v59, %v7891_v59 }
 0x705   : > { %7138 = vmatmul.mubr.msk.bf16.vlgmr.msra.gmra.mxu1 %vm1020_vm5, %v1509_v51 }
 0x706   : > { %1584 = vmatpush1.bf16.msra.mxu1 %v8538_v34  ;;  %1603 = vmatprep.mubr.bf16.mxu1 %v10996_v46 }
 0x707   : > { %1585 = vmatprep.subr.bf16.mxu1 %v8549_v37 }
 0x70a   : > { %1586 = vmatpush1.bf16.msra.mxu1 %v8554_v38 }
 0x70b   : > { %7141 = vmatprep.subr.bf16.mxu1 %v10969_v9 }
 0x719   : > { %v1564_v33 = vpop.permute.xlu0 %1563 }
 0x7c5   : > { %v1547_v17 = vpop.f32.mrf.mxu1 }
 0x7c6   : > { %v1548_v55 = vadd.f32 %v8655_v35, %v1547_v17 }
 0x7c7   : > { %v7139_v4 = vpop.f32.mrf.mxu1 }
 0x7c8   : > { %v1554_v59 = vmul.f32 %v1553_v24, %v1548_v55 }
 0x7c9   : > { %v1550_v61 = vpop.f32.mrf.mxu1 }
 0x7ca   : > { %v8907_v51 = vadd.f32 %v1554_v59, %v1451_v0  ;;  %v720_v0 = vadd.f32 %v8703_v28, %v8693_v27 }
 0x7cb   : > { %v7140_v63 = vpop.f32.mrf.mxu1 }
 0x7cc   : > { %v1566_v2 = vsel %vm950_vm4, %v8907_v51, %v1564_v33 }
 0x7cd   : > { %v1567_v10 = vpack.c.bf16 %v1566_v2, %v1566_v2 }
 0x7cf   : > { %6304 = vmatmul.mubr.msk.bf16.vlgmr.msra.gmra.mxu1 %vm1099_vm6, %v1567_v10 }
 0x7d0   : > { %7142 = vmatpush3.bf16.msra.mxu1 %v8772_v13  ;;  %7145 = vmatprep.mubr.msk.bf16.mxu1 %vm8233_vm3, %v10969_v9 }
 0x7d1   : > { %7143 = vmatprep.subr.bf16.mxu1 %v10969_v9 }
 0x7d4   : > { %7144 = vmatpush3.bf16.msra.mxu1 %v8783_v62 }
 0x7d5   : > { %7149 = vmatprep.subr.bf16.mxu1 %v10969_v9 }
 0x88f   : > { %v1605_v12 = vpop.f32.mrf.mxu1 }
 0x890   : > { %v1606_v17 = vadd.f32 %v1605_v12, %v720_v0 }
 0x891   : > { %v1607_v24 = vpop.f32.mrf.mxu1 }
 0x892   : > { %v1608_v55 = vadd.f32 %v1607_v24, %v722_v7  ;;  %7892 = vtanh.f32 %v1606_v17 }
 0x893   : > { %v1609_v4 = vpop.f32.mrf.mxu1 }
 0x894   : > { %7894 = vtanh.f32 %v1608_v55 }
 0x895   : > { %v1610_v59 = vpop.f32.mrf.mxu1 }
 0x89f   : > { %v7893_v61 = vpop.eup %7892 }
 0x8a0   : > { %v1614_v2 = vpack.c.bf16 %v7893_v61, %v7893_v61 }
 0x8a1   : > { %v7895_v33 = vpop.eup %7894 }
 0x8a2   : > { %v1615_v63 = vpack.c.bf16 %v7895_v33, %v7895_v33 }
 0x8a4   : > { %1648 = vmatprep.mubr.bf16.mxu0 %v1615_v63 }
 0x8a5   : > { %1649 = vmatmul.mubr.bf16.vlgmr.msra.gmra.mxu0 %v1614_v2 }
 0x8a6   : > { %7170 = vmatpush3.bf16.msra.mxu0 %v8390_v20  ;;  %7171 = vmatprep.mubr.msk.bf16.mxu0 %vm8233_vm3, %v10969_v9 }
 0x8a7   : > { %7175 = vmatprep.subr.bf16.mxu0 %v10969_v9 }
 0x965   : > { %v6467_v28 = vpop.f32.mrf.mxu0 }
 0x967   : > { %v6468_v31 = vpop.f32.mrf.mxu0 }
 0x968   : > { %v6469_v10 = vadd.f32 %v6468_v31, %v6467_v28  ;;  %v832_v28 = vadd.f32 %v8487_v56, %v8381_v14 }
 0x969   : > { %v6470_v0 = vpop.f32.mrf.mxu0 }
 0x96a   : > { %v1651_v12 = vadd.f32 %v6469_v10, %v8766_v6 }
 0x96b   : > { %v6471_v7 = vpop.f32.mrf.mxu0 }
 0x96c   : > { %v6305_v17 = vmul.f32 -1.442695, %v1651_v12 }
 0x96e   : > { %7896 = vpow2.f32 %v6305_v17 }
 0x97b   : > { %v7897_v24 = vpop.eup %7896 }
 0x97c   : > { %v1659_v55 = vadd.f32 1.0, %v7897_v24 }
 0x97e   : > { %7898 = vrcp.f32 %v1659_v55 }
 0x98b   : > { %v8927_v4 = vpop.eup %7898 }
 0x98c   : > { %1663 = vrot.lane.b32.xlu1 %v8927_v4, %s8236_s19 }
 0x9fe   : > { %v1664_v20 = vpop.permute.xlu1 %1663 }
 0x9ff   : > { %v1667_v59 = vmul.f32 %v1664_v20, %v8894_v60  ;;  %v1666_v61 = vmul.f32 %v1664_v20, %v8907_v51  ;;  %v1760_v20 = vsub.f32 1.0, %v8927_v4 }
 0xa01   : > { %1669 = vrot.lane.b32.xlu0 %v1667_v59, %s8234_s18 }
 0xa73   : > { %v1670_v33 = vpop.permute.xlu0 %1669 }
 0xa74   : > { %v1672_v63 = vsel %vm950_vm4, %v1666_v61, %v1670_v33 }
 0xa75   : > { %v1673_v2 = vpack.c.bf16 %v1672_v63, %v1672_v63  ;;  %v1762_v63 = vmul.f32 %v8927_v4, %v8907_v51 }
 0xa77   : > { %7146 = vmatmul.mubr.msk.bf16.vlgmr.msra.gmra.mxu1 %vm1099_vm6, %v1673_v2 }
 0xa78   : > { %7150 = vmatpush3.bf16.msra.mxu1 %v8790_v1  ;;  %7165 = vmatprep.mubr.msk.bf16.mxu1 %vm8233_vm3, %v10969_v9 }
 0xa79   : > { %7151 = vmatprep.subr.bf16.mxu1 %v10969_v9 }
 0xa7c   : > { %7152 = vmatpush3.bf16.msra.mxu1 %v8796_v3 }
 0xa7d   : > { %7153 = vmatprep.subr.bf16.mxu1 %v10969_v9 }
 0xa80   : > { %7154 = vmatpush3.bf16.msra.mxu1 %v8803_v5 }
 0xa81   : > { %7155 = vmatprep.subr.bf16.mxu1 %v10969_v9 }
 0xa84   : > { %7156 = vmatpush3.bf16.msra.mxu1 %v8820_v16 }
 0xa85   : > { %7157 = vmatprep.subr.bf16.mxu1 %v10969_v9 }
 0xa88   : > { %7158 = vmatpush3.bf16.msra.mxu1 %v8827_v58 }
 0xa89   : > { %7159 = vmatprep.subr.bf16.mxu1 %v10969_v9 }
 0xa8c   : > { %7160 = vmatpush3.bf16.msra.mxu1 %v8834_v11 }
 0xa8d   : > { %7161 = vmatprep.subr.bf16.mxu1 %v10969_v9 }
 0xa90   : > { %7162 = vmatpush3.bf16.msra.mxu1 %v8841_v15 }
 0xa91   : > { %7163 = vmatprep.subr.bf16.mxu1 %v10969_v9 }
 0xa94   : > { %7164 = vmatpush3.bf16.msra.mxu1 %v8848_v26 }
 0xa95   : > { %1895 = vmatprep.subr.bf16.mxu1 %v8532_v32 }
 0xb37   : > { %v1711_v31 = vpop.f32.mrf.mxu1 }
 0xb38   : > { %v1712_v10 = vadd.f32 %v1711_v31, %v832_v28 }
 0xb39   : > { %v7147_v0 = vpop.f32.mrf.mxu1 }
 0xb3a   : > { %7900 = vtanh.f32 %v1712_v10 }
 0xb3b   : > { %v1714_v12 = vpop.f32.mrf.mxu1 }
 0xb3d   : > { %v7148_v7 = vpop.f32.mrf.mxu1 }
 0xb47   : > { %v7901_v17 = vpop.eup %7900 }
 0xb48   : > { %v1718_v24 = vpack.c.bf16 %v7901_v17, %v7901_v17 }
 0xb4a   : > { %7166 = vmatmul.mubr.bf16.vlgmr.msra.gmra.mxu1 %v1718_v24 }
 0xb4b   : > { %1896 = vmatpush1.bf16.msra.mxu1 %v8538_v34  ;;  %1915 = vmatprep.mubr.bf16.mxu1 %v10996_v46 }
 0xb4c   : > { %1897 = vmatprep.subr.bf16.mxu1 %v8549_v37 }
 0xb4f   : > { %1898 = vmatpush1.bf16.msra.mxu1 %v8554_v38 }
 0xb50   : > { %6492 = vmatprep.subr.bf16.mxu1 %v8562_v8 }
 0xc0a   : > { %v1753_v56 = vpop.f32.mrf.mxu1 }
 0xc0b   : > { %v1754_v55 = vadd.f32 %v8872_v53, %v1753_v56 }
 0xc0c   : > { %v7167_v59 = vpop.f32.mrf.mxu1 }
 0xc0d   : > { %v1759_v61 = vand.u32 2147483647, %v1754_v55  ;;  %v1761_v33 = vmul.f32 %v1760_v20, %v1754_v55 }
 0xc0e   : > { %v1756_v2 = vpop.f32.mrf.mxu1 }
 0xc0f   : > { %v1763_v28 = vadd.f32 %v1762_v63, %v1761_v33  ;;  %1765 = vrot.lane.b32.xlu1 %v1759_v61, %s8236_s19 }
 0xc10   : > { %v7168_v31 = vpop.f32.mrf.mxu1 }
 0xc11   : > { %v1772_v10 = vpack.c.bf16 %v1763_v28, %v1763_v28 }
 0xc13   : > { %6307 = vst.msk [vmem:[%s8354_s16 + $0x4] sm:$0xf] %vm1461_vm7, %v1772_v10  ;;  %7172 = vmatmul.mubr.msk.bf16.vlgmr.msra.gmra.mxu0 %vm950_vm4, %v1772_v10 }
 0xc14   : > { %7176 = vmatpush3.bf16.msra.mxu0 %v8447_v42  ;;  %7183 = vmatprep.mubr.msk.bf16.mxu0 %vm8233_vm3, %v10969_v9  ;;  %v1769_v42 = vmul.f32 %v8927_v4, %v8894_v60  ;;  %v1865_v60 = vstv %s1776_s22  ;;  %s3335_s22 = sadd.s32 7, %s8342_s21 }
 0xc15   : > { %7177 = vmatprep.subr.bf16.mxu0 %v10969_v9  ;;  %s3336_s23 = sld [smem:[#allocation5 + %s3335_s22]] }
 0xc18   : > { %7178 = vmatpush3.bf16.msra.mxu0 %v8454_v43 }
 0xc19   : > { %7179 = vmatprep.subr.bf16.mxu0 %v10969_v9 }
 0xc1c   : > { %7180 = vmatpush3.bf16.msra.mxu0 %v8461_v44 }
 0xc1d   : > { %7181 = vmatprep.subr.bf16.mxu0 %v10969_v9 }
 0xc20   : > { %7182 = vmatpush3.bf16.msra.mxu0 %v8468_v45 }
 0xc21   : > { %7187 = vmatprep.subr.bf16.mxu0 %v10969_v9 }
 0xc81   : > { %v1766_v51 = vpop.permute.xlu1 %1765 }
 0xc82   : > { %v1768_v0 = vmul.f32 %v1766_v51, %v1760_v20 }
 0xc84   : > { %v1770_v12 = vadd.f32 %v1769_v42, %v1768_v0 }
 0xc86   : > { %v8981_v7 = vand.u32 2147483647, %v1770_v12 }
 0xc88   : > { %1875 = vrot.lane.b32.xlu0 %v8981_v7, %s8234_s18 }
 0xcd3   : > { %v1814_v43 = vpop.f32.mrf.mxu0 }
 0xcd4   : > { %v1815_v44 = vadd.f32 %v8525_v18, %v1814_v43 }
 0xcd5   : > { %v7173_v17 = vpop.f32.mrf.mxu0 }
 0xcd6   : > { %7902 = vtanh.f32 %v1815_v44 }
 0xcd7   : > { %v1817_v45 = vpop.f32.mrf.mxu0 }
 0xcd9   : > { %v7174_v24 = vpop.f32.mrf.mxu0 }
 0xce3   : > { %v7903_v56 = vpop.eup %7902 }
 0xce4   : > { %v1821_v55 = vpack.c.bf16 %v7903_v56, %v7903_v56 }
 0xce6   : > { %7184 = vmatmul.mubr.msk.bf16.vlgmr.msra.gmra.mxu0 %vm1020_vm5, %v1821_v55 }
 0xce7   : > { %7188 = vmatpush3.bf16.msra.mxu0 %v8772_v13  ;;  %7191 = vmatprep.mubr.msk.bf16.mxu0 %vm8233_vm3, %v10969_v9 }
 0xce8   : > { %7189 = vmatprep.subr.bf16.mxu0 %v10969_v9 }
 0xceb   : > { %7190 = vmatpush3.bf16.msra.mxu0 %v8783_v62 }
 0xcec   : > { %7195 = vmatprep.subr.bf16.mxu0 %v10969_v9 }
 0xcfa   : > { %v1876_v63 = vpop.permute.xlu0 %1875 }
 0xda6   : > { %v1859_v18 = vpop.f32.mrf.mxu0 }
 0xda7   : > { %v1860_v4 = vadd.f32 %v8655_v35, %v1859_v18 }
 0xda8   : > { %v7185_v20 = vpop.f32.mrf.mxu0 }
 0xda9   : > { %v1866_v59 = vmul.f32 %v1865_v60, %v1860_v4 }
 0xdaa   : > { %v1862_v61 = vpop.f32.mrf.mxu0 }
 0xdab   : > { %v8995_v33 = vadd.f32 %v1866_v59, %v1763_v28 }
 0xdac   : > { %v7186_v2 = vpop.f32.mrf.mxu0 }
 0xdad   : > { %v1878_v31 = vsel %vm950_vm4, %v8995_v33, %v1876_v63  ;;  %v10997_v2 = vld [vmem:[#allocation8_spill] sm:$0xff] }
 0xdae   : > { %v1879_v10 = vpack.c.bf16 %v1878_v31, %v1878_v31 }
 0xdb0   : > { %6310 = vmatmul.mubr.msk.bf16.vlgmr.msra.gmra.mxu1 %vm1099_vm6, %v1879_v10 }
 0xdb1   : > { %6493 = vmatpush3.bf16.msra.mxu1 %v8567_v41  ;;  %v726_v41 = vadd.f32 %v8707_v39, %v8693_v27  ;;  %v9023_v39 = vld [vmem:[%s10936_s2] sm:$0xff]  }
 0xdb2   : > { %6494 = vmatprep.subr.bf16.mxu1 %v8574_v47 }
 0xdb5   : > { %6495 = vmatpush3.bf16.msra.mxu1 %v8582_v48  ;;  %v728_v48 = vadd.f32 %v8709_v57, %v8697_v36 }
 0xdb6   : > { %6496 = vmatprep.subr.bf16.mxu1 %v8588_v22 }
 0xdb9   : > { %6497 = vmatpush3.bf16.msra.mxu1 %v8594_v49 }
 0xdba   : > { %6498 = vmatprep.subr.bf16.mxu1 %v8602_v50 }
 0xdbd   : > { %6499 = vmatpush3.bf16.msra.mxu1 %v8609_v52 }
 0xdbe   : > { %6500 = vmatprep.subr.bf16.mxu1 %v8615_v23 }
 0xdc1   : > { %6501 = vmatpush3.bf16.msra.mxu1 %v8621_v54 }
 0xdc2   : > { %6502 = vmatprep.subr.bf16.mxu1 %v8642_v29 }
 0xdc5   : > { %6503 = vmatpush3.bf16.msra.mxu1 %v8648_v30 }
 0xdc6   : > { %6504 = vmatprep.subr.bf16.mxu1 %v8669_v19 }
 0xdc9   : > { %6505 = vmatpush3.bf16.msra.mxu1 %v8674_v40 }
 0xdca   : > { %6506 = vmatprep.subr.bf16.mxu1 %v8681_v21 }
 0xdcd   : > { %6507 = vmatpush3.bf16.msra.mxu1 %v8686_v25 }
 0xdce   : > { %7215 = vmatprep.subr.bf16.mxu1 %v10969_v9 }
 0xe70   : > { %v1917_v47 = vpop.f32.mrf.mxu1 }
 0xe71   : > { %v1918_v22 = vadd.f32 %v1917_v47, %v726_v41 }
 0xe72   : > { %v1919_v49 = vpop.f32.mrf.mxu1 }
 0xe73   : > { %v1920_v50 = vadd.f32 %v1919_v49, %v728_v48  ;;  %7904 = vtanh.f32 %v1918_v22 }
 0xe74   : > { %v1921_v52 = vpop.f32.mrf.mxu1 }
 0xe75   : > { %7906 = vtanh.f32 %v1920_v50 }
 0xe76   : > { %v1922_v23 = vpop.f32.mrf.mxu1 }
 0xe80   : > { %v7905_v54 = vpop.eup %7904 }
 0xe81   : > { %v1926_v0 = vpack.c.bf16 %v7905_v54, %v7905_v54 }
 0xe82   : > { %v7907_v28 = vpop.eup %7906 }
 0xe83   : > { %v1927_v51 = vpack.c.bf16 %v7907_v28, %v7907_v28 }
 0xe85   : > { %1960 = vmatprep.mubr.bf16.mxu1 %v1927_v51 }
 0xe86   : > { %1961 = vmatmul.mubr.bf16.vlgmr.msra.gmra.mxu1 %v1926_v0 }
 0xe87   : > { %7216 = vmatpush3.bf16.msra.mxu1 %v9023_v39  ;;  %7217 = vmatprep.mubr.msk.bf16.mxu1 %vm8233_vm3, %v10969_v9 }
 0xe88   : > { %7221 = vmatprep.subr.bf16.mxu1 %v10969_v9 }
 0xf46   : > { %v6508_v57 = vpop.f32.mrf.mxu1 }
 0xf48   : > { %v6509_v42 = vpop.f32.mrf.mxu1 }
 0xf49   : > { %v6510_v12 = vadd.f32 %v6509_v42, %v6508_v57  ;;  %v9097_v57 = vld [vmem:[%s10938_s4] sm:$0xff]  }
 0xf4a   : > { %v6511_v43 = vpop.f32.mrf.mxu1 }
 0xf4b   : > { %v1963_v44 = vadd.f32 %v6510_v12, %v8766_v6 }
 0xf4c   : > { %v6512_v17 = vpop.f32.mrf.mxu1 }
 0xf4d   : > { %v6311_v45 = vmul.f32 -1.442695, %v1963_v44 }
 0xf4f   : > { %7908 = vpow2.f32 %v6311_v45 }
 0xf5c   : > { %v7909_v24 = vpop.eup %7908 }
 0xf5d   : > { %v1971_v56 = vadd.f32 1.0, %v7909_v24  ;;  %v9110_v24 = vld [vmem:[%s10937_s3] ss:$0 sm:$0xff] }
 0xf5f   : > { %7910 = vrcp.f32 %v1971_v56 }
 0xf6c   : > { %v9030_v55 = vpop.eup %7910 }
 0xf6d   : > { %1975 = vrot.lane.b32.xlu1 %v9030_v55, %s8236_s19  ;;  %v2072_v50 = vsub.f32 1.0, %v9030_v55  ;;  %v2081_v12 = vmul.f32 %v9030_v55, %v8981_v7 }
 0xfdf   : > { %v1976_v18 = vpop.permute.xlu1 %1975 }
 0xfe0   : > { %v1979_v60 = vmul.f32 %v1976_v18, %v8981_v7  ;;  %v1978_v4 = vmul.f32 %v1976_v18, %v8995_v33 }
 0xfe2   : > { %1981 = vrot.lane.b32.xlu0 %v1979_v60, %s8234_s18 }
0x1054   : > { %v1982_v20 = vpop.permute.xlu0 %1981 }
0x1055   : > { %v1984_v59 = vsel %vm950_vm4, %v1978_v4, %v1982_v20 }
0x1056   : > { %v1985_v61 = vpack.c.bf16 %v1984_v59, %v1984_v59  ;;  %v2177_v59 = vstv %s2088_s25  ;;  %s2399_s25 = sadd.s32 4, %s8342_s21 }
0x1057   : > { %s2400_s26 = sld [smem:[#allocation5 + %s2399_s25]] }
0x1058   : > { %7192 = vmatmul.mubr.msk.bf16.vlgmr.msra.gmra.mxu0 %vm1099_vm6, %v1985_v61 }
0x1059   : > { %7196 = vmatpush3.bf16.msra.mxu0 %v8790_v1  ;;  %7211 = vmatprep.mubr.msk.bf16.mxu0 %vm8233_vm3, %v10969_v9 }
0x105a   : > { %7197 = vmatprep.subr.bf16.mxu0 %v10969_v9 }
0x105d   : > { %7198 = vmatpush3.bf16.msra.mxu0 %v8796_v3 }
0x105e   : > { %7199 = vmatprep.subr.bf16.mxu0 %v10969_v9 }
0x1061   : > { %7200 = vmatpush3.bf16.msra.mxu0 %v8803_v5 }
0x1062   : > { %7201 = vmatprep.subr.bf16.mxu0 %v10969_v9 }
0x1065   : > { %7202 = vmatpush3.bf16.msra.mxu0 %v8820_v16 }
0x1066   : > { %7203 = vmatprep.subr.bf16.mxu0 %v10969_v9 }
0x1069   : > { %7204 = vmatpush3.bf16.msra.mxu0 %v8827_v58 }
0x106a   : > { %7205 = vmatprep.subr.bf16.mxu0 %v10969_v9 }
0x106d   : > { %7206 = vmatpush3.bf16.msra.mxu0 %v8834_v11 }
0x106e   : > { %7207 = vmatprep.subr.bf16.mxu0 %v10969_v9 }
0x1071   : > { %7208 = vmatpush3.bf16.msra.mxu0 %v8841_v15 }
0x1072   : > { %7209 = vmatprep.subr.bf16.mxu0 %v10969_v9 }
0x1075   : > { %7210 = vmatpush3.bf16.msra.mxu0 %v8848_v26 }
0x1076   : > { %2207 = vmatprep.subr.bf16.mxu0 %v8532_v32 }
0x1118   : > { %v2023_v63 = vpop.f32.mrf.mxu0 }
0x1119   : > { %v2024_v31 = vadd.f32 %v2023_v63, %v10997_v2 }
0x111a   : > { %v7193_v10 = vpop.f32.mrf.mxu0 }
0x111b   : > { %7912 = vtanh.f32 %v2024_v31 }
0x111c   : > { %v2026_v41 = vpop.f32.mrf.mxu0 }
0x111e   : > { %v7194_v47 = vpop.f32.mrf.mxu0 }
0x1128   : > { %v7913_v48 = vpop.eup %7912 }
0x1129   : > { %v2030_v22 = vpack.c.bf16 %v7913_v48, %v7913_v48 }
0x112b   : > { %7212 = vmatmul.mubr.bf16.vlgmr.msra.gmra.mxu0 %v2030_v22  ;;  %v9142_v22 = vld [vmem:[%s10944_s10 + $0x30] sm:$0xff]  }
0x112c   : > { %2208 = vmatpush1.bf16.msra.mxu0 %v8538_v34  ;;  %2227 = vmatprep.mubr.bf16.mxu0 %v10996_v46  ;;  %v2074_v34 = vmul.f32 %v9030_v55, %v8995_v33  ;;  %v9090_v33 = vld [vmem:[%s10938_s4 + $0x8] sm:$0xff]  }
0x112d   : > { %2209 = vmatprep.subr.bf16.mxu0 %v8549_v37 }
0x1130   : > { %2210 = vmatpush1.bf16.msra.mxu0 %v8554_v38  ;;  %v9074_v38 = vld [vmem:[%s10938_s4 + $0x18] sm:$0xff]  }
0x1131   : > { %6533 = vmatprep.subr.bf16.mxu0 %v8562_v8  ;;  %v9083_v8 = vld [vmem:[%s10938_s4 + $0x10] sm:$0xff]  }
0x11eb   : > { %v2065_v32 = vpop.f32.mrf.mxu0 }
0x11ec   : > { %v2066_v49 = vadd.f32 %v8872_v53, %v2065_v32  ;;  %v9148_v32 = vld [vmem:[%s10944_s10 + $0x68] sm:$0xff]  }
0x11ed   : > { %v7213_v52 = vpop.f32.mrf.mxu0 }
0x11ee   : > { %v2071_v23 = vand.u32 2147483647, %v2066_v49  ;;  %v2073_v54 = vmul.f32 %v2072_v50, %v2066_v49  ;;  %v9154_v49 = vld [vmem:[%s10944_s10 + $0x28] sm:$0xff]   ;;  %v9166_v52 = vld [vmem:[%s10944_s10 + $0x20] sm:$0xff]  }
0x11ef   : > { %v2068_v28 = vpop.f32.mrf.mxu0 }
0x11f0   : > { %v2075_v51 = vadd.f32 %v2074_v34, %v2073_v54  ;;  %2077 = vrot.lane.b32.xlu1 %v2071_v23, %s8236_s19  ;;  %v9172_v23 = vld [vmem:[%s10944_s10 + $0x58] sm:$0xff]   ;;  %v10998_v34 = vld [vmem:[#allocation22_spill] sm:$0xff] }
0x11f1   : > { %v7214_v37 = vpop.f32.mrf.mxu0  ;;  %v9178_v54 = vld [vmem:[%s10944_s10 + $0x18] sm:$0xff]   ;;  %v730_v28 = vadd.f32 %v10998_v34, %v8693_v27  ;;  %v9246_v34 = vld [vmem:[%s10940_s6] ss:$8 sps:$4 sm:$0xff]  }
0x11f2   : > { %v2084_v0 = vpack.c.bf16 %v2075_v51, %v2075_v51  ;;  %v10999_v37 = vld [vmem:[#allocation23_spill] sm:$0xff] }
0x11f4   : > { %6313 = vst.msk [vmem:[%s8354_s16 + $0x8] sm:$0xf] %vm1461_vm7, %v2084_v0  ;;  %7218 = vmatmul.mubr.msk.bf16.vlgmr.msra.gmra.mxu1 %vm950_vm4, %v2084_v0  ;;  %v732_v0 = vadd.f32 %v10999_v37, %v8697_v36 }
0x11f5   : > { %7222 = vmatpush3.bf16.msra.mxu1 %v9074_v38  ;;  %7229 = vmatprep.mubr.msk.bf16.mxu1 %vm8233_vm3, %v10969_v9 }
0x11f6   : > { %7223 = vmatprep.subr.bf16.mxu1 %v10969_v9 }
0x11f9   : > { %7224 = vmatpush3.bf16.msra.mxu1 %v9083_v8 }
0x11fa   : > { %7225 = vmatprep.subr.bf16.mxu1 %v10969_v9 }
0x11fd   : > { %7226 = vmatpush3.bf16.msra.mxu1 %v9090_v33 }
0x11fe   : > { %7227 = vmatprep.subr.bf16.mxu1 %v10969_v9 }
0x1201   : > { %7228 = vmatpush3.bf16.msra.mxu1 %v9097_v57 }
0x1202   : > { %7233 = vmatprep.subr.bf16.mxu1 %v10969_v9 }
0x1262   : > { %v2078_v42 = vpop.permute.xlu1 %2077 }
0x1263   : > { %v2080_v43 = vmul.f32 %v2078_v42, %v2072_v50  ;;  %v9160_v50 = vld [vmem:[%s10944_s10 + $0x60] sm:$0xff]  }
0x1265   : > { %v2082_v44 = vadd.f32 %v2081_v12, %v2080_v43 }
0x1267   : > { %v9103_v17 = vand.u32 2147483647, %v2082_v44 }
0x1269   : > { %2187 = vrot.lane.b32.xlu0 %v9103_v17, %s8234_s18 }
0x12b4   : > { %v2126_v45 = vpop.f32.mrf.mxu1 }
0x12b5   : > { %v2127_v56 = vadd.f32 %v9110_v24, %v2126_v45 }
0x12b6   : > { %v7219_v18 = vpop.f32.mrf.mxu1 }
0x12b7   : > { %7914 = vtanh.f32 %v2127_v56 }
0x12b8   : > { %v2129_v60 = vpop.f32.mrf.mxu1 }
0x12ba   : > { %v7220_v7 = vpop.f32.mrf.mxu1 }
0x12c4   : > { %v7915_v55 = vpop.eup %7914 }
0x12c5   : > { %v2133_v4 = vpack.c.bf16 %v7915_v55, %v7915_v55 }
0x12c7   : > { %7230 = vmatmul.mubr.msk.bf16.vlgmr.msra.gmra.mxu1 %vm1020_vm5, %v2133_v4 }
0x12c8   : > { %7234 = vmatpush3.bf16.msra.mxu1 %v8772_v13  ;;  %7237 = vmatprep.mubr.msk.bf16.mxu1 %vm8233_vm3, %v10969_v9 }
0x12c9   : > { %7235 = vmatprep.subr.bf16.mxu1 %v10969_v9 }
0x12cc   : > { %7236 = vmatpush3.bf16.msra.mxu1 %v8783_v62  ;;  %v9130_v62 = vld [vmem:[%s10944_s10 + $0x38] sm:$0xff]  }
0x12cd   : > { %7241 = vmatprep.subr.bf16.mxu1 %v10969_v9 }
0x12db   : > { %v2188_v13 = vpop.permute.xlu0 %2187 }
0x1387   : > { %v2171_v20 = vpop.f32.mrf.mxu1 }
0x1388   : > { %v2172_v61 = vadd.f32 %v8655_v35, %v2171_v20  ;;  %v9136_v35 = vld [vmem:[%s10944_s10 + $0x70] sm:$0xff]  }
0x1389   : > { %v7231_v63 = vpop.f32.mrf.mxu1 }
0x138a   : > { %v2178_v2 = vmul.f32 %v2177_v59, %v2172_v61 }
0x138b   : > { %v2174_v31 = vpop.f32.mrf.mxu1 }
0x138c   : > { %v9122_v10 = vadd.f32 %v2178_v2, %v2075_v51 }
0x138d   : > { %v7232_v41 = vpop.f32.mrf.mxu1 }
0x138e   : > { %v2190_v47 = vsel %vm950_vm4, %v9122_v10, %v2188_v13 }
0x138f   : > { %v2191_v48 = vpack.c.bf16 %v2190_v47, %v2190_v47 }
0x1391   : > { %6316 = vmatmul.mubr.msk.bf16.vlgmr.msra.gmra.mxu0 %vm1099_vm6, %v2191_v48  ;;  %v9240_v48 = vld [vmem:[%s10940_s6 + $0x4] ss:$8 sps:$4 sm:$0xff]  }
0x1392   : > { %6534 = vmatpush3.bf16.msra.mxu0 %v9130_v62 }
0x1393   : > { %6535 = vmatprep.subr.bf16.mxu0 %v9136_v35 }
0x1396   : > { %6536 = vmatpush3.bf16.msra.mxu0 %v9142_v22 }
0x1397   : > { %6537 = vmatprep.subr.bf16.mxu0 %v9148_v32 }
0x139a   : > { %6538 = vmatpush3.bf16.msra.mxu0 %v9154_v49 }
0x139b   : > { %6539 = vmatprep.subr.bf16.mxu0 %v9160_v50 }
0x139e   : > { %6540 = vmatpush3.bf16.msra.mxu0 %v9166_v52 }
0x139f   : > { %6541 = vmatprep.subr.bf16.mxu0 %v9172_v23 }
0x13a2   : > { %6542 = vmatpush3.bf16.msra.mxu0 %v9178_v54 }
0x13a3   : > { %6543 = vmatprep.subr.bf16.mxu0 %v8642_v29 }
0x13a6   : > { %6544 = vmatpush3.bf16.msra.mxu0 %v8648_v30 }
0x13a7   : > { %6545 = vmatprep.subr.bf16.mxu0 %v8669_v19 }
0x13aa   : > { %6546 = vmatpush3.bf16.msra.mxu0 %v8674_v40 }
0x13ab   : > { %6547 = vmatprep.subr.bf16.mxu0 %v8681_v21 }
0x13ae   : > { %6548 = vmatpush3.bf16.msra.mxu0 %v8686_v25 }
0x13af   : > { %7261 = vmatprep.subr.bf16.mxu0 %v10969_v9 }
0x1451   : > { %v2229_v51 = vpop.f32.mrf.mxu0 }
0x1452   : > { %v2230_v29 = vadd.f32 %v2229_v51, %v730_v28  ;;  %v9252_v28 = vld [vmem:[%s10944_s10 + $0x78] sm:$0xff]  }
0x1453   : > { %v2231_v42 = vpop.f32.mrf.mxu0 }
0x1454   : > { %v2232_v30 = vadd.f32 %v2231_v42, %v732_v0  ;;  %7916 = vtanh.f32 %v2230_v29 }
0x1455   : > { %v2233_v19 = vpop.f32.mrf.mxu0 }
0x1456   : > { %7918 = vtanh.f32 %v2232_v30 }
0x1457   : > { %v2234_v40 = vpop.f32.mrf.mxu0 }
0x1461   : > { %v7917_v12 = vpop.eup %7916 }
0x1462   : > { %v2238_v25 = vpack.c.bf16 %v7917_v12, %v7917_v12 }
0x1463   : > { %v7919_v21 = vpop.eup %7918 }
0x1464   : > { %v2239_v43 = vpack.c.bf16 %v7919_v21, %v7919_v21 }
0x1466   : > { %2272 = vmatprep.mubr.bf16.mxu0 %v2239_v43 }
0x1467   : > { %2273 = vmatmul.mubr.bf16.vlgmr.msra.gmra.mxu0 %v2238_v25 }
0x1468   : > { %7262 = vmatpush3.bf16.msra.mxu0 %v9023_v39  ;;  %7263 = vmatprep.mubr.msk.bf16.mxu0 %vm8233_vm3, %v10969_v9 }
0x1469   : > { %7267 = vmatprep.subr.bf16.mxu0 %v10969_v9 }
0x1527   : > { %v6549_v44 = vpop.f32.mrf.mxu0 }
0x1529   : > { %v6550_v45 = vpop.f32.mrf.mxu0 }
0x152a   : > { %v6551_v56 = vadd.f32 %v6550_v45, %v6549_v44 }
0x152b   : > { %v6552_v18 = vpop.f32.mrf.mxu0 }
0x152c   : > { %v2275_v60 = vadd.f32 %v6551_v56, %v8766_v6 }
0x152d   : > { %v6553_v7 = vpop.f32.mrf.mxu0 }
0x152e   : > { %v6317_v55 = vmul.f32 -1.442695, %v2275_v60 }
0x1530   : > { %7920 = vpow2.f32 %v6317_v55 }
0x153d   : > { %v7921_v4 = vpop.eup %7920 }
0x153e   : > { %v2283_v20 = vadd.f32 1.0, %v7921_v4 }
0x1540   : > { %7922 = vrcp.f32 %v2283_v20 }
0x154d   : > { %v9197_v59 = vpop.eup %7922 }
0x154e   : > { %2287 = vrot.lane.b32.xlu1 %v9197_v59, %s8236_s19  ;;  %v2384_v0 = vsub.f32 1.0, %v9197_v59  ;;  %v2386_v19 = vmul.f32 %v9197_v59, %v9122_v10  ;;  %v2393_v25 = vmul.f32 %v9197_v59, %v9103_v17  ;;  %v9293_v59 = vld [vmem:[%s10941_s7] sm:$0xff]  }
0x15c0   : > { %v2288_v61 = vpop.permute.xlu1 %2287 }
0x15c1   : > { %v2291_v63 = vmul.f32 %v2288_v61, %v9103_v17  ;;  %v2290_v2 = vmul.f32 %v2288_v61, %v9122_v10  ;;  %v9284_v17 = vld [vmem:[%s10941_s7 + $0x8] sm:$0xff]  }
0x15c3   : > { %2293 = vrot.lane.b32.xlu0 %v2291_v63, %s8234_s18  ;;  %v2489_v63 = vstv %s2400_s26  ;;  %s3959_s26 = sadd.s32 9, %s8342_s21 }
0x15c4   : > { %s3960_s27 = sld [smem:[#allocation5 + %s3959_s26]]  ;;  %s5519_s26 = sadd.s32 14, %s8342_s21 }
0x1635   : > { %v2294_v31 = vpop.permute.xlu0 %2293 }
0x1636   : > { %v2296_v6 = vsel %vm950_vm4, %v2290_v2, %v2294_v31  ;;  %v9301_v2 = vld [vmem:[%s10939_s5] ss:$0 sm:$0xff] }
0x1637   : > { %v2297_v13 = vpack.c.bf16 %v2296_v6, %v2296_v6 }
0x1639   : > { %7238 = vmatmul.mubr.msk.bf16.vlgmr.msra.gmra.mxu1 %vm1099_vm6, %v2297_v13 }
0x163a   : > { %7242 = vmatpush3.bf16.msra.mxu1 %v8790_v1  ;;  %7257 = vmatprep.mubr.msk.bf16.mxu1 %vm8233_vm3, %v10969_v9  ;;  %v9226_v1 = vld [vmem:[%s10940_s6 + $0x14] ss:$8 sps:$4 sm:$0xff]  }
0x163b   : > { %7243 = vmatprep.subr.bf16.mxu1 %v10969_v9 }
0x163e   : > { %7244 = vmatpush3.bf16.msra.mxu1 %v8796_v3 }
0x163f   : > { %7245 = vmatprep.subr.bf16.mxu1 %v10969_v9 }
0x1642   : > { %7246 = vmatpush3.bf16.msra.mxu1 %v8803_v5  ;;  %v11000_v5 = vld [vmem:[#allocation9_spill] sm:$0xff] }
0x1643   : > { %7247 = vmatprep.subr.bf16.mxu1 %v10969_v9 }
0x1646   : > { %7248 = vmatpush3.bf16.msra.mxu1 %v8820_v16 }
0x1647   : > { %7249 = vmatprep.subr.bf16.mxu1 %v10969_v9 }
0x164a   : > { %7250 = vmatpush3.bf16.msra.mxu1 %v8827_v58 }
0x164b   : > { %7251 = vmatprep.subr.bf16.mxu1 %v10969_v9 }
0x164e   : > { %7252 = vmatpush3.bf16.msra.mxu1 %v8834_v11 }
0x164f   : > { %7253 = vmatprep.subr.bf16.mxu1 %v10969_v9 }
0x1652   : > { %7254 = vmatpush3.bf16.msra.mxu1 %v8841_v15 }
0x1653   : > { %7255 = vmatprep.subr.bf16.mxu1 %v10969_v9 }
0x1656   : > { %7256 = vmatpush3.bf16.msra.mxu1 %v8848_v26  ;;  %v9233_v26 = vld [vmem:[%s10940_s6 + $0x10] ss:$8 sps:$4 sm:$0xff]  }
0x1657   : > { %2519 = vmatprep.subr.bf16.mxu1 %v9226_v1 }
0x16f9   : > { %v2335_v3 = vpop.f32.mrf.mxu1 }
0x16fa   : > { %v2336_v16 = vadd.f32 %v2335_v3, %v11000_v5 }
0x16fb   : > { %v7239_v58 = vpop.f32.mrf.mxu1 }
0x16fc   : > { %7924 = vtanh.f32 %v2336_v16 }
0x16fd   : > { %v2338_v11 = vpop.f32.mrf.mxu1 }
0x16ff   : > { %v7240_v41 = vpop.f32.mrf.mxu1 }
0x1709   : > { %v7925_v47 = vpop.eup %7924 }
0x170a   : > { %v2342_v15 = vpack.c.bf16 %v7925_v47, %v7925_v47  ;;  %v9321_v47 = vld [vmem:[%s10944_s10 + $0x50] sm:$0xff]  }
0x170c   : > { %7258 = vmatmul.mubr.bf16.vlgmr.msra.gmra.mxu1 %v2342_v15  ;;  %v9327_v15 = vld [vmem:[%s10944_s10 + $0x10] sm:$0xff]  }
0x170d   : > { %2520 = vmatpush1.bf16.msra.mxu1 %v9233_v26  ;;  %2539 = vmatprep.mubr.bf16.mxu1 %v10996_v46 }
0x170e   : > { %2521 = vmatprep.subr.bf16.mxu1 %v9240_v48 }
0x1711   : > { %2522 = vmatpush1.bf16.msra.mxu1 %v9246_v34 }
0x1712   : > { %6574 = vmatprep.subr.bf16.mxu1 %v9252_v28 }
0x17cc   : > { %v2377_v51 = vpop.f32.mrf.mxu1 }
0x17cd   : > { %v2378_v37 = vadd.f32 %v8872_v53, %v2377_v51  ;;  %v9333_v51 = vld [vmem:[%s10944_s10 + $0x48] sm:$0xff]  }
0x17ce   : > { %v7259_v29 = vpop.f32.mrf.mxu1 }
0x17cf   : > { %v2383_v42 = vand.u32 2147483647, %v2378_v37  ;;  %v2385_v30 = vmul.f32 %v2384_v0, %v2378_v37  ;;  %v9339_v37 = vld [vmem:[%s10944_s10 + $0x8] sm:$0xff]   ;;  %v9351_v29 = vld [vmem:[%s10944_s10] sm:$0xff]  }
0x17d0   : > { %v2380_v40 = vpop.f32.mrf.mxu1 }
0x17d1   : > { %v2387_v12 = vadd.f32 %v2386_v19, %v2385_v30  ;;  %2389 = vrot.lane.b32.xlu1 %v2383_v42, %s8236_s19  ;;  %v11001_v42 = vld [vmem:[#allocation24_spill] sm:$0xff]  ;;  %v11002_v40 = vld [vmem:[#allocation25_spill] sm:$0xff] }
0x17d2   : > { %v7260_v21 = vpop.f32.mrf.mxu1  ;;  %v736_v30 = vadd.f32 %v11001_v42, %v8693_v27 }
0x17d3   : > { %v2396_v43 = vpack.c.bf16 %v2387_v12, %v2387_v12 }
0x17d5   : > { %6319 = vst.msk [vmem:[%s8354_s16 + $0xc] sm:$0xf] %vm1461_vm7, %v2396_v43  ;;  %7264 = vmatmul.mubr.msk.bf16.vlgmr.msra.gmra.mxu0 %vm950_vm4, %v2396_v43 }
0x17d6   : > { %7268 = vmatpush3.bf16.msra.mxu0 %v9074_v38  ;;  %7275 = vmatprep.mubr.msk.bf16.mxu0 %vm8233_vm3, %v10969_v9 }
0x17d7   : > { %7269 = vmatprep.subr.bf16.mxu0 %v10969_v9 }
0x17da   : > { %7270 = vmatpush3.bf16.msra.mxu0 %v9083_v8 }
0x17db   : > { %7271 = vmatprep.subr.bf16.mxu0 %v10969_v9 }
0x17de   : > { %7272 = vmatpush3.bf16.msra.mxu0 %v9090_v33 }
0x17df   : > { %7273 = vmatprep.subr.bf16.mxu0 %v10969_v9 }
0x17e2   : > { %7274 = vmatpush3.bf16.msra.mxu0 %v9097_v57 }
0x17e3   : > { %7279 = vmatprep.subr.bf16.mxu0 %v10969_v9 }
0x1843   : > { %v2390_v53 = vpop.permute.xlu1 %2389 }
0x1844   : > { %v2392_v10 = vmul.f32 %v2390_v53, %v2384_v0  ;;  %v9345_v0 = vld [vmem:[%s10944_s10 + $0x40] sm:$0xff]  }
0x1846   : > { %v2394_v44 = vadd.f32 %v2393_v25, %v2392_v10 }
0x1848   : > { %v9275_v45 = vand.u32 2147483647, %v2394_v44 }
0x184a   : > { %2499 = vrot.lane.b32.xlu0 %v9275_v45, %s8234_s18 }
0x1895   : > { %v2438_v56 = vpop.f32.mrf.mxu0 }
0x1896   : > { %v2439_v18 = vadd.f32 %v9110_v24, %v2438_v56 }
0x1897   : > { %v7265_v60 = vpop.f32.mrf.mxu0 }
0x1898   : > { %7926 = vtanh.f32 %v2439_v18 }
0x1899   : > { %v2441_v7 = vpop.f32.mrf.mxu0 }
0x189b   : > { %v7266_v55 = vpop.f32.mrf.mxu0 }
0x18a5   : > { %v7927_v4 = vpop.eup %7926 }
0x18a6   : > { %v2445_v20 = vpack.c.bf16 %v7927_v4, %v7927_v4 }
0x18a8   : > { %7276 = vmatmul.mubr.msk.bf16.vlgmr.msra.gmra.mxu0 %vm1020_vm5, %v2445_v20 }
0x18a9   : > { %7280 = vmatpush3.bf16.msra.mxu0 %v9284_v17  ;;  %7283 = vmatprep.mubr.msk.bf16.mxu0 %vm8233_vm3, %v10969_v9 }
0x18aa   : > { %7281 = vmatprep.subr.bf16.mxu0 %v10969_v9 }
0x18ad   : > { %7282 = vmatpush3.bf16.msra.mxu0 %v9293_v59 }
0x18ae   : > { %7287 = vmatprep.subr.bf16.mxu0 %v10969_v9 }
0x18bc   : > { %v2500_v16 = vpop.permute.xlu0 %2499 }
0x1968   : > { %v2483_v61 = vpop.f32.mrf.mxu0 }
0x1969   : > { %v2484_v31 = vadd.f32 %v9301_v2, %v2483_v61  ;;  %v9366_v61 = vld [vmem:[%s10945_s11] ss:$0 sm:$0xff] }
0x196a   : > { %v7277_v6 = vpop.f32.mrf.mxu0 }
0x196b   : > { %v2490_v13 = vmul.f32 %v2489_v63, %v2484_v31 }
0x196c   : > { %v2486_v3 = vpop.f32.mrf.mxu0 }
0x196d   : > { %v9304_v5 = vadd.f32 %v2490_v13, %v2387_v12  ;;  %v738_v12 = vadd.f32 %v11002_v40, %v8697_v36  ;;  %v9381_v40 = vld [vmem:[%s10946_s12 + $0x38] sm:$0xff]  }
0x196e   : > { %v7278_v58 = vpop.f32.mrf.mxu0 }
0x196f   : > { %v2502_v11 = vsel %vm950_vm4, %v9304_v5, %v2500_v16 }
0x1970   : > { %v2503_v41 = vpack.c.bf16 %v2502_v11, %v2502_v11 }
0x1972   : > { %6322 = vmatmul.mubr.msk.bf16.vlgmr.msra.gmra.mxu1 %vm1099_vm6, %v2503_v41 }
0x1973   : > { %6575 = vmatpush3.bf16.msra.mxu1 %v9130_v62 }
0x1974   : > { %6576 = vmatprep.subr.bf16.mxu1 %v9136_v35 }
0x1977   : > { %6577 = vmatpush3.bf16.msra.mxu1 %v9142_v22 }
0x1978   : > { %6578 = vmatprep.subr.bf16.mxu1 %v9148_v32 }
0x197b   : > { %6579 = vmatpush3.bf16.msra.mxu1 %v9154_v49 }
0x197c   : > { %6580 = vmatprep.subr.bf16.mxu1 %v9160_v50 }
0x197f   : > { %6581 = vmatpush3.bf16.msra.mxu1 %v9166_v52 }
0x1980   : > { %6582 = vmatprep.subr.bf16.mxu1 %v9172_v23 }
0x1983   : > { %6583 = vmatpush3.bf16.msra.mxu1 %v9178_v54 }
0x1984   : > { %6584 = vmatprep.subr.bf16.mxu1 %v9321_v47 }
0x1987   : > { %6585 = vmatpush3.bf16.msra.mxu1 %v9327_v15 }
0x1988   : > { %6586 = vmatprep.subr.bf16.mxu1 %v9333_v51 }
0x198b   : > { %6587 = vmatpush3.bf16.msra.mxu1 %v9339_v37 }
0x198c   : > { %6588 = vmatprep.subr.bf16.mxu1 %v9345_v0 }
0x198f   : > { %6589 = vmatpush3.bf16.msra.mxu1 %v9351_v29 }
0x1990   : > { %7307 = vmatprep.subr.bf16.mxu1 %v10969_v9 }
0x1a32   : > { %v2541_v19 = vpop.f32.mrf.mxu1 }
0x1a33   : > { %v2542_v21 = vadd.f32 %v2541_v19, %v736_v30 }
0x1a34   : > { %v2543_v43 = vpop.f32.mrf.mxu1 }
0x1a35   : > { %v2544_v53 = vadd.f32 %v2543_v43, %v738_v12  ;;  %7928 = vtanh.f32 %v2542_v21  ;;  %v9390_v12 = vld [vmem:[%s10946_s12 + $0x30] sm:$0xff]   ;;  %v9397_v21 = vld [vmem:[%s10946_s12 + $0x28] sm:$0xff]   ;;  %v9404_v43 = vld [vmem:[%s10946_s12 + $0x20] sm:$0xff]  }
0x1a36   : > { %v2545_v10 = vpop.f32.mrf.mxu1 }
0x1a37   : > { %7930 = vtanh.f32 %v2544_v53  ;;  %v9411_v53 = vld [vmem:[%s10946_s12 + $0x18] sm:$0xff]   ;;  %v9418_v10 = vld [vmem:[%s10946_s12 + $0x10] sm:$0xff]  }
0x1a38   : > { %v2546_v25 = vpop.f32.mrf.mxu1 }
0x1a39   : > { %v9425_v25 = vld [vmem:[%s10946_s12 + $0x8] sm:$0xff]  }
0x1a42   : > { %v7929_v44 = vpop.eup %7928 }
0x1a43   : > { %v2550_v60 = vpack.c.bf16 %v7929_v44, %v7929_v44  ;;  %v9432_v44 = vld [vmem:[%s10946_s12] sm:$0xff]  }
0x1a44   : > { %v7931_v56 = vpop.eup %7930 }
0x1a45   : > { %v2551_v18 = vpack.c.bf16 %v7931_v56, %v7931_v56 }
0x1a47   : > { %2584 = vmatprep.mubr.bf16.mxu1 %v2551_v18  ;;  %v11003_v18 = vld [vmem:[#allocation11_spill] sm:$0xff] }
0x1a48   : > { %2585 = vmatmul.mubr.bf16.vlgmr.msra.gmra.mxu1 %v2550_v60 }
0x1a49   : > { %7308 = vmatpush3.bf16.msra.mxu1 %v9023_v39  ;;  %7309 = vmatprep.mubr.msk.bf16.mxu1 %vm8233_vm3, %v10969_v9 }
0x1a4a   : > { %7313 = vmatprep.subr.bf16.mxu1 %v10969_v9 }
0x1b08   : > { %v6590_v7 = vpop.f32.mrf.mxu1 }
0x1b0a   : > { %v6591_v55 = vpop.f32.mrf.mxu1 }
0x1b0b   : > { %v6592_v4 = vadd.f32 %v6591_v55, %v6590_v7 }
0x1b0c   : > { %v6593_v20 = vpop.f32.mrf.mxu1 }
0x1b0d   : > { %v2587_v63 = vadd.f32 %v9366_v61, %v6592_v4 }
0x1b0e   : > { %v6594_v31 = vpop.f32.mrf.mxu1 }
0x1b0f   : > { %v6323_v6 = vmul.f32 -1.442695, %v2587_v63 }
0x1b11   : > { %7932 = vpow2.f32 %v6323_v6  ;;  %v9445_v6 = vld [vmem:[%s10947_s13] ss:$0 sm:$0xff] }
0x1b1e   : > { %v7933_v13 = vpop.eup %7932 }
0x1b1f   : > { %v2595_v3 = vadd.f32 1.0, %v7933_v13 }
0x1b21   : > { %7934 = vrcp.f32 %v2595_v3 }
0x1b2e   : > { %v9369_v16 = vpop.eup %7934 }
0x1b2f   : > { %2599 = vrot.lane.b32.xlu1 %v9369_v16, %s8236_s19  ;;  %v2696_v3 = vsub.f32 1.0, %v9369_v16 }
0x1ba1   : > { %v2600_v58 = vpop.permute.xlu1 %2599 }
0x1ba2   : > { %v2603_v11 = vmul.f32 %v2600_v58, %v9275_v45  ;;  %v2602_v41 = vmul.f32 %v2600_v58, %v9304_v5 }
0x1ba4   : > { %2605 = vrot.lane.b32.xlu0 %v2603_v11, %s8234_s18 }
0x1c16   : > { %v2606_v42 = vpop.permute.xlu0 %2605 }
0x1c17   : > { %v2608_v30 = vsel %vm950_vm4, %v2602_v41, %v2606_v42  ;;  %v2698_v42 = vmul.f32 %v9369_v16, %v9304_v5 }
0x1c18   : > { %v2609_v19 = vpack.c.bf16 %v2608_v30, %v2608_v30 }
0x1c1a   : > { %7284 = vmatmul.mubr.msk.bf16.vlgmr.msra.gmra.mxu0 %vm1099_vm6, %v2609_v19 }
0x1c1b   : > { %7288 = vmatpush3.bf16.msra.mxu0 %v9381_v40  ;;  %7303 = vmatprep.mubr.msk.bf16.mxu0 %vm8233_vm3, %v10969_v9 }
0x1c1c   : > { %7289 = vmatprep.subr.bf16.mxu0 %v10969_v9 }
0x1c1f   : > { %7290 = vmatpush3.bf16.msra.mxu0 %v9390_v12 }
0x1c20   : > { %7291 = vmatprep.subr.bf16.mxu0 %v10969_v9 }
0x1c23   : > { %7292 = vmatpush3.bf16.msra.mxu0 %v9397_v21 }
0x1c24   : > { %7293 = vmatprep.subr.bf16.mxu0 %v10969_v9 }
0x1c27   : > { %7294 = vmatpush3.bf16.msra.mxu0 %v9404_v43 }
0x1c28   : > { %7295 = vmatprep.subr.bf16.mxu0 %v10969_v9 }
0x1c2b   : > { %7296 = vmatpush3.bf16.msra.mxu0 %v9411_v53 }
0x1c2c   : > { %7297 = vmatprep.subr.bf16.mxu0 %v10969_v9 }
0x1c2f   : > { %7298 = vmatpush3.bf16.msra.mxu0 %v9418_v10 }
0x1c30   : > { %7299 = vmatprep.subr.bf16.mxu0 %v10969_v9 }
0x1c33   : > { %7300 = vmatpush3.bf16.msra.mxu0 %v9425_v25 }
0x1c34   : > { %7301 = vmatprep.subr.bf16.mxu0 %v10969_v9 }
0x1c37   : > { %7302 = vmatpush3.bf16.msra.mxu0 %v9432_v44 }
0x1c38   : > { %2831 = vmatprep.subr.bf16.mxu0 %v9226_v1 }
0x1cda   : > { %v2647_v56 = vpop.f32.mrf.mxu0 }
0x1cdb   : > { %v2648_v60 = vadd.f32 %v2647_v56, %v11003_v18 }
0x1cdc   : > { %v7285_v7 = vpop.f32.mrf.mxu0 }
0x1cdd   : > { %7936 = vtanh.f32 %v2648_v60  ;;  %v2705_v60 = vmul.f32 %v9369_v16, %v9275_v45  ;;  %v2801_v16 = vstv %s2712_s15  ;;  %s4272_s15 = sld [smem:[#allocation5 + %s4271_s28]] }
0x1cde   : > { %v2650_v55 = vpop.f32.mrf.mxu0 }
0x1ce0   : > { %v7286_v4 = vpop.f32.mrf.mxu0 }
0x1cea   : > { %v7937_v20 = vpop.eup %7936 }
0x1ceb   : > { %v2654_v63 = vpack.c.bf16 %v7937_v20, %v7937_v20 }
0x1ced   : > { %7304 = vmatmul.mubr.bf16.vlgmr.msra.gmra.mxu0 %v2654_v63 }
0x1cee   : > { %2832 = vmatpush1.bf16.msra.mxu0 %v9233_v26  ;;  %2851 = vmatprep.mubr.bf16.mxu0 %v10996_v46 }
0x1cef   : > { %2833 = vmatprep.subr.bf16.mxu0 %v9240_v48 }
0x1cf2   : > { %2834 = vmatpush1.bf16.msra.mxu0 %v9246_v34 }
0x1cf3   : > { %6615 = vmatprep.subr.bf16.mxu0 %v9252_v28 }
0x1dad   : > { %v2689_v31 = vpop.f32.mrf.mxu0 }
0x1dae   : > { %v2690_v13 = vadd.f32 %v9445_v6, %v2689_v31 }
0x1daf   : > { %v7305_v58 = vpop.f32.mrf.mxu0 }
0x1db0   : > { %v2695_v11 = vand.u32 2147483647, %v2690_v13  ;;  %v2697_v41 = vmul.f32 %v2696_v3, %v2690_v13 }
0x1db1   : > { %v2692_v30 = vpop.f32.mrf.mxu0 }
0x1db2   : > { %v2699_v19 = vadd.f32 %v2698_v42, %v2697_v41  ;;  %2701 = vrot.lane.b32.xlu1 %v2695_v11, %s8236_s19 }
0x1db3   : > { %v7306_v56 = vpop.f32.mrf.mxu0 }
0x1db4   : > { %v2708_v18 = vpack.c.bf16 %v2699_v19, %v2699_v19 }
0x1db6   : > { %6325 = vst.msk [vmem:[%s8354_s16 + $0x10] sm:$0xf] %vm1461_vm7, %v2708_v18  ;;  %7310 = vmatmul.mubr.msk.bf16.vlgmr.msra.gmra.mxu1 %vm950_vm4, %v2708_v18 }
0x1db7   : > { %7314 = vmatpush3.bf16.msra.mxu1 %v9074_v38  ;;  %7321 = vmatprep.mubr.msk.bf16.mxu1 %vm8233_vm3, %v10969_v9 }
0x1db8   : > { %7315 = vmatprep.subr.bf16.mxu1 %v10969_v9 }
0x1dbb   : > { %7316 = vmatpush3.bf16.msra.mxu1 %v9083_v8 }
0x1dbc   : > { %7317 = vmatprep.subr.bf16.mxu1 %v10969_v9 }
0x1dbf   : > { %7318 = vmatpush3.bf16.msra.mxu1 %v9090_v33 }
0x1dc0   : > { %7319 = vmatprep.subr.bf16.mxu1 %v10969_v9 }
0x1dc3   : > { %7320 = vmatpush3.bf16.msra.mxu1 %v9097_v57 }
0x1dc4   : > { %7325 = vmatprep.subr.bf16.mxu1 %v10969_v9 }
0x1e24   : > { %v2702_v5 = vpop.permute.xlu1 %2701 }
0x1e25   : > { %v2704_v7 = vmul.f32 %v2702_v5, %v2696_v3 }
0x1e27   : > { %v2706_v55 = vadd.f32 %v2705_v60, %v2704_v7 }
0x1e29   : > { %v9467_v4 = vand.u32 2147483647, %v2706_v55 }
0x1e2b   : > { %2811 = vrot.lane.b32.xlu0 %v9467_v4, %s8234_s18 }
0x1e76   : > { %v2750_v20 = vpop.f32.mrf.mxu1 }
0x1e77   : > { %v2751_v63 = vadd.f32 %v9110_v24, %v2750_v20 }
0x1e78   : > { %v7311_v31 = vpop.f32.mrf.mxu1 }
0x1e79   : > { %7938 = vtanh.f32 %v2751_v63  ;;  %v11005_v31 = vld [vmem:[#allocation27_spill] sm:$0xff] }
0x1e7a   : > { %v2753_v13 = vpop.f32.mrf.mxu1 }
0x1e7b   : > { %v742_v13 = vadd.f32 %v11005_v31, %v8697_v36 }
0x1e7c   : > { %v7312_v58 = vpop.f32.mrf.mxu1 }
0x1e86   : > { %v7939_v11 = vpop.eup %7938 }
0x1e87   : > { %v2757_v41 = vpack.c.bf16 %v7939_v11, %v7939_v11 }
0x1e89   : > { %7322 = vmatmul.mubr.msk.bf16.vlgmr.msra.gmra.mxu1 %vm1020_vm5, %v2757_v41 }
0x1e8a   : > { %7326 = vmatpush3.bf16.msra.mxu1 %v9284_v17  ;;  %7329 = vmatprep.mubr.msk.bf16.mxu1 %vm8233_vm3, %v10969_v9 }
0x1e8b   : > { %7327 = vmatprep.subr.bf16.mxu1 %v10969_v9 }
0x1e8e   : > { %7328 = vmatpush3.bf16.msra.mxu1 %v9293_v59 }
0x1e8f   : > { %7333 = vmatprep.subr.bf16.mxu1 %v10969_v9 }
0x1e9d   : > { %v2812_v5 = vpop.permute.xlu0 %2811 }
0x1f49   : > { %v2795_v45 = vpop.f32.mrf.mxu1 }
0x1f4a   : > { %v2796_v3 = vadd.f32 %v9301_v2, %v2795_v45 }
0x1f4b   : > { %v7323_v42 = vpop.f32.mrf.mxu1 }
0x1f4c   : > { %v2802_v30 = vmul.f32 %v2801_v16, %v2796_v3 }
0x1f4d   : > { %v2798_v56 = vpop.f32.mrf.mxu1 }
0x1f4e   : > { %v9481_v18 = vadd.f32 %v2802_v30, %v2699_v19  ;;  %v11004_v19 = vld [vmem:[#allocation26_spill] sm:$0xff] }
0x1f4f   : > { %v7324_v60 = vpop.f32.mrf.mxu1  ;;  %v740_v20 = vadd.f32 %v11004_v19, %v8693_v27 }
0x1f50   : > { %v2814_v7 = vsel %vm950_vm4, %v9481_v18, %v2812_v5 }
0x1f51   : > { %v2815_v55 = vpack.c.bf16 %v2814_v7, %v2814_v7 }
0x1f53   : > { %6328 = vmatmul.mubr.msk.bf16.vlgmr.msra.gmra.mxu0 %vm1099_vm6, %v2815_v55 }
0x1f54   : > { %6616 = vmatpush3.bf16.msra.mxu0 %v9130_v62 }
0x1f55   : > { %6617 = vmatprep.subr.bf16.mxu0 %v9136_v35 }
0x1f58   : > { %6618 = vmatpush3.bf16.msra.mxu0 %v9142_v22 }
0x1f59   : > { %6619 = vmatprep.subr.bf16.mxu0 %v9148_v32 }
0x1f5c   : > { %6620 = vmatpush3.bf16.msra.mxu0 %v9154_v49 }
0x1f5d   : > { %6621 = vmatprep.subr.bf16.mxu0 %v9160_v50 }
0x1f60   : > { %6622 = vmatpush3.bf16.msra.mxu0 %v9166_v52 }
0x1f61   : > { %6623 = vmatprep.subr.bf16.mxu0 %v9172_v23 }
0x1f64   : > { %6624 = vmatpush3.bf16.msra.mxu0 %v9178_v54 }
0x1f65   : > { %6625 = vmatprep.subr.bf16.mxu0 %v9321_v47 }
0x1f68   : > { %6626 = vmatpush3.bf16.msra.mxu0 %v9327_v15 }
0x1f69   : > { %6627 = vmatprep.subr.bf16.mxu0 %v9333_v51 }
0x1f6c   : > { %6628 = vmatpush3.bf16.msra.mxu0 %v9339_v37 }
0x1f6d   : > { %6629 = vmatprep.subr.bf16.mxu0 %v9345_v0 }
0x1f70   : > { %6630 = vmatpush3.bf16.msra.mxu0 %v9351_v29 }
0x1f71   : > { %7353 = vmatprep.subr.bf16.mxu0 %v10969_v9 }
0x2013   : > { %v2853_v63 = vpop.f32.mrf.mxu0 }
0x2014   : > { %v2854_v58 = vadd.f32 %v2853_v63, %v740_v20 }
0x2015   : > { %v2855_v11 = vpop.f32.mrf.mxu0 }
0x2016   : > { %v2856_v41 = vadd.f32 %v2855_v11, %v742_v13  ;;  %7940 = vtanh.f32 %v2854_v58 }
0x2017   : > { %v2857_v45 = vpop.f32.mrf.mxu0 }
0x2018   : > { %7942 = vtanh.f32 %v2856_v41 }
0x2019   : > { %v2858_v16 = vpop.f32.mrf.mxu0 }
0x2023   : > { %v7941_v3 = vpop.eup %7940 }
0x2024   : > { %v2862_v56 = vpack.c.bf16 %v7941_v3, %v7941_v3 }
0x2025   : > { %v7943_v42 = vpop.eup %7942 }
0x2026   : > { %v2863_v30 = vpack.c.bf16 %v7943_v42, %v7943_v42  ;;  %v11006_v42 = vld [vmem:[#allocation13_spill] sm:$0xff] }
0x2028   : > { %2896 = vmatprep.mubr.bf16.mxu0 %v2863_v30  ;;  %v848_v30 = vadd.f32 %v11006_v42, %v8381_v14 }
0x2029   : > { %2897 = vmatmul.mubr.bf16.vlgmr.msra.gmra.mxu0 %v2862_v56 }
0x202a   : > { %7354 = vmatpush3.bf16.msra.mxu0 %v9023_v39  ;;  %7355 = vmatprep.mubr.msk.bf16.mxu0 %vm8233_vm3, %v10969_v9 }
0x202b   : > { %7359 = vmatprep.subr.bf16.mxu0 %v10969_v9 }
0x20e9   : > { %v6631_v5 = vpop.f32.mrf.mxu0 }
0x20eb   : > { %v6632_v60 = vpop.f32.mrf.mxu0 }
0x20ec   : > { %v6633_v7 = vadd.f32 %v6632_v60, %v6631_v5 }
0x20ed   : > { %v6634_v55 = vpop.f32.mrf.mxu0 }
0x20ee   : > { %v2899_v19 = vadd.f32 %v9366_v61, %v6633_v7 }
0x20ef   : > { %v6635_v20 = vpop.f32.mrf.mxu0 }
0x20f0   : > { %v6329_v63 = vmul.f32 -1.442695, %v2899_v19 }
0x20f2   : > { %7944 = vpow2.f32 %v6329_v63 }
0x20ff   : > { %v7945_v31 = vpop.eup %7944 }
0x2100   : > { %v2907_v13 = vadd.f32 1.0, %v7945_v31 }
0x2102   : > { %7946 = vrcp.f32 %v2907_v13 }
0x210f   : > { %v9511_v58 = vpop.eup %7946 }
0x2110   : > { %2911 = vrot.lane.b32.xlu1 %v9511_v58, %s8236_s19  ;;  %v3008_v13 = vsub.f32 1.0, %v9511_v58 }
0x2182   : > { %v2912_v39 = vpop.permute.xlu1 %2911 }
0x2183   : > { %v2915_v11 = vmul.f32 %v2912_v39, %v9467_v4  ;;  %v2914_v41 = vmul.f32 %v2912_v39, %v9481_v18 }
0x2185   : > { %2917 = vrot.lane.b32.xlu0 %v2915_v11, %s8234_s18 }
0x21f7   : > { %v2918_v45 = vpop.permute.xlu0 %2917 }
0x21f8   : > { %v2920_v16 = vsel %vm950_vm4, %v2914_v41, %v2918_v45  ;;  %v3010_v45 = vmul.f32 %v9511_v58, %v9481_v18 }
0x21f9   : > { %v2921_v3 = vpack.c.bf16 %v2920_v16, %v2920_v16 }
0x21fb   : > { %7330 = vmatmul.mubr.msk.bf16.vlgmr.msra.gmra.mxu1 %vm1099_vm6, %v2921_v3 }
0x21fc   : > { %7334 = vmatpush3.bf16.msra.mxu1 %v9381_v40  ;;  %7349 = vmatprep.mubr.msk.bf16.mxu1 %vm8233_vm3, %v10969_v9 }
0x21fd   : > { %7335 = vmatprep.subr.bf16.mxu1 %v10969_v9 }
0x2200   : > { %7336 = vmatpush3.bf16.msra.mxu1 %v9390_v12 }
0x2201   : > { %7337 = vmatprep.subr.bf16.mxu1 %v10969_v9 }
0x2204   : > { %7338 = vmatpush3.bf16.msra.mxu1 %v9397_v21 }
0x2205   : > { %7339 = vmatprep.subr.bf16.mxu1 %v10969_v9 }
0x2208   : > { %7340 = vmatpush3.bf16.msra.mxu1 %v9404_v43 }
0x2209   : > { %7341 = vmatprep.subr.bf16.mxu1 %v10969_v9 }
0x220c   : > { %7342 = vmatpush3.bf16.msra.mxu1 %v9411_v53 }
0x220d   : > { %7343 = vmatprep.subr.bf16.mxu1 %v10969_v9 }
0x2210   : > { %7344 = vmatpush3.bf16.msra.mxu1 %v9418_v10 }
0x2211   : > { %7345 = vmatprep.subr.bf16.mxu1 %v10969_v9 }
0x2214   : > { %7346 = vmatpush3.bf16.msra.mxu1 %v9425_v25 }
0x2215   : > { %7347 = vmatprep.subr.bf16.mxu1 %v10969_v9 }
0x2218   : > { %7348 = vmatpush3.bf16.msra.mxu1 %v9432_v44 }
0x2219   : > { %3143 = vmatprep.subr.bf16.mxu1 %v9226_v1 }
0x22bb   : > { %v2959_v56 = vpop.f32.mrf.mxu1 }
0x22bc   : > { %v2960_v5 = vadd.f32 %v2959_v56, %v848_v30 }
0x22bd   : > { %v7331_v60 = vpop.f32.mrf.mxu1 }
0x22be   : > { %7948 = vtanh.f32 %v2960_v5 }
0x22bf   : > { %v2962_v7 = vpop.f32.mrf.mxu1 }
0x22c1   : > { %v7332_v55 = vpop.f32.mrf.mxu1 }
0x22cb   : > { %v7949_v19 = vpop.eup %7948 }
0x22cc   : > { %v2966_v20 = vpack.c.bf16 %v7949_v19, %v7949_v19 }
0x22ce   : > { %7350 = vmatmul.mubr.bf16.vlgmr.msra.gmra.mxu1 %v2966_v20 }
0x22cf   : > { %3144 = vmatpush1.bf16.msra.mxu1 %v9233_v26  ;;  %3163 = vmatprep.mubr.bf16.mxu1 %v10996_v46 }
0x22d0   : > { %3145 = vmatprep.subr.bf16.mxu1 %v9240_v48 }
0x22d3   : > { %3146 = vmatpush1.bf16.msra.mxu1 %v9246_v34 }
0x22d4   : > { %6656 = vmatprep.subr.bf16.mxu1 %v9252_v28 }
0x238e   : > { %v3001_v63 = vpop.f32.mrf.mxu1 }
0x238f   : > { %v3002_v31 = vadd.f32 %v9445_v6, %v3001_v63 }
0x2390   : > { %v7351_v39 = vpop.f32.mrf.mxu1 }
0x2391   : > { %v3007_v11 = vand.u32 2147483647, %v3002_v31  ;;  %v3009_v41 = vmul.f32 %v3008_v13, %v3002_v31 }
0x2392   : > { %v3004_v16 = vpop.f32.mrf.mxu1 }
0x2393   : > { %v3011_v3 = vadd.f32 %v3010_v45, %v3009_v41  ;;  %3013 = vrot.lane.b32.xlu1 %v3007_v11, %s8236_s19 }
0x2394   : > { %v7352_v42 = vpop.f32.mrf.mxu1 }
0x2395   : > { %v3020_v30 = vpack.c.bf16 %v3011_v3, %v3011_v3 }
0x2397   : > { %6331 = vst.msk [vmem:[%s8354_s16 + $0x14] sm:$0xf] %vm1461_vm7, %v3020_v30  ;;  %7356 = vmatmul.mubr.msk.bf16.vlgmr.msra.gmra.mxu0 %vm950_vm4, %v3020_v30 }
0x2398   : > { %7360 = vmatpush3.bf16.msra.mxu0 %v9074_v38  ;;  %7367 = vmatprep.mubr.msk.bf16.mxu0 %vm8233_vm3, %v10969_v9  ;;  %v3017_v38 = vmul.f32 %v9511_v58, %v9467_v4  ;;  %v3113_v4 = vstv %s3024_s30  ;;  %s4583_s30 = sadd.s32 11, %s8342_s21 }
0x2399   : > { %7361 = vmatprep.subr.bf16.mxu0 %v10969_v9  ;;  %s4584_s20 = sld [smem:[#allocation5 + %s4583_s30]] }
0x239c   : > { %7362 = vmatpush3.bf16.msra.mxu0 %v9083_v8 }
0x239d   : > { %7363 = vmatprep.subr.bf16.mxu0 %v10969_v9 }
0x23a0   : > { %7364 = vmatpush3.bf16.msra.mxu0 %v9090_v33 }
0x23a1   : > { %7365 = vmatprep.subr.bf16.mxu0 %v10969_v9 }
0x23a4   : > { %7366 = vmatpush3.bf16.msra.mxu0 %v9097_v57 }
0x23a5   : > { %7371 = vmatprep.subr.bf16.mxu0 %v10969_v9 }
0x2405   : > { %v3014_v18 = vpop.permute.xlu1 %3013 }
0x2406   : > { %v3016_v56 = vmul.f32 %v3014_v18, %v3008_v13 }
0x2408   : > { %v3018_v5 = vadd.f32 %v3017_v38, %v3016_v56  ;;  %v9607_v38 = vld [vmem:[%s10936_s2] sm:$0xff]  }
0x240a   : > { %v9565_v60 = vand.u32 2147483647, %v3018_v5 }
0x240c   : > { %3123 = vrot.lane.b32.xlu0 %v9565_v60, %s8234_s18 }
0x2457   : > { %v3062_v8 = vpop.f32.mrf.mxu0 }
0x2458   : > { %v3063_v33 = vadd.f32 %v9110_v24, %v3062_v8 }
0x2459   : > { %v7357_v7 = vpop.f32.mrf.mxu0 }
0x245a   : > { %7950 = vtanh.f32 %v3063_v33 }
0x245b   : > { %v3065_v57 = vpop.f32.mrf.mxu0 }
0x245d   : > { %v7358_v55 = vpop.f32.mrf.mxu0 }
0x2467   : > { %v7951_v19 = vpop.eup %7950 }
0x2468   : > { %v3069_v20 = vpack.c.bf16 %v7951_v19, %v7951_v19 }
0x246a   : > { %7368 = vmatmul.mubr.msk.bf16.vlgmr.msra.gmra.mxu0 %vm1020_vm5, %v3069_v20 }
0x246b   : > { %7372 = vmatpush3.bf16.msra.mxu0 %v9284_v17  ;;  %7375 = vmatprep.mubr.msk.bf16.mxu0 %vm8233_vm3, %v10969_v9 }
0x246c   : > { %7373 = vmatprep.subr.bf16.mxu0 %v10969_v9 }
0x246f   : > { %7374 = vmatpush3.bf16.msra.mxu0 %v9293_v59 }
0x2470   : > { %7379 = vmatprep.subr.bf16.mxu0 %v10969_v9 }
0x247e   : > { %v3124_v11 = vpop.permute.xlu0 %3123 }
0x252a   : > { %v3107_v24 = vpop.f32.mrf.mxu0 }
0x252b   : > { %v3108_v58 = vadd.f32 %v9301_v2, %v3107_v24 }
0x252c   : > { %v7369_v63 = vpop.f32.mrf.mxu0 }
0x252d   : > { %v3114_v31 = vmul.f32 %v3113_v4, %v3108_v58 }
0x252e   : > { %v3110_v13 = vpop.f32.mrf.mxu0 }
0x252f   : > { %v9579_v39 = vadd.f32 %v3114_v31, %v3011_v3 }
0x2530   : > { %v7370_v41 = vpop.f32.mrf.mxu0 }
0x2531   : > { %v3126_v45 = vsel %vm950_vm4, %v9579_v39, %v3124_v11 }
0x2532   : > { %v3127_v16 = vpack.c.bf16 %v3126_v45, %v3126_v45 }
0x2534   : > { %6334 = vmatmul.mubr.msk.bf16.vlgmr.msra.gmra.mxu1 %vm1099_vm6, %v3127_v16  ;;  %v11009_v16 = vld [vmem:[#allocation10_spill] sm:$0xff] }
0x2535   : > { %6657 = vmatpush3.bf16.msra.mxu1 %v9130_v62  ;;  %v11007_v62 = vld [vmem:[#allocation28_spill] sm:$0xff] }
0x2536   : > { %6658 = vmatprep.subr.bf16.mxu1 %v9136_v35  ;;  %v746_v35 = vadd.f32 %v11007_v62, %v8693_v27 }
0x2539   : > { %6659 = vmatpush3.bf16.msra.mxu1 %v9142_v22 }
0x253a   : > { %6660 = vmatprep.subr.bf16.mxu1 %v9148_v32  ;;  %v11008_v32 = vld [vmem:[#allocation29_spill] sm:$0xff] }
0x253d   : > { %6661 = vmatpush3.bf16.msra.mxu1 %v9154_v49  ;;  %v748_v49 = vadd.f32 %v11008_v32, %v8697_v36 }
0x253e   : > { %6662 = vmatprep.subr.bf16.mxu1 %v9160_v50 }
0x2541   : > { %6663 = vmatpush3.bf16.msra.mxu1 %v9166_v52 }
0x2542   : > { %6664 = vmatprep.subr.bf16.mxu1 %v9172_v23 }
0x2545   : > { %6665 = vmatpush3.bf16.msra.mxu1 %v9178_v54 }
0x2546   : > { %6666 = vmatprep.subr.bf16.mxu1 %v9321_v47 }
0x2549   : > { %6667 = vmatpush3.bf16.msra.mxu1 %v9327_v15 }
0x254a   : > { %6668 = vmatprep.subr.bf16.mxu1 %v9333_v51 }
0x254d   : > { %6669 = vmatpush3.bf16.msra.mxu1 %v9339_v37 }
0x254e   : > { %6670 = vmatprep.subr.bf16.mxu1 %v9345_v0 }
0x2551   : > { %6671 = vmatpush3.bf16.msra.mxu1 %v9351_v29 }
0x2552   : > { %7399 = vmatprep.subr.bf16.mxu1 %v10969_v9 }
0x25f4   : > { %v3165_v22 = vpop.f32.mrf.mxu1 }
0x25f5   : > { %v3166_v50 = vadd.f32 %v3165_v22, %v746_v35 }
0x25f6   : > { %v3167_v52 = vpop.f32.mrf.mxu1 }
0x25f7   : > { %v3168_v23 = vadd.f32 %v3167_v52, %v748_v49  ;;  %7952 = vtanh.f32 %v3166_v50 }
0x25f8   : > { %v3169_v54 = vpop.f32.mrf.mxu1 }
0x25f9   : > { %7954 = vtanh.f32 %v3168_v23 }
0x25fa   : > { %v3170_v3 = vpop.f32.mrf.mxu1 }
0x2604   : > { %v7953_v42 = vpop.eup %7952 }
0x2605   : > { %v3174_v56 = vpack.c.bf16 %v7953_v42, %v7953_v42 }
0x2606   : > { %v7955_v30 = vpop.eup %7954 }
0x2607   : > { %v3175_v18 = vpack.c.bf16 %v7955_v30, %v7955_v30 }
0x2609   : > { %3208 = vmatprep.mubr.bf16.mxu1 %v3175_v18 }
0x260a   : > { %3209 = vmatmul.mubr.bf16.vlgmr.msra.gmra.mxu1 %v3174_v56 }
0x260b   : > { %7400 = vmatpush3.bf16.msra.mxu1 %v9607_v38  ;;  %7401 = vmatprep.mubr.msk.bf16.mxu1 %vm8233_vm3, %v10969_v9 }
0x260c   : > { %7405 = vmatprep.subr.bf16.mxu1 %v10969_v9 }
0x26ca   : > { %v6672_v5 = vpop.f32.mrf.mxu1 }
0x26cc   : > { %v6673_v8 = vpop.f32.mrf.mxu1 }
0x26cd   : > { %v6674_v33 = vadd.f32 %v6673_v8, %v6672_v5  ;;  %v9681_v5 = vld [vmem:[%s10938_s4] sm:$0xff]  }
0x26ce   : > { %v6675_v7 = vpop.f32.mrf.mxu1 }
0x26cf   : > { %v3211_v57 = vadd.f32 %v9366_v61, %v6674_v33 }
0x26d0   : > { %v6676_v55 = vpop.f32.mrf.mxu1 }
0x26d1   : > { %v6335_v19 = vmul.f32 -1.442695, %v3211_v57 }
0x26d3   : > { %7956 = vpow2.f32 %v6335_v19 }
0x26e0   : > { %v7957_v20 = vpop.eup %7956 }
0x26e1   : > { %v3219_v24 = vadd.f32 1.0, %v7957_v20  ;;  %v9694_v20 = vld [vmem:[%s10937_s3] ss:$0 sm:$0xff] }
0x26e3   : > { %7958 = vrcp.f32 %v3219_v24 }
0x26f0   : > { %v9614_v4 = vpop.eup %7958 }
0x26f1   : > { %3223 = vrot.lane.b32.xlu1 %v9614_v4, %s8236_s19  ;;  %v3320_v23 = vsub.f32 1.0, %v9614_v4  ;;  %v3329_v33 = vmul.f32 %v9614_v4, %v9565_v60 }
0x2763   : > { %v3224_v58 = vpop.permute.xlu1 %3223 }
0x2764   : > { %v3227_v63 = vmul.f32 %v3224_v58, %v9565_v60  ;;  %v3226_v31 = vmul.f32 %v3224_v58, %v9579_v39 }
0x2766   : > { %3229 = vrot.lane.b32.xlu0 %v3227_v63, %s8234_s18 }
0x27d8   : > { %v3230_v13 = vpop.permute.xlu0 %3229 }
0x27d9   : > { %v3232_v11 = vsel %vm950_vm4, %v3226_v31, %v3230_v13 }
0x27da   : > { %v3233_v41 = vpack.c.bf16 %v3232_v11, %v3232_v11  ;;  %v3425_v11 = vstv %s3336_s23  ;;  %s3647_s23 = sadd.s32 8, %s8342_s21 }
0x27db   : > { %s3648_s24 = sld [smem:[#allocation5 + %s3647_s23]] }
0x27dc   : > { %7376 = vmatmul.mubr.msk.bf16.vlgmr.msra.gmra.mxu0 %vm1099_vm6, %v3233_v41 }
0x27dd   : > { %7380 = vmatpush3.bf16.msra.mxu0 %v9381_v40  ;;  %7395 = vmatprep.mubr.msk.bf16.mxu0 %vm8233_vm3, %v10969_v9 }
0x27de   : > { %7381 = vmatprep.subr.bf16.mxu0 %v10969_v9 }
0x27e1   : > { %7382 = vmatpush3.bf16.msra.mxu0 %v9390_v12 }
0x27e2   : > { %7383 = vmatprep.subr.bf16.mxu0 %v10969_v9 }
0x27e5   : > { %7384 = vmatpush3.bf16.msra.mxu0 %v9397_v21 }
0x27e6   : > { %7385 = vmatprep.subr.bf16.mxu0 %v10969_v9 }
0x27e9   : > { %7386 = vmatpush3.bf16.msra.mxu0 %v9404_v43 }
0x27ea   : > { %7387 = vmatprep.subr.bf16.mxu0 %v10969_v9 }
0x27ed   : > { %7388 = vmatpush3.bf16.msra.mxu0 %v9411_v53 }
0x27ee   : > { %7389 = vmatprep.subr.bf16.mxu0 %v10969_v9 }
0x27f1   : > { %7390 = vmatpush3.bf16.msra.mxu0 %v9418_v10 }
0x27f2   : > { %7391 = vmatprep.subr.bf16.mxu0 %v10969_v9 }
0x27f5   : > { %7392 = vmatpush3.bf16.msra.mxu0 %v9425_v25 }
0x27f6   : > { %7393 = vmatprep.subr.bf16.mxu0 %v10969_v9 }
0x27f9   : > { %7394 = vmatpush3.bf16.msra.mxu0 %v9432_v44 }
0x27fa   : > { %3455 = vmatprep.subr.bf16.mxu0 %v9226_v1 }
0x289c   : > { %v3271_v45 = vpop.f32.mrf.mxu0 }
0x289d   : > { %v3272_v62 = vadd.f32 %v3271_v45, %v11009_v16 }
0x289e   : > { %v7377_v35 = vpop.f32.mrf.mxu0 }
0x289f   : > { %7960 = vtanh.f32 %v3272_v62 }
0x28a0   : > { %v3274_v22 = vpop.f32.mrf.mxu0 }
0x28a2   : > { %v7378_v32 = vpop.f32.mrf.mxu0 }
0x28ac   : > { %v7961_v49 = vpop.eup %7960 }
0x28ad   : > { %v3278_v50 = vpack.c.bf16 %v7961_v49, %v7961_v49 }
0x28af   : > { %7396 = vmatmul.mubr.bf16.vlgmr.msra.gmra.mxu0 %v3278_v50  ;;  %v9726_v50 = vld [vmem:[%s10944_s10 + $0x30] sm:$0xff]  }
0x28b0   : > { %3456 = vmatpush1.bf16.msra.mxu0 %v9233_v26  ;;  %3475 = vmatprep.mubr.bf16.mxu0 %v10996_v46  ;;  %v3322_v26 = vmul.f32 %v9614_v4, %v9579_v39  ;;  %v9674_v39 = vld [vmem:[%s10938_s4 + $0x8] sm:$0xff]  }
0x28b1   : > { %3457 = vmatprep.subr.bf16.mxu0 %v9240_v48 }
0x28b4   : > { %3458 = vmatpush1.bf16.msra.mxu0 %v9246_v34  ;;  %v9658_v34 = vld [vmem:[%s10938_s4 + $0x18] sm:$0xff]  }
0x28b5   : > { %6697 = vmatprep.subr.bf16.mxu0 %v9252_v28  ;;  %v9667_v28 = vld [vmem:[%s10938_s4 + $0x10] sm:$0xff]  }
0x296f   : > { %v3313_v1 = vpop.f32.mrf.mxu0 }
0x2970   : > { %v3314_v52 = vadd.f32 %v9445_v6, %v3313_v1  ;;  %v9732_v1 = vld [vmem:[%s10944_s10 + $0x68] sm:$0xff]  }
0x2971   : > { %v7397_v54 = vpop.f32.mrf.mxu0 }
0x2972   : > { %v3319_v3 = vand.u32 2147483647, %v3314_v52  ;;  %v3321_v42 = vmul.f32 %v3320_v23, %v3314_v52  ;;  %v9738_v52 = vld [vmem:[%s10944_s10 + $0x28] sm:$0xff]   ;;  %v9750_v54 = vld [vmem:[%s10944_s10 + $0x20] sm:$0xff]  }
0x2973   : > { %v3316_v30 = vpop.f32.mrf.mxu0 }
0x2974   : > { %v3323_v18 = vadd.f32 %v3322_v26, %v3321_v42  ;;  %3325 = vrot.lane.b32.xlu1 %v3319_v3, %s8236_s19  ;;  %v9756_v3 = vld [vmem:[%s10944_s10 + $0x58] sm:$0xff]   ;;  %v11010_v26 = vld [vmem:[#allocation30_spill] sm:$0xff] }
0x2975   : > { %v7398_v48 = vpop.f32.mrf.mxu0  ;;  %v9762_v42 = vld [vmem:[%s10944_s10 + $0x18] sm:$0xff]   ;;  %v750_v30 = vadd.f32 %v11010_v26, %v8693_v27  ;;  %v9830_v26 = vld [vmem:[%s10940_s6] ss:$8 sps:$4 sm:$0xff]  }
0x2976   : > { %v3332_v56 = vpack.c.bf16 %v3323_v18, %v3323_v18  ;;  %v11011_v48 = vld [vmem:[#allocation31_spill] sm:$0xff] }
0x2978   : > { %6337 = vst.msk [vmem:[%s8354_s16 + $0x18] sm:$0xf] %vm1461_vm7, %v3332_v56  ;;  %7402 = vmatmul.mubr.msk.bf16.vlgmr.msra.gmra.mxu1 %vm950_vm4, %v3332_v56  ;;  %v752_v56 = vadd.f32 %v11011_v48, %v8697_v36 }
0x2979   : > { %7406 = vmatpush3.bf16.msra.mxu1 %v9658_v34  ;;  %7413 = vmatprep.mubr.msk.bf16.mxu1 %vm8233_vm3, %v10969_v9 }
0x297a   : > { %7407 = vmatprep.subr.bf16.mxu1 %v10969_v9 }
0x297d   : > { %7408 = vmatpush3.bf16.msra.mxu1 %v9667_v28 }
0x297e   : > { %7409 = vmatprep.subr.bf16.mxu1 %v10969_v9 }
0x2981   : > { %7410 = vmatpush3.bf16.msra.mxu1 %v9674_v39 }
0x2982   : > { %7411 = vmatprep.subr.bf16.mxu1 %v10969_v9 }
0x2985   : > { %7412 = vmatpush3.bf16.msra.mxu1 %v9681_v5 }
0x2986   : > { %7417 = vmatprep.subr.bf16.mxu1 %v10969_v9 }
0x29e6   : > { %v3326_v8 = vpop.permute.xlu1 %3325 }
0x29e7   : > { %v3328_v7 = vmul.f32 %v3326_v8, %v3320_v23  ;;  %v9744_v23 = vld [vmem:[%s10944_s10 + $0x60] sm:$0xff]  }
0x29e9   : > { %v3330_v57 = vadd.f32 %v3329_v33, %v3328_v7 }
0x29eb   : > { %v9687_v55 = vand.u32 2147483647, %v3330_v57 }
0x29ed   : > { %3435 = vrot.lane.b32.xlu0 %v9687_v55, %s8234_s18 }
0x2a38   : > { %v3374_v19 = vpop.f32.mrf.mxu1 }
0x2a39   : > { %v3375_v24 = vadd.f32 %v9694_v20, %v3374_v19 }
0x2a3a   : > { %v7403_v58 = vpop.f32.mrf.mxu1 }
0x2a3b   : > { %7962 = vtanh.f32 %v3375_v24 }
0x2a3c   : > { %v3377_v63 = vpop.f32.mrf.mxu1 }
0x2a3e   : > { %v7404_v60 = vpop.f32.mrf.mxu1 }
0x2a48   : > { %v7963_v4 = vpop.eup %7962 }
0x2a49   : > { %v3381_v31 = vpack.c.bf16 %v7963_v4, %v7963_v4 }
0x2a4b   : > { %7414 = vmatmul.mubr.msk.bf16.vlgmr.msra.gmra.mxu1 %vm1020_vm5, %v3381_v31 }
0x2a4c   : > { %7418 = vmatpush3.bf16.msra.mxu1 %v9284_v17  ;;  %7421 = vmatprep.mubr.msk.bf16.mxu1 %vm8233_vm3, %v10969_v9 }
0x2a4d   : > { %7419 = vmatprep.subr.bf16.mxu1 %v10969_v9 }
0x2a50   : > { %7420 = vmatpush3.bf16.msra.mxu1 %v9293_v59  ;;  %v9714_v59 = vld [vmem:[%s10944_s10 + $0x38] sm:$0xff]  }
0x2a51   : > { %7425 = vmatprep.subr.bf16.mxu1 %v10969_v9 }
0x2a5f   : > { %v3436_v17 = vpop.permute.xlu0 %3435 }
0x2b0b   : > { %v3419_v13 = vpop.f32.mrf.mxu1 }
0x2b0c   : > { %v3420_v41 = vadd.f32 %v9301_v2, %v3419_v13  ;;  %v9720_v2 = vld [vmem:[%s10944_s10 + $0x70] sm:$0xff]  }
0x2b0d   : > { %v7415_v45 = vpop.f32.mrf.mxu1 }
0x2b0e   : > { %v3426_v16 = vmul.f32 %v3425_v11, %v3420_v41 }
0x2b0f   : > { %v3422_v62 = vpop.f32.mrf.mxu1 }
0x2b10   : > { %v9706_v35 = vadd.f32 %v3426_v16, %v3323_v18 }
0x2b11   : > { %v7416_v22 = vpop.f32.mrf.mxu1 }
0x2b12   : > { %v3438_v32 = vsel %vm950_vm4, %v9706_v35, %v3436_v17 }
0x2b13   : > { %v3439_v49 = vpack.c.bf16 %v3438_v32, %v3438_v32 }
0x2b15   : > { %6340 = vmatmul.mubr.msk.bf16.vlgmr.msra.gmra.mxu0 %vm1099_vm6, %v3439_v49  ;;  %v9824_v49 = vld [vmem:[%s10940_s6 + $0x4] ss:$8 sps:$4 sm:$0xff]  }
0x2b16   : > { %6698 = vmatpush3.bf16.msra.mxu0 %v9714_v59 }
0x2b17   : > { %6699 = vmatprep.subr.bf16.mxu0 %v9720_v2 }
0x2b1a   : > { %6700 = vmatpush3.bf16.msra.mxu0 %v9726_v50 }
0x2b1b   : > { %6701 = vmatprep.subr.bf16.mxu0 %v9732_v1 }
0x2b1e   : > { %6702 = vmatpush3.bf16.msra.mxu0 %v9738_v52 }
0x2b1f   : > { %6703 = vmatprep.subr.bf16.mxu0 %v9744_v23 }
0x2b22   : > { %6704 = vmatpush3.bf16.msra.mxu0 %v9750_v54 }
0x2b23   : > { %6705 = vmatprep.subr.bf16.mxu0 %v9756_v3 }
0x2b26   : > { %6706 = vmatpush3.bf16.msra.mxu0 %v9762_v42 }
0x2b27   : > { %6707 = vmatprep.subr.bf16.mxu0 %v9321_v47 }
0x2b2a   : > { %6708 = vmatpush3.bf16.msra.mxu0 %v9327_v15 }
0x2b2b   : > { %6709 = vmatprep.subr.bf16.mxu0 %v9333_v51 }
0x2b2e   : > { %6710 = vmatpush3.bf16.msra.mxu0 %v9339_v37 }
0x2b2f   : > { %6711 = vmatprep.subr.bf16.mxu0 %v9345_v0 }
0x2b32   : > { %6712 = vmatpush3.bf16.msra.mxu0 %v9351_v29 }
0x2b33   : > { %7445 = vmatprep.subr.bf16.mxu0 %v10969_v9 }
0x2bd5   : > { %v3477_v18 = vpop.f32.mrf.mxu0 }
0x2bd6   : > { %v3478_v47 = vadd.f32 %v3477_v18, %v750_v30  ;;  %v9836_v30 = vld [vmem:[%s10944_s10 + $0x78] sm:$0xff]  }
0x2bd7   : > { %v3479_v8 = vpop.f32.mrf.mxu0 }
0x2bd8   : > { %v3480_v15 = vadd.f32 %v3479_v8, %v752_v56  ;;  %7964 = vtanh.f32 %v3478_v47 }
0x2bd9   : > { %v3481_v51 = vpop.f32.mrf.mxu0 }
0x2bda   : > { %7966 = vtanh.f32 %v3480_v15 }
0x2bdb   : > { %v3482_v37 = vpop.f32.mrf.mxu0 }
0x2be5   : > { %v7965_v33 = vpop.eup %7964 }
0x2be6   : > { %v3486_v29 = vpack.c.bf16 %v7965_v33, %v7965_v33 }
0x2be7   : > { %v7967_v0 = vpop.eup %7966 }
0x2be8   : > { %v3487_v7 = vpack.c.bf16 %v7967_v0, %v7967_v0 }
0x2bea   : > { %3520 = vmatprep.mubr.bf16.mxu0 %v3487_v7 }
0x2beb   : > { %3521 = vmatmul.mubr.bf16.vlgmr.msra.gmra.mxu0 %v3486_v29 }
0x2bec   : > { %7446 = vmatpush3.bf16.msra.mxu0 %v9607_v38  ;;  %7447 = vmatprep.mubr.msk.bf16.mxu0 %vm8233_vm3, %v10969_v9 }
0x2bed   : > { %7451 = vmatprep.subr.bf16.mxu0 %v10969_v9 }
0x2cab   : > { %v6713_v57 = vpop.f32.mrf.mxu0 }
0x2cad   : > { %v6714_v19 = vpop.f32.mrf.mxu0 }
0x2cae   : > { %v6715_v24 = vadd.f32 %v6714_v19, %v6713_v57 }
0x2caf   : > { %v6716_v58 = vpop.f32.mrf.mxu0 }
0x2cb0   : > { %v3523_v63 = vadd.f32 %v9366_v61, %v6715_v24 }
0x2cb1   : > { %v6717_v60 = vpop.f32.mrf.mxu0 }
0x2cb2   : > { %v6341_v4 = vmul.f32 -1.442695, %v3523_v63 }
0x2cb4   : > { %7968 = vpow2.f32 %v6341_v4 }
0x2cc1   : > { %v7969_v31 = vpop.eup %7968 }
0x2cc2   : > { %v3531_v13 = vadd.f32 1.0, %v7969_v31 }
0x2cc4   : > { %7970 = vrcp.f32 %v3531_v13 }
0x2cd1   : > { %v9781_v11 = vpop.eup %7970 }
0x2cd2   : > { %3535 = vrot.lane.b32.xlu1 %v9781_v11, %s8236_s19  ;;  %v3632_v56 = vsub.f32 1.0, %v9781_v11  ;;  %v3634_v51 = vmul.f32 %v9781_v11, %v9706_v35  ;;  %v3641_v29 = vmul.f32 %v9781_v11, %v9687_v55  ;;  %v9877_v11 = vld [vmem:[%s10941_s7] sm:$0xff]  }
0x2d44   : > { %v3536_v41 = vpop.permute.xlu1 %3535 }
0x2d45   : > { %v3539_v45 = vmul.f32 %v3536_v41, %v9687_v55  ;;  %v3538_v16 = vmul.f32 %v3536_v41, %v9706_v35  ;;  %v9868_v55 = vld [vmem:[%s10941_s7 + $0x8] sm:$0xff]  }
0x2d47   : > { %3541 = vrot.lane.b32.xlu0 %v3539_v45, %s8234_s18  ;;  %v3737_v45 = vstv %s3648_s24  ;;  %s5207_s24 = sadd.s32 13, %s8342_s21 }
0x2d48   : > { %s5208_s25 = sld [smem:[#allocation5 + %s5207_s24]] }
0x2db9   : > { %v3542_v62 = vpop.permute.xlu0 %3541 }
0x2dba   : > { %v3544_v61 = vsel %vm950_vm4, %v3538_v16, %v3542_v62  ;;  %v9885_v16 = vld [vmem:[%s10939_s5] ss:$0 sm:$0xff] }
0x2dbb   : > { %v3545_v17 = vpack.c.bf16 %v3544_v61, %v3544_v61 }
0x2dbd   : > { %7422 = vmatmul.mubr.msk.bf16.vlgmr.msra.gmra.mxu1 %vm1099_vm6, %v3545_v17 }
0x2dbe   : > { %7426 = vmatpush3.bf16.msra.mxu1 %v9381_v40  ;;  %7441 = vmatprep.mubr.msk.bf16.mxu1 %vm8233_vm3, %v10969_v9  ;;  %v9810_v40 = vld [vmem:[%s10940_s6 + $0x14] ss:$8 sps:$4 sm:$0xff]  }
0x2dbf   : > { %7427 = vmatprep.subr.bf16.mxu1 %v10969_v9 }
0x2dc2   : > { %7428 = vmatpush3.bf16.msra.mxu1 %v9390_v12 }
0x2dc3   : > { %7429 = vmatprep.subr.bf16.mxu1 %v10969_v9 }
0x2dc6   : > { %7430 = vmatpush3.bf16.msra.mxu1 %v9397_v21  ;;  %v11012_v21 = vld [vmem:[#allocation12_spill] sm:$0xff] }
0x2dc7   : > { %7431 = vmatprep.subr.bf16.mxu1 %v10969_v9 }
0x2dca   : > { %7432 = vmatpush3.bf16.msra.mxu1 %v9404_v43 }
0x2dcb   : > { %7433 = vmatprep.subr.bf16.mxu1 %v10969_v9 }
0x2dce   : > { %7434 = vmatpush3.bf16.msra.mxu1 %v9411_v53 }
0x2dcf   : > { %7435 = vmatprep.subr.bf16.mxu1 %v10969_v9 }
0x2dd2   : > { %7436 = vmatpush3.bf16.msra.mxu1 %v9418_v10 }
0x2dd3   : > { %7437 = vmatprep.subr.bf16.mxu1 %v10969_v9 }
0x2dd6   : > { %7438 = vmatpush3.bf16.msra.mxu1 %v9425_v25 }
0x2dd7   : > { %7439 = vmatprep.subr.bf16.mxu1 %v10969_v9 }
0x2dda   : > { %7440 = vmatpush3.bf16.msra.mxu1 %v9432_v44  ;;  %v9817_v44 = vld [vmem:[%s10940_s6 + $0x10] ss:$8 sps:$4 sm:$0xff]  }
0x2ddb   : > { %3767 = vmatprep.subr.bf16.mxu1 %v9810_v40 }
0x2e7d   : > { %v3583_v12 = vpop.f32.mrf.mxu1 }
0x2e7e   : > { %v3584_v43 = vadd.f32 %v3583_v12, %v11012_v21 }
0x2e7f   : > { %v7423_v53 = vpop.f32.mrf.mxu1 }
0x2e80   : > { %7972 = vtanh.f32 %v3584_v43 }
0x2e81   : > { %v3586_v10 = vpop.f32.mrf.mxu1 }
0x2e83   : > { %v7424_v22 = vpop.f32.mrf.mxu1 }
0x2e8d   : > { %v7973_v32 = vpop.eup %7972 }
0x2e8e   : > { %v3590_v25 = vpack.c.bf16 %v7973_v32, %v7973_v32  ;;  %v9905_v32 = vld [vmem:[%s10944_s10 + $0x50] sm:$0xff]  }
0x2e90   : > { %7442 = vmatmul.mubr.bf16.vlgmr.msra.gmra.mxu1 %v3590_v25  ;;  %v9911_v25 = vld [vmem:[%s10944_s10 + $0x10] sm:$0xff]  }
0x2e91   : > { %3768 = vmatpush1.bf16.msra.mxu1 %v9817_v44  ;;  %3787 = vmatprep.mubr.bf16.mxu1 %v10996_v46 }
0x2e92   : > { %3769 = vmatprep.subr.bf16.mxu1 %v9824_v49 }
0x2e95   : > { %3770 = vmatpush1.bf16.msra.mxu1 %v9830_v26 }
0x2e96   : > { %6738 = vmatprep.subr.bf16.mxu1 %v9836_v30 }
0x2f50   : > { %v3625_v18 = vpop.f32.mrf.mxu1 }
0x2f51   : > { %v3626_v48 = vadd.f32 %v9445_v6, %v3625_v18  ;;  %v9917_v18 = vld [vmem:[%s10944_s10 + $0x48] sm:$0xff]  }
0x2f52   : > { %v7443_v47 = vpop.f32.mrf.mxu1 }
0x2f53   : > { %v3631_v8 = vand.u32 2147483647, %v3626_v48  ;;  %v3633_v15 = vmul.f32 %v3632_v56, %v3626_v48  ;;  %v9923_v48 = vld [vmem:[%s10944_s10 + $0x8] sm:$0xff]   ;;  %v9935_v47 = vld [vmem:[%s10944_s10] sm:$0xff]  }
0x2f54   : > { %v3628_v37 = vpop.f32.mrf.mxu1 }
0x2f55   : > { %v3635_v33 = vadd.f32 %v3634_v51, %v3633_v15  ;;  %3637 = vrot.lane.b32.xlu1 %v3631_v8, %s8236_s19  ;;  %v11013_v8 = vld [vmem:[#allocation32_spill] sm:$0xff]  ;;  %v11014_v37 = vld [vmem:[#allocation33_spill] sm:$0xff] }
0x2f56   : > { %v7444_v0 = vpop.f32.mrf.mxu1  ;;  %v756_v15 = vadd.f32 %v11013_v8, %v8693_v27 }
0x2f57   : > { %v3644_v7 = vpack.c.bf16 %v3635_v33, %v3635_v33 }
0x2f59   : > { %6343 = vst.msk [vmem:[%s8354_s16 + $0x1c] sm:$0xf] %vm1461_vm7, %v3644_v7  ;;  %7448 = vmatmul.mubr.msk.bf16.vlgmr.msra.gmra.mxu0 %vm950_vm4, %v3644_v7 }
0x2f5a   : > { %7452 = vmatpush3.bf16.msra.mxu0 %v9658_v34  ;;  %7459 = vmatprep.mubr.msk.bf16.mxu0 %vm8233_vm3, %v10969_v9 }
0x2f5b   : > { %7453 = vmatprep.subr.bf16.mxu0 %v10969_v9 }
0x2f5e   : > { %7454 = vmatpush3.bf16.msra.mxu0 %v9667_v28 }
0x2f5f   : > { %7455 = vmatprep.subr.bf16.mxu0 %v10969_v9 }
0x2f62   : > { %7456 = vmatpush3.bf16.msra.mxu0 %v9674_v39 }
0x2f63   : > { %7457 = vmatprep.subr.bf16.mxu0 %v10969_v9 }
0x2f66   : > { %7458 = vmatpush3.bf16.msra.mxu0 %v9681_v5 }
0x2f67   : > { %7463 = vmatprep.subr.bf16.mxu0 %v10969_v9 }
0x2fc7   : > { %v3638_v6 = vpop.permute.xlu1 %3637 }
0x2fc8   : > { %v3640_v35 = vmul.f32 %v3638_v6, %v3632_v56  ;;  %v9929_v56 = vld [vmem:[%s10944_s10 + $0x40] sm:$0xff]  }
0x2fca   : > { %v3642_v57 = vadd.f32 %v3641_v29, %v3640_v35 }
0x2fcc   : > { %v9859_v19 = vand.u32 2147483647, %v3642_v57 }
0x2fce   : > { %3747 = vrot.lane.b32.xlu0 %v9859_v19, %s8234_s18 }
0x3019   : > { %v3686_v24 = vpop.f32.mrf.mxu0 }
0x301a   : > { %v3687_v58 = vadd.f32 %v9694_v20, %v3686_v24 }
0x301b   : > { %v7449_v63 = vpop.f32.mrf.mxu0 }
0x301c   : > { %7974 = vtanh.f32 %v3687_v58 }
0x301d   : > { %v3689_v60 = vpop.f32.mrf.mxu0 }
0x301f   : > { %v7450_v4 = vpop.f32.mrf.mxu0 }
0x3029   : > { %v7975_v31 = vpop.eup %7974 }
0x302a   : > { %v3693_v13 = vpack.c.bf16 %v7975_v31, %v7975_v31 }
0x302c   : > { %7460 = vmatmul.mubr.msk.bf16.vlgmr.msra.gmra.mxu0 %vm1020_vm5, %v3693_v13 }
0x302d   : > { %7464 = vmatpush3.bf16.msra.mxu0 %v9868_v55  ;;  %7467 = vmatprep.mubr.msk.bf16.mxu0 %vm8233_vm3, %v10969_v9 }
0x302e   : > { %7465 = vmatprep.subr.bf16.mxu0 %v10969_v9 }
0x3031   : > { %7466 = vmatpush3.bf16.msra.mxu0 %v9877_v11 }
0x3032   : > { %7471 = vmatprep.subr.bf16.mxu0 %v10969_v9 }
0x3040   : > { %v3748_v43 = vpop.permute.xlu0 %3747 }
0x30ec   : > { %v3731_v41 = vpop.f32.mrf.mxu0 }
0x30ed   : > { %v3732_v62 = vadd.f32 %v9885_v16, %v3731_v41  ;;  %v9950_v41 = vld [vmem:[%s10945_s11] ss:$0 sm:$0xff] }
0x30ee   : > { %v7461_v61 = vpop.f32.mrf.mxu0 }
0x30ef   : > { %v3738_v17 = vmul.f32 %v3737_v45, %v3732_v62 }
0x30f0   : > { %v3734_v12 = vpop.f32.mrf.mxu0 }
0x30f1   : > { %v9888_v21 = vadd.f32 %v3738_v17, %v3635_v33  ;;  %v758_v33 = vadd.f32 %v11014_v37, %v8697_v36  ;;  %v9965_v37 = vld [vmem:[%s10946_s12 + $0x38] sm:$0xff]  }
0x30f2   : > { %v7462_v53 = vpop.f32.mrf.mxu0 }
0x30f3   : > { %v3750_v10 = vsel %vm950_vm4, %v9888_v21, %v3748_v43 }
0x30f4   : > { %v3751_v22 = vpack.c.bf16 %v3750_v10, %v3750_v10 }
0x30f6   : > { %6346 = vmatmul.mubr.msk.bf16.vlgmr.msra.gmra.mxu1 %vm1099_vm6, %v3751_v22 }
0x30f7   : > { %6739 = vmatpush3.bf16.msra.mxu1 %v9714_v59 }
0x30f8   : > { %6740 = vmatprep.subr.bf16.mxu1 %v9720_v2 }
0x30fb   : > { %6741 = vmatpush3.bf16.msra.mxu1 %v9726_v50 }
0x30fc   : > { %6742 = vmatprep.subr.bf16.mxu1 %v9732_v1 }
0x30ff   : > { %6743 = vmatpush3.bf16.msra.mxu1 %v9738_v52 }
0x3100   : > { %6744 = vmatprep.subr.bf16.mxu1 %v9744_v23 }
0x3103   : > { %6745 = vmatpush3.bf16.msra.mxu1 %v9750_v54 }
0x3104   : > { %6746 = vmatprep.subr.bf16.mxu1 %v9756_v3 }
0x3107   : > { %6747 = vmatpush3.bf16.msra.mxu1 %v9762_v42 }
0x3108   : > { %6748 = vmatprep.subr.bf16.mxu1 %v9905_v32 }
0x310b   : > { %6749 = vmatpush3.bf16.msra.mxu1 %v9911_v25 }
0x310c   : > { %6750 = vmatprep.subr.bf16.mxu1 %v9917_v18 }
0x310f   : > { %6751 = vmatpush3.bf16.msra.mxu1 %v9923_v48 }
0x3110   : > { %6752 = vmatprep.subr.bf16.mxu1 %v9929_v56 }
0x3113   : > { %6753 = vmatpush3.bf16.msra.mxu1 %v9935_v47 }
0x3114   : > { %7491 = vmatprep.subr.bf16.mxu1 %v10969_v9 }
0x31b6   : > { %v3789_v51 = vpop.f32.mrf.mxu1 }
0x31b7   : > { %v3790_v0 = vadd.f32 %v3789_v51, %v756_v15 }
0x31b8   : > { %v3791_v7 = vpop.f32.mrf.mxu1 }
0x31b9   : > { %v3792_v6 = vadd.f32 %v3791_v7, %v758_v33  ;;  %7976 = vtanh.f32 %v3790_v0  ;;  %v9974_v33 = vld [vmem:[%s10946_s12 + $0x30] sm:$0xff]   ;;  %v9981_v0 = vld [vmem:[%s10946_s12 + $0x28] sm:$0xff]   ;;  %v9988_v7 = vld [vmem:[%s10946_s12 + $0x20] sm:$0xff]  }
0x31ba   : > { %v3793_v35 = vpop.f32.mrf.mxu1 }
0x31bb   : > { %7978 = vtanh.f32 %v3792_v6  ;;  %v9995_v6 = vld [vmem:[%s10946_s12 + $0x18] sm:$0xff]   ;;  %v10002_v35 = vld [vmem:[%s10946_s12 + $0x10] sm:$0xff]  }
0x31bc   : > { %v3794_v29 = vpop.f32.mrf.mxu1 }
0x31bd   : > { %v10009_v29 = vld [vmem:[%s10946_s12 + $0x8] sm:$0xff]  }
0x31c6   : > { %v7977_v57 = vpop.eup %7976 }
0x31c7   : > { %v3798_v63 = vpack.c.bf16 %v7977_v57, %v7977_v57  ;;  %v10016_v57 = vld [vmem:[%s10946_s12] sm:$0xff]  }
0x31c8   : > { %v7979_v24 = vpop.eup %7978 }
0x31c9   : > { %v3799_v58 = vpack.c.bf16 %v7979_v24, %v7979_v24 }
0x31cb   : > { %3832 = vmatprep.mubr.bf16.mxu1 %v3799_v58  ;;  %v11015_v58 = vld [vmem:[#allocation15_spill] sm:$0xff] }
0x31cc   : > { %3833 = vmatmul.mubr.bf16.vlgmr.msra.gmra.mxu1 %v3798_v63 }
0x31cd   : > { %7492 = vmatpush3.bf16.msra.mxu1 %v9607_v38  ;;  %7493 = vmatprep.mubr.msk.bf16.mxu1 %vm8233_vm3, %v10969_v9 }
0x31ce   : > { %7497 = vmatprep.subr.bf16.mxu1 %v10969_v9 }
0x328c   : > { %v6754_v60 = vpop.f32.mrf.mxu1 }
0x328e   : > { %v6755_v4 = vpop.f32.mrf.mxu1 }
0x328f   : > { %v6756_v31 = vadd.f32 %v6755_v4, %v6754_v60 }
0x3290   : > { %v6757_v13 = vpop.f32.mrf.mxu1 }
0x3291   : > { %v3835_v45 = vadd.f32 %v9950_v41, %v6756_v31 }
0x3292   : > { %v6758_v62 = vpop.f32.mrf.mxu1 }
0x3293   : > { %v6347_v61 = vmul.f32 -1.442695, %v3835_v45 }
0x3295   : > { %7980 = vpow2.f32 %v6347_v61  ;;  %v10029_v61 = vld [vmem:[%s10947_s13] ss:$0 sm:$0xff] }
0x32a2   : > { %v7981_v17 = vpop.eup %7980 }
0x32a3   : > { %v3843_v12 = vadd.f32 1.0, %v7981_v17 }
0x32a5   : > { %7982 = vrcp.f32 %v3843_v12 }
0x32b2   : > { %v9953_v43 = vpop.eup %7982 }
0x32b3   : > { %3847 = vrot.lane.b32.xlu1 %v9953_v43, %s8236_s19  ;;  %v3944_v12 = vsub.f32 1.0, %v9953_v43 }
0x3325   : > { %v3848_v53 = vpop.permute.xlu1 %3847 }
0x3326   : > { %v3851_v10 = vmul.f32 %v3848_v53, %v9859_v19  ;;  %v3850_v22 = vmul.f32 %v3848_v53, %v9888_v21 }
0x3328   : > { %3853 = vrot.lane.b32.xlu0 %v3851_v10, %s8234_s18 }
0x339a   : > { %v3854_v8 = vpop.permute.xlu0 %3853 }
0x339b   : > { %v3856_v15 = vsel %vm950_vm4, %v3850_v22, %v3854_v8  ;;  %v3946_v8 = vmul.f32 %v9953_v43, %v9888_v21 }
0x339c   : > { %v3857_v51 = vpack.c.bf16 %v3856_v15, %v3856_v15 }
0x339e   : > { %7468 = vmatmul.mubr.msk.bf16.vlgmr.msra.gmra.mxu0 %vm1099_vm6, %v3857_v51 }
0x339f   : > { %7472 = vmatpush3.bf16.msra.mxu0 %v9965_v37  ;;  %7487 = vmatprep.mubr.msk.bf16.mxu0 %vm8233_vm3, %v10969_v9 }
0x33a0   : > { %7473 = vmatprep.subr.bf16.mxu0 %v10969_v9 }
0x33a3   : > { %7474 = vmatpush3.bf16.msra.mxu0 %v9974_v33 }
0x33a4   : > { %7475 = vmatprep.subr.bf16.mxu0 %v10969_v9 }
0x33a7   : > { %7476 = vmatpush3.bf16.msra.mxu0 %v9981_v0 }
0x33a8   : > { %7477 = vmatprep.subr.bf16.mxu0 %v10969_v9 }
0x33ab   : > { %7478 = vmatpush3.bf16.msra.mxu0 %v9988_v7 }
0x33ac   : > { %7479 = vmatprep.subr.bf16.mxu0 %v10969_v9 }
0x33af   : > { %7480 = vmatpush3.bf16.msra.mxu0 %v9995_v6 }
0x33b0   : > { %7481 = vmatprep.subr.bf16.mxu0 %v10969_v9 }
0x33b3   : > { %7482 = vmatpush3.bf16.msra.mxu0 %v10002_v35 }
0x33b4   : > { %7483 = vmatprep.subr.bf16.mxu0 %v10969_v9 }
0x33b7   : > { %7484 = vmatpush3.bf16.msra.mxu0 %v10009_v29 }
0x33b8   : > { %7485 = vmatprep.subr.bf16.mxu0 %v10969_v9 }
0x33bb   : > { %7486 = vmatpush3.bf16.msra.mxu0 %v10016_v57 }
0x33bc   : > { %4079 = vmatprep.subr.bf16.mxu0 %v9810_v40 }
0x345e   : > { %v3895_v24 = vpop.f32.mrf.mxu0 }
0x345f   : > { %v3896_v63 = vadd.f32 %v3895_v24, %v11015_v58 }
0x3460   : > { %v7469_v60 = vpop.f32.mrf.mxu0 }
0x3461   : > { %7984 = vtanh.f32 %v3896_v63  ;;  %v3953_v63 = vmul.f32 %v9953_v43, %v9859_v19  ;;  %v4049_v43 = vstv %s3960_s27  ;;  %s5520_s27 = sld [smem:[#allocation5 + %s5519_s26]] }
0x3462   : > { %v3898_v4 = vpop.f32.mrf.mxu0 }
0x3464   : > { %v7470_v31 = vpop.f32.mrf.mxu0 }
0x346e   : > { %v7985_v13 = vpop.eup %7984 }
0x346f   : > { %v3902_v45 = vpack.c.bf16 %v7985_v13, %v7985_v13 }
0x3471   : > { %7488 = vmatmul.mubr.bf16.vlgmr.msra.gmra.mxu0 %v3902_v45 }
0x3472   : > { %4080 = vmatpush1.bf16.msra.mxu0 %v9817_v44  ;;  %4099 = vmatprep.mubr.bf16.mxu0 %v10996_v46 }
0x3473   : > { %4081 = vmatprep.subr.bf16.mxu0 %v9824_v49 }
0x3476   : > { %4082 = vmatpush1.bf16.msra.mxu0 %v9830_v26 }
0x3477   : > { %6779 = vmatprep.subr.bf16.mxu0 %v9836_v30 }
0x3531   : > { %v3937_v62 = vpop.f32.mrf.mxu0 }
0x3532   : > { %v3938_v17 = vadd.f32 %v10029_v61, %v3937_v62 }
0x3533   : > { %v7489_v53 = vpop.f32.mrf.mxu0 }
0x3534   : > { %v3943_v10 = vand.u32 2147483647, %v3938_v17  ;;  %v3945_v22 = vmul.f32 %v3944_v12, %v3938_v17 }
0x3535   : > { %v3940_v15 = vpop.f32.mrf.mxu0 }
0x3536   : > { %v3947_v51 = vadd.f32 %v3946_v8, %v3945_v22  ;;  %3949 = vrot.lane.b32.xlu1 %v3943_v10, %s8236_s19 }
0x3537   : > { %v7490_v24 = vpop.f32.mrf.mxu0 }
0x3538   : > { %v3956_v58 = vpack.c.bf16 %v3947_v51, %v3947_v51 }
0x353a   : > { %6349 = vst.msk [vmem:[%s8354_s16 + $0x20] sm:$0xf] %vm1461_vm7, %v3956_v58  ;;  %7494 = vmatmul.mubr.msk.bf16.vlgmr.msra.gmra.mxu1 %vm950_vm4, %v3956_v58 }
0x353b   : > { %7498 = vmatpush3.bf16.msra.mxu1 %v9658_v34  ;;  %7505 = vmatprep.mubr.msk.bf16.mxu1 %vm8233_vm3, %v10969_v9 }
0x353c   : > { %7499 = vmatprep.subr.bf16.mxu1 %v10969_v9 }
0x353f   : > { %7500 = vmatpush3.bf16.msra.mxu1 %v9667_v28 }
0x3540   : > { %7501 = vmatprep.subr.bf16.mxu1 %v10969_v9 }
0x3543   : > { %7502 = vmatpush3.bf16.msra.mxu1 %v9674_v39 }
0x3544   : > { %7503 = vmatprep.subr.bf16.mxu1 %v10969_v9 }
0x3547   : > { %7504 = vmatpush3.bf16.msra.mxu1 %v9681_v5 }
0x3548   : > { %7509 = vmatprep.subr.bf16.mxu1 %v10969_v9 }
0x35a8   : > { %v3950_v21 = vpop.permute.xlu1 %3949 }
0x35a9   : > { %v3952_v60 = vmul.f32 %v3950_v21, %v3944_v12 }
0x35ab   : > { %v3954_v4 = vadd.f32 %v3953_v63, %v3952_v60 }
0x35ad   : > { %v10051_v31 = vand.u32 2147483647, %v3954_v4 }
0x35af   : > { %4059 = vrot.lane.b32.xlu0 %v10051_v31, %s8234_s18 }
0x35fa   : > { %v3998_v13 = vpop.f32.mrf.mxu1 }
0x35fb   : > { %v3999_v45 = vadd.f32 %v9694_v20, %v3998_v13 }
0x35fc   : > { %v7495_v62 = vpop.f32.mrf.mxu1 }
0x35fd   : > { %7986 = vtanh.f32 %v3999_v45  ;;  %v11017_v62 = vld [vmem:[#allocation35_spill] sm:$0xff] }
0x35fe   : > { %v4001_v17 = vpop.f32.mrf.mxu1 }
0x35ff   : > { %v762_v17 = vadd.f32 %v11017_v62, %v8697_v36 }
0x3600   : > { %v7496_v53 = vpop.f32.mrf.mxu1 }
0x360a   : > { %v7987_v10 = vpop.eup %7986 }
0x360b   : > { %v4005_v22 = vpack.c.bf16 %v7987_v10, %v7987_v10 }
0x360d   : > { %7506 = vmatmul.mubr.msk.bf16.vlgmr.msra.gmra.mxu1 %vm1020_vm5, %v4005_v22 }
0x360e   : > { %7510 = vmatpush3.bf16.msra.mxu1 %v9868_v55  ;;  %7513 = vmatprep.mubr.msk.bf16.mxu1 %vm8233_vm3, %v10969_v9 }
0x360f   : > { %7511 = vmatprep.subr.bf16.mxu1 %v10969_v9 }
0x3612   : > { %7512 = vmatpush3.bf16.msra.mxu1 %v9877_v11 }
0x3613   : > { %7517 = vmatprep.subr.bf16.mxu1 %v10969_v9 }
0x3621   : > { %v4060_v21 = vpop.permute.xlu0 %4059 }
0x36cd   : > { %v4043_v19 = vpop.f32.mrf.mxu1 }
0x36ce   : > { %v4044_v12 = vadd.f32 %v9885_v16, %v4043_v19 }
0x36cf   : > { %v7507_v8 = vpop.f32.mrf.mxu1 }
0x36d0   : > { %v4050_v15 = vmul.f32 %v4049_v43, %v4044_v12 }
0x36d1   : > { %v4046_v24 = vpop.f32.mrf.mxu1 }
0x36d2   : > { %v10065_v58 = vadd.f32 %v4050_v15, %v3947_v51  ;;  %v11016_v51 = vld [vmem:[#allocation34_spill] sm:$0xff] }
0x36d3   : > { %v7508_v63 = vpop.f32.mrf.mxu1  ;;  %v760_v13 = vadd.f32 %v11016_v51, %v8693_v27 }
0x36d4   : > { %v4062_v60 = vsel %vm950_vm4, %v10065_v58, %v4060_v21 }
0x36d5   : > { %v4063_v4 = vpack.c.bf16 %v4062_v60, %v4062_v60 }
0x36d7   : > { %6352 = vmatmul.mubr.msk.bf16.vlgmr.msra.gmra.mxu0 %vm1099_vm6, %v4063_v4 }
0x36d8   : > { %6780 = vmatpush3.bf16.msra.mxu0 %v9714_v59 }
0x36d9   : > { %6781 = vmatprep.subr.bf16.mxu0 %v9720_v2 }
0x36dc   : > { %6782 = vmatpush3.bf16.msra.mxu0 %v9726_v50 }
0x36dd   : > { %6783 = vmatprep.subr.bf16.mxu0 %v9732_v1 }
0x36e0   : > { %6784 = vmatpush3.bf16.msra.mxu0 %v9738_v52 }
0x36e1   : > { %6785 = vmatprep.subr.bf16.mxu0 %v9744_v23 }
0x36e4   : > { %6786 = vmatpush3.bf16.msra.mxu0 %v9750_v54 }
0x36e5   : > { %6787 = vmatprep.subr.bf16.mxu0 %v9756_v3 }
0x36e8   : > { %6788 = vmatpush3.bf16.msra.mxu0 %v9762_v42 }
0x36e9   : > { %6789 = vmatprep.subr.bf16.mxu0 %v9905_v32 }
0x36ec   : > { %6790 = vmatpush3.bf16.msra.mxu0 %v9911_v25 }
0x36ed   : > { %6791 = vmatprep.subr.bf16.mxu0 %v9917_v18 }
0x36f0   : > { %6792 = vmatpush3.bf16.msra.mxu0 %v9923_v48 }
0x36f1   : > { %6793 = vmatprep.subr.bf16.mxu0 %v9929_v56 }
0x36f4   : > { %6794 = vmatpush3.bf16.msra.mxu0 %v9935_v47 }
0x36f5   : > { %7537 = vmatprep.subr.bf16.mxu0 %v10969_v9 }
0x3797   : > { %v4101_v45 = vpop.f32.mrf.mxu0 }
0x3798   : > { %v4102_v53 = vadd.f32 %v4101_v45, %v760_v13 }
0x3799   : > { %v4103_v10 = vpop.f32.mrf.mxu0 }
0x379a   : > { %v4104_v22 = vadd.f32 %v4103_v10, %v762_v17  ;;  %7988 = vtanh.f32 %v4102_v53 }
0x379b   : > { %v4105_v19 = vpop.f32.mrf.mxu0 }
0x379c   : > { %7990 = vtanh.f32 %v4104_v22 }
0x379d   : > { %v4106_v43 = vpop.f32.mrf.mxu0 }
0x37a7   : > { %v7989_v12 = vpop.eup %7988 }
0x37a8   : > { %v4110_v24 = vpack.c.bf16 %v7989_v12, %v7989_v12 }
0x37a9   : > { %v7991_v8 = vpop.eup %7990 }
0x37aa   : > { %v4111_v15 = vpack.c.bf16 %v7991_v8, %v7991_v8  ;;  %v11018_v8 = vld [vmem:[#allocation17_spill] sm:$0xff] }
0x37ac   : > { %4144 = vmatprep.mubr.bf16.mxu0 %v4111_v15  ;;  %v864_v15 = vadd.f32 %v11018_v8, %v8381_v14 }
0x37ad   : > { %4145 = vmatmul.mubr.bf16.vlgmr.msra.gmra.mxu0 %v4110_v24 }
0x37ae   : > { %7538 = vmatpush3.bf16.msra.mxu0 %v9607_v38  ;;  %7539 = vmatprep.mubr.msk.bf16.mxu0 %vm8233_vm3, %v10969_v9 }
0x37af   : > { %7543 = vmatprep.subr.bf16.mxu0 %v10969_v9 }
0x386d   : > { %v6795_v21 = vpop.f32.mrf.mxu0 }
0x386f   : > { %v6796_v63 = vpop.f32.mrf.mxu0 }
0x3870   : > { %v6797_v60 = vadd.f32 %v6796_v63, %v6795_v21 }
0x3871   : > { %v6798_v4 = vpop.f32.mrf.mxu0 }
0x3872   : > { %v4147_v51 = vadd.f32 %v9950_v41, %v6797_v60 }
0x3873   : > { %v6799_v13 = vpop.f32.mrf.mxu0 }
0x3874   : > { %v6353_v45 = vmul.f32 -1.442695, %v4147_v51 }
0x3876   : > { %7992 = vpow2.f32 %v6353_v45 }
0x3883   : > { %v7993_v62 = vpop.eup %7992 }
0x3884   : > { %v4155_v17 = vadd.f32 1.0, %v7993_v62 }
0x3886   : > { %7994 = vrcp.f32 %v4155_v17 }
0x3893   : > { %v10095_v53 = vpop.eup %7994 }
0x3894   : > { %4159 = vrot.lane.b32.xlu1 %v10095_v53, %s8236_s19  ;;  %v4256_v17 = vsub.f32 1.0, %v10095_v53 }
0x3906   : > { %v4160_v38 = vpop.permute.xlu1 %4159 }
0x3907   : > { %v4163_v10 = vmul.f32 %v4160_v38, %v10051_v31  ;;  %v4162_v22 = vmul.f32 %v4160_v38, %v10065_v58 }
0x3909   : > { %4165 = vrot.lane.b32.xlu0 %v4163_v10, %s8234_s18 }
0x397b   : > { %v4166_v19 = vpop.permute.xlu0 %4165 }
0x397c   : > { %v4168_v43 = vsel %vm950_vm4, %v4162_v22, %v4166_v19  ;;  %v4258_v19 = vmul.f32 %v10095_v53, %v10065_v58 }
0x397d   : > { %v4169_v12 = vpack.c.bf16 %v4168_v43, %v4168_v43 }
0x397f   : > { %7514 = vmatmul.mubr.msk.bf16.vlgmr.msra.gmra.mxu1 %vm1099_vm6, %v4169_v12 }
0x3980   : > { %7518 = vmatpush3.bf16.msra.mxu1 %v9965_v37  ;;  %7533 = vmatprep.mubr.msk.bf16.mxu1 %vm8233_vm3, %v10969_v9 }
0x3981   : > { %7519 = vmatprep.subr.bf16.mxu1 %v10969_v9 }
0x3984   : > { %7520 = vmatpush3.bf16.msra.mxu1 %v9974_v33 }
0x3985   : > { %7521 = vmatprep.subr.bf16.mxu1 %v10969_v9 }
0x3988   : > { %7522 = vmatpush3.bf16.msra.mxu1 %v9981_v0 }
0x3989   : > { %7523 = vmatprep.subr.bf16.mxu1 %v10969_v9 }
0x398c   : > { %7524 = vmatpush3.bf16.msra.mxu1 %v9988_v7 }
0x398d   : > { %7525 = vmatprep.subr.bf16.mxu1 %v10969_v9 }
0x3990   : > { %7526 = vmatpush3.bf16.msra.mxu1 %v9995_v6 }
0x3991   : > { %7527 = vmatprep.subr.bf16.mxu1 %v10969_v9 }
0x3994   : > { %7528 = vmatpush3.bf16.msra.mxu1 %v10002_v35 }
0x3995   : > { %7529 = vmatprep.subr.bf16.mxu1 %v10969_v9 }
0x3998   : > { %7530 = vmatpush3.bf16.msra.mxu1 %v10009_v29 }
0x3999   : > { %7531 = vmatprep.subr.bf16.mxu1 %v10969_v9 }
0x399c   : > { %7532 = vmatpush3.bf16.msra.mxu1 %v10016_v57 }
0x399d   : > { %4391 = vmatprep.subr.bf16.mxu1 %v9810_v40 }
0x3a3f   : > { %v4207_v24 = vpop.f32.mrf.mxu1 }
0x3a40   : > { %v4208_v21 = vadd.f32 %v4207_v24, %v864_v15 }
0x3a41   : > { %v7515_v63 = vpop.f32.mrf.mxu1 }
0x3a42   : > { %7996 = vtanh.f32 %v4208_v21 }
0x3a43   : > { %v4210_v60 = vpop.f32.mrf.mxu1 }
0x3a45   : > { %v7516_v4 = vpop.f32.mrf.mxu1 }
0x3a4f   : > { %v7997_v51 = vpop.eup %7996 }
0x3a50   : > { %v4214_v13 = vpack.c.bf16 %v7997_v51, %v7997_v51 }
0x3a52   : > { %7534 = vmatmul.mubr.bf16.vlgmr.msra.gmra.mxu1 %v4214_v13 }
0x3a53   : > { %4392 = vmatpush1.bf16.msra.mxu1 %v9817_v44  ;;  %4411 = vmatprep.mubr.bf16.mxu1 %v10996_v46 }
0x3a54   : > { %4393 = vmatprep.subr.bf16.mxu1 %v9824_v49 }
0x3a57   : > { %4394 = vmatpush1.bf16.msra.mxu1 %v9830_v26 }
0x3a58   : > { %6820 = vmatprep.subr.bf16.mxu1 %v9836_v30 }
0x3b12   : > { %v4249_v45 = vpop.f32.mrf.mxu1 }
0x3b13   : > { %v4250_v62 = vadd.f32 %v10029_v61, %v4249_v45 }
0x3b14   : > { %v7535_v38 = vpop.f32.mrf.mxu1 }
0x3b15   : > { %v4255_v10 = vand.u32 2147483647, %v4250_v62  ;;  %v4257_v22 = vmul.f32 %v4256_v17, %v4250_v62 }
0x3b16   : > { %v4252_v43 = vpop.f32.mrf.mxu1 }
0x3b17   : > { %v4259_v12 = vadd.f32 %v4258_v19, %v4257_v22  ;;  %4261 = vrot.lane.b32.xlu1 %v4255_v10, %s8236_s19 }
0x3b18   : > { %v7536_v8 = vpop.f32.mrf.mxu1 }
0x3b19   : > { %v4268_v15 = vpack.c.bf16 %v4259_v12, %v4259_v12 }
0x3b1b   : > { %6355 = vst.msk [vmem:[%s8354_s16 + $0x24] sm:$0xf] %vm1461_vm7, %v4268_v15  ;;  %7540 = vmatmul.mubr.msk.bf16.vlgmr.msra.gmra.mxu0 %vm950_vm4, %v4268_v15 }
0x3b1c   : > { %7544 = vmatpush3.bf16.msra.mxu0 %v9658_v34  ;;  %7551 = vmatprep.mubr.msk.bf16.mxu0 %vm8233_vm3, %v10969_v9  ;;  %v4265_v34 = vmul.f32 %v10095_v53, %v10051_v31  ;;  %v4361_v31 = vstv %s4272_s15  ;;  %s5831_s15 = sadd.s32 15, %s8342_s21 }
0x3b1d   : > { %7545 = vmatprep.subr.bf16.mxu0 %v10969_v9  ;;  %s5832_s17 = sld [smem:[#allocation5 + %s5831_s15]] }
0x3b20   : > { %7546 = vmatpush3.bf16.msra.mxu0 %v9667_v28 }
0x3b21   : > { %7547 = vmatprep.subr.bf16.mxu0 %v10969_v9 }
0x3b24   : > { %7548 = vmatpush3.bf16.msra.mxu0 %v9674_v39 }
0x3b25   : > { %7549 = vmatprep.subr.bf16.mxu0 %v10969_v9 }
0x3b28   : > { %7550 = vmatpush3.bf16.msra.mxu0 %v9681_v5 }
0x3b29   : > { %7555 = vmatprep.subr.bf16.mxu0 %v10969_v9 }
0x3b89   : > { %v4262_v58 = vpop.permute.xlu1 %4261 }
0x3b8a   : > { %v4264_v24 = vmul.f32 %v4262_v58, %v4256_v17 }
0x3b8c   : > { %v4266_v21 = vadd.f32 %v4265_v34, %v4264_v24  ;;  %v10191_v34 = vld [vmem:[%s10936_s2] sm:$0xff]  }
0x3b8e   : > { %v10149_v63 = vand.u32 2147483647, %v4266_v21 }
0x3b90   : > { %4371 = vrot.lane.b32.xlu0 %v10149_v63, %s8234_s18 }
0x3bdb   : > { %v4310_v28 = vpop.f32.mrf.mxu0 }
0x3bdc   : > { %v4311_v39 = vadd.f32 %v9694_v20, %v4310_v28 }
0x3bdd   : > { %v7541_v60 = vpop.f32.mrf.mxu0 }
0x3bde   : > { %7998 = vtanh.f32 %v4311_v39 }
0x3bdf   : > { %v4313_v5 = vpop.f32.mrf.mxu0 }
0x3be1   : > { %v7542_v4 = vpop.f32.mrf.mxu0 }
0x3beb   : > { %v7999_v51 = vpop.eup %7998 }
0x3bec   : > { %v4317_v13 = vpack.c.bf16 %v7999_v51, %v7999_v51 }
0x3bee   : > { %7552 = vmatmul.mubr.msk.bf16.vlgmr.msra.gmra.mxu0 %vm1020_vm5, %v4317_v13 }
0x3bef   : > { %7556 = vmatpush3.bf16.msra.mxu0 %v9868_v55  ;;  %7559 = vmatprep.mubr.msk.bf16.mxu0 %vm8233_vm3, %v10969_v9 }
0x3bf0   : > { %7557 = vmatprep.subr.bf16.mxu0 %v10969_v9 }
0x3bf3   : > { %7558 = vmatpush3.bf16.msra.mxu0 %v9877_v11 }
0x3bf4   : > { %7563 = vmatprep.subr.bf16.mxu0 %v10969_v9 }
0x3c02   : > { %v4372_v10 = vpop.permute.xlu0 %4371 }
0x3cae   : > { %v4355_v20 = vpop.f32.mrf.mxu0 }
0x3caf   : > { %v4356_v53 = vadd.f32 %v9885_v16, %v4355_v20 }
0x3cb0   : > { %v7553_v45 = vpop.f32.mrf.mxu0 }
0x3cb1   : > { %v4362_v62 = vmul.f32 %v4361_v31, %v4356_v53 }
0x3cb2   : > { %v4358_v17 = vpop.f32.mrf.mxu0 }
0x3cb3   : > { %v10163_v38 = vadd.f32 %v4362_v62, %v4259_v12 }
0x3cb4   : > { %v7554_v22 = vpop.f32.mrf.mxu0 }
0x3cb5   : > { %v4374_v19 = vsel %vm950_vm4, %v10163_v38, %v4372_v10 }
0x3cb6   : > { %v4375_v43 = vpack.c.bf16 %v4374_v19, %v4374_v19 }
0x3cb8   : > { %6358 = vmatmul.mubr.msk.bf16.vlgmr.msra.gmra.mxu1 %vm1099_vm6, %v4375_v43  ;;  %v11021_v43 = vld [vmem:[#allocation14_spill] sm:$0xff] }
0x3cb9   : > { %6821 = vmatpush3.bf16.msra.mxu1 %v9714_v59  ;;  %v11019_v59 = vld [vmem:[#allocation36_spill] sm:$0xff] }
0x3cba   : > { %6822 = vmatprep.subr.bf16.mxu1 %v9720_v2  ;;  %v766_v2 = vadd.f32 %v11019_v59, %v8693_v27 }
0x3cbd   : > { %6823 = vmatpush3.bf16.msra.mxu1 %v9726_v50 }
0x3cbe   : > { %6824 = vmatprep.subr.bf16.mxu1 %v9732_v1  ;;  %v11020_v1 = vld [vmem:[#allocation37_spill] sm:$0xff] }
0x3cc1   : > { %6825 = vmatpush3.bf16.msra.mxu1 %v9738_v52  ;;  %v768_v52 = vadd.f32 %v11020_v1, %v8697_v36 }
0x3cc2   : > { %6826 = vmatprep.subr.bf16.mxu1 %v9744_v23 }
0x3cc5   : > { %6827 = vmatpush3.bf16.msra.mxu1 %v9750_v54 }
0x3cc6   : > { %6828 = vmatprep.subr.bf16.mxu1 %v9756_v3 }
0x3cc9   : > { %6829 = vmatpush3.bf16.msra.mxu1 %v9762_v42 }
0x3cca   : > { %6830 = vmatprep.subr.bf16.mxu1 %v9905_v32 }
0x3ccd   : > { %6831 = vmatpush3.bf16.msra.mxu1 %v9911_v25 }
0x3cce   : > { %6832 = vmatprep.subr.bf16.mxu1 %v9917_v18 }
0x3cd1   : > { %6833 = vmatpush3.bf16.msra.mxu1 %v9923_v48 }
0x3cd2   : > { %6834 = vmatprep.subr.bf16.mxu1 %v9929_v56 }
0x3cd5   : > { %6835 = vmatpush3.bf16.msra.mxu1 %v9935_v47 }
0x3cd6   : > { %7583 = vmatprep.subr.bf16.mxu1 %v10969_v9 }
0x3d78   : > { %v4413_v50 = vpop.f32.mrf.mxu1 }
0x3d79   : > { %v4414_v23 = vadd.f32 %v4413_v50, %v766_v2 }
0x3d7a   : > { %v4415_v54 = vpop.f32.mrf.mxu1 }
0x3d7b   : > { %v4416_v3 = vadd.f32 %v4415_v54, %v768_v52  ;;  %8000 = vtanh.f32 %v4414_v23 }
0x3d7c   : > { %v4417_v42 = vpop.f32.mrf.mxu1 }
0x3d7d   : > { %8002 = vtanh.f32 %v4416_v3 }
0x3d7e   : > { %v4418_v12 = vpop.f32.mrf.mxu1 }
0x3d88   : > { %v8001_v8 = vpop.eup %8000 }
0x3d89   : > { %v4422_v24 = vpack.c.bf16 %v8001_v8, %v8001_v8 }
0x3d8a   : > { %v8003_v15 = vpop.eup %8002 }
0x3d8b   : > { %v4423_v58 = vpack.c.bf16 %v8003_v15, %v8003_v15 }
0x3d8d   : > { %4456 = vmatprep.mubr.bf16.mxu1 %v4423_v58 }
0x3d8e   : > { %4457 = vmatmul.mubr.bf16.vlgmr.msra.gmra.mxu1 %v4422_v24 }
0x3d8f   : > { %7584 = vmatpush3.bf16.msra.mxu1 %v10191_v34  ;;  %7585 = vmatprep.mubr.msk.bf16.mxu1 %vm8233_vm3, %v10969_v9 }
0x3d90   : > { %7589 = vmatprep.subr.bf16.mxu1 %v10969_v9 }
0x3e4e   : > { %v6836_v21 = vpop.f32.mrf.mxu1 }
0x3e50   : > { %v6837_v28 = vpop.f32.mrf.mxu1 }
0x3e51   : > { %v6838_v39 = vadd.f32 %v6837_v28, %v6836_v21  ;;  %v10265_v21 = vld [vmem:[%s10938_s4] sm:$0xff]  }
0x3e52   : > { %v6839_v60 = vpop.f32.mrf.mxu1 }
0x3e53   : > { %v4459_v5 = vadd.f32 %v9950_v41, %v6838_v39 }
0x3e54   : > { %v6840_v4 = vpop.f32.mrf.mxu1 }
0x3e55   : > { %v6359_v51 = vmul.f32 -1.442695, %v4459_v5 }
0x3e57   : > { %8004 = vpow2.f32 %v6359_v51 }
0x3e64   : > { %v8005_v13 = vpop.eup %8004 }
0x3e65   : > { %v4467_v20 = vadd.f32 1.0, %v8005_v13  ;;  %v10278_v13 = vld [vmem:[%s10937_s3] ss:$0 sm:$0xff] }
0x3e67   : > { %8006 = vrcp.f32 %v4467_v20 }
0x3e74   : > { %v10198_v31 = vpop.eup %8006 }
0x3e75   : > { %4471 = vrot.lane.b32.xlu1 %v10198_v31, %s8236_s19  ;;  %v4568_v3 = vsub.f32 1.0, %v10198_v31  ;;  %v4577_v39 = vmul.f32 %v10198_v31, %v10149_v63 }
0x3ee7   : > { %v4472_v53 = vpop.permute.xlu1 %4471 }
0x3ee8   : > { %v4475_v45 = vmul.f32 %v4472_v53, %v10149_v63  ;;  %v4474_v62 = vmul.f32 %v4472_v53, %v10163_v38 }
0x3eea   : > { %4477 = vrot.lane.b32.xlu0 %v4475_v45, %s8234_s18 }
0x3f5c   : > { %v4478_v17 = vpop.permute.xlu0 %4477 }
0x3f5d   : > { %v4480_v10 = vsel %vm950_vm4, %v4474_v62, %v4478_v17 }
0x3f5e   : > { %v4481_v22 = vpack.c.bf16 %v4480_v10, %v4480_v10  ;;  %v4673_v10 = vstv %s4584_s20  ;;  %s4895_s20 = sadd.s32 12, %s8342_s21 }
0x3f5f   : > { %s4896_s22 = sld [smem:[#allocation5 + %s4895_s20]] }
0x3f60   : > { %7560 = vmatmul.mubr.msk.bf16.vlgmr.msra.gmra.mxu0 %vm1099_vm6, %v4481_v22 }
0x3f61   : > { %7564 = vmatpush3.bf16.msra.mxu0 %v9965_v37  ;;  %7579 = vmatprep.mubr.msk.bf16.mxu0 %vm8233_vm3, %v10969_v9 }
0x3f62   : > { %7565 = vmatprep.subr.bf16.mxu0 %v10969_v9 }
0x3f65   : > { %7566 = vmatpush3.bf16.msra.mxu0 %v9974_v33 }
0x3f66   : > { %7567 = vmatprep.subr.bf16.mxu0 %v10969_v9 }
0x3f69   : > { %7568 = vmatpush3.bf16.msra.mxu0 %v9981_v0 }
0x3f6a   : > { %7569 = vmatprep.subr.bf16.mxu0 %v10969_v9 }
0x3f6d   : > { %7570 = vmatpush3.bf16.msra.mxu0 %v9988_v7 }
0x3f6e   : > { %7571 = vmatprep.subr.bf16.mxu0 %v10969_v9 }
0x3f71   : > { %7572 = vmatpush3.bf16.msra.mxu0 %v9995_v6 }
0x3f72   : > { %7573 = vmatprep.subr.bf16.mxu0 %v10969_v9 }
0x3f75   : > { %7574 = vmatpush3.bf16.msra.mxu0 %v10002_v35 }
0x3f76   : > { %7575 = vmatprep.subr.bf16.mxu0 %v10969_v9 }
0x3f79   : > { %7576 = vmatpush3.bf16.msra.mxu0 %v10009_v29 }
0x3f7a   : > { %7577 = vmatprep.subr.bf16.mxu0 %v10969_v9 }
0x3f7d   : > { %7578 = vmatpush3.bf16.msra.mxu0 %v10016_v57 }
0x3f7e   : > { %4703 = vmatprep.subr.bf16.mxu0 %v9810_v40 }
0x4020   : > { %v4519_v19 = vpop.f32.mrf.mxu0 }
0x4021   : > { %v4520_v59 = vadd.f32 %v4519_v19, %v11021_v43 }
0x4022   : > { %v7561_v2 = vpop.f32.mrf.mxu0 }
0x4023   : > { %8008 = vtanh.f32 %v4520_v59 }
0x4024   : > { %v4522_v50 = vpop.f32.mrf.mxu0 }
0x4026   : > { %v7562_v1 = vpop.f32.mrf.mxu0 }
0x4030   : > { %v8009_v52 = vpop.eup %8008 }
0x4031   : > { %v4526_v23 = vpack.c.bf16 %v8009_v52, %v8009_v52 }
0x4033   : > { %7580 = vmatmul.mubr.bf16.vlgmr.msra.gmra.mxu0 %v4526_v23  ;;  %v10310_v23 = vld [vmem:[%s10944_s10 + $0x30] sm:$0xff]  }
0x4034   : > { %4704 = vmatpush1.bf16.msra.mxu0 %v9817_v44  ;;  %4723 = vmatprep.mubr.bf16.mxu0 %v10996_v46  ;;  %v4570_v44 = vmul.f32 %v10198_v31, %v10163_v38  ;;  %v10258_v38 = vld [vmem:[%s10938_s4 + $0x8] sm:$0xff]  }
0x4035   : > { %4705 = vmatprep.subr.bf16.mxu0 %v9824_v49 }
0x4038   : > { %4706 = vmatpush1.bf16.msra.mxu0 %v9830_v26  ;;  %v10242_v26 = vld [vmem:[%s10938_s4 + $0x18] sm:$0xff]  }
0x4039   : > { %6861 = vmatprep.subr.bf16.mxu0 %v9836_v30  ;;  %v10251_v30 = vld [vmem:[%s10938_s4 + $0x10] sm:$0xff]  }
0x40f3   : > { %v4561_v40 = vpop.f32.mrf.mxu0 }
0x40f4   : > { %v4562_v54 = vadd.f32 %v10029_v61, %v4561_v40  ;;  %v10316_v40 = vld [vmem:[%s10944_s10 + $0x68] sm:$0xff]  }
0x40f5   : > { %v7581_v42 = vpop.f32.mrf.mxu0 }
0x40f6   : > { %v4567_v12 = vand.u32 2147483647, %v4562_v54  ;;  %v4569_v8 = vmul.f32 %v4568_v3, %v4562_v54  ;;  %v10322_v54 = vld [vmem:[%s10944_s10 + $0x28] sm:$0xff]   ;;  %v10334_v42 = vld [vmem:[%s10944_s10 + $0x20] sm:$0xff]  }
0x40f7   : > { %v4564_v15 = vpop.f32.mrf.mxu0 }
0x40f8   : > { %v4571_v58 = vadd.f32 %v4570_v44, %v4569_v8  ;;  %4573 = vrot.lane.b32.xlu1 %v4567_v12, %s8236_s19  ;;  %v10340_v12 = vld [vmem:[%s10944_s10 + $0x58] sm:$0xff]   ;;  %v11022_v44 = vld [vmem:[#allocation38_spill] sm:$0xff] }
0x40f9   : > { %v7582_v49 = vpop.f32.mrf.mxu0  ;;  %v10346_v8 = vld [vmem:[%s10944_s10 + $0x18] sm:$0xff]   ;;  %v770_v15 = vadd.f32 %v11022_v44, %v8693_v27  ;;  %v10414_v44 = vld [vmem:[%s10940_s6] ss:$8 sps:$4 sm:$0xff]  }
0x40fa   : > { %v4580_v24 = vpack.c.bf16 %v4571_v58, %v4571_v58  ;;  %v11023_v49 = vld [vmem:[#allocation39_spill] sm:$0xff] }
0x40fc   : > { %6361 = vst.msk [vmem:[%s8354_s16 + $0x28] sm:$0xf] %vm1461_vm7, %v4580_v24  ;;  %7586 = vmatmul.mubr.msk.bf16.vlgmr.msra.gmra.mxu1 %vm950_vm4, %v4580_v24  ;;  %v772_v24 = vadd.f32 %v11023_v49, %v8697_v36 }
0x40fd   : > { %7590 = vmatpush3.bf16.msra.mxu1 %v10242_v26  ;;  %7597 = vmatprep.mubr.msk.bf16.mxu1 %vm8233_vm3, %v10969_v9 }
0x40fe   : > { %7591 = vmatprep.subr.bf16.mxu1 %v10969_v9 }
0x4101   : > { %7592 = vmatpush3.bf16.msra.mxu1 %v10251_v30 }
0x4102   : > { %7593 = vmatprep.subr.bf16.mxu1 %v10969_v9 }
0x4105   : > { %7594 = vmatpush3.bf16.msra.mxu1 %v10258_v38 }
0x4106   : > { %7595 = vmatprep.subr.bf16.mxu1 %v10969_v9 }
0x4109   : > { %7596 = vmatpush3.bf16.msra.mxu1 %v10265_v21 }
0x410a   : > { %7601 = vmatprep.subr.bf16.mxu1 %v10969_v9 }
0x416a   : > { %v4574_v28 = vpop.permute.xlu1 %4573 }
0x416b   : > { %v4576_v60 = vmul.f32 %v4574_v28, %v4568_v3  ;;  %v10328_v3 = vld [vmem:[%s10944_s10 + $0x60] sm:$0xff]  }
0x416d   : > { %v4578_v5 = vadd.f32 %v4577_v39, %v4576_v60 }
0x416f   : > { %v10271_v4 = vand.u32 2147483647, %v4578_v5 }
0x4171   : > { %4683 = vrot.lane.b32.xlu0 %v10271_v4, %s8234_s18 }
0x41bc   : > { %v4622_v51 = vpop.f32.mrf.mxu1 }
0x41bd   : > { %v4623_v20 = vadd.f32 %v10278_v13, %v4622_v51 }
0x41be   : > { %v7587_v53 = vpop.f32.mrf.mxu1 }
0x41bf   : > { %8010 = vtanh.f32 %v4623_v20 }
0x41c0   : > { %v4625_v45 = vpop.f32.mrf.mxu1 }
0x41c2   : > { %v7588_v63 = vpop.f32.mrf.mxu1 }
0x41cc   : > { %v8011_v31 = vpop.eup %8010 }
0x41cd   : > { %v4629_v62 = vpack.c.bf16 %v8011_v31, %v8011_v31 }
0x41cf   : > { %7598 = vmatmul.mubr.msk.bf16.vlgmr.msra.gmra.mxu1 %vm1020_vm5, %v4629_v62 }
0x41d0   : > { %7602 = vmatpush3.bf16.msra.mxu1 %v9868_v55  ;;  %7605 = vmatprep.mubr.msk.bf16.mxu1 %vm8233_vm3, %v10969_v9 }
0x41d1   : > { %7603 = vmatprep.subr.bf16.mxu1 %v10969_v9 }
0x41d4   : > { %7604 = vmatpush3.bf16.msra.mxu1 %v9877_v11  ;;  %v10298_v11 = vld [vmem:[%s10944_s10 + $0x38] sm:$0xff]  }
0x41d5   : > { %7609 = vmatprep.subr.bf16.mxu1 %v10969_v9 }
0x41e3   : > { %v4684_v55 = vpop.permute.xlu0 %4683 }
0x428f   : > { %v4667_v17 = vpop.f32.mrf.mxu1 }
0x4290   : > { %v4668_v22 = vadd.f32 %v9885_v16, %v4667_v17  ;;  %v10304_v16 = vld [vmem:[%s10944_s10 + $0x70] sm:$0xff]  }
0x4291   : > { %v7599_v19 = vpop.f32.mrf.mxu1 }
0x4292   : > { %v4674_v43 = vmul.f32 %v4673_v10, %v4668_v22 }
0x4293   : > { %v4670_v59 = vpop.f32.mrf.mxu1 }
0x4294   : > { %v10290_v2 = vadd.f32 %v4674_v43, %v4571_v58 }
0x4295   : > { %v7600_v50 = vpop.f32.mrf.mxu1 }
0x4296   : > { %v4686_v1 = vsel %vm950_vm4, %v10290_v2, %v4684_v55 }
0x4297   : > { %v4687_v52 = vpack.c.bf16 %v4686_v1, %v4686_v1 }
0x4299   : > { %6364 = vmatmul.mubr.msk.bf16.vlgmr.msra.gmra.mxu0 %vm1099_vm6, %v4687_v52  ;;  %v10408_v52 = vld [vmem:[%s10940_s6 + $0x4] ss:$8 sps:$4 sm:$0xff]  }
0x429a   : > { %6862 = vmatpush3.bf16.msra.mxu0 %v10298_v11 }
0x429b   : > { %6863 = vmatprep.subr.bf16.mxu0 %v10304_v16 }
0x429e   : > { %6864 = vmatpush3.bf16.msra.mxu0 %v10310_v23 }
0x429f   : > { %6865 = vmatprep.subr.bf16.mxu0 %v10316_v40 }
0x42a2   : > { %6866 = vmatpush3.bf16.msra.mxu0 %v10322_v54 }
0x42a3   : > { %6867 = vmatprep.subr.bf16.mxu0 %v10328_v3 }
0x42a6   : > { %6868 = vmatpush3.bf16.msra.mxu0 %v10334_v42 }
0x42a7   : > { %6869 = vmatprep.subr.bf16.mxu0 %v10340_v12 }
0x42aa   : > { %6870 = vmatpush3.bf16.msra.mxu0 %v10346_v8 }
0x42ab   : > { %6871 = vmatprep.subr.bf16.mxu0 %v9905_v32 }
0x42ae   : > { %6872 = vmatpush3.bf16.msra.mxu0 %v9911_v25 }
0x42af   : > { %6873 = vmatprep.subr.bf16.mxu0 %v9917_v18 }
0x42b2   : > { %6874 = vmatpush3.bf16.msra.mxu0 %v9923_v48 }
0x42b3   : > { %6875 = vmatprep.subr.bf16.mxu0 %v9929_v56 }
0x42b6   : > { %6876 = vmatpush3.bf16.msra.mxu0 %v9935_v47 }
0x42b7   : > { %7629 = vmatprep.subr.bf16.mxu0 %v10969_v9 }
0x4359   : > { %v4725_v58 = vpop.f32.mrf.mxu0 }
0x435a   : > { %v4726_v32 = vadd.f32 %v4725_v58, %v770_v15  ;;  %v10420_v15 = vld [vmem:[%s10944_s10 + $0x78] sm:$0xff]  }
0x435b   : > { %v4727_v28 = vpop.f32.mrf.mxu0 }
0x435c   : > { %v4728_v25 = vadd.f32 %v4727_v28, %v772_v24  ;;  %8012 = vtanh.f32 %v4726_v32 }
0x435d   : > { %v4729_v18 = vpop.f32.mrf.mxu0 }
0x435e   : > { %8014 = vtanh.f32 %v4728_v25 }
0x435f   : > { %v4730_v48 = vpop.f32.mrf.mxu0 }
0x4369   : > { %v8013_v39 = vpop.eup %8012 }
0x436a   : > { %v4734_v47 = vpack.c.bf16 %v8013_v39, %v8013_v39 }
0x436b   : > { %v8015_v56 = vpop.eup %8014 }
0x436c   : > { %v4735_v60 = vpack.c.bf16 %v8015_v56, %v8015_v56 }
0x436e   : > { %4768 = vmatprep.mubr.bf16.mxu0 %v4735_v60 }
0x436f   : > { %4769 = vmatmul.mubr.bf16.vlgmr.msra.gmra.mxu0 %v4734_v47 }
0x4370   : > { %7630 = vmatpush3.bf16.msra.mxu0 %v10191_v34  ;;  %7631 = vmatprep.mubr.msk.bf16.mxu0 %vm8233_vm3, %v10969_v9 }
0x4371   : > { %7635 = vmatprep.subr.bf16.mxu0 %v10969_v9 }
0x442f   : > { %v6877_v5 = vpop.f32.mrf.mxu0 }
0x4431   : > { %v6878_v51 = vpop.f32.mrf.mxu0 }
0x4432   : > { %v6879_v20 = vadd.f32 %v6878_v51, %v6877_v5 }
0x4433   : > { %v6880_v53 = vpop.f32.mrf.mxu0 }
0x4434   : > { %v4771_v45 = vadd.f32 %v9950_v41, %v6879_v20 }
0x4435   : > { %v6881_v63 = vpop.f32.mrf.mxu0 }
0x4436   : > { %v6365_v31 = vmul.f32 -1.442695, %v4771_v45 }
0x4438   : > { %8016 = vpow2.f32 %v6365_v31 }
0x4445   : > { %v8017_v62 = vpop.eup %8016 }
0x4446   : > { %v4779_v17 = vadd.f32 1.0, %v8017_v62 }
0x4448   : > { %8018 = vrcp.f32 %v4779_v17 }
0x4455   : > { %v10365_v10 = vpop.eup %8018 }
0x4456   : > { %4783 = vrot.lane.b32.xlu1 %v10365_v10, %s8236_s19  ;;  %v4880_v24 = vsub.f32 1.0, %v10365_v10  ;;  %v4882_v18 = vmul.f32 %v10365_v10, %v10290_v2  ;;  %v4889_v47 = vmul.f32 %v10365_v10, %v10271_v4  ;;  %v10461_v10 = vld [vmem:[%s10941_s7] sm:$0xff]  }
0x44c8   : > { %v4784_v22 = vpop.permute.xlu1 %4783 }
0x44c9   : > { %v4787_v19 = vmul.f32 %v4784_v22, %v10271_v4  ;;  %v4786_v43 = vmul.f32 %v4784_v22, %v10290_v2  ;;  %v10452_v4 = vld [vmem:[%s10941_s7 + $0x8] sm:$0xff]  }
0x44cb   : > { %4789 = vrot.lane.b32.xlu0 %v4787_v19, %s8234_s18  ;;  %v4985_v19 = vstv %s4896_s22 }
0x453d   : > { %v4790_v59 = vpop.permute.xlu0 %4789 }
0x453e   : > { %v4792_v41 = vsel %vm950_vm4, %v4786_v43, %v4790_v59  ;;  %v10469_v43 = vld [vmem:[%s10939_s5] ss:$0 sm:$0xff] }
0x453f   : > { %v4793_v55 = vpack.c.bf16 %v4792_v41, %v4792_v41 }
0x4541   : > { %7606 = vmatmul.mubr.msk.bf16.vlgmr.msra.gmra.mxu1 %vm1099_vm6, %v4793_v55 }
0x4542   : > { %7610 = vmatpush3.bf16.msra.mxu1 %v9965_v37  ;;  %7625 = vmatprep.mubr.msk.bf16.mxu1 %vm8233_vm3, %v10969_v9  ;;  %v10394_v37 = vld [vmem:[%s10940_s6 + $0x14] ss:$8 sps:$4 sm:$0xff]  }
0x4543   : > { %7611 = vmatprep.subr.bf16.mxu1 %v10969_v9 }
0x4546   : > { %7612 = vmatpush3.bf16.msra.mxu1 %v9974_v33 }
0x4547   : > { %7613 = vmatprep.subr.bf16.mxu1 %v10969_v9 }
0x454a   : > { %7614 = vmatpush3.bf16.msra.mxu1 %v9981_v0  ;;  %v11024_v0 = vld [vmem:[#allocation16_spill] sm:$0xff] }
0x454b   : > { %7615 = vmatprep.subr.bf16.mxu1 %v10969_v9 }
0x454e   : > { %7616 = vmatpush3.bf16.msra.mxu1 %v9988_v7 }
0x454f   : > { %7617 = vmatprep.subr.bf16.mxu1 %v10969_v9 }
0x4552   : > { %7618 = vmatpush3.bf16.msra.mxu1 %v9995_v6 }
0x4553   : > { %7619 = vmatprep.subr.bf16.mxu1 %v10969_v9 }
0x4556   : > { %7620 = vmatpush3.bf16.msra.mxu1 %v10002_v35 }
0x4557   : > { %7621 = vmatprep.subr.bf16.mxu1 %v10969_v9 }
0x455a   : > { %7622 = vmatpush3.bf16.msra.mxu1 %v10009_v29 }
0x455b   : > { %7623 = vmatprep.subr.bf16.mxu1 %v10969_v9 }
0x455e   : > { %7624 = vmatpush3.bf16.msra.mxu1 %v10016_v57  ;;  %v10401_v57 = vld [vmem:[%s10940_s6 + $0x10] ss:$8 sps:$4 sm:$0xff]  }
0x455f   : > { %5015 = vmatprep.subr.bf16.mxu1 %v10394_v37 }
0x4601   : > { %v4831_v33 = vpop.f32.mrf.mxu1 }
0x4602   : > { %v4832_v7 = vadd.f32 %v4831_v33, %v11024_v0 }
0x4603   : > { %v7607_v6 = vpop.f32.mrf.mxu1 }
0x4604   : > { %8020 = vtanh.f32 %v4832_v7 }
0x4605   : > { %v4834_v35 = vpop.f32.mrf.mxu1 }
0x4607   : > { %v7608_v50 = vpop.f32.mrf.mxu1 }
0x4611   : > { %v8021_v1 = vpop.eup %8020 }
0x4612   : > { %v4838_v29 = vpack.c.bf16 %v8021_v1, %v8021_v1  ;;  %v10489_v1 = vld [vmem:[%s10944_s10 + $0x50] sm:$0xff]  }
0x4614   : > { %7626 = vmatmul.mubr.bf16.vlgmr.msra.gmra.mxu1 %v4838_v29  ;;  %v10495_v29 = vld [vmem:[%s10944_s10 + $0x10] sm:$0xff]  }
0x4615   : > { %5016 = vmatpush1.bf16.msra.mxu1 %v10401_v57  ;;  %5035 = vmatprep.mubr.bf16.mxu1 %v10996_v46 }
0x4616   : > { %5017 = vmatprep.subr.bf16.mxu1 %v10408_v52 }
0x4619   : > { %5018 = vmatpush1.bf16.msra.mxu1 %v10414_v44 }
0x461a   : > { %6902 = vmatprep.subr.bf16.mxu1 %v10420_v15 }
0x46d4   : > { %v4873_v58 = vpop.f32.mrf.mxu1 }
0x46d5   : > { %v4874_v49 = vadd.f32 %v10029_v61, %v4873_v58  ;;  %v10501_v58 = vld [vmem:[%s10944_s10 + $0x48] sm:$0xff]  }
0x46d6   : > { %v7627_v32 = vpop.f32.mrf.mxu1 }
0x46d7   : > { %v4879_v28 = vand.u32 2147483647, %v4874_v49  ;;  %v4881_v25 = vmul.f32 %v4880_v24, %v4874_v49  ;;  %v10507_v49 = vld [vmem:[%s10944_s10 + $0x8] sm:$0xff]   ;;  %v10519_v32 = vld [vmem:[%s10944_s10] sm:$0xff]  }
0x46d8   : > { %v4876_v48 = vpop.f32.mrf.mxu1 }
0x46d9   : > { %v4883_v39 = vadd.f32 %v4882_v18, %v4881_v25  ;;  %4885 = vrot.lane.b32.xlu1 %v4879_v28, %s8236_s19  ;;  %v11025_v28 = vld [vmem:[#allocation40_spill] sm:$0xff]  ;;  %v11026_v48 = vld [vmem:[#allocation41_spill] sm:$0xff] }
0x46da   : > { %v7628_v56 = vpop.f32.mrf.mxu1  ;;  %v776_v25 = vadd.f32 %v11025_v28, %v8693_v27 }
0x46db   : > { %v4892_v60 = vpack.c.bf16 %v4883_v39, %v4883_v39 }
0x46dd   : > { %6367 = vst.msk [vmem:[%s8354_s16 + $0x2c] sm:$0xf] %vm1461_vm7, %v4892_v60  ;;  %7632 = vmatmul.mubr.msk.bf16.vlgmr.msra.gmra.mxu0 %vm950_vm4, %v4892_v60 }
0x46de   : > { %7636 = vmatpush3.bf16.msra.mxu0 %v10242_v26  ;;  %7643 = vmatprep.mubr.msk.bf16.mxu0 %vm8233_vm3, %v10969_v9 }
0x46df   : > { %7637 = vmatprep.subr.bf16.mxu0 %v10969_v9 }
0x46e2   : > { %7638 = vmatpush3.bf16.msra.mxu0 %v10251_v30 }
0x46e3   : > { %7639 = vmatprep.subr.bf16.mxu0 %v10969_v9 }
0x46e6   : > { %7640 = vmatpush3.bf16.msra.mxu0 %v10258_v38 }
0x46e7   : > { %7641 = vmatprep.subr.bf16.mxu0 %v10969_v9 }
0x46ea   : > { %7642 = vmatpush3.bf16.msra.mxu0 %v10265_v21 }
0x46eb   : > { %7647 = vmatprep.subr.bf16.mxu0 %v10969_v9 }
0x474b   : > { %v4886_v61 = vpop.permute.xlu1 %4885 }
0x474c   : > { %v4888_v2 = vmul.f32 %v4886_v61, %v4880_v24  ;;  %v10513_v24 = vld [vmem:[%s10944_s10 + $0x40] sm:$0xff]  }
0x474e   : > { %v4890_v5 = vadd.f32 %v4889_v47, %v4888_v2 }
0x4750   : > { %v10443_v51 = vand.u32 2147483647, %v4890_v5 }
0x4752   : > { %4995 = vrot.lane.b32.xlu0 %v10443_v51, %s8234_s18 }
0x479d   : > { %v4934_v20 = vpop.f32.mrf.mxu0 }
0x479e   : > { %v4935_v53 = vadd.f32 %v10278_v13, %v4934_v20 }
0x479f   : > { %v7633_v45 = vpop.f32.mrf.mxu0 }
0x47a0   : > { %8022 = vtanh.f32 %v4935_v53 }
0x47a1   : > { %v4937_v63 = vpop.f32.mrf.mxu0 }
0x47a3   : > { %v7634_v31 = vpop.f32.mrf.mxu0 }
0x47ad   : > { %v8023_v62 = vpop.eup %8022 }
0x47ae   : > { %v4941_v17 = vpack.c.bf16 %v8023_v62, %v8023_v62 }
0x47b0   : > { %7644 = vmatmul.mubr.msk.bf16.vlgmr.msra.gmra.mxu0 %vm1020_vm5, %v4941_v17 }
0x47b1   : > { %7648 = vmatpush3.bf16.msra.mxu0 %v10452_v4  ;;  %7651 = vmatprep.mubr.msk.bf16.mxu0 %vm8233_vm3, %v10969_v9 }
0x47b2   : > { %7649 = vmatprep.subr.bf16.mxu0 %v10969_v9 }
0x47b5   : > { %7650 = vmatpush3.bf16.msra.mxu0 %v10461_v10 }
0x47b6   : > { %7655 = vmatprep.subr.bf16.mxu0 %v10969_v9 }
0x47c4   : > { %v4996_v7 = vpop.permute.xlu0 %4995 }
0x4870   : > { %v4979_v22 = vpop.f32.mrf.mxu0 }
0x4871   : > { %v4980_v59 = vadd.f32 %v10469_v43, %v4979_v22  ;;  %v10534_v22 = vld [vmem:[%s10945_s11] ss:$0 sm:$0xff] }
0x4872   : > { %v7645_v41 = vpop.f32.mrf.mxu0 }
0x4873   : > { %v4986_v55 = vmul.f32 %v4985_v19, %v4980_v59 }
0x4874   : > { %v4982_v33 = vpop.f32.mrf.mxu0 }
0x4875   : > { %v10472_v0 = vadd.f32 %v4986_v55, %v4883_v39  ;;  %v778_v39 = vadd.f32 %v11026_v48, %v8697_v36  ;;  %v10549_v48 = vld [vmem:[%s10946_s12 + $0x38] sm:$0xff]  }
0x4876   : > { %v7646_v6 = vpop.f32.mrf.mxu0 }
0x4877   : > { %v4998_v35 = vsel %vm950_vm4, %v10472_v0, %v4996_v7 }
0x4878   : > { %v4999_v50 = vpack.c.bf16 %v4998_v35, %v4998_v35 }
0x487a   : > { %6370 = vmatmul.mubr.msk.bf16.vlgmr.msra.gmra.mxu1 %vm1099_vm6, %v4999_v50 }
0x487b   : > { %6903 = vmatpush3.bf16.msra.mxu1 %v10298_v11 }
0x487c   : > { %6904 = vmatprep.subr.bf16.mxu1 %v10304_v16 }
0x487f   : > { %6905 = vmatpush3.bf16.msra.mxu1 %v10310_v23 }
0x4880   : > { %6906 = vmatprep.subr.bf16.mxu1 %v10316_v40 }
0x4883   : > { %6907 = vmatpush3.bf16.msra.mxu1 %v10322_v54 }
0x4884   : > { %6908 = vmatprep.subr.bf16.mxu1 %v10328_v3 }
0x4887   : > { %6909 = vmatpush3.bf16.msra.mxu1 %v10334_v42 }
0x4888   : > { %6910 = vmatprep.subr.bf16.mxu1 %v10340_v12 }
0x488b   : > { %6911 = vmatpush3.bf16.msra.mxu1 %v10346_v8 }
0x488c   : > { %6912 = vmatprep.subr.bf16.mxu1 %v10489_v1 }
0x488f   : > { %6913 = vmatpush3.bf16.msra.mxu1 %v10495_v29 }
0x4890   : > { %6914 = vmatprep.subr.bf16.mxu1 %v10501_v58 }
0x4893   : > { %6915 = vmatpush3.bf16.msra.mxu1 %v10507_v49 }
0x4894   : > { %6916 = vmatprep.subr.bf16.mxu1 %v10513_v24 }
0x4897   : > { %6917 = vmatpush3.bf16.msra.mxu1 %v10519_v32 }
0x4898   : > { %7675 = vmatprep.subr.bf16.mxu1 %v10969_v9 }
0x493a   : > { %v5037_v18 = vpop.f32.mrf.mxu1 }
0x493b   : > { %v5038_v56 = vadd.f32 %v5037_v18, %v776_v25 }
0x493c   : > { %v5039_v60 = vpop.f32.mrf.mxu1 }
0x493d   : > { %v5040_v61 = vadd.f32 %v5039_v60, %v778_v39  ;;  %8024 = vtanh.f32 %v5038_v56  ;;  %v10558_v39 = vld [vmem:[%s10946_s12 + $0x30] sm:$0xff]   ;;  %v10565_v56 = vld [vmem:[%s10946_s12 + $0x28] sm:$0xff]   ;;  %v10572_v60 = vld [vmem:[%s10946_s12 + $0x20] sm:$0xff]  }
0x493e   : > { %v5041_v2 = vpop.f32.mrf.mxu1 }
0x493f   : > { %8026 = vtanh.f32 %v5040_v61  ;;  %v10579_v61 = vld [vmem:[%s10946_s12 + $0x18] sm:$0xff]   ;;  %v10586_v2 = vld [vmem:[%s10946_s12 + $0x10] sm:$0xff]  }
0x4940   : > { %v5042_v47 = vpop.f32.mrf.mxu1 }
0x4941   : > { %v10593_v47 = vld [vmem:[%s10946_s12 + $0x8] sm:$0xff]  }
0x494a   : > { %v8025_v5 = vpop.eup %8024 }
0x494b   : > { %v5046_v45 = vpack.c.bf16 %v8025_v5, %v8025_v5  ;;  %v10600_v5 = vld [vmem:[%s10946_s12] sm:$0xff]  }
0x494c   : > { %v8027_v20 = vpop.eup %8026 }
0x494d   : > { %v5047_v53 = vpack.c.bf16 %v8027_v20, %v8027_v20 }
0x494f   : > { %5080 = vmatprep.mubr.bf16.mxu1 %v5047_v53  ;;  %v11027_v53 = vld [vmem:[#allocation19_spill] sm:$0xff] }
0x4950   : > { %5081 = vmatmul.mubr.bf16.vlgmr.msra.gmra.mxu1 %v5046_v45 }
0x4951   : > { %7676 = vmatpush3.bf16.msra.mxu1 %v10191_v34  ;;  %7677 = vmatprep.mubr.msk.bf16.mxu1 %vm8233_vm3, %v10969_v9 }
0x4952   : > { %7681 = vmatprep.subr.bf16.mxu1 %v10969_v9 }
0x4a10   : > { %v6918_v63 = vpop.f32.mrf.mxu1 }
0x4a12   : > { %v6919_v31 = vpop.f32.mrf.mxu1 }
0x4a13   : > { %v6920_v62 = vadd.f32 %v6919_v31, %v6918_v63 }
0x4a14   : > { %v6921_v17 = vpop.f32.mrf.mxu1 }
0x4a15   : > { %v5083_v19 = vadd.f32 %v10534_v22, %v6920_v62 }
0x4a16   : > { %v6922_v59 = vpop.f32.mrf.mxu1 }
0x4a17   : > { %v6371_v41 = vmul.f32 -1.442695, %v5083_v19 }
0x4a19   : > { %8028 = vpow2.f32 %v6371_v41  ;;  %v10613_v41 = vld [vmem:[%s10947_s13] ss:$0 sm:$0xff] }
0x4a26   : > { %v8029_v55 = vpop.eup %8028 }
0x4a27   : > { %v5091_v33 = vadd.f32 1.0, %v8029_v55 }
0x4a29   : > { %8030 = vrcp.f32 %v5091_v33 }
0x4a36   : > { %v10537_v7 = vpop.eup %8030 }
0x4a37   : > { %5095 = vrot.lane.b32.xlu1 %v10537_v7, %s8236_s19  ;;  %v5192_v33 = vsub.f32 1.0, %v10537_v7 }
0x4aa9   : > { %v5096_v6 = vpop.permute.xlu1 %5095 }
0x4aaa   : > { %v5099_v35 = vmul.f32 %v5096_v6, %v10443_v51  ;;  %v5098_v50 = vmul.f32 %v5096_v6, %v10472_v0 }
0x4aac   : > { %5101 = vrot.lane.b32.xlu0 %v5099_v35, %s8234_s18 }
0x4b1e   : > { %v5102_v28 = vpop.permute.xlu0 %5101 }
0x4b1f   : > { %v5104_v25 = vsel %vm950_vm4, %v5098_v50, %v5102_v28  ;;  %v5194_v28 = vmul.f32 %v10537_v7, %v10472_v0 }
0x4b20   : > { %v5105_v18 = vpack.c.bf16 %v5104_v25, %v5104_v25 }
0x4b22   : > { %7652 = vmatmul.mubr.msk.bf16.vlgmr.msra.gmra.mxu0 %vm1099_vm6, %v5105_v18 }
0x4b23   : > { %7656 = vmatpush3.bf16.msra.mxu0 %v10549_v48  ;;  %7671 = vmatprep.mubr.msk.bf16.mxu0 %vm8233_vm3, %v10969_v9 }
0x4b24   : > { %7657 = vmatprep.subr.bf16.mxu0 %v10969_v9 }
0x4b27   : > { %7658 = vmatpush3.bf16.msra.mxu0 %v10558_v39 }
0x4b28   : > { %7659 = vmatprep.subr.bf16.mxu0 %v10969_v9 }
0x4b2b   : > { %7660 = vmatpush3.bf16.msra.mxu0 %v10565_v56 }
0x4b2c   : > { %7661 = vmatprep.subr.bf16.mxu0 %v10969_v9 }
0x4b2f   : > { %7662 = vmatpush3.bf16.msra.mxu0 %v10572_v60 }
0x4b30   : > { %7663 = vmatprep.subr.bf16.mxu0 %v10969_v9 }
0x4b33   : > { %7664 = vmatpush3.bf16.msra.mxu0 %v10579_v61 }
0x4b34   : > { %7665 = vmatprep.subr.bf16.mxu0 %v10969_v9 }
0x4b37   : > { %7666 = vmatpush3.bf16.msra.mxu0 %v10586_v2 }
0x4b38   : > { %7667 = vmatprep.subr.bf16.mxu0 %v10969_v9 }
0x4b3b   : > { %7668 = vmatpush3.bf16.msra.mxu0 %v10593_v47 }
0x4b3c   : > { %7669 = vmatprep.subr.bf16.mxu0 %v10969_v9 }
0x4b3f   : > { %7670 = vmatpush3.bf16.msra.mxu0 %v10600_v5 }
0x4b40   : > { %5327 = vmatprep.subr.bf16.mxu0 %v10394_v37 }
0x4be2   : > { %v5143_v20 = vpop.f32.mrf.mxu0 }
0x4be3   : > { %v5144_v45 = vadd.f32 %v5143_v20, %v11027_v53 }
0x4be4   : > { %v7653_v63 = vpop.f32.mrf.mxu0 }
0x4be5   : > { %8032 = vtanh.f32 %v5144_v45  ;;  %v5201_v45 = vmul.f32 %v10537_v7, %v10443_v51  ;;  %v5297_v7 = vstv %s5208_s25 }
0x4be6   : > { %v5146_v31 = vpop.f32.mrf.mxu0 }
0x4be8   : > { %v7654_v62 = vpop.f32.mrf.mxu0 }
0x4bf2   : > { %v8033_v17 = vpop.eup %8032 }
0x4bf3   : > { %v5150_v19 = vpack.c.bf16 %v8033_v17, %v8033_v17 }
0x4bf5   : > { %7672 = vmatmul.mubr.bf16.vlgmr.msra.gmra.mxu0 %v5150_v19 }
0x4bf6   : > { %5328 = vmatpush1.bf16.msra.mxu0 %v10401_v57  ;;  %5347 = vmatprep.mubr.bf16.mxu0 %v10996_v46 }
0x4bf7   : > { %5329 = vmatprep.subr.bf16.mxu0 %v10408_v52 }
0x4bfa   : > { %5330 = vmatpush1.bf16.msra.mxu0 %v10414_v44 }
0x4bfb   : > { %6943 = vmatprep.subr.bf16.mxu0 %v10420_v15 }
0x4cb5   : > { %v5185_v59 = vpop.f32.mrf.mxu0 }
0x4cb6   : > { %v5186_v55 = vadd.f32 %v10613_v41, %v5185_v59 }
0x4cb7   : > { %v7673_v6 = vpop.f32.mrf.mxu0 }
0x4cb8   : > { %v5191_v35 = vand.u32 2147483647, %v5186_v55  ;;  %v5193_v50 = vmul.f32 %v5192_v33, %v5186_v55 }
0x4cb9   : > { %v5188_v25 = vpop.f32.mrf.mxu0 }
0x4cba   : > { %v5195_v18 = vadd.f32 %v5194_v28, %v5193_v50  ;;  %5197 = vrot.lane.b32.xlu1 %v5191_v35, %s8236_s19 }
0x4cbb   : > { %v7674_v20 = vpop.f32.mrf.mxu0 }
0x4cbc   : > { %v5204_v53 = vpack.c.bf16 %v5195_v18, %v5195_v18 }
0x4cbe   : > { %6373 = vst.msk [vmem:[%s8354_s16 + $0x30] sm:$0xf] %vm1461_vm7, %v5204_v53  ;;  %7678 = vmatmul.mubr.msk.bf16.vlgmr.msra.gmra.mxu1 %vm950_vm4, %v5204_v53 }
0x4cbf   : > { %7682 = vmatpush3.bf16.msra.mxu1 %v10242_v26  ;;  %7689 = vmatprep.mubr.msk.bf16.mxu1 %vm8233_vm3, %v10969_v9 }
0x4cc0   : > { %7683 = vmatprep.subr.bf16.mxu1 %v10969_v9 }
0x4cc3   : > { %7684 = vmatpush3.bf16.msra.mxu1 %v10251_v30 }
0x4cc4   : > { %7685 = vmatprep.subr.bf16.mxu1 %v10969_v9 }
0x4cc7   : > { %7686 = vmatpush3.bf16.msra.mxu1 %v10258_v38 }
0x4cc8   : > { %7687 = vmatprep.subr.bf16.mxu1 %v10969_v9 }
0x4ccb   : > { %7688 = vmatpush3.bf16.msra.mxu1 %v10265_v21 }
0x4ccc   : > { %7693 = vmatprep.subr.bf16.mxu1 %v10969_v9 }
0x4d2c   : > { %v5198_v0 = vpop.permute.xlu1 %5197 }
0x4d2d   : > { %v5200_v63 = vmul.f32 %v5198_v0, %v5192_v33 }
0x4d2f   : > { %v5202_v31 = vadd.f32 %v5201_v45, %v5200_v63 }
0x4d31   : > { %v10635_v62 = vand.u32 2147483647, %v5202_v31 }
0x4d33   : > { %5307 = vrot.lane.b32.xlu0 %v10635_v62, %s8234_s18 }
0x4d7e   : > { %v5246_v17 = vpop.f32.mrf.mxu1 }
0x4d7f   : > { %v5247_v19 = vadd.f32 %v10278_v13, %v5246_v17 }
0x4d80   : > { %v7679_v59 = vpop.f32.mrf.mxu1 }
0x4d81   : > { %8034 = vtanh.f32 %v5247_v19  ;;  %v11029_v59 = vld [vmem:[#allocation43_spill] sm:$0xff] }
0x4d82   : > { %v5249_v55 = vpop.f32.mrf.mxu1 }
0x4d83   : > { %v782_v55 = vadd.f32 %v11029_v59, %v8697_v36 }
0x4d84   : > { %v7680_v6 = vpop.f32.mrf.mxu1 }
0x4d8e   : > { %v8035_v35 = vpop.eup %8034 }
0x4d8f   : > { %v5253_v50 = vpack.c.bf16 %v8035_v35, %v8035_v35 }
0x4d91   : > { %7690 = vmatmul.mubr.msk.bf16.vlgmr.msra.gmra.mxu1 %vm1020_vm5, %v5253_v50 }
0x4d92   : > { %7694 = vmatpush3.bf16.msra.mxu1 %v10452_v4  ;;  %7697 = vmatprep.mubr.msk.bf16.mxu1 %vm8233_vm3, %v10969_v9 }
0x4d93   : > { %7695 = vmatprep.subr.bf16.mxu1 %v10969_v9 }
0x4d96   : > { %7696 = vmatpush3.bf16.msra.mxu1 %v10461_v10 }
0x4d97   : > { %7701 = vmatprep.subr.bf16.mxu1 %v10969_v9 }
0x4da5   : > { %v5308_v0 = vpop.permute.xlu0 %5307 }
0x4e51   : > { %v5291_v51 = vpop.f32.mrf.mxu1 }
0x4e52   : > { %v5292_v33 = vadd.f32 %v10469_v43, %v5291_v51 }
0x4e53   : > { %v7691_v28 = vpop.f32.mrf.mxu1 }
0x4e54   : > { %v5298_v25 = vmul.f32 %v5297_v7, %v5292_v33 }
0x4e55   : > { %v5294_v20 = vpop.f32.mrf.mxu1 }
0x4e56   : > { %v10649_v53 = vadd.f32 %v5298_v25, %v5195_v18  ;;  %v11028_v18 = vld [vmem:[#allocation42_spill] sm:$0xff] }
0x4e57   : > { %v7692_v45 = vpop.f32.mrf.mxu1  ;;  %v780_v17 = vadd.f32 %v11028_v18, %v8693_v27 }
0x4e58   : > { %v5310_v63 = vsel %vm950_vm4, %v10649_v53, %v5308_v0 }
0x4e59   : > { %v5311_v31 = vpack.c.bf16 %v5310_v63, %v5310_v63 }
0x4e5b   : > { %6376 = vmatmul.mubr.msk.bf16.vlgmr.msra.gmra.mxu0 %vm1099_vm6, %v5311_v31 }
0x4e5c   : > { %6944 = vmatpush3.bf16.msra.mxu0 %v10298_v11 }
0x4e5d   : > { %6945 = vmatprep.subr.bf16.mxu0 %v10304_v16 }
0x4e60   : > { %6946 = vmatpush3.bf16.msra.mxu0 %v10310_v23 }
0x4e61   : > { %6947 = vmatprep.subr.bf16.mxu0 %v10316_v40 }
0x4e64   : > { %6948 = vmatpush3.bf16.msra.mxu0 %v10322_v54 }
0x4e65   : > { %6949 = vmatprep.subr.bf16.mxu0 %v10328_v3 }
0x4e68   : > { %6950 = vmatpush3.bf16.msra.mxu0 %v10334_v42 }
0x4e69   : > { %6951 = vmatprep.subr.bf16.mxu0 %v10340_v12 }
0x4e6c   : > { %6952 = vmatpush3.bf16.msra.mxu0 %v10346_v8 }
0x4e6d   : > { %6953 = vmatprep.subr.bf16.mxu0 %v10489_v1 }
0x4e70   : > { %6954 = vmatpush3.bf16.msra.mxu0 %v10495_v29 }
0x4e71   : > { %6955 = vmatprep.subr.bf16.mxu0 %v10501_v58 }
0x4e74   : > { %6956 = vmatpush3.bf16.msra.mxu0 %v10507_v49 }
0x4e75   : > { %6957 = vmatprep.subr.bf16.mxu0 %v10513_v24 }
0x4e78   : > { %6958 = vmatpush3.bf16.msra.mxu0 %v10519_v32 }
0x4e79   : > { %7721 = vmatprep.subr.bf16.mxu0 %v10969_v9 }
0x4f1b   : > { %v5349_v19 = vpop.f32.mrf.mxu0 }
0x4f1c   : > { %v5350_v6 = vadd.f32 %v5349_v19, %v780_v17 }
0x4f1d   : > { %v5351_v35 = vpop.f32.mrf.mxu0 }
0x4f1e   : > { %v5352_v50 = vadd.f32 %v5351_v35, %v782_v55  ;;  %8036 = vtanh.f32 %v5350_v6 }
0x4f1f   : > { %v5353_v51 = vpop.f32.mrf.mxu0 }
0x4f20   : > { %8038 = vtanh.f32 %v5352_v50 }
0x4f21   : > { %v5354_v7 = vpop.f32.mrf.mxu0 }
0x4f2b   : > { %v8037_v33 = vpop.eup %8036 }
0x4f2c   : > { %v5358_v20 = vpack.c.bf16 %v8037_v33, %v8037_v33 }
0x4f2d   : > { %v8039_v28 = vpop.eup %8038 }
0x4f2e   : > { %v5359_v25 = vpack.c.bf16 %v8039_v28, %v8039_v28  ;;  %v11030_v28 = vld [vmem:[#allocation21_spill] sm:$0xff] }
0x4f30   : > { %5392 = vmatprep.mubr.bf16.mxu0 %v5359_v25  ;;  %v880_v25 = vadd.f32 %v11030_v28, %v8381_v14 }
0x4f31   : > { %5393 = vmatmul.mubr.bf16.vlgmr.msra.gmra.mxu0 %v5358_v20 }
0x4f32   : > { %7722 = vmatpush3.bf16.msra.mxu0 %v10191_v34  ;;  %7723 = vmatprep.mubr.msk.bf16.mxu0 %vm8233_vm3, %v10969_v9 }
0x4f33   : > { %7727 = vmatprep.subr.bf16.mxu0 %v10969_v9 }
0x4ff1   : > { %v6959_v0 = vpop.f32.mrf.mxu0 }
0x4ff3   : > { %v6960_v45 = vpop.f32.mrf.mxu0 }
0x4ff4   : > { %v6961_v63 = vadd.f32 %v6960_v45, %v6959_v0 }
0x4ff5   : > { %v6962_v31 = vpop.f32.mrf.mxu0 }
0x4ff6   : > { %v5395_v18 = vadd.f32 %v10534_v22, %v6961_v63 }
0x4ff7   : > { %v6963_v17 = vpop.f32.mrf.mxu0 }
0x4ff8   : > { %v6377_v19 = vmul.f32 -1.442695, %v5395_v18 }
0x4ffa   : > { %8040 = vpow2.f32 %v6377_v19 }
0x5007   : > { %v8041_v59 = vpop.eup %8040 }
0x5008   : > { %v5403_v55 = vadd.f32 1.0, %v8041_v59 }
0x500a   : > { %8042 = vrcp.f32 %v5403_v55 }
0x5017   : > { %v10679_v6 = vpop.eup %8042 }
0x5018   : > { %5407 = vrot.lane.b32.xlu1 %v10679_v6, %s8236_s19  ;;  %v5504_v59 = vsub.f32 1.0, %v10679_v6 }
0x508a   : > { %v5408_v34 = vpop.permute.xlu1 %5407 }
0x508b   : > { %v5411_v35 = vmul.f32 %v5408_v34, %v10635_v62  ;;  %v5410_v50 = vmul.f32 %v5408_v34, %v10649_v53 }
0x508d   : > { %5413 = vrot.lane.b32.xlu0 %v5411_v35, %s8234_s18 }
0x50ff   : > { %v5414_v51 = vpop.permute.xlu0 %5413 }
0x5100   : > { %v5416_v7 = vsel %vm950_vm4, %v5410_v50, %v5414_v51  ;;  %v5506_v50 = vmul.f32 %v10679_v6, %v10649_v53 }
0x5101   : > { %v5417_v33 = vpack.c.bf16 %v5416_v7, %v5416_v7 }
0x5103   : > { %7698 = vmatmul.mubr.msk.bf16.vlgmr.msra.gmra.mxu1 %vm1099_vm6, %v5417_v33 }
0x5104   : > { %7702 = vmatpush3.bf16.msra.mxu1 %v10549_v48  ;;  %7717 = vmatprep.mubr.msk.bf16.mxu1 %vm8233_vm3, %v10969_v9 }
0x5105   : > { %7703 = vmatprep.subr.bf16.mxu1 %v10969_v9 }
0x5108   : > { %7704 = vmatpush3.bf16.msra.mxu1 %v10558_v39 }
0x5109   : > { %7705 = vmatprep.subr.bf16.mxu1 %v10969_v9 }
0x510c   : > { %7706 = vmatpush3.bf16.msra.mxu1 %v10565_v56 }
0x510d   : > { %7707 = vmatprep.subr.bf16.mxu1 %v10969_v9 }
0x5110   : > { %7708 = vmatpush3.bf16.msra.mxu1 %v10572_v60 }
0x5111   : > { %7709 = vmatprep.subr.bf16.mxu1 %v10969_v9 }
0x5114   : > { %7710 = vmatpush3.bf16.msra.mxu1 %v10579_v61 }
0x5115   : > { %7711 = vmatprep.subr.bf16.mxu1 %v10969_v9 }
0x5118   : > { %7712 = vmatpush3.bf16.msra.mxu1 %v10586_v2 }
0x5119   : > { %7713 = vmatprep.subr.bf16.mxu1 %v10969_v9 }
0x511c   : > { %7714 = vmatpush3.bf16.msra.mxu1 %v10593_v47 }
0x511d   : > { %7715 = vmatprep.subr.bf16.mxu1 %v10969_v9 }
0x5120   : > { %7716 = vmatpush3.bf16.msra.mxu1 %v10600_v5 }
0x5121   : > { %5639 = vmatprep.subr.bf16.mxu1 %v10394_v37 }
0x51c3   : > { %v5455_v20 = vpop.f32.mrf.mxu1 }
0x51c4   : > { %v5456_v0 = vadd.f32 %v5455_v20, %v880_v25 }
0x51c5   : > { %v7699_v45 = vpop.f32.mrf.mxu1 }
0x51c6   : > { %8044 = vtanh.f32 %v5456_v0 }
0x51c7   : > { %v5458_v63 = vpop.f32.mrf.mxu1 }
0x51c9   : > { %v7700_v31 = vpop.f32.mrf.mxu1 }
0x51d3   : > { %v8045_v18 = vpop.eup %8044 }
0x51d4   : > { %v5462_v17 = vpack.c.bf16 %v8045_v18, %v8045_v18 }
0x51d6   : > { %7718 = vmatmul.mubr.bf16.vlgmr.msra.gmra.mxu1 %v5462_v17 }
0x51d7   : > { %5640 = vmatpush1.bf16.msra.mxu1 %v10401_v57  ;;  %5659 = vmatprep.mubr.bf16.mxu1 %v10996_v46 }
0x51d8   : > { %5641 = vmatprep.subr.bf16.mxu1 %v10408_v52 }
0x51db   : > { %5642 = vmatpush1.bf16.msra.mxu1 %v10414_v44 }
0x51dc   : > { %6984 = vmatprep.subr.bf16.mxu1 %v10420_v15 }
0x5296   : > { %v5497_v14 = vpop.f32.mrf.mxu1 }
0x5297   : > { %v5498_v19 = vadd.f32 %v10613_v41, %v5497_v14 }
0x5298   : > { %v7719_v55 = vpop.f32.mrf.mxu1 }
0x5299   : > { %v5503_v34 = vand.u32 2147483647, %v5498_v19  ;;  %v5505_v35 = vmul.f32 %v5504_v59, %v5498_v19 }
0x529a   : > { %v5500_v51 = vpop.f32.mrf.mxu1 }
0x529b   : > { %v5507_v7 = vadd.f32 %v5506_v50, %v5505_v35  ;;  %5509 = vrot.lane.b32.xlu1 %v5503_v34, %s8236_s19 }
0x529c   : > { %v7720_v33 = vpop.f32.mrf.mxu1 }
0x529d   : > { %v5516_v28 = vpack.c.bf16 %v5507_v7, %v5507_v7 }
0x529f   : > { %6379 = vst.msk [vmem:[%s8354_s16 + $0x34] sm:$0xf] %vm1461_vm7, %v5516_v28  ;;  %7724 = vmatmul.mubr.msk.bf16.vlgmr.msra.gmra.mxu0 %vm950_vm4, %v5516_v28 }
0x52a0   : > { %7728 = vmatpush3.bf16.msra.mxu0 %v10242_v26  ;;  %7735 = vmatprep.mubr.msk.bf16.mxu0 %vm8233_vm3, %v10969_v9  ;;  %v5513_v26 = vmul.f32 %v10679_v6, %v10635_v62  ;;  %v5609_v62 = vstv %s5520_s27 }
0x52a1   : > { %7729 = vmatprep.subr.bf16.mxu0 %v10969_v9 }
0x52a4   : > { %7730 = vmatpush3.bf16.msra.mxu0 %v10251_v30 }
0x52a5   : > { %7731 = vmatprep.subr.bf16.mxu0 %v10969_v9 }
0x52a8   : > { %7732 = vmatpush3.bf16.msra.mxu0 %v10258_v38 }
0x52a9   : > { %7733 = vmatprep.subr.bf16.mxu0 %v10969_v9 }
0x52ac   : > { %7734 = vmatpush3.bf16.msra.mxu0 %v10265_v21 }
0x52ad   : > { %7739 = vmatprep.subr.bf16.mxu0 %v10969_v9 }
0x530d   : > { %v5510_v53 = vpop.permute.xlu1 %5509 }
0x530e   : > { %v5512_v25 = vmul.f32 %v5510_v53, %v5504_v59 }
0x5310   : > { %v5514_v20 = vadd.f32 %v5513_v26, %v5512_v25  ;;  %v8187_v25 = vld [vmem:[%s10936_s2] sm:$0xff]  }
0x5312   : > { %v10733_v0 = vand.u32 2147483647, %v5514_v20 }
0x5314   : > { %5619 = vrot.lane.b32.xlu0 %v10733_v0, %s8234_s18 }
0x535f   : > { %v5558_v30 = vpop.f32.mrf.mxu0 }
0x5360   : > { %v5559_v38 = vadd.f32 %v10278_v13, %v5558_v30 }
0x5361   : > { %v7725_v45 = vpop.f32.mrf.mxu0 }
0x5362   : > { %8046 = vtanh.f32 %v5559_v38 }
0x5363   : > { %v5561_v21 = vpop.f32.mrf.mxu0 }
0x5365   : > { %v7726_v63 = vpop.f32.mrf.mxu0 }
0x536f   : > { %v8047_v31 = vpop.eup %8046 }
0x5370   : > { %v5565_v18 = vpack.c.bf16 %v8047_v31, %v8047_v31 }
0x5372   : > { %7736 = vmatmul.mubr.msk.bf16.vlgmr.msra.gmra.mxu0 %vm1020_vm5, %v5565_v18 }
0x5373   : > { %7740 = vmatpush3.bf16.msra.mxu0 %v10452_v4  ;;  %7743 = vmatprep.mubr.msk.bf16.mxu0 %vm8233_vm3, %v10969_v9 }
0x5374   : > { %7741 = vmatprep.subr.bf16.mxu0 %v10969_v9 }
0x5377   : > { %7742 = vmatpush3.bf16.msra.mxu0 %v10461_v10 }
0x5378   : > { %7747 = vmatprep.subr.bf16.mxu0 %v10969_v9 }
0x5386   : > { %v5620_v55 = vpop.permute.xlu0 %5619 }
0x5432   : > { %v5603_v13 = vpop.f32.mrf.mxu0 }
0x5433   : > { %v5604_v6 = vadd.f32 %v10469_v43, %v5603_v13 }
0x5434   : > { %v7737_v17 = vpop.f32.mrf.mxu0 }
0x5435   : > { %v5610_v14 = vmul.f32 %v5609_v62, %v5604_v6 }
0x5436   : > { %v5606_v19 = vpop.f32.mrf.mxu0 }
0x5437   : > { %v10747_v59 = vadd.f32 %v5610_v14, %v5507_v7 }
0x5438   : > { %v7738_v34 = vpop.f32.mrf.mxu0 }
0x5439   : > { %v5622_v35 = vsel %vm950_vm4, %v10747_v59, %v5620_v55 }
0x543a   : > { %v5623_v50 = vpack.c.bf16 %v5622_v35, %v5622_v35  ;;  %v11033_v35 = vld [vmem:[#allocation18_spill] sm:$0xff] }
0x543c   : > { %6382 = vmatmul.mubr.msk.bf16.vlgmr.msra.gmra.mxu1 %vm1099_vm6, %v5623_v50 }
0x543d   : > { %6985 = vmatpush3.bf16.msra.mxu1 %v10298_v11  ;;  %v11031_v11 = vld [vmem:[#allocation44_spill] sm:$0xff] }
0x543e   : > { %6986 = vmatprep.subr.bf16.mxu1 %v10304_v16  ;;  %v786_v16 = vadd.f32 %v11031_v11, %v8693_v27 }
0x5441   : > { %6987 = vmatpush3.bf16.msra.mxu1 %v10310_v23 }
0x5442   : > { %6988 = vmatprep.subr.bf16.mxu1 %v10316_v40  ;;  %v11032_v40 = vld [vmem:[#allocation45_spill] sm:$0xff] }
0x5445   : > { %6989 = vmatpush3.bf16.msra.mxu1 %v10322_v54  ;;  %v788_v54 = vadd.f32 %v11032_v40, %v8697_v36 }
0x5446   : > { %6990 = vmatprep.subr.bf16.mxu1 %v10328_v3 }
0x5449   : > { %6991 = vmatpush3.bf16.msra.mxu1 %v10334_v42 }
0x544a   : > { %6992 = vmatprep.subr.bf16.mxu1 %v10340_v12 }
0x544d   : > { %6993 = vmatpush3.bf16.msra.mxu1 %v10346_v8 }
0x544e   : > { %6994 = vmatprep.subr.bf16.mxu1 %v10489_v1 }
0x5451   : > { %6995 = vmatpush3.bf16.msra.mxu1 %v10495_v29 }
0x5452   : > { %6996 = vmatprep.subr.bf16.mxu1 %v10501_v58 }
0x5455   : > { %6997 = vmatpush3.bf16.msra.mxu1 %v10507_v49 }
0x5456   : > { %6998 = vmatprep.subr.bf16.mxu1 %v10513_v24 }
0x5459   : > { %6999 = vmatpush3.bf16.msra.mxu1 %v10519_v32 }
0x545a   : > { %7767 = vmatprep.subr.bf16.mxu1 %v10969_v9 }
0x54fc   : > { %v5661_v23 = vpop.f32.mrf.mxu1 }
0x54fd   : > { %v5662_v3 = vadd.f32 %v5661_v23, %v786_v16 }
0x54fe   : > { %v5663_v42 = vpop.f32.mrf.mxu1 }
0x54ff   : > { %v5664_v12 = vadd.f32 %v5663_v42, %v788_v54  ;;  %8048 = vtanh.f32 %v5662_v3 }
0x5500   : > { %v5665_v8 = vpop.f32.mrf.mxu1 }
0x5501   : > { %8050 = vtanh.f32 %v5664_v12 }
0x5502   : > { %v5666_v51 = vpop.f32.mrf.mxu1 }
0x550c   : > { %v8049_v7 = vpop.eup %8048 }
0x550d   : > { %v5670_v53 = vpack.c.bf16 %v8049_v7, %v8049_v7 }
0x550e   : > { %v8051_v33 = vpop.eup %8050 }
0x550f   : > { %v5671_v28 = vpack.c.bf16 %v8051_v33, %v8051_v33 }
0x5511   : > { %5704 = vmatprep.mubr.bf16.mxu1 %v5671_v28  ;;  %v8191_v28 = vld [vmem:[%s10938_s4] sm:$0xff]  }
0x5512   : > { %5705 = vmatmul.mubr.bf16.vlgmr.msra.gmra.mxu1 %v5670_v53 }
0x5513   : > { %7768 = vmatpush3.bf16.msra.mxu1 %v8187_v25  ;;  %7769 = vmatprep.mubr.msk.bf16.mxu1 %vm8233_vm3, %v10969_v9 }
0x5514   : > { %7773 = vmatprep.subr.bf16.mxu1 %v10969_v9 }
0x55d2   : > { %v7000_v26 = vpop.f32.mrf.mxu1 }
0x55d4   : > { %v7001_v20 = vpop.f32.mrf.mxu1 }
0x55d5   : > { %v7002_v30 = vadd.f32 %v7001_v20, %v7000_v26 }
0x55d6   : > { %v7003_v38 = vpop.f32.mrf.mxu1 }
0x55d7   : > { %v5707_v45 = vadd.f32 %v10534_v22, %v7002_v30 }
0x55d8   : > { %v7004_v21 = vpop.f32.mrf.mxu1 }
0x55d9   : > { %v6383_v63 = vmul.f32 -1.442695, %v5707_v45  ;;  %v8192_v45 = vld [vmem:[%s10937_s3] ss:$0 sm:$0xff] }
0x55db   : > { %8052 = vpow2.f32 %v6383_v63 }
0x55e8   : > { %v8053_v31 = vpop.eup %8052 }
0x55e9   : > { %v5715_v18 = vadd.f32 1.0, %v8053_v31 }
0x55eb   : > { %8054 = vrcp.f32 %v5715_v18 }
0x55f8   : > { %v10779_v13 = vpop.eup %8054 }
0x55f9   : > { %5719 = vrot.lane.b32.xlu1 %v10779_v13, %s8236_s19  ;;  %v5816_v42 = vsub.f32 1.0, %v10779_v13  ;;  %v5825_v25 = vmul.f32 %v10779_v13, %v10733_v0 }
0x566b   : > { %v5720_v62 = vpop.permute.xlu1 %5719 }
0x566c   : > { %v5723_v6 = vmul.f32 %v5720_v62, %v10733_v0  ;;  %v5722_v17 = vmul.f32 %v5720_v62, %v10747_v59 }
0x566e   : > { %5725 = vrot.lane.b32.xlu0 %v5723_v6, %s8234_s18  ;;  %v5921_v6 = vstv %s5832_s17 }
0x56e0   : > { %v5726_v14 = vpop.permute.xlu0 %5725 }
0x56e1   : > { %v5728_v19 = vsel %vm950_vm4, %v5722_v17, %v5726_v14 }
0x56e2   : > { %v5729_v55 = vpack.c.bf16 %v5728_v19, %v5728_v19 }
0x56e4   : > { %7744 = vmatmul.mubr.msk.bf16.vlgmr.msra.gmra.mxu0 %vm1099_vm6, %v5729_v55 }
0x56e5   : > { %7748 = vmatpush3.bf16.msra.mxu0 %v10549_v48  ;;  %7763 = vmatprep.mubr.msk.bf16.mxu0 %vm8233_vm3, %v10969_v9 }
0x56e6   : > { %7749 = vmatprep.subr.bf16.mxu0 %v10969_v9 }
0x56e9   : > { %7750 = vmatpush3.bf16.msra.mxu0 %v10558_v39 }
0x56ea   : > { %7751 = vmatprep.subr.bf16.mxu0 %v10969_v9 }
0x56ed   : > { %7752 = vmatpush3.bf16.msra.mxu0 %v10565_v56 }
0x56ee   : > { %7753 = vmatprep.subr.bf16.mxu0 %v10969_v9 }
0x56f1   : > { %7754 = vmatpush3.bf16.msra.mxu0 %v10572_v60 }
0x56f2   : > { %7755 = vmatprep.subr.bf16.mxu0 %v10969_v9 }
0x56f5   : > { %7756 = vmatpush3.bf16.msra.mxu0 %v10579_v61 }
0x56f6   : > { %7757 = vmatprep.subr.bf16.mxu0 %v10969_v9 }
0x56f9   : > { %7758 = vmatpush3.bf16.msra.mxu0 %v10586_v2 }
0x56fa   : > { %7759 = vmatprep.subr.bf16.mxu0 %v10969_v9 }
0x56fd   : > { %7760 = vmatpush3.bf16.msra.mxu0 %v10593_v47 }
0x56fe   : > { %7761 = vmatprep.subr.bf16.mxu0 %v10969_v9 }
0x5701   : > { %7762 = vmatpush3.bf16.msra.mxu0 %v10600_v5 }
0x5702   : > { %5951 = vmatprep.subr.bf16.mxu0 %v10394_v37 }
0x57a4   : > { %v5767_v34 = vpop.f32.mrf.mxu0 }
0x57a5   : > { %v5768_v50 = vadd.f32 %v5767_v34, %v11033_v35 }
0x57a6   : > { %v7745_v11 = vpop.f32.mrf.mxu0 }
0x57a7   : > { %8056 = vtanh.f32 %v5768_v50 }
0x57a8   : > { %v5770_v16 = vpop.f32.mrf.mxu0 }
0x57a9   : > { %v8195_v16 = vld [vmem:[%s10944_s10 + $0x30] sm:$0xff]  }
0x57aa   : > { %v7746_v23 = vpop.f32.mrf.mxu0 }
0x57ab   : > { %v8196_v23 = vld [vmem:[%s10944_s10 + $0x68] sm:$0xff]  }
0x57b4   : > { %v8057_v40 = vpop.eup %8056 }
0x57b5   : > { %v5774_v54 = vpack.c.bf16 %v8057_v40, %v8057_v40  ;;  %v8197_v40 = vld [vmem:[%s10944_s10 + $0x28] sm:$0xff]  }
0x57b7   : > { %7764 = vmatmul.mubr.bf16.vlgmr.msra.gmra.mxu0 %v5774_v54  ;;  %v8198_v54 = vld [vmem:[%s10944_s10 + $0x60] sm:$0xff]  }
0x57b8   : > { %5952 = vmatpush1.bf16.msra.mxu0 %v10401_v57  ;;  %5971 = vmatprep.mubr.bf16.mxu0 %v10996_v46  ;;  %v5818_v57 = vmul.f32 %v10779_v13, %v10747_v59  ;;  %v8190_v59 = vld [vmem:[%s10938_s4 + $0x8] sm:$0xff]  }
0x57b9   : > { %5953 = vmatprep.subr.bf16.mxu0 %v10408_v52 }
0x57bc   : > { %5954 = vmatpush1.bf16.msra.mxu0 %v10414_v44  ;;  %v8188_v44 = vld [vmem:[%s10938_s4 + $0x18] sm:$0xff]  }
0x57bd   : > { %7025 = vmatprep.subr.bf16.mxu0 %v10420_v15  ;;  %v8189_v15 = vld [vmem:[%s10938_s4 + $0x10] sm:$0xff]  }
0x5877   : > { %v5809_v37 = vpop.f32.mrf.mxu0 }
0x5878   : > { %v5810_v3 = vadd.f32 %v10613_v41, %v5809_v37  ;;  %v8199_v37 = vld [vmem:[%s10944_s10 + $0x20] sm:$0xff]  }
0x5879   : > { %v7765_v12 = vpop.f32.mrf.mxu0 }
0x587a   : > { %v5815_v8 = vand.u32 2147483647, %v5810_v3  ;;  %v5817_v51 = vmul.f32 %v5816_v42, %v5810_v3  ;;  %v8200_v3 = vld [vmem:[%s10944_s10 + $0x58] sm:$0xff]   ;;  %v11034_v12 = vld [vmem:[#allocation46_spill] sm:$0xff] }
0x587b   : > { %v5812_v7 = vpop.f32.mrf.mxu0 }
0x587c   : > { %v5819_v46 = vadd.f32 %v5818_v57, %v5817_v51  ;;  %5821 = vrot.lane.b32.xlu1 %v5815_v8, %s8236_s19  ;;  %v790_v8 = vadd.f32 %v11034_v12, %v8693_v27  ;;  %v11035_v57 = vld [vmem:[#allocation47_spill] sm:$0xff] }
0x587d   : > { %v7766_v52 = vpop.f32.mrf.mxu0  ;;  %v792_v7 = vadd.f32 %v11035_v57, %v8697_v36 }
0x587e   : > { %v5828_v33 = vpack.c.bf16 %v5819_v46, %v5819_v46 }
0x5880   : > { %6385 = vst.msk [vmem:[%s8354_s16 + $0x38] sm:$0xf] %vm1461_vm7, %v5828_v33  ;;  %7770 = vmatmul.mubr.msk.bf16.vlgmr.msra.gmra.mxu1 %vm950_vm4, %v5828_v33 }
0x5881   : > { %7774 = vmatpush3.bf16.msra.mxu1 %v8188_v44  ;;  %7781 = vmatprep.mubr.msk.bf16.mxu1 %vm8233_vm3, %v10969_v9 }
0x5882   : > { %7775 = vmatprep.subr.bf16.mxu1 %v10969_v9 }
0x5885   : > { %7776 = vmatpush3.bf16.msra.mxu1 %v8189_v15 }
0x5886   : > { %7777 = vmatprep.subr.bf16.mxu1 %v10969_v9 }
0x5889   : > { %7778 = vmatpush3.bf16.msra.mxu1 %v8190_v59 }
0x588a   : > { %7779 = vmatprep.subr.bf16.mxu1 %v10969_v9 }
0x588d   : > { %7780 = vmatpush3.bf16.msra.mxu1 %v8191_v28 }
0x588e   : > { %7785 = vmatprep.subr.bf16.mxu1 %v10969_v9 }
0x58ee   : > { %v5822_v53 = vpop.permute.xlu1 %5821 }
0x58ef   : > { %v5824_v26 = vmul.f32 %v5822_v53, %v5816_v42  ;;  %v8201_v42 = vld [vmem:[%s10944_s10 + $0x18] sm:$0xff]  }
0x58f1   : > { %v5826_v20 = vadd.f32 %v5825_v25, %v5824_v26 }
0x58f3   : > { %v10840_v30 = vand.u32 2147483647, %v5826_v20 }
0x58f5   : > { %5931 = vrot.lane.b32.xlu0 %v10840_v30, %s8234_s18 }
0x5940   : > { %v5870_v38 = vpop.f32.mrf.mxu1 }
0x5941   : > { %v5871_v21 = vadd.f32 %v8192_v45, %v5870_v38 }
0x5942   : > { %v7771_v63 = vpop.f32.mrf.mxu1 }
0x5943   : > { %8058 = vtanh.f32 %v5871_v21 }
0x5944   : > { %v5873_v31 = vpop.f32.mrf.mxu1 }
0x5946   : > { %v7772_v18 = vpop.f32.mrf.mxu1 }
0x5950   : > { %v8059_v62 = vpop.eup %8058 }
0x5951   : > { %v5877_v0 = vpack.c.bf16 %v8059_v62, %v8059_v62 }
0x5953   : > { %7782 = vmatmul.mubr.msk.bf16.vlgmr.msra.gmra.mxu1 %vm1020_vm5, %v5877_v0 }
0x5954   : > { %7786 = vmatpush3.bf16.msra.mxu1 %v10452_v4  ;;  %7789 = vmatprep.mubr.msk.bf16.mxu1 %vm8233_vm3, %v10969_v9 }
0x5955   : > { %7787 = vmatprep.subr.bf16.mxu1 %v10969_v9 }
0x5958   : > { %7788 = vmatpush3.bf16.msra.mxu1 %v10461_v10  ;;  %v8193_v10 = vld [vmem:[%s10944_s10 + $0x38] sm:$0xff]  }
0x5959   : > { %7793 = vmatprep.subr.bf16.mxu1 %v10969_v9 }
0x5967   : > { %v5932_v4 = vpop.permute.xlu0 %5931 }
0x5a13   : > { %v5915_v13 = vpop.f32.mrf.mxu1 }
0x5a14   : > { %v5916_v17 = vadd.f32 %v10469_v43, %v5915_v13  ;;  %v8194_v43 = vld [vmem:[%s10944_s10 + $0x70] sm:$0xff]  }
0x5a15   : > { %v7783_v14 = vpop.f32.mrf.mxu1 }
0x5a16   : > { %v5922_v19 = vmul.f32 %v5921_v6, %v5916_v17 }
0x5a17   : > { %v5918_v55 = vpop.f32.mrf.mxu1 }
0x5a18   : > { %v10856_v34 = vadd.f32 %v5922_v19, %v5819_v46 }
0x5a19   : > { %v7784_v35 = vpop.f32.mrf.mxu1 }
0x5a1a   : > { %v5934_v50 = vsel %vm950_vm4, %v10856_v34, %v5932_v4 }
0x5a1b   : > { %v5935_v11 = vpack.c.bf16 %v5934_v50, %v5934_v50 }
0x5a1d   : > { %6388 = vmatmul.mubr.msk.bf16.vlgmr.msra.gmra.mxu0 %vm1099_vm6, %v5935_v11 }
0x5a1e   : > { %7026 = vmatpush3.bf16.msra.mxu0 %v8193_v10 }
0x5a1f   : > { %7027 = vmatprep.subr.bf16.mxu0 %v8194_v43 }
0x5a22   : > { %7028 = vmatpush3.bf16.msra.mxu0 %v8195_v16 }
0x5a23   : > { %7029 = vmatprep.subr.bf16.mxu0 %v8196_v23 }
0x5a26   : > { %7030 = vmatpush3.bf16.msra.mxu0 %v8197_v40 }
0x5a27   : > { %7031 = vmatprep.subr.bf16.mxu0 %v8198_v54 }
0x5a2a   : > { %7032 = vmatpush3.bf16.msra.mxu0 %v8199_v37 }
0x5a2b   : > { %7033 = vmatprep.subr.bf16.mxu0 %v8200_v3 }
0x5a2e   : > { %7034 = vmatpush3.bf16.msra.mxu0 %v8201_v42 }
0x5a2f   : > { %7035 = vmatprep.subr.bf16.mxu0 %v10489_v1 }
0x5a32   : > { %7036 = vmatpush3.bf16.msra.mxu0 %v10495_v29 }
0x5a33   : > { %7037 = vmatprep.subr.bf16.mxu0 %v10501_v58 }
0x5a36   : > { %7038 = vmatpush3.bf16.msra.mxu0 %v10507_v49 }
0x5a37   : > { %7039 = vmatprep.subr.bf16.mxu0 %v10513_v24 }
0x5a3a   : > { %7040 = vmatpush3.bf16.msra.mxu0 %v10519_v32 }
0x5add   : > { %v5973_v51 = vpop.f32.mrf.mxu0 }
0x5ade   : > { %v5974_v46 = vadd.f32 %v5973_v51, %v790_v8 }
0x5adf   : > { %v5975_v52 = vpop.f32.mrf.mxu0 }
0x5ae0   : > { %v5976_v1 = vadd.f32 %v5975_v52, %v792_v7  ;;  %8060 = vtanh.f32 %v5974_v46 }
0x5ae1   : > { %v5977_v29 = vpop.f32.mrf.mxu0 }
0x5ae2   : > { %8062 = vtanh.f32 %v5976_v1 }
0x5ae3   : > { %v5978_v58 = vpop.f32.mrf.mxu0 }
0x5aed   : > { %v8061_v33 = vpop.eup %8060 }
0x5aee   : > { %v5982_v24 = vpack.c.bf16 %v8061_v33, %v8061_v33 }
0x5aef   : > { %v8063_v49 = vpop.eup %8062 }
0x5af0   : > { %v5983_v44 = vpack.c.bf16 %v8063_v49, %v8063_v49 }
0x5af2   : > { %6016 = vmatprep.mubr.bf16.mxu0 %v5983_v44 }
0x5af3   : > { %6017 = vmatmul.mubr.bf16.vlgmr.msra.gmra.mxu0 %v5982_v24 }
0x5bb3   : > { %v7041_v32 = vpop.f32.mrf.mxu0 }
0x5bb5   : > { %v7042_v15 = vpop.f32.mrf.mxu0 }
0x5bb6   : > { %v7043_v27 = vadd.f32 %v7042_v15, %v7041_v32 }
0x5bb7   : > { %v7044_v59 = vpop.f32.mrf.mxu0 }
0x5bb8   : > { %v6019_v28 = vadd.f32 %v10534_v22, %v7043_v27 }
0x5bb9   : > { %v7045_v36 = vpop.f32.mrf.mxu0 }
0x5bba   : > { %v6389_v53 = vmul.f32 -1.442695, %v6019_v28 }
0x5bbc   : > { %8064 = vpow2.f32 %v6389_v53 }
0x5bc9   : > { %v8065_v25 = vpop.eup %8064 }
0x5bca   : > { %v6027_v26 = vadd.f32 1.0, %v8065_v25 }
0x5bcc   : > { %8066 = vrcp.f32 %v6027_v26 }
0x5bd9   : > { %v8067_v20 = vpop.eup %8066 }
0x5bda   : > { %6031 = vrot.lane.b32.xlu1 %v8067_v20, %s8236_s19  ;;  %v6128_v6 = vsub.f32 1.0, %v8067_v20 }
0x5c4c   : > { %v6032_v38 = vpop.permute.xlu1 %6031 }
0x5c4d   : > { %v6035_v45 = vmul.f32 %v6032_v38, %v10840_v30  ;;  %v6034_v21 = vmul.f32 %v6032_v38, %v10856_v34 }
0x5c4f   : > { %6037 = vrot.lane.b32.xlu0 %v6035_v45, %s8234_s18 }
0x5cc1   : > { %v6038_v63 = vpop.permute.xlu0 %6037 }
0x5cc2   : > { %v6040_v31 = vsel %vm950_vm4, %v6034_v21, %v6038_v63 }
0x5cc3   : > { %v6041_v22 = vpack.c.bf16 %v6040_v31, %v6040_v31 }
0x5cc5   : > { %7790 = vmatmul.mubr.msk.bf16.vlgmr.msra.gmra.mxu1 %vm1099_vm6, %v6041_v22 }
0x5cc6   : > { %7794 = vmatpush3.bf16.msra.mxu1 %v10549_v48  ;;  %7809 = vmatprep.mubr.msk.bf16.mxu1 %vm8233_vm3, %v10969_v9 }
0x5cc7   : > { %7795 = vmatprep.subr.bf16.mxu1 %v10969_v9 }
0x5cca   : > { %7796 = vmatpush3.bf16.msra.mxu1 %v10558_v39  ;;  %v11036_v39 = vld [vmem:[#allocation20_spill] sm:$0xff] }
0x5ccb   : > { %7797 = vmatprep.subr.bf16.mxu1 %v10969_v9 }
0x5cce   : > { %7798 = vmatpush3.bf16.msra.mxu1 %v10565_v56 }
0x5ccf   : > { %7799 = vmatprep.subr.bf16.mxu1 %v10969_v9 }
0x5cd2   : > { %7800 = vmatpush3.bf16.msra.mxu1 %v10572_v60 }
0x5cd3   : > { %7801 = vmatprep.subr.bf16.mxu1 %v10969_v9 }
0x5cd6   : > { %7802 = vmatpush3.bf16.msra.mxu1 %v10579_v61 }
0x5cd7   : > { %7803 = vmatprep.subr.bf16.mxu1 %v10969_v9 }
0x5cda   : > { %7804 = vmatpush3.bf16.msra.mxu1 %v10586_v2 }
0x5cdb   : > { %7805 = vmatprep.subr.bf16.mxu1 %v10969_v9 }
0x5cde   : > { %7806 = vmatpush3.bf16.msra.mxu1 %v10593_v47 }
0x5cdf   : > { %7807 = vmatprep.subr.bf16.mxu1 %v10969_v9 }
0x5ce2   : > { %7808 = vmatpush3.bf16.msra.mxu1 %v10600_v5  ;;  %v6130_v5 = vmul.f32 %v8067_v20, %v10856_v34 }
0x5d85   : > { %v6079_v48 = vpop.f32.mrf.mxu1 }
0x5d86   : > { %v6080_v56 = vadd.f32 %v6079_v48, %v11036_v39 }
0x5d87   : > { %v7791_v60 = vpop.f32.mrf.mxu1 }
0x5d88   : > { %8068 = vtanh.f32 %v6080_v56 }
0x5d89   : > { %v6082_v18 = vpop.f32.mrf.mxu1 }
0x5d8b   : > { %v7792_v62 = vpop.f32.mrf.mxu1 }
0x5d95   : > { %v8069_v61 = vpop.eup %8068 }
0x5d96   : > { %v6086_v0 = vpack.c.bf16 %v8069_v61, %v8069_v61 }
0x5d98   : > { %7810 = vmatmul.mubr.bf16.vlgmr.msra.gmra.mxu1 %v6086_v0 }
0x5e58   : > { %v6121_v2 = vpop.f32.mrf.mxu1 }
0x5e59   : > { %v6122_v13 = vadd.f32 %v10613_v41, %v6121_v2  ;;  %v6137_v41 = vmul.f32 %v8067_v20, %v10840_v30 }
0x5e5a   : > { %v7811_v47 = vpop.f32.mrf.mxu1 }
0x5e5b   : > { %v6127_v17 = vand.u32 2147483647, %v6122_v13  ;;  %v6129_v9 = vmul.f32 %v6128_v6, %v6122_v13 }
0x5e5c   : > { %v6124_v14 = vpop.f32.mrf.mxu1 }
0x5e5d   : > { %v6131_v19 = vadd.f32 %v6130_v5, %v6129_v9  ;;  %6133 = vrot.lane.b32.xlu1 %v6127_v17, %s8236_s19 }
0x5e5e   : > { %v7812_v55 = vpop.f32.mrf.mxu1 }
0x5e5f   : > { %v6140_v4 = vpack.c.bf16 %v6131_v19, %v6131_v19  ;;  %6143 = vst.msk [vmem:[#allocation3] sm:$0xff] %vm950_vm4, %v6131_v19 }
0x5e61   : > { %6391 = vst.msk [vmem:[%s8354_s16 + $0x3c] sm:$0xf] %vm1461_vm7, %v6140_v4 }
0x5ecf   : > { %v6134_v35 = vpop.permute.xlu1 %6133 }
0x5ed0   : > { %v6136_v50 = vmul.f32 %v6134_v35, %v6128_v6 }
0x5ed2   : > { %v6138_v11 = vadd.f32 %v6137_v41, %v6136_v50 }
0x5ed4   : > { %v6139_v10 = vand.u32 2147483647, %v6138_v11 }
0x5ed6   : > { %6144 = vst.msk [vmem:[#allocation4] sm:$0xff] %vm950_vm4, %v6139_v10 }
0x5ed7 PF: > { %s25_s29 = sadd.s32 1, %s8227_s29  }
0x5ed8   : > { %p22_p2 = scmp.ge.s32.totalorder %s25_s29, 4  }
0x5eda   :  { %24 = sbr.rel (!%p22_p2) target bundleno = 1 (0x1), region = 146 }
0x5edf   :  { %6167 = vsyncpa [#allocation6], 1 }
0x5ee0   :  { %6169 = vsyncpa [#allocation6 + $0x1], 1 }

</bundles_post_ra>
